<compile_context>
chip_gen: v7x
topology: tpu7x:2x2x1
jax: 0.10.0
libtpu: 0.0.40
codegen_flags: <defaults>
</compile_context>

<pallas_src>
import jax
import jax.numpy as jnp
from jax.experimental import pallas as pl
from jax.experimental.pallas import tpu as pltpu

_C = 128  # all channel dims are zero-padded to one full lane tile


# ---------------------------------------------------------------------------
# In-kernel helpers (traced inside the fused kernel body)
# ---------------------------------------------------------------------------

def _sigmoid(x):
    # exp on the EUP; approx reciprocal keeps the divide off the VALU.
    return pl.reciprocal(1.0 + jnp.exp(-x), approx=True)


def _silu(x):
    return x * _sigmoid(x)


def _mm(x, w_ref, b_ref):
    # [M, 128] @ [128, 128] + [1, 128]  (conv-as-matmul, BN folded into bias).
    return jnp.dot(x, w_ref[...], preferred_element_type=jnp.float32) + b_ref[...]


def _fill_padded(xpad_ref, x_flat, H, W):
    # x_flat: [H*W, 128] value (rows ordered h-major, w-minor) -> zero-padded
    # [H+2, W+2, 128] VMEM scratch (spatial pad = 1), filled row by row.
    Hp, Wp = H + 2, W + 2
    xpad_ref[...] = jnp.zeros((Hp, Wp, _C), jnp.float32)
    for h in range(H):
        xpad_ref[h + 1, 1:1 + W, :] = x_flat[h * W:(h + 1) * W, :]


def _dwconv3x3_s1(xpad_ref, dwflat_ref, dw_w_ref, dw_b_ref, H, W):
    # Stride-1 3x3 depthwise conv + BN(bias) + SiLU: 9 contiguous-slab taps,
    # result written back as a flat [H*W, 128] slab for the following matmuls.
    acc = jnp.zeros((H, W, _C), jnp.float32)
    for k in range(9):
        ky, kx = k // 3, k % 3
        acc = acc + xpad_ref[ky:ky + H, kx:kx + W, :] * dw_w_ref[k, :]
    act = _silu(acc + dw_b_ref[...])
    for h in range(H):
        dwflat_ref[h * W:(h + 1) * W, :] = act[h]


def _dwconv3x3_s2(xpad_ref, dwflat_ref, dw_w_ref, dw_b_ref, H, W):
    # Stride-2 3x3 depthwise conv computed directly at output resolution
    # (no full-res intermediate, no XLA subsample).  Each output position is a
    # full 128-lane vector; taps are scalar-indexed rows of the padded scratch.
    Ho, Wo = H // 2, W // 2
    for i in range(Ho):
        accs = [jnp.zeros((_C,), jnp.float32) for _ in range(Wo)]
        for ky in range(3):
            row = xpad_ref[2 * i + ky, :, :]              # [W+2, 128]
            for kx in range(3):
                wk = dw_w_ref[3 * ky + kx, :]             # [128]
                for j in range(Wo):
                    accs[j] = accs[j] + row[2 * j + kx, :] * wk
        for j in range(Wo):
            dwflat_ref[i * Wo + j, :] = _silu(accs[j] + dw_b_ref[0, :])


def _se_gate(x_flat, s1w, s1b, s2w, s2b):
    # Squeeze-excite: global average pool as a sublane-axis reduction (channels stay
    # lane-resident), then two tiny lane-dense FCs.
    pooled = jnp.mean(x_flat, axis=0, keepdims=True)      # [1, 128]
    s = _silu(_mm(pooled, s1w, s1b))
    return _sigmoid(_mm(s, s2w, s2b))                     # [1, 128] channel gate


# ---------------------------------------------------------------------------
# The fused forward kernel (one grid step = one batch sample)
# ---------------------------------------------------------------------------

def _fwd_kernel(*refs):
    (patches_ref, stem_w, stem_b,
     b1_dw_w, b1_dw_b, b1_s1w, b1_s1b, b1_s2w, b1_s2b, b1_pw_w, b1_pw_b,
     b2_ex_w, b2_ex_b, b2_dw_w, b2_dw_b, b2_s1w, b2_s1b, b2_s2w, b2_s2b, b2_pw_w, b2_pw_b,
     b3_ex_w, b3_ex_b, b3_dw_w, b3_dw_b, b3_s1w, b3_s1b, b3_s2w, b3_s2b, b3_pw_w, b3_pw_b,
     head_w, head_b, cls_w, cls_b,
     out_ref,
     xpad1, xpad2, xpad3, dwflat1, dwflat2, dwflat3) = refs

    # --- encoder.stem: 3x3 stride-2 conv (im2col'd in the wrapper) + BN + SiLU ---
    x = _silu(_mm(patches_ref[0], stem_w, stem_b))                 # [64, 128], 8x8 map

    # --- block1: depthwise-separable (no expand), stride 1, SE, residual ---
    _fill_padded(xpad1, x, 8, 8)
    _dwconv3x3_s1(xpad1, dwflat1, b1_dw_w, b1_dw_b, 8, 8)
    xd = dwflat1[...]                                              # [64, 128]
    g = _se_gate(xd, b1_s1w, b1_s1b, b1_s2w, b1_s2b)
    x = _mm(xd * g, b1_pw_w, b1_pw_b) + x                          # residual (Cin==Cout, s=1)

    # --- block2: MBConv expand 16->64, stride-2 depthwise, SE, project -> 24 (no residual) ---
    h = _silu(_mm(x, b2_ex_w, b2_ex_b))                            # [64, 128]
    _fill_padded(xpad2, h, 8, 8)
    _dwconv3x3_s2(xpad2, dwflat2, b2_dw_w, b2_dw_b, 8, 8)
    xd = dwflat2[...]                                              # [16, 128], 4x4 map
    g = _se_gate(xd, b2_s1w, b2_s1b, b2_s2w, b2_s2b)
    x = _mm(xd * g, b2_pw_w, b2_pw_b)

    # --- block3: MBConv expand 24->96, stride-1 depthwise, SE, project -> 24, residual ---
    h = _silu(_mm(x, b3_ex_w, b3_ex_b))                            # [16, 128]
    _fill_padded(xpad3, h, 4, 4)
    _dwconv3x3_s1(xpad3, dwflat3, b3_dw_w, b3_dw_b, 4, 4)
    xd = dwflat3[...]
    g = _se_gate(xd, b3_s1w, b3_s1b, b3_s2w, b3_s2b)
    x = _mm(xd * g, b3_pw_w, b3_pw_b) + x

    # --- encoder.head (1x1 conv + BN + SiLU) + classifier (global pool + Linear) ---
    hfeat = _silu(_mm(x, head_w, head_b))                          # [16, 128]
    pooled = jnp.mean(hfeat, axis=0, keepdims=True)                # [1, 128]
    out_ref[0] = _mm(pooled, cls_w, cls_b)                         # padded logit row (lane 0 real)


# ---------------------------------------------------------------------------
# Wrapper: one pallas_call for the whole forward
# ---------------------------------------------------------------------------

_PARAM_ORDER = (
    "stem_w", "stem_b",
    "b1_dw_w", "b1_dw_b", "b1_se1_w", "b1_se1_b", "b1_se2_w", "b1_se2_b", "b1_pw_w", "b1_pw_b",
    "b2_exp_w", "b2_exp_b", "b2_dw_w", "b2_dw_b", "b2_se1_w", "b2_se1_b", "b2_se2_w", "b2_se2_b",
    "b2_pw_w", "b2_pw_b",
    "b3_exp_w", "b3_exp_b", "b3_dw_w", "b3_dw_b", "b3_se1_w", "b3_se1_b", "b3_se2_w", "b3_se2_b",
    "b3_pw_w", "b3_pw_b",
    "head_w", "head_b", "cls_w", "cls_b",
)


def efficientnet_forward(x_nchw, params):
    B, Cin, H, W = x_nchw.shape
    assert (H, W, Cin) == (16, 16, 3), "scaled-down config expects 3x16x16 inputs"
    Ho, Wo = H // 2, W // 2                                        # stem is stride 2

    # Stem im2col (host-side XLA data movement only; tap order = (ky,kx)-major, channel-minor,
    # matching the synthetic stem weight layout).  K is padded 27 -> 32.
    x = jnp.transpose(x_nchw, (0, 2, 3, 1))                        # NCHW -> NHWC, once
    xp = jnp.pad(x, ((0, 0), (1, 1), (1, 1), (0, 0)))
    cols = [xp[:, ky:ky + 2 * Ho:2, kx:kx + 2 * Wo:2, :]
            for ky in range(3) for kx in range(3)]
    patches = jnp.concatenate(cols, axis=-1).reshape(B, Ho * Wo, 9 * Cin)
    patches = jnp.pad(patches, ((0, 0), (0, 0), (0, 32 - 9 * Cin)))

    weights = [params[k] for k in _PARAM_ORDER]
    in_specs = [pl.BlockSpec((1, Ho * Wo, 32), lambda b: (b, 0, 0))]
    in_specs += [pl.BlockSpec(w.shape, lambda b, n=w.ndim: (0,) * n) for w in weights]

    out = pl.pallas_call(
        _fwd_kernel,
        out_shape=jax.ShapeDtypeStruct((B, 1, _C), jnp.float32),
        grid=(B,),
        in_specs=in_specs,
        out_specs=pl.BlockSpec((1, 1, _C), lambda b: (b, 0, 0)),
        scratch_shapes=[
            pltpu.VMEM((10, 10, _C), jnp.float32),   # block1 padded dw input (8x8 + halo)
            pltpu.VMEM((10, 10, _C), jnp.float32),   # block2 padded dw input (8x8 + halo)
            pltpu.VMEM((6, 6, _C), jnp.float32),     # block3 padded dw input (4x4 + halo)
            pltpu.VMEM((64, _C), jnp.float32),       # block1 dw output, flat [H*W, C]
            pltpu.VMEM((16, _C), jnp.float32),       # block2 dw output, flat (stride-2 -> 4x4)
            pltpu.VMEM((16, _C), jnp.float32),       # block3 dw output, flat
        ],
        compiler_params=pltpu.CompilerParams(dimension_semantics=("parallel",)),
    )(patches, *weights)

    return out[:, 0, :1]                                           # [B, 1] real logit (lane 0)


# ---------------------------------------------------------------------------
# Deterministic parameter init: BN folded into conv scale/bias, all channel dims
# zero-padded to 128 so the kernel is uniformly lane-dense.
# ---------------------------------------------------------------------------

def init_params(key):
    keys = iter(jax.random.split(key, 64))

    def lin(cin, cout, krows=_C):
        w = jax.random.normal(next(keys), (cin, cout), jnp.float32) * (cin ** -0.5)
        return jnp.zeros((krows, _C), jnp.float32).at[:cin, :cout].set(w)

    def bias(n):
        b = jax.random.normal(next(keys), (n,), jnp.float32) * 0.01
        return jnp.zeros((1, _C), jnp.float32).at[0, :n].set(b)

    def dw(c):
        w = jax.random.normal(next(keys), (9, c), jnp.float32) * (1.0 / 3.0)
        return jnp.zeros((9, _C), jnp.float32).at[:, :c].set(w)

    p = {}
    p["stem_w"], p["stem_b"] = lin(27, 16, krows=32), bias(16)
    # block1: DS conv 16->16, SE 16->4->16, stride 1, residual (Cin==Cout, s=1 by construction)
    p["b1_dw_w"], p["b1_dw_b"] = dw(16), bias(16)
    p["b1_se1_w"], p["b1_se1_b"] = lin(16, 4), bias(4)
    p["b1_se2_w"], p["b1_se2_b"] = lin(4, 16), bias(16)
    p["b1_pw_w"], p["b1_pw_b"] = lin(16, 16), bias(16)
    # block2: expand 16->64, stride-2 dw, SE 64->4->64, project -> 24, no residual
    p["b2_exp_w"], p["b2_exp_b"] = lin(16, 64), bias(64)
    p["b2_dw_w"], p["b2_dw_b"] = dw(64), bias(64)
    p["b2_se1_w"], p["b2_se1_b"] = lin(64, 4), bias(4)
    p["b2_se2_w"], p["b2_se2_b"] = lin(4, 64), bias(64)
    p["b2_pw_w"], p["b2_pw_b"] = lin(64, 24), bias(24)
    # block3: expand 24->96, stride-1 dw, SE 96->6->96, project -> 24, residual
    p["b3_exp_w"], p["b3_exp_b"] = lin(24, 96), bias(96)
    p["b3_dw_w"], p["b3_dw_b"] = dw(96), bias(96)
    p["b3_se1_w"], p["b3_se1_b"] = lin(96, 6), bias(6)
    p["b3_se2_w"], p["b3_se2_b"] = lin(6, 96), bias(96)
    p["b3_pw_w"], p["b3_pw_b"] = lin(96, 24), bias(24)
    # encoder.head 1x1 conv 24->64 + classifier Linear(64 -> num_classes=1)
    p["head_w"], p["head_b"] = lin(24, 64), bias(64)
    p["cls_w"], p["cls_b"] = lin(64, 1), bias(1)
    return p


if __name__ == "__main__":
    key = jax.random.PRNGKey(0)
    pkey, xkey = jax.random.split(key)
    params = init_params(pkey)
    x = jax.random.normal(xkey, (2, 3, 16, 16), jnp.float32)   # NCHW, like the PyTorch module

    fwd = jax.jit(lambda inp: efficientnet_forward(inp, params))
    out = jax.block_until_ready(fwd(x))
    assert out.shape == (2, 1), out.shape
    assert bool(jnp.all(jnp.isfinite(out)))
    print("KERNEL_OK")
</pallas_src>

<mosaic_0001>
module attributes {stable_mosaic.version = 11 : i64} {
  func.func @_fwd_kernel(%arg0: i32, %arg1: memref<1x64x32xf32, #tpu.memory_space<vmem>>, %arg2: memref<32x128xf32, #tpu.memory_space<vmem>>, %arg3: memref<1x128xf32, #tpu.memory_space<vmem>>, %arg4: memref<9x128xf32, #tpu.memory_space<vmem>>, %arg5: memref<1x128xf32, #tpu.memory_space<vmem>>, %arg6: memref<128x128xf32, #tpu.memory_space<vmem>>, %arg7: memref<1x128xf32, #tpu.memory_space<vmem>>, %arg8: memref<128x128xf32, #tpu.memory_space<vmem>>, %arg9: memref<1x128xf32, #tpu.memory_space<vmem>>, %arg10: memref<128x128xf32, #tpu.memory_space<vmem>>, %arg11: memref<1x128xf32, #tpu.memory_space<vmem>>, %arg12: memref<128x128xf32, #tpu.memory_space<vmem>>, %arg13: memref<1x128xf32, #tpu.memory_space<vmem>>, %arg14: memref<9x128xf32, #tpu.memory_space<vmem>>, %arg15: memref<1x128xf32, #tpu.memory_space<vmem>>, %arg16: memref<128x128xf32, #tpu.memory_space<vmem>>, %arg17: memref<1x128xf32, #tpu.memory_space<vmem>>, %arg18: memref<128x128xf32, #tpu.memory_space<vmem>>, %arg19: memref<1x128xf32, #tpu.memory_space<vmem>>, %arg20: memref<128x128xf32, #tpu.memory_space<vmem>>, %arg21: memref<1x128xf32, #tpu.memory_space<vmem>>, %arg22: memref<128x128xf32, #tpu.memory_space<vmem>>, %arg23: memref<1x128xf32, #tpu.memory_space<vmem>>, %arg24: memref<9x128xf32, #tpu.memory_space<vmem>>, %arg25: memref<1x128xf32, #tpu.memory_space<vmem>>, %arg26: memref<128x128xf32, #tpu.memory_space<vmem>>, %arg27: memref<1x128xf32, #tpu.memory_space<vmem>>, %arg28: memref<128x128xf32, #tpu.memory_space<vmem>>, %arg29: memref<1x128xf32, #tpu.memory_space<vmem>>, %arg30: memref<128x128xf32, #tpu.memory_space<vmem>>, %arg31: memref<1x128xf32, #tpu.memory_space<vmem>>, %arg32: memref<128x128xf32, #tpu.memory_space<vmem>>, %arg33: memref<1x128xf32, #tpu.memory_space<vmem>>, %arg34: memref<128x128xf32, #tpu.memory_space<vmem>>, %arg35: memref<1x128xf32, #tpu.memory_space<vmem>>, %arg36: memref<1x1x128xf32, #tpu.memory_space<vmem>>, %arg37: memref<10x10x128xf32, #tpu.memory_space<vmem>>, %arg38: memref<10x10x128xf32, #tpu.memory_space<vmem>>, %arg39: memref<6x6x128xf32, #tpu.memory_space<vmem>>, %arg40: memref<64x128xf32, #tpu.memory_space<vmem>>, %arg41: memref<16x128xf32, #tpu.memory_space<vmem>>, %arg42: memref<16x128xf32, #tpu.memory_space<vmem>>) attributes {dimension_semantics = [#tpu.dimension_semantics<parallel>], iteration_bounds = array<i64: 2>, scalar_prefetch = 0 : i64, scratch_operands = 6 : i64, tpu.core_type = #tpu.core_type<tc>, window_params = [{transform_indices = @transform_0, window_bounds = array<i64: 1, 64, 32>}, {pipeline_mode = #tpu.pipeline_mode<synchronous>, transform_indices = @transform_1, window_bounds = array<i64: 32, 128>}, {pipeline_mode = #tpu.pipeline_mode<synchronous>, transform_indices = @transform_2, window_bounds = array<i64: 1, 128>}, {pipeline_mode = #tpu.pipeline_mode<synchronous>, transform_indices = @transform_3, window_bounds = array<i64: 9, 128>}, {pipeline_mode = #tpu.pipeline_mode<synchronous>, transform_indices = @transform_4, window_bounds = array<i64: 1, 128>}, {pipeline_mode = #tpu.pipeline_mode<synchronous>, transform_indices = @transform_5, window_bounds = array<i64: 128, 128>}, {pipeline_mode = #tpu.pipeline_mode<synchronous>, transform_indices = @transform_6, window_bounds = array<i64: 1, 128>}, {pipeline_mode = #tpu.pipeline_mode<synchronous>, transform_indices = @transform_7, window_bounds = array<i64: 128, 128>}, {pipeline_mode = #tpu.pipeline_mode<synchronous>, transform_indices = @transform_8, window_bounds = array<i64: 1, 128>}, {pipeline_mode = #tpu.pipeline_mode<synchronous>, transform_indices = @transform_9, window_bounds = array<i64: 128, 128>}, {pipeline_mode = #tpu.pipeline_mode<synchronous>, transform_indices = @transform_10, window_bounds = array<i64: 1, 128>}, {pipeline_mode = #tpu.pipeline_mode<synchronous>, transform_indices = @transform_11, window_bounds = array<i64: 128, 128>}, {pipeline_mode = #tpu.pipeline_mode<synchronous>, transform_indices = @transform_12, window_bounds = array<i64: 1, 128>}, {pipeline_mode = #tpu.pipeline_mode<synchronous>, transform_indices = @transform_13, window_bounds = array<i64: 9, 128>}, {pipeline_mode = #tpu.pipeline_mode<synchronous>, transform_indices = @transform_14, window_bounds = array<i64: 1, 128>}, {pipeline_mode = #tpu.pipeline_mode<synchronous>, transform_indices = @transform_15, window_bounds = array<i64: 128, 128>}, {pipeline_mode = #tpu.pipeline_mode<synchronous>, transform_indices = @transform_16, window_bounds = array<i64: 1, 128>}, {pipeline_mode = #tpu.pipeline_mode<synchronous>, transform_indices = @transform_17, window_bounds = array<i64: 128, 128>}, {pipeline_mode = #tpu.pipeline_mode<synchronous>, transform_indices = @transform_18, window_bounds = array<i64: 1, 128>}, {pipeline_mode = #tpu.pipeline_mode<synchronous>, transform_indices = @transform_19, window_bounds = array<i64: 128, 128>}, {pipeline_mode = #tpu.pipeline_mode<synchronous>, transform_indices = @transform_20, window_bounds = array<i64: 1, 128>}, {pipeline_mode = #tpu.pipeline_mode<synchronous>, transform_indices = @transform_21, window_bounds = array<i64: 128, 128>}, {pipeline_mode = #tpu.pipeline_mode<synchronous>, transform_indices = @transform_22, window_bounds = array<i64: 1, 128>}, {pipeline_mode = #tpu.pipeline_mode<synchronous>, transform_indices = @transform_23, window_bounds = array<i64: 9, 128>}, {pipeline_mode = #tpu.pipeline_mode<synchronous>, transform_indices = @transform_24, window_bounds = array<i64: 1, 128>}, {pipeline_mode = #tpu.pipeline_mode<synchronous>, transform_indices = @transform_25, window_bounds = array<i64: 128, 128>}, {pipeline_mode = #tpu.pipeline_mode<synchronous>, transform_indices = @transform_26, window_bounds = array<i64: 1, 128>}, {pipeline_mode = #tpu.pipeline_mode<synchronous>, transform_indices = @transform_27, window_bounds = array<i64: 128, 128>}, {pipeline_mode = #tpu.pipeline_mode<synchronous>, transform_indices = @transform_28, window_bounds = array<i64: 1, 128>}, {pipeline_mode = #tpu.pipeline_mode<synchronous>, transform_indices = @transform_29, window_bounds = array<i64: 128, 128>}, {pipeline_mode = #tpu.pipeline_mode<synchronous>, transform_indices = @transform_30, window_bounds = array<i64: 1, 128>}, {pipeline_mode = #tpu.pipeline_mode<synchronous>, transform_indices = @transform_31, window_bounds = array<i64: 128, 128>}, {pipeline_mode = #tpu.pipeline_mode<synchronous>, transform_indices = @transform_32, window_bounds = array<i64: 1, 128>}, {pipeline_mode = #tpu.pipeline_mode<synchronous>, transform_indices = @transform_33, window_bounds = array<i64: 128, 128>}, {pipeline_mode = #tpu.pipeline_mode<synchronous>, transform_indices = @transform_34, window_bounds = array<i64: 1, 128>}, {transform_indices = @transform_35, window_bounds = array<i64: 1, 1, 128>}]} {
    %c0 = arith.constant 0 : index
    %c0_0 = arith.constant 0 : index
    %c0_1 = arith.constant 0 : index
    %0 = vector.load %arg1[%c0, %c0_0, %c0_1] : memref<1x64x32xf32, #tpu.memory_space<vmem>>, vector<1x64x32xf32>
    %1 = vector.shape_cast %0 : vector<1x64x32xf32> to vector<64x32xf32>
    %c0_2 = arith.constant 0 : index
    %c0_3 = arith.constant 0 : index
    %2 = vector.load %arg2[%c0_2, %c0_3] : memref<32x128xf32, #tpu.memory_space<vmem>>, vector<32x128xf32>
    %cst = arith.constant dense<0.000000e+00> : vector<64x128xf32>
    %3 = tpu.matmul %1, %2, %cst {dimension_numbers = #tpu.dot_dimension_numbers<[1], [0], [0], [1], [0, 0, 1, 1], [], []>} : vector<64x32xf32>, vector<32x128xf32>, vector<64x128xf32> -> vector<64x128xf32>
    %c0_4 = arith.constant 0 : index
    %c0_5 = arith.constant 0 : index
    %4 = vector.load %arg3[%c0_4, %c0_5] : memref<1x128xf32, #tpu.memory_space<vmem>>, vector<1x128xf32>
    %5 = vector.broadcast %4 : vector<1x128xf32> to vector<64x128xf32>
    %6 = arith.addf %3, %5 : vector<64x128xf32>
    %cst_6 = arith.constant 0.000000e+00 : f32
    %7 = vector.broadcast %cst_6 : f32 to vector<64x128xf32>
    %8 = arith.subf %7, %6 : vector<64x128xf32>
    %9 = math.exp %8 : vector<64x128xf32>
    %cst_7 = arith.constant 1.000000e+00 : f32
    %10 = vector.broadcast %cst_7 : f32 to vector<64x128xf32>
    %11 = arith.addf %10, %9 : vector<64x128xf32>
    %12 = tpu.reciprocal %11 {approx = true} : vector<64x128xf32> -> vector<64x128xf32>
    %13 = arith.mulf %6, %12 : vector<64x128xf32>
    %cst_8 = arith.constant 0.000000e+00 : f32
    %14 = vector.broadcast %cst_8 : f32 to vector<10x10x128xf32>
    %c0_9 = arith.constant 0 : index
    %c0_10 = arith.constant 0 : index
    %c0_11 = arith.constant 0 : index
    %15 = vector.load %arg37[%c0_9, %c0_10, %c0_11] : memref<10x10x128xf32, #tpu.memory_space<vmem>>, vector<10x10x128xf32>
    tpu.vector_store %arg37[%c0_9, %c0_10, %c0_11], %14 {strides = array<i32>} : memref<10x10x128xf32, #tpu.memory_space<vmem>>, vector<10x10x128xf32>,
    %16 = vector.extract_strided_slice %13 {offsets = [0, 0], sizes = [8, 128], strides = [1, 1]} : vector<64x128xf32> to vector<8x128xf32>
    %c1 = arith.constant 1 : index
    %c1_12 = arith.constant 1 : index
    %c0_13 = arith.constant 0 : index
    %17 = vector.load %arg37[%c1, %c1_12, %c0_13] : memref<10x10x128xf32, #tpu.memory_space<vmem>>, vector<1x8x128xf32>
    %18 = vector.shape_cast %17 : vector<1x8x128xf32> to vector<8x128xf32>
    %19 = vector.shape_cast %16 : vector<8x128xf32> to vector<1x8x128xf32>
    tpu.vector_store %arg37[%c1, %c1_12, %c0_13], %19 {strides = array<i32>} : memref<10x10x128xf32, #tpu.memory_space<vmem>>, vector<1x8x128xf32>,
    %20 = vector.extract_strided_slice %13 {offsets = [8, 0], sizes = [8, 128], strides = [1, 1]} : vector<64x128xf32> to vector<8x128xf32>
    %c2 = arith.constant 2 : index
    %c1_14 = arith.constant 1 : index
    %c0_15 = arith.constant 0 : index
    %21 = vector.load %arg37[%c2, %c1_14, %c0_15] : memref<10x10x128xf32, #tpu.memory_space<vmem>>, vector<1x8x128xf32>
    %22 = vector.shape_cast %21 : vector<1x8x128xf32> to vector<8x128xf32>
    %23 = vector.shape_cast %20 : vector<8x128xf32> to vector<1x8x128xf32>
    tpu.vector_store %arg37[%c2, %c1_14, %c0_15], %23 {strides = array<i32>} : memref<10x10x128xf32, #tpu.memory_space<vmem>>, vector<1x8x128xf32>,
    %24 = vector.extract_strided_slice %13 {offsets = [16, 0], sizes = [8, 128], strides = [1, 1]} : vector<64x128xf32> to vector<8x128xf32>
    %c3 = arith.constant 3 : index
    %c1_16 = arith.constant 1 : index
    %c0_17 = arith.constant 0 : index
    %25 = vector.load %arg37[%c3, %c1_16, %c0_17] : memref<10x10x128xf32, #tpu.memory_space<vmem>>, vector<1x8x128xf32>
    %26 = vector.shape_cast %25 : vector<1x8x128xf32> to vector<8x128xf32>
    %27 = vector.shape_cast %24 : vector<8x128xf32> to vector<1x8x128xf32>
    tpu.vector_store %arg37[%c3, %c1_16, %c0_17], %27 {strides = array<i32>} : memref<10x10x128xf32, #tpu.memory_space<vmem>>, vector<1x8x128xf32>,
    %28 = vector.extract_strided_slice %13 {offsets = [24, 0], sizes = [8, 128], strides = [1, 1]} : vector<64x128xf32> to vector<8x128xf32>
    %c4 = arith.constant 4 : index
    %c1_18 = arith.constant 1 : index
    %c0_19 = arith.constant 0 : index
    %29 = vector.load %arg37[%c4, %c1_18, %c0_19] : memref<10x10x128xf32, #tpu.memory_space<vmem>>, vector<1x8x128xf32>
    %30 = vector.shape_cast %29 : vector<1x8x128xf32> to vector<8x128xf32>
    %31 = vector.shape_cast %28 : vector<8x128xf32> to vector<1x8x128xf32>
    tpu.vector_store %arg37[%c4, %c1_18, %c0_19], %31 {strides = array<i32>} : memref<10x10x128xf32, #tpu.memory_space<vmem>>, vector<1x8x128xf32>,
    %32 = vector.extract_strided_slice %13 {offsets = [32, 0], sizes = [8, 128], strides = [1, 1]} : vector<64x128xf32> to vector<8x128xf32>
    %c5 = arith.constant 5 : index
    %c1_20 = arith.constant 1 : index
    %c0_21 = arith.constant 0 : index
    %33 = vector.load %arg37[%c5, %c1_20, %c0_21] : memref<10x10x128xf32, #tpu.memory_space<vmem>>, vector<1x8x128xf32>
    %34 = vector.shape_cast %33 : vector<1x8x128xf32> to vector<8x128xf32>
    %35 = vector.shape_cast %32 : vector<8x128xf32> to vector<1x8x128xf32>
    tpu.vector_store %arg37[%c5, %c1_20, %c0_21], %35 {strides = array<i32>} : memref<10x10x128xf32, #tpu.memory_space<vmem>>, vector<1x8x128xf32>,
    %36 = vector.extract_strided_slice %13 {offsets = [40, 0], sizes = [8, 128], strides = [1, 1]} : vector<64x128xf32> to vector<8x128xf32>
    %c6 = arith.constant 6 : index
    %c1_22 = arith.constant 1 : index
    %c0_23 = arith.constant 0 : index
    %37 = vector.load %arg37[%c6, %c1_22, %c0_23] : memref<10x10x128xf32, #tpu.memory_space<vmem>>, vector<1x8x128xf32>
    %38 = vector.shape_cast %37 : vector<1x8x128xf32> to vector<8x128xf32>
    %39 = vector.shape_cast %36 : vector<8x128xf32> to vector<1x8x128xf32>
    tpu.vector_store %arg37[%c6, %c1_22, %c0_23], %39 {strides = array<i32>} : memref<10x10x128xf32, #tpu.memory_space<vmem>>, vector<1x8x128xf32>,
    %40 = vector.extract_strided_slice %13 {offsets = [48, 0], sizes = [8, 128], strides = [1, 1]} : vector<64x128xf32> to vector<8x128xf32>
    %c7 = arith.constant 7 : index
    %c1_24 = arith.constant 1 : index
    %c0_25 = arith.constant 0 : index
    %41 = vector.load %arg37[%c7, %c1_24, %c0_25] : memref<10x10x128xf32, #tpu.memory_space<vmem>>, vector<1x8x128xf32>
    %42 = vector.shape_cast %41 : vector<1x8x128xf32> to vector<8x128xf32>
    %43 = vector.shape_cast %40 : vector<8x128xf32> to vector<1x8x128xf32>
    tpu.vector_store %arg37[%c7, %c1_24, %c0_25], %43 {strides = array<i32>} : memref<10x10x128xf32, #tpu.memory_space<vmem>>, vector<1x8x128xf32>,
    %44 = vector.extract_strided_slice %13 {offsets = [56, 0], sizes = [8, 128], strides = [1, 1]} : vector<64x128xf32> to vector<8x128xf32>
    %c8 = arith.constant 8 : index
    %c1_26 = arith.constant 1 : index
    %c0_27 = arith.constant 0 : index
    %45 = vector.load %arg37[%c8, %c1_26, %c0_27] : memref<10x10x128xf32, #tpu.memory_space<vmem>>, vector<1x8x128xf32>
    %46 = vector.shape_cast %45 : vector<1x8x128xf32> to vector<8x128xf32>
    %47 = vector.shape_cast %44 : vector<8x128xf32> to vector<1x8x128xf32>
    tpu.vector_store %arg37[%c8, %c1_26, %c0_27], %47 {strides = array<i32>} : memref<10x10x128xf32, #tpu.memory_space<vmem>>, vector<1x8x128xf32>,
    %cst_28 = arith.constant 0.000000e+00 : f32
    %48 = vector.broadcast %cst_28 : f32 to vector<8x8x128xf32>
    %c0_29 = arith.constant 0 : index
    %c0_30 = arith.constant 0 : index
    %c0_31 = arith.constant 0 : index
    %49 = vector.load %arg37[%c0_29, %c0_30, %c0_31] : memref<10x10x128xf32, #tpu.memory_space<vmem>>, vector<8x8x128xf32>
    %c0_32 = arith.constant 0 : index
    %c0_33 = arith.constant 0 : index
    %50 = vector.load %arg4[%c0_32, %c0_33] : memref<9x128xf32, #tpu.memory_space<vmem>>, vector<1x128xf32>
    %51 = vector.shape_cast %50 : vector<1x128xf32> to vector<128xf32>
    %52 = vector.shape_cast %51 : vector<128xf32> to vector<1x1x128xf32>
    %53 = vector.broadcast %52 : vector<1x1x128xf32> to vector<8x8x128xf32>
    %54 = arith.mulf %49, %53 : vector<8x8x128xf32>
    %55 = arith.addf %48, %54 : vector<8x8x128xf32>
    %c0_34 = arith.constant 0 : index
    %c1_35 = arith.constant 1 : index
    %c0_36 = arith.constant 0 : index
    %56 = vector.load %arg37[%c0_34, %c1_35, %c0_36] : memref<10x10x128xf32, #tpu.memory_space<vmem>>, vector<8x8x128xf32>
    %c1_37 = arith.constant 1 : index
    %c0_38 = arith.constant 0 : index
    %57 = vector.load %arg4[%c1_37, %c0_38] : memref<9x128xf32, #tpu.memory_space<vmem>>, vector<1x128xf32>
    %58 = vector.shape_cast %57 : vector<1x128xf32> to vector<128xf32>
    %59 = vector.shape_cast %58 : vector<128xf32> to vector<1x1x128xf32>
    %60 = vector.broadcast %59 : vector<1x1x128xf32> to vector<8x8x128xf32>
    %61 = arith.mulf %56, %60 : vector<8x8x128xf32>
    %62 = arith.addf %55, %61 : vector<8x8x128xf32>
    %c0_39 = arith.constant 0 : index
    %c2_40 = arith.constant 2 : index
    %c0_41 = arith.constant 0 : index
    %63 = vector.load %arg37[%c0_39, %c2_40, %c0_41] : memref<10x10x128xf32, #tpu.memory_space<vmem>>, vector<8x8x128xf32>
    %c2_42 = arith.constant 2 : index
    %c0_43 = arith.constant 0 : index
    %64 = vector.load %arg4[%c2_42, %c0_43] : memref<9x128xf32, #tpu.memory_space<vmem>>, vector<1x128xf32>
    %65 = vector.shape_cast %64 : vector<1x128xf32> to vector<128xf32>
    %66 = vector.shape_cast %65 : vector<128xf32> to vector<1x1x128xf32>
    %67 = vector.broadcast %66 : vector<1x1x128xf32> to vector<8x8x128xf32>
    %68 = arith.mulf %63, %67 : vector<8x8x128xf32>
    %69 = arith.addf %62, %68 : vector<8x8x128xf32>
    %c1_44 = arith.constant 1 : index
    %c0_45 = arith.constant 0 : index
    %c0_46 = arith.constant 0 : index
    %70 = vector.load %arg37[%c1_44, %c0_45, %c0_46] : memref<10x10x128xf32, #tpu.memory_space<vmem>>, vector<8x8x128xf32>
    %c3_47 = arith.constant 3 : index
    %c0_48 = arith.constant 0 : index
    %71 = vector.load %arg4[%c3_47, %c0_48] : memref<9x128xf32, #tpu.memory_space<vmem>>, vector<1x128xf32>
    %72 = vector.shape_cast %71 : vector<1x128xf32> to vector<128xf32>
    %73 = vector.shape_cast %72 : vector<128xf32> to vector<1x1x128xf32>
    %74 = vector.broadcast %73 : vector<1x1x128xf32> to vector<8x8x128xf32>
    %75 = arith.mulf %70, %74 : vector<8x8x128xf32>
    %76 = arith.addf %69, %75 : vector<8x8x128xf32>
    %c1_49 = arith.constant 1 : index
    %c1_50 = arith.constant 1 : index
    %c0_51 = arith.constant 0 : index
    %77 = vector.load %arg37[%c1_49, %c1_50, %c0_51] : memref<10x10x128xf32, #tpu.memory_space<vmem>>, vector<8x8x128xf32>
    %c4_52 = arith.constant 4 : index
    %c0_53 = arith.constant 0 : index
    %78 = vector.load %arg4[%c4_52, %c0_53] : memref<9x128xf32, #tpu.memory_space<vmem>>, vector<1x128xf32>
    %79 = vector.shape_cast %78 : vector<1x128xf32> to vector<128xf32>
    %80 = vector.shape_cast %79 : vector<128xf32> to vector<1x1x128xf32>
    %81 = vector.broadcast %80 : vector<1x1x128xf32> to vector<8x8x128xf32>
    %82 = arith.mulf %77, %81 : vector<8x8x128xf32>
    %83 = arith.addf %76, %82 : vector<8x8x128xf32>
    %c1_54 = arith.constant 1 : index
    %c2_55 = arith.constant 2 : index
    %c0_56 = arith.constant 0 : index
    %84 = vector.load %arg37[%c1_54, %c2_55, %c0_56] : memref<10x10x128xf32, #tpu.memory_space<vmem>>, vector<8x8x128xf32>
    %c5_57 = arith.constant 5 : index
    %c0_58 = arith.constant 0 : index
    %85 = vector.load %arg4[%c5_57, %c0_58] : memref<9x128xf32, #tpu.memory_space<vmem>>, vector<1x128xf32>
    %86 = vector.shape_cast %85 : vector<1x128xf32> to vector<128xf32>
    %87 = vector.shape_cast %86 : vector<128xf32> to vector<1x1x128xf32>
    %88 = vector.broadcast %87 : vector<1x1x128xf32> to vector<8x8x128xf32>
    %89 = arith.mulf %84, %88 : vector<8x8x128xf32>
    %90 = arith.addf %83, %89 : vector<8x8x128xf32>
    %c2_59 = arith.constant 2 : index
    %c0_60 = arith.constant 0 : index
    %c0_61 = arith.constant 0 : index
    %91 = vector.load %arg37[%c2_59, %c0_60, %c0_61] : memref<10x10x128xf32, #tpu.memory_space<vmem>>, vector<8x8x128xf32>
    %c6_62 = arith.constant 6 : index
    %c0_63 = arith.constant 0 : index
    %92 = vector.load %arg4[%c6_62, %c0_63] : memref<9x128xf32, #tpu.memory_space<vmem>>, vector<1x128xf32>
    %93 = vector.shape_cast %92 : vector<1x128xf32> to vector<128xf32>
    %94 = vector.shape_cast %93 : vector<128xf32> to vector<1x1x128xf32>
    %95 = vector.broadcast %94 : vector<1x1x128xf32> to vector<8x8x128xf32>
    %96 = arith.mulf %91, %95 : vector<8x8x128xf32>
    %97 = arith.addf %90, %96 : vector<8x8x128xf32>
    %c2_64 = arith.constant 2 : index
    %c1_65 = arith.constant 1 : index
    %c0_66 = arith.constant 0 : index
    %98 = vector.load %arg37[%c2_64, %c1_65, %c0_66] : memref<10x10x128xf32, #tpu.memory_space<vmem>>, vector<8x8x128xf32>
    %c7_67 = arith.constant 7 : index
    %c0_68 = arith.constant 0 : index
    %99 = vector.load %arg4[%c7_67, %c0_68] : memref<9x128xf32, #tpu.memory_space<vmem>>, vector<1x128xf32>
    %100 = vector.shape_cast %99 : vector<1x128xf32> to vector<128xf32>
    %101 = vector.shape_cast %100 : vector<128xf32> to vector<1x1x128xf32>
    %102 = vector.broadcast %101 : vector<1x1x128xf32> to vector<8x8x128xf32>
    %103 = arith.mulf %98, %102 : vector<8x8x128xf32>
    %104 = arith.addf %97, %103 : vector<8x8x128xf32>
    %c2_69 = arith.constant 2 : index
    %c2_70 = arith.constant 2 : index
    %c0_71 = arith.constant 0 : index
    %105 = vector.load %arg37[%c2_69, %c2_70, %c0_71] : memref<10x10x128xf32, #tpu.memory_space<vmem>>, vector<8x8x128xf32>
    %c8_72 = arith.constant 8 : index
    %c0_73 = arith.constant 0 : index
    %106 = vector.load %arg4[%c8_72, %c0_73] : memref<9x128xf32, #tpu.memory_space<vmem>>, vector<1x128xf32>
    %107 = vector.shape_cast %106 : vector<1x128xf32> to vector<128xf32>
    %108 = vector.shape_cast %107 : vector<128xf32> to vector<1x1x128xf32>
    %109 = vector.broadcast %108 : vector<1x1x128xf32> to vector<8x8x128xf32>
    %110 = arith.mulf %105, %109 : vector<8x8x128xf32>
    %111 = arith.addf %104, %110 : vector<8x8x128xf32>
    %c0_74 = arith.constant 0 : index
    %c0_75 = arith.constant 0 : index
    %112 = vector.load %arg5[%c0_74, %c0_75] : memref<1x128xf32, #tpu.memory_space<vmem>>, vector<1x128xf32>
    %113 = vector.shape_cast %112 : vector<1x128xf32> to vector<1x1x128xf32>
    %114 = vector.broadcast %113 : vector<1x1x128xf32> to vector<8x8x128xf32>
    %115 = arith.addf %111, %114 : vector<8x8x128xf32>
    %cst_76 = arith.constant 0.000000e+00 : f32
    %116 = vector.broadcast %cst_76 : f32 to vector<8x8x128xf32>
    %117 = arith.subf %116, %115 : vector<8x8x128xf32>
    %118 = math.exp %117 : vector<8x8x128xf32>
    %cst_77 = arith.constant 1.000000e+00 : f32
    %119 = vector.broadcast %cst_77 : f32 to vector<8x8x128xf32>
    %120 = arith.addf %119, %118 : vector<8x8x128xf32>
    %121 = tpu.reciprocal %120 {approx = true} : vector<8x8x128xf32> -> vector<8x8x128xf32>
    %122 = arith.mulf %115, %121 : vector<8x8x128xf32>
    %123 = vector.extract_strided_slice %122 {offsets = [0, 0, 0], sizes = [1, 8, 128], strides = [1, 1, 1]} : vector<8x8x128xf32> to vector<1x8x128xf32>
    %124 = vector.shape_cast %123 : vector<1x8x128xf32> to vector<8x128xf32>
    %c0_78 = arith.constant 0 : index
    %c0_79 = arith.constant 0 : index
    %125 = vector.load %arg40[%c0_78, %c0_79] : memref<64x128xf32, #tpu.memory_space<vmem>>, vector<8x128xf32>
    tpu.vector_store %arg40[%c0_78, %c0_79], %124 {strides = array<i32>} : memref<64x128xf32, #tpu.memory_space<vmem>>, vector<8x128xf32>,
    %126 = vector.extract_strided_slice %122 {offsets = [1, 0, 0], sizes = [1, 8, 128], strides = [1, 1, 1]} : vector<8x8x128xf32> to vector<1x8x128xf32>
    %127 = vector.shape_cast %126 : vector<1x8x128xf32> to vector<8x128xf32>
    %c8_80 = arith.constant 8 : index
    %c0_81 = arith.constant 0 : index
    %128 = vector.load %arg40[%c8_80, %c0_81] : memref<64x128xf32, #tpu.memory_space<vmem>>, vector<8x128xf32>
    tpu.vector_store %arg40[%c8_80, %c0_81], %127 {strides = array<i32>} : memref<64x128xf32, #tpu.memory_space<vmem>>, vector<8x128xf32>,
    %129 = vector.extract_strided_slice %122 {offsets = [2, 0, 0], sizes = [1, 8, 128], strides = [1, 1, 1]} : vector<8x8x128xf32> to vector<1x8x128xf32>
    %130 = vector.shape_cast %129 : vector<1x8x128xf32> to vector<8x128xf32>
    %c16 = arith.constant 16 : index
    %c0_82 = arith.constant 0 : index
    %131 = vector.load %arg40[%c16, %c0_82] : memref<64x128xf32, #tpu.memory_space<vmem>>, vector<8x128xf32>
    tpu.vector_store %arg40[%c16, %c0_82], %130 {strides = array<i32>} : memref<64x128xf32, #tpu.memory_space<vmem>>, vector<8x128xf32>,
    %132 = vector.extract_strided_slice %122 {offsets = [3, 0, 0], sizes = [1, 8, 128], strides = [1, 1, 1]} : vector<8x8x128xf32> to vector<1x8x128xf32>
    %133 = vector.shape_cast %132 : vector<1x8x128xf32> to vector<8x128xf32>
    %c24 = arith.constant 24 : index
    %c0_83 = arith.constant 0 : index
    %134 = vector.load %arg40[%c24, %c0_83] : memref<64x128xf32, #tpu.memory_space<vmem>>, vector<8x128xf32>
    tpu.vector_store %arg40[%c24, %c0_83], %133 {strides = array<i32>} : memref<64x128xf32, #tpu.memory_space<vmem>>, vector<8x128xf32>,
    %135 = vector.extract_strided_slice %122 {offsets = [4, 0, 0], sizes = [1, 8, 128], strides = [1, 1, 1]} : vector<8x8x128xf32> to vector<1x8x128xf32>
    %136 = vector.shape_cast %135 : vector<1x8x128xf32> to vector<8x128xf32>
    %c32 = arith.constant 32 : index
    %c0_84 = arith.constant 0 : index
    %137 = vector.load %arg40[%c32, %c0_84] : memref<64x128xf32, #tpu.memory_space<vmem>>, vector<8x128xf32>
    tpu.vector_store %arg40[%c32, %c0_84], %136 {strides = array<i32>} : memref<64x128xf32, #tpu.memory_space<vmem>>, vector<8x128xf32>,
    %138 = vector.extract_strided_slice %122 {offsets = [5, 0, 0], sizes = [1, 8, 128], strides = [1, 1, 1]} : vector<8x8x128xf32> to vector<1x8x128xf32>
    %139 = vector.shape_cast %138 : vector<1x8x128xf32> to vector<8x128xf32>
    %c40 = arith.constant 40 : index
    %c0_85 = arith.constant 0 : index
    %140 = vector.load %arg40[%c40, %c0_85] : memref<64x128xf32, #tpu.memory_space<vmem>>, vector<8x128xf32>
    tpu.vector_store %arg40[%c40, %c0_85], %139 {strides = array<i32>} : memref<64x128xf32, #tpu.memory_space<vmem>>, vector<8x128xf32>,
    %141 = vector.extract_strided_slice %122 {offsets = [6, 0, 0], sizes = [1, 8, 128], strides = [1, 1, 1]} : vector<8x8x128xf32> to vector<1x8x128xf32>
    %142 = vector.shape_cast %141 : vector<1x8x128xf32> to vector<8x128xf32>
    %c48 = arith.constant 48 : index
    %c0_86 = arith.constant 0 : index
    %143 = vector.load %arg40[%c48, %c0_86] : memref<64x128xf32, #tpu.memory_space<vmem>>, vector<8x128xf32>
    tpu.vector_store %arg40[%c48, %c0_86], %142 {strides = array<i32>} : memref<64x128xf32, #tpu.memory_space<vmem>>, vector<8x128xf32>,
    %144 = vector.extract_strided_slice %122 {offsets = [7, 0, 0], sizes = [1, 8, 128], strides = [1, 1, 1]} : vector<8x8x128xf32> to vector<1x8x128xf32>
    %145 = vector.shape_cast %144 : vector<1x8x128xf32> to vector<8x128xf32>
    %c56 = arith.constant 56 : index
    %c0_87 = arith.constant 0 : index
    %146 = vector.load %arg40[%c56, %c0_87] : memref<64x128xf32, #tpu.memory_space<vmem>>, vector<8x128xf32>
    tpu.vector_store %arg40[%c56, %c0_87], %145 {strides = array<i32>} : memref<64x128xf32, #tpu.memory_space<vmem>>, vector<8x128xf32>,
    %c0_88 = arith.constant 0 : index
    %c0_89 = arith.constant 0 : index
    %147 = vector.load %arg40[%c0_88, %c0_89] : memref<64x128xf32, #tpu.memory_space<vmem>>, vector<64x128xf32>
    %cst_90 = arith.constant dense<0.000000e+00> : vector<128xf32>
    %148 = vector.multi_reduction <add>, %147, %cst_90 [0] : vector<64x128xf32> to vector<128xf32>
    %149 = vector.shape_cast %148 : vector<128xf32> to vector<1x128xf32>
    %cst_91 = arith.constant 6.400000e+01 : f32
    %150 = vector.broadcast %cst_91 : f32 to vector<1x128xf32>
    %151 = arith.divf %149, %150 : vector<1x128xf32>
    %c0_92 = arith.constant 0 : index
    %c0_93 = arith.constant 0 : index
    %152 = vector.load %arg6[%c0_92, %c0_93] : memref<128x128xf32, #tpu.memory_space<vmem>>, vector<128x128xf32>
    %cst_94 = arith.constant dense<0.000000e+00> : vector<1x128xf32>
    %153 = tpu.matmul %151, %152, %cst_94 {dimension_numbers = #tpu.dot_dimension_numbers<[1], [0], [0], [1], [0, 0, 1, 1], [], []>} : vector<1x128xf32>, vector<128x128xf32>, vector<1x128xf32> -> vector<1x128xf32>
    %c0_95 = arith.constant 0 : index
    %c0_96 = arith.constant 0 : index
    %154 = vector.load %arg7[%c0_95, %c0_96] : memref<1x128xf32, #tpu.memory_space<vmem>>, vector<1x128xf32>
    %155 = arith.addf %153, %154 : vector<1x128xf32>
    %cst_97 = arith.constant 0.000000e+00 : f32
    %156 = vector.broadcast %cst_97 : f32 to vector<1x128xf32>
    %157 = arith.subf %156, %155 : vector<1x128xf32>
    %158 = math.exp %157 : vector<1x128xf32>
    %cst_98 = arith.constant 1.000000e+00 : f32
    %159 = vector.broadcast %cst_98 : f32 to vector<1x128xf32>
    %160 = arith.addf %159, %158 : vector<1x128xf32>
    %161 = tpu.reciprocal %160 {approx = true} : vector<1x128xf32> -> vector<1x128xf32>
    %162 = arith.mulf %155, %161 : vector<1x128xf32>
    %c0_99 = arith.constant 0 : index
    %c0_100 = arith.constant 0 : index
    %163 = vector.load %arg8[%c0_99, %c0_100] : memref<128x128xf32, #tpu.memory_space<vmem>>, vector<128x128xf32>
    %cst_101 = arith.constant dense<0.000000e+00> : vector<1x128xf32>
    %164 = tpu.matmul %162, %163, %cst_101 {dimension_numbers = #tpu.dot_dimension_numbers<[1], [0], [0], [1], [0, 0, 1, 1], [], []>} : vector<1x128xf32>, vector<128x128xf32>, vector<1x128xf32> -> vector<1x128xf32>
    %c0_102 = arith.constant 0 : index
    %c0_103 = arith.constant 0 : index
    %165 = vector.load %arg9[%c0_102, %c0_103] : memref<1x128xf32, #tpu.memory_space<vmem>>, vector<1x128xf32>
    %166 = arith.addf %164, %165 : vector<1x128xf32>
    %cst_104 = arith.constant 0.000000e+00 : f32
    %167 = vector.broadcast %cst_104 : f32 to vector<1x128xf32>
    %168 = arith.subf %167, %166 : vector<1x128xf32>
    %169 = math.exp %168 : vector<1x128xf32>
    %cst_105 = arith.constant 1.000000e+00 : f32
    %170 = vector.broadcast %cst_105 : f32 to vector<1x128xf32>
    %171 = arith.addf %170, %169 : vector<1x128xf32>
    %172 = tpu.reciprocal %171 {approx = true} : vector<1x128xf32> -> vector<1x128xf32>
    %173 = vector.broadcast %172 : vector<1x128xf32> to vector<64x128xf32>
    %174 = arith.mulf %147, %173 : vector<64x128xf32>
    %c0_106 = arith.constant 0 : index
    %c0_107 = arith.constant 0 : index
    %175 = vector.load %arg10[%c0_106, %c0_107] : memref<128x128xf32, #tpu.memory_space<vmem>>, vector<128x128xf32>
    %cst_108 = arith.constant dense<0.000000e+00> : vector<64x128xf32>
    %176 = tpu.matmul %174, %175, %cst_108 {dimension_numbers = #tpu.dot_dimension_numbers<[1], [0], [0], [1], [0, 0, 1, 1], [], []>} : vector<64x128xf32>, vector<128x128xf32>, vector<64x128xf32> -> vector<64x128xf32>
    %c0_109 = arith.constant 0 : index
    %c0_110 = arith.constant 0 : index
    %177 = vector.load %arg11[%c0_109, %c0_110] : memref<1x128xf32, #tpu.memory_space<vmem>>, vector<1x128xf32>
    %178 = vector.broadcast %177 : vector<1x128xf32> to vector<64x128xf32>
    %179 = arith.addf %176, %178 : vector<64x128xf32>
    %180 = arith.addf %179, %13 : vector<64x128xf32>
    %c0_111 = arith.constant 0 : index
    %c0_112 = arith.constant 0 : index
    %181 = vector.load %arg12[%c0_111, %c0_112] : memref<128x128xf32, #tpu.memory_space<vmem>>, vector<128x128xf32>
    %cst_113 = arith.constant dense<0.000000e+00> : vector<64x128xf32>
    %182 = tpu.matmul %180, %181, %cst_113 {dimension_numbers = #tpu.dot_dimension_numbers<[1], [0], [0], [1], [0, 0, 1, 1], [], []>} : vector<64x128xf32>, vector<128x128xf32>, vector<64x128xf32> -> vector<64x128xf32>
    %c0_114 = arith.constant 0 : index
    %c0_115 = arith.constant 0 : index
    %183 = vector.load %arg13[%c0_114, %c0_115] : memref<1x128xf32, #tpu.memory_space<vmem>>, vector<1x128xf32>
    %184 = vector.broadcast %183 : vector<1x128xf32> to vector<64x128xf32>
    %185 = arith.addf %182, %184 : vector<64x128xf32>
    %cst_116 = arith.constant 0.000000e+00 : f32
    %186 = vector.broadcast %cst_116 : f32 to vector<64x128xf32>
    %187 = arith.subf %186, %185 : vector<64x128xf32>
    %188 = math.exp %187 : vector<64x128xf32>
    %cst_117 = arith.constant 1.000000e+00 : f32
    %189 = vector.broadcast %cst_117 : f32 to vector<64x128xf32>
    %190 = arith.addf %189, %188 : vector<64x128xf32>
    %191 = tpu.reciprocal %190 {approx = true} : vector<64x128xf32> -> vector<64x128xf32>
    %192 = arith.mulf %185, %191 : vector<64x128xf32>
    %cst_118 = arith.constant 0.000000e+00 : f32
    %193 = vector.broadcast %cst_118 : f32 to vector<10x10x128xf32>
    %c0_119 = arith.constant 0 : index
    %c0_120 = arith.constant 0 : index
    %c0_121 = arith.constant 0 : index
    %194 = vector.load %arg38[%c0_119, %c0_120, %c0_121] : memref<10x10x128xf32, #tpu.memory_space<vmem>>, vector<10x10x128xf32>
    tpu.vector_store %arg38[%c0_119, %c0_120, %c0_121], %193 {strides = array<i32>} : memref<10x10x128xf32, #tpu.memory_space<vmem>>, vector<10x10x128xf32>,
    %195 = vector.extract_strided_slice %192 {offsets = [0, 0], sizes = [8, 128], strides = [1, 1]} : vector<64x128xf32> to vector<8x128xf32>
    %c1_122 = arith.constant 1 : index
    %c1_123 = arith.constant 1 : index
    %c0_124 = arith.constant 0 : index
    %196 = vector.load %arg38[%c1_122, %c1_123, %c0_124] : memref<10x10x128xf32, #tpu.memory_space<vmem>>, vector<1x8x128xf32>
    %197 = vector.shape_cast %196 : vector<1x8x128xf32> to vector<8x128xf32>
    %198 = vector.shape_cast %195 : vector<8x128xf32> to vector<1x8x128xf32>
    tpu.vector_store %arg38[%c1_122, %c1_123, %c0_124], %198 {strides = array<i32>} : memref<10x10x128xf32, #tpu.memory_space<vmem>>, vector<1x8x128xf32>,
    %199 = vector.extract_strided_slice %192 {offsets = [8, 0], sizes = [8, 128], strides = [1, 1]} : vector<64x128xf32> to vector<8x128xf32>
    %c2_125 = arith.constant 2 : index
    %c1_126 = arith.constant 1 : index
    %c0_127 = arith.constant 0 : index
    %200 = vector.load %arg38[%c2_125, %c1_126, %c0_127] : memref<10x10x128xf32, #tpu.memory_space<vmem>>, vector<1x8x128xf32>
    %201 = vector.shape_cast %200 : vector<1x8x128xf32> to vector<8x128xf32>
    %202 = vector.shape_cast %199 : vector<8x128xf32> to vector<1x8x128xf32>
    tpu.vector_store %arg38[%c2_125, %c1_126, %c0_127], %202 {strides = array<i32>} : memref<10x10x128xf32, #tpu.memory_space<vmem>>, vector<1x8x128xf32>,
    %203 = vector.extract_strided_slice %192 {offsets = [16, 0], sizes = [8, 128], strides = [1, 1]} : vector<64x128xf32> to vector<8x128xf32>
    %c3_128 = arith.constant 3 : index
    %c1_129 = arith.constant 1 : index
    %c0_130 = arith.constant 0 : index
    %204 = vector.load %arg38[%c3_128, %c1_129, %c0_130] : memref<10x10x128xf32, #tpu.memory_space<vmem>>, vector<1x8x128xf32>
    %205 = vector.shape_cast %204 : vector<1x8x128xf32> to vector<8x128xf32>
    %206 = vector.shape_cast %203 : vector<8x128xf32> to vector<1x8x128xf32>
    tpu.vector_store %arg38[%c3_128, %c1_129, %c0_130], %206 {strides = array<i32>} : memref<10x10x128xf32, #tpu.memory_space<vmem>>, vector<1x8x128xf32>,
    %207 = vector.extract_strided_slice %192 {offsets = [24, 0], sizes = [8, 128], strides = [1, 1]} : vector<64x128xf32> to vector<8x128xf32>
    %c4_131 = arith.constant 4 : index
    %c1_132 = arith.constant 1 : index
    %c0_133 = arith.constant 0 : index
    %208 = vector.load %arg38[%c4_131, %c1_132, %c0_133] : memref<10x10x128xf32, #tpu.memory_space<vmem>>, vector<1x8x128xf32>
    %209 = vector.shape_cast %208 : vector<1x8x128xf32> to vector<8x128xf32>
    %210 = vector.shape_cast %207 : vector<8x128xf32> to vector<1x8x128xf32>
    tpu.vector_store %arg38[%c4_131, %c1_132, %c0_133], %210 {strides = array<i32>} : memref<10x10x128xf32, #tpu.memory_space<vmem>>, vector<1x8x128xf32>,
    %211 = vector.extract_strided_slice %192 {offsets = [32, 0], sizes = [8, 128], strides = [1, 1]} : vector<64x128xf32> to vector<8x128xf32>
    %c5_134 = arith.constant 5 : index
    %c1_135 = arith.constant 1 : index
    %c0_136 = arith.constant 0 : index
    %212 = vector.load %arg38[%c5_134, %c1_135, %c0_136] : memref<10x10x128xf32, #tpu.memory_space<vmem>>, vector<1x8x128xf32>
    %213 = vector.shape_cast %212 : vector<1x8x128xf32> to vector<8x128xf32>
    %214 = vector.shape_cast %211 : vector<8x128xf32> to vector<1x8x128xf32>
    tpu.vector_store %arg38[%c5_134, %c1_135, %c0_136], %214 {strides = array<i32>} : memref<10x10x128xf32, #tpu.memory_space<vmem>>, vector<1x8x128xf32>,
    %215 = vector.extract_strided_slice %192 {offsets = [40, 0], sizes = [8, 128], strides = [1, 1]} : vector<64x128xf32> to vector<8x128xf32>
    %c6_137 = arith.constant 6 : index
    %c1_138 = arith.constant 1 : index
    %c0_139 = arith.constant 0 : index
    %216 = vector.load %arg38[%c6_137, %c1_138, %c0_139] : memref<10x10x128xf32, #tpu.memory_space<vmem>>, vector<1x8x128xf32>
    %217 = vector.shape_cast %216 : vector<1x8x128xf32> to vector<8x128xf32>
    %218 = vector.shape_cast %215 : vector<8x128xf32> to vector<1x8x128xf32>
    tpu.vector_store %arg38[%c6_137, %c1_138, %c0_139], %218 {strides = array<i32>} : memref<10x10x128xf32, #tpu.memory_space<vmem>>, vector<1x8x128xf32>,
    %219 = vector.extract_strided_slice %192 {offsets = [48, 0], sizes = [8, 128], strides = [1, 1]} : vector<64x128xf32> to vector<8x128xf32>
    %c7_140 = arith.constant 7 : index
    %c1_141 = arith.constant 1 : index
    %c0_142 = arith.constant 0 : index
    %220 = vector.load %arg38[%c7_140, %c1_141, %c0_142] : memref<10x10x128xf32, #tpu.memory_space<vmem>>, vector<1x8x128xf32>
    %221 = vector.shape_cast %220 : vector<1x8x128xf32> to vector<8x128xf32>
    %222 = vector.shape_cast %219 : vector<8x128xf32> to vector<1x8x128xf32>
    tpu.vector_store %arg38[%c7_140, %c1_141, %c0_142], %222 {strides = array<i32>} : memref<10x10x128xf32, #tpu.memory_space<vmem>>, vector<1x8x128xf32>,
    %223 = vector.extract_strided_slice %192 {offsets = [56, 0], sizes = [8, 128], strides = [1, 1]} : vector<64x128xf32> to vector<8x128xf32>
    %c8_143 = arith.constant 8 : index
    %c1_144 = arith.constant 1 : index
    %c0_145 = arith.constant 0 : index
    %224 = vector.load %arg38[%c8_143, %c1_144, %c0_145] : memref<10x10x128xf32, #tpu.memory_space<vmem>>, vector<1x8x128xf32>
    %225 = vector.shape_cast %224 : vector<1x8x128xf32> to vector<8x128xf32>
    %226 = vector.shape_cast %223 : vector<8x128xf32> to vector<1x8x128xf32>
    tpu.vector_store %arg38[%c8_143, %c1_144, %c0_145], %226 {strides = array<i32>} : memref<10x10x128xf32, #tpu.memory_space<vmem>>, vector<1x8x128xf32>,
    %cst_146 = arith.constant 0.000000e+00 : f32
    %227 = vector.broadcast %cst_146 : f32 to vector<128xf32>
    %cst_147 = arith.constant 0.000000e+00 : f32
    %228 = vector.broadcast %cst_147 : f32 to vector<128xf32>
    %cst_148 = arith.constant 0.000000e+00 : f32
    %229 = vector.broadcast %cst_148 : f32 to vector<128xf32>
    %cst_149 = arith.constant 0.000000e+00 : f32
    %230 = vector.broadcast %cst_149 : f32 to vector<128xf32>
    %c0_150 = arith.constant 0 : index
    %c0_151 = arith.constant 0 : index
    %c0_152 = arith.constant 0 : index
    %231 = vector.load %arg38[%c0_150, %c0_151, %c0_152] : memref<10x10x128xf32, #tpu.memory_space<vmem>>, vector<1x10x128xf32>
    %232 = vector.shape_cast %231 : vector<1x10x128xf32> to vector<10x128xf32>
    %c0_153 = arith.constant 0 : index
    %c0_154 = arith.constant 0 : index
    %233 = vector.load %arg14[%c0_153, %c0_154] : memref<9x128xf32, #tpu.memory_space<vmem>>, vector<1x128xf32>
    %234 = vector.shape_cast %233 : vector<1x128xf32> to vector<128xf32>
    %235 = vector.extract_strided_slice %232 {offsets = [0, 0], sizes = [1, 128], strides = [1, 1]} : vector<10x128xf32> to vector<1x128xf32>
    %236 = vector.shape_cast %235 : vector<1x128xf32> to vector<128xf32>
    %237 = arith.mulf %236, %234 : vector<128xf32>
    %238 = arith.addf %227, %237 : vector<128xf32>
    %239 = vector.extract_strided_slice %232 {offsets = [2, 0], sizes = [1, 128], strides = [1, 1]} : vector<10x128xf32> to vector<1x128xf32>
    %240 = vector.shape_cast %239 : vector<1x128xf32> to vector<128xf32>
    %241 = arith.mulf %240, %234 : vector<128xf32>
    %242 = arith.addf %228, %241 : vector<128xf32>
    %243 = vector.extract_strided_slice %232 {offsets = [4, 0], sizes = [1, 128], strides = [1, 1]} : vector<10x128xf32> to vector<1x128xf32>
    %244 = vector.shape_cast %243 : vector<1x128xf32> to vector<128xf32>
    %245 = arith.mulf %244, %234 : vector<128xf32>
    %246 = arith.addf %229, %245 : vector<128xf32>
    %247 = vector.extract_strided_slice %232 {offsets = [6, 0], sizes = [1, 128], strides = [1, 1]} : vector<10x128xf32> to vector<1x128xf32>
    %248 = vector.shape_cast %247 : vector<1x128xf32> to vector<128xf32>
    %249 = arith.mulf %248, %234 : vector<128xf32>
    %250 = arith.addf %230, %249 : vector<128xf32>
    %c1_155 = arith.constant 1 : index
    %c0_156 = arith.constant 0 : index
    %251 = vector.load %arg14[%c1_155, %c0_156] : memref<9x128xf32, #tpu.memory_space<vmem>>, vector<1x128xf32>
    %252 = vector.shape_cast %251 : vector<1x128xf32> to vector<128xf32>
    %253 = vector.extract_strided_slice %232 {offsets = [1, 0], sizes = [1, 128], strides = [1, 1]} : vector<10x128xf32> to vector<1x128xf32>
    %254 = vector.shape_cast %253 : vector<1x128xf32> to vector<128xf32>
    %255 = arith.mulf %254, %252 : vector<128xf32>
    %256 = arith.addf %238, %255 : vector<128xf32>
    %257 = vector.extract_strided_slice %232 {offsets = [3, 0], sizes = [1, 128], strides = [1, 1]} : vector<10x128xf32> to vector<1x128xf32>
    %258 = vector.shape_cast %257 : vector<1x128xf32> to vector<128xf32>
    %259 = arith.mulf %258, %252 : vector<128xf32>
    %260 = arith.addf %242, %259 : vector<128xf32>
    %261 = vector.extract_strided_slice %232 {offsets = [5, 0], sizes = [1, 128], strides = [1, 1]} : vector<10x128xf32> to vector<1x128xf32>
    %262 = vector.shape_cast %261 : vector<1x128xf32> to vector<128xf32>
    %263 = arith.mulf %262, %252 : vector<128xf32>
    %264 = arith.addf %246, %263 : vector<128xf32>
    %265 = vector.extract_strided_slice %232 {offsets = [7, 0], sizes = [1, 128], strides = [1, 1]} : vector<10x128xf32> to vector<1x128xf32>
    %266 = vector.shape_cast %265 : vector<1x128xf32> to vector<128xf32>
    %267 = arith.mulf %266, %252 : vector<128xf32>
    %268 = arith.addf %250, %267 : vector<128xf32>
    %c2_157 = arith.constant 2 : index
    %c0_158 = arith.constant 0 : index
    %269 = vector.load %arg14[%c2_157, %c0_158] : memref<9x128xf32, #tpu.memory_space<vmem>>, vector<1x128xf32>
    %270 = vector.shape_cast %269 : vector<1x128xf32> to vector<128xf32>
    %271 = vector.extract_strided_slice %232 {offsets = [2, 0], sizes = [1, 128], strides = [1, 1]} : vector<10x128xf32> to vector<1x128xf32>
    %272 = vector.shape_cast %271 : vector<1x128xf32> to vector<128xf32>
    %273 = arith.mulf %272, %270 : vector<128xf32>
    %274 = arith.addf %256, %273 : vector<128xf32>
    %275 = vector.extract_strided_slice %232 {offsets = [4, 0], sizes = [1, 128], strides = [1, 1]} : vector<10x128xf32> to vector<1x128xf32>
    %276 = vector.shape_cast %275 : vector<1x128xf32> to vector<128xf32>
    %277 = arith.mulf %276, %270 : vector<128xf32>
    %278 = arith.addf %260, %277 : vector<128xf32>
    %279 = vector.extract_strided_slice %232 {offsets = [6, 0], sizes = [1, 128], strides = [1, 1]} : vector<10x128xf32> to vector<1x128xf32>
    %280 = vector.shape_cast %279 : vector<1x128xf32> to vector<128xf32>
    %281 = arith.mulf %280, %270 : vector<128xf32>
    %282 = arith.addf %264, %281 : vector<128xf32>
    %283 = vector.extract_strided_slice %232 {offsets = [8, 0], sizes = [1, 128], strides = [1, 1]} : vector<10x128xf32> to vector<1x128xf32>
    %284 = vector.shape_cast %283 : vector<1x128xf32> to vector<128xf32>
    %285 = arith.mulf %284, %270 : vector<128xf32>
    %286 = arith.addf %268, %285 : vector<128xf32>
    %c1_159 = arith.constant 1 : index
    %c0_160 = arith.constant 0 : index
    %c0_161 = arith.constant 0 : index
    %287 = vector.load %arg38[%c1_159, %c0_160, %c0_161] : memref<10x10x128xf32, #tpu.memory_space<vmem>>, vector<1x10x128xf32>
    %288 = vector.shape_cast %287 : vector<1x10x128xf32> to vector<10x128xf32>
    %c3_162 = arith.constant 3 : index
    %c0_163 = arith.constant 0 : index
    %289 = vector.load %arg14[%c3_162, %c0_163] : memref<9x128xf32, #tpu.memory_space<vmem>>, vector<1x128xf32>
    %290 = vector.shape_cast %289 : vector<1x128xf32> to vector<128xf32>
    %291 = vector.extract_strided_slice %288 {offsets = [0, 0], sizes = [1, 128], strides = [1, 1]} : vector<10x128xf32> to vector<1x128xf32>
    %292 = vector.shape_cast %291 : vector<1x128xf32> to vector<128xf32>
    %293 = arith.mulf %292, %290 : vector<128xf32>
    %294 = arith.addf %274, %293 : vector<128xf32>
    %295 = vector.extract_strided_slice %288 {offsets = [2, 0], sizes = [1, 128], strides = [1, 1]} : vector<10x128xf32> to vector<1x128xf32>
    %296 = vector.shape_cast %295 : vector<1x128xf32> to vector<128xf32>
    %297 = arith.mulf %296, %290 : vector<128xf32>
    %298 = arith.addf %278, %297 : vector<128xf32>
    %299 = vector.extract_strided_slice %288 {offsets = [4, 0], sizes = [1, 128], strides = [1, 1]} : vector<10x128xf32> to vector<1x128xf32>
    %300 = vector.shape_cast %299 : vector<1x128xf32> to vector<128xf32>
    %301 = arith.mulf %300, %290 : vector<128xf32>
    %302 = arith.addf %282, %301 : vector<128xf32>
    %303 = vector.extract_strided_slice %288 {offsets = [6, 0], sizes = [1, 128], strides = [1, 1]} : vector<10x128xf32> to vector<1x128xf32>
    %304 = vector.shape_cast %303 : vector<1x128xf32> to vector<128xf32>
    %305 = arith.mulf %304, %290 : vector<128xf32>
    %306 = arith.addf %286, %305 : vector<128xf32>
    %c4_164 = arith.constant 4 : index
    %c0_165 = arith.constant 0 : index
    %307 = vector.load %arg14[%c4_164, %c0_165] : memref<9x128xf32, #tpu.memory_space<vmem>>, vector<1x128xf32>
    %308 = vector.shape_cast %307 : vector<1x128xf32> to vector<128xf32>
    %309 = vector.extract_strided_slice %288 {offsets = [1, 0], sizes = [1, 128], strides = [1, 1]} : vector<10x128xf32> to vector<1x128xf32>
    %310 = vector.shape_cast %309 : vector<1x128xf32> to vector<128xf32>
    %311 = arith.mulf %310, %308 : vector<128xf32>
    %312 = arith.addf %294, %311 : vector<128xf32>
    %313 = vector.extract_strided_slice %288 {offsets = [3, 0], sizes = [1, 128], strides = [1, 1]} : vector<10x128xf32> to vector<1x128xf32>
    %314 = vector.shape_cast %313 : vector<1x128xf32> to vector<128xf32>
    %315 = arith.mulf %314, %308 : vector<128xf32>
    %316 = arith.addf %298, %315 : vector<128xf32>
    %317 = vector.extract_strided_slice %288 {offsets = [5, 0], sizes = [1, 128], strides = [1, 1]} : vector<10x128xf32> to vector<1x128xf32>
    %318 = vector.shape_cast %317 : vector<1x128xf32> to vector<128xf32>
    %319 = arith.mulf %318, %308 : vector<128xf32>
    %320 = arith.addf %302, %319 : vector<128xf32>
    %321 = vector.extract_strided_slice %288 {offsets = [7, 0], sizes = [1, 128], strides = [1, 1]} : vector<10x128xf32> to vector<1x128xf32>
    %322 = vector.shape_cast %321 : vector<1x128xf32> to vector<128xf32>
    %323 = arith.mulf %322, %308 : vector<128xf32>
    %324 = arith.addf %306, %323 : vector<128xf32>
    %c5_166 = arith.constant 5 : index
    %c0_167 = arith.constant 0 : index
    %325 = vector.load %arg14[%c5_166, %c0_167] : memref<9x128xf32, #tpu.memory_space<vmem>>, vector<1x128xf32>
    %326 = vector.shape_cast %325 : vector<1x128xf32> to vector<128xf32>
    %327 = vector.extract_strided_slice %288 {offsets = [2, 0], sizes = [1, 128], strides = [1, 1]} : vector<10x128xf32> to vector<1x128xf32>
    %328 = vector.shape_cast %327 : vector<1x128xf32> to vector<128xf32>
    %329 = arith.mulf %328, %326 : vector<128xf32>
    %330 = arith.addf %312, %329 : vector<128xf32>
    %331 = vector.extract_strided_slice %288 {offsets = [4, 0], sizes = [1, 128], strides = [1, 1]} : vector<10x128xf32> to vector<1x128xf32>
    %332 = vector.shape_cast %331 : vector<1x128xf32> to vector<128xf32>
    %333 = arith.mulf %332, %326 : vector<128xf32>
    %334 = arith.addf %316, %333 : vector<128xf32>
    %335 = vector.extract_strided_slice %288 {offsets = [6, 0], sizes = [1, 128], strides = [1, 1]} : vector<10x128xf32> to vector<1x128xf32>
    %336 = vector.shape_cast %335 : vector<1x128xf32> to vector<128xf32>
    %337 = arith.mulf %336, %326 : vector<128xf32>
    %338 = arith.addf %320, %337 : vector<128xf32>
    %339 = vector.extract_strided_slice %288 {offsets = [8, 0], sizes = [1, 128], strides = [1, 1]} : vector<10x128xf32> to vector<1x128xf32>
    %340 = vector.shape_cast %339 : vector<1x128xf32> to vector<128xf32>
    %341 = arith.mulf %340, %326 : vector<128xf32>
    %342 = arith.addf %324, %341 : vector<128xf32>
    %c2_168 = arith.constant 2 : index
    %c0_169 = arith.constant 0 : index
    %c0_170 = arith.constant 0 : index
    %343 = vector.load %arg38[%c2_168, %c0_169, %c0_170] : memref<10x10x128xf32, #tpu.memory_space<vmem>>, vector<1x10x128xf32>
    %344 = vector.shape_cast %343 : vector<1x10x128xf32> to vector<10x128xf32>
    %c6_171 = arith.constant 6 : index
    %c0_172 = arith.constant 0 : index
    %345 = vector.load %arg14[%c6_171, %c0_172] : memref<9x128xf32, #tpu.memory_space<vmem>>, vector<1x128xf32>
    %346 = vector.shape_cast %345 : vector<1x128xf32> to vector<128xf32>
    %347 = vector.extract_strided_slice %344 {offsets = [0, 0], sizes = [1, 128], strides = [1, 1]} : vector<10x128xf32> to vector<1x128xf32>
    %348 = vector.shape_cast %347 : vector<1x128xf32> to vector<128xf32>
    %349 = arith.mulf %348, %346 : vector<128xf32>
    %350 = arith.addf %330, %349 : vector<128xf32>
    %351 = vector.extract_strided_slice %344 {offsets = [2, 0], sizes = [1, 128], strides = [1, 1]} : vector<10x128xf32> to vector<1x128xf32>
    %352 = vector.shape_cast %351 : vector<1x128xf32> to vector<128xf32>
    %353 = arith.mulf %352, %346 : vector<128xf32>
    %354 = arith.addf %334, %353 : vector<128xf32>
    %355 = vector.extract_strided_slice %344 {offsets = [4, 0], sizes = [1, 128], strides = [1, 1]} : vector<10x128xf32> to vector<1x128xf32>
    %356 = vector.shape_cast %355 : vector<1x128xf32> to vector<128xf32>
    %357 = arith.mulf %356, %346 : vector<128xf32>
    %358 = arith.addf %338, %357 : vector<128xf32>
    %359 = vector.extract_strided_slice %344 {offsets = [6, 0], sizes = [1, 128], strides = [1, 1]} : vector<10x128xf32> to vector<1x128xf32>
    %360 = vector.shape_cast %359 : vector<1x128xf32> to vector<128xf32>
    %361 = arith.mulf %360, %346 : vector<128xf32>
    %362 = arith.addf %342, %361 : vector<128xf32>
    %c7_173 = arith.constant 7 : index
    %c0_174 = arith.constant 0 : index
    %363 = vector.load %arg14[%c7_173, %c0_174] : memref<9x128xf32, #tpu.memory_space<vmem>>, vector<1x128xf32>
    %364 = vector.shape_cast %363 : vector<1x128xf32> to vector<128xf32>
    %365 = vector.extract_strided_slice %344 {offsets = [1, 0], sizes = [1, 128], strides = [1, 1]} : vector<10x128xf32> to vector<1x128xf32>
    %366 = vector.shape_cast %365 : vector<1x128xf32> to vector<128xf32>
    %367 = arith.mulf %366, %364 : vector<128xf32>
    %368 = arith.addf %350, %367 : vector<128xf32>
    %369 = vector.extract_strided_slice %344 {offsets = [3, 0], sizes = [1, 128], strides = [1, 1]} : vector<10x128xf32> to vector<1x128xf32>
    %370 = vector.shape_cast %369 : vector<1x128xf32> to vector<128xf32>
    %371 = arith.mulf %370, %364 : vector<128xf32>
    %372 = arith.addf %354, %371 : vector<128xf32>
    %373 = vector.extract_strided_slice %344 {offsets = [5, 0], sizes = [1, 128], strides = [1, 1]} : vector<10x128xf32> to vector<1x128xf32>
    %374 = vector.shape_cast %373 : vector<1x128xf32> to vector<128xf32>
    %375 = arith.mulf %374, %364 : vector<128xf32>
    %376 = arith.addf %358, %375 : vector<128xf32>
    %377 = vector.extract_strided_slice %344 {offsets = [7, 0], sizes = [1, 128], strides = [1, 1]} : vector<10x128xf32> to vector<1x128xf32>
    %378 = vector.shape_cast %377 : vector<1x128xf32> to vector<128xf32>
    %379 = arith.mulf %378, %364 : vector<128xf32>
    %380 = arith.addf %362, %379 : vector<128xf32>
    %c8_175 = arith.constant 8 : index
    %c0_176 = arith.constant 0 : index
    %381 = vector.load %arg14[%c8_175, %c0_176] : memref<9x128xf32, #tpu.memory_space<vmem>>, vector<1x128xf32>
    %382 = vector.shape_cast %381 : vector<1x128xf32> to vector<128xf32>
    %383 = vector.extract_strided_slice %344 {offsets = [2, 0], sizes = [1, 128], strides = [1, 1]} : vector<10x128xf32> to vector<1x128xf32>
    %384 = vector.shape_cast %383 : vector<1x128xf32> to vector<128xf32>
    %385 = arith.mulf %384, %382 : vector<128xf32>
    %386 = arith.addf %368, %385 : vector<128xf32>
    %387 = vector.extract_strided_slice %344 {offsets = [4, 0], sizes = [1, 128], strides = [1, 1]} : vector<10x128xf32> to vector<1x128xf32>
    %388 = vector.shape_cast %387 : vector<1x128xf32> to vector<128xf32>
    %389 = arith.mulf %388, %382 : vector<128xf32>
    %390 = arith.addf %372, %389 : vector<128xf32>
    %391 = vector.extract_strided_slice %344 {offsets = [6, 0], sizes = [1, 128], strides = [1, 1]} : vector<10x128xf32> to vector<1x128xf32>
    %392 = vector.shape_cast %391 : vector<1x128xf32> to vector<128xf32>
    %393 = arith.mulf %392, %382 : vector<128xf32>
    %394 = arith.addf %376, %393 : vector<128xf32>
    %395 = vector.extract_strided_slice %344 {offsets = [8, 0], sizes = [1, 128], strides = [1, 1]} : vector<10x128xf32> to vector<1x128xf32>
    %396 = vector.shape_cast %395 : vector<1x128xf32> to vector<128xf32>
    %397 = arith.mulf %396, %382 : vector<128xf32>
    %398 = arith.addf %380, %397 : vector<128xf32>
    %c0_177 = arith.constant 0 : index
    %c0_178 = arith.constant 0 : index
    %399 = vector.load %arg15[%c0_177, %c0_178] : memref<1x128xf32, #tpu.memory_space<vmem>>, vector<1x128xf32>
    %400 = vector.shape_cast %399 : vector<1x128xf32> to vector<128xf32>
    %401 = arith.addf %386, %400 : vector<128xf32>
    %cst_179 = arith.constant 0.000000e+00 : f32
    %402 = vector.broadcast %cst_179 : f32 to vector<128xf32>
    %403 = arith.subf %402, %401 : vector<128xf32>
    %404 = math.exp %403 : vector<128xf32>
    %cst_180 = arith.constant 1.000000e+00 : f32
    %405 = vector.broadcast %cst_180 : f32 to vector<128xf32>
    %406 = arith.addf %405, %404 : vector<128xf32>
    %407 = tpu.reciprocal %406 {approx = true} : vector<128xf32> -> vector<128xf32>
    %408 = arith.mulf %401, %407 : vector<128xf32>
    %c0_181 = arith.constant 0 : index
    %c0_182 = arith.constant 0 : index
    %409 = vector.load %arg41[%c0_181, %c0_182] : memref<16x128xf32, #tpu.memory_space<vmem>>, vector<1x128xf32>
    %410 = vector.shape_cast %409 : vector<1x128xf32> to vector<128xf32>
    %411 = vector.shape_cast %408 : vector<128xf32> to vector<1x128xf32>
    tpu.vector_store %arg41[%c0_181, %c0_182], %411 {strides = array<i32>} : memref<16x128xf32, #tpu.memory_space<vmem>>, vector<1x128xf32>,
    %c0_183 = arith.constant 0 : index
    %c0_184 = arith.constant 0 : index
    %412 = vector.load %arg15[%c0_183, %c0_184] : memref<1x128xf32, #tpu.memory_space<vmem>>, vector<1x128xf32>
    %413 = vector.shape_cast %412 : vector<1x128xf32> to vector<128xf32>
    %414 = arith.addf %390, %413 : vector<128xf32>
    %cst_185 = arith.constant 0.000000e+00 : f32
    %415 = vector.broadcast %cst_185 : f32 to vector<128xf32>
    %416 = arith.subf %415, %414 : vector<128xf32>
    %417 = math.exp %416 : vector<128xf32>
    %cst_186 = arith.constant 1.000000e+00 : f32
    %418 = vector.broadcast %cst_186 : f32 to vector<128xf32>
    %419 = arith.addf %418, %417 : vector<128xf32>
    %420 = tpu.reciprocal %419 {approx = true} : vector<128xf32> -> vector<128xf32>
    %421 = arith.mulf %414, %420 : vector<128xf32>
    %c1_187 = arith.constant 1 : index
    %c0_188 = arith.constant 0 : index
    %422 = vector.load %arg41[%c1_187, %c0_188] : memref<16x128xf32, #tpu.memory_space<vmem>>, vector<1x128xf32>
    %423 = vector.shape_cast %422 : vector<1x128xf32> to vector<128xf32>
    %424 = vector.shape_cast %421 : vector<128xf32> to vector<1x128xf32>
    tpu.vector_store %arg41[%c1_187, %c0_188], %424 {strides = array<i32>} : memref<16x128xf32, #tpu.memory_space<vmem>>, vector<1x128xf32>,
    %c0_189 = arith.constant 0 : index
    %c0_190 = arith.constant 0 : index
    %425 = vector.load %arg15[%c0_189, %c0_190] : memref<1x128xf32, #tpu.memory_space<vmem>>, vector<1x128xf32>
    %426 = vector.shape_cast %425 : vector<1x128xf32> to vector<128xf32>
    %427 = arith.addf %394, %426 : vector<128xf32>
    %cst_191 = arith.constant 0.000000e+00 : f32
    %428 = vector.broadcast %cst_191 : f32 to vector<128xf32>
    %429 = arith.subf %428, %427 : vector<128xf32>
    %430 = math.exp %429 : vector<128xf32>
    %cst_192 = arith.constant 1.000000e+00 : f32
    %431 = vector.broadcast %cst_192 : f32 to vector<128xf32>
    %432 = arith.addf %431, %430 : vector<128xf32>
    %433 = tpu.reciprocal %432 {approx = true} : vector<128xf32> -> vector<128xf32>
    %434 = arith.mulf %427, %433 : vector<128xf32>
    %c2_193 = arith.constant 2 : index
    %c0_194 = arith.constant 0 : index
    %435 = vector.load %arg41[%c2_193, %c0_194] : memref<16x128xf32, #tpu.memory_space<vmem>>, vector<1x128xf32>
    %436 = vector.shape_cast %435 : vector<1x128xf32> to vector<128xf32>
    %437 = vector.shape_cast %434 : vector<128xf32> to vector<1x128xf32>
    tpu.vector_store %arg41[%c2_193, %c0_194], %437 {strides = array<i32>} : memref<16x128xf32, #tpu.memory_space<vmem>>, vector<1x128xf32>,
    %c0_195 = arith.constant 0 : index
    %c0_196 = arith.constant 0 : index
    %438 = vector.load %arg15[%c0_195, %c0_196] : memref<1x128xf32, #tpu.memory_space<vmem>>, vector<1x128xf32>
    %439 = vector.shape_cast %438 : vector<1x128xf32> to vector<128xf32>
    %440 = arith.addf %398, %439 : vector<128xf32>
    %cst_197 = arith.constant 0.000000e+00 : f32
    %441 = vector.broadcast %cst_197 : f32 to vector<128xf32>
    %442 = arith.subf %441, %440 : vector<128xf32>
    %443 = math.exp %442 : vector<128xf32>
    %cst_198 = arith.constant 1.000000e+00 : f32
    %444 = vector.broadcast %cst_198 : f32 to vector<128xf32>
    %445 = arith.addf %444, %443 : vector<128xf32>
    %446 = tpu.reciprocal %445 {approx = true} : vector<128xf32> -> vector<128xf32>
    %447 = arith.mulf %440, %446 : vector<128xf32>
    %c3_199 = arith.constant 3 : index
    %c0_200 = arith.constant 0 : index
    %448 = vector.load %arg41[%c3_199, %c0_200] : memref<16x128xf32, #tpu.memory_space<vmem>>, vector<1x128xf32>
    %449 = vector.shape_cast %448 : vector<1x128xf32> to vector<128xf32>
    %450 = vector.shape_cast %447 : vector<128xf32> to vector<1x128xf32>
    tpu.vector_store %arg41[%c3_199, %c0_200], %450 {strides = array<i32>} : memref<16x128xf32, #tpu.memory_space<vmem>>, vector<1x128xf32>,
    %cst_201 = arith.constant 0.000000e+00 : f32
    %451 = vector.broadcast %cst_201 : f32 to vector<128xf32>
    %cst_202 = arith.constant 0.000000e+00 : f32
    %452 = vector.broadcast %cst_202 : f32 to vector<128xf32>
    %cst_203 = arith.constant 0.000000e+00 : f32
    %453 = vector.broadcast %cst_203 : f32 to vector<128xf32>
    %cst_204 = arith.constant 0.000000e+00 : f32
    %454 = vector.broadcast %cst_204 : f32 to vector<128xf32>
    %c2_205 = arith.constant 2 : index
    %c0_206 = arith.constant 0 : index
    %c0_207 = arith.constant 0 : index
    %455 = vector.load %arg38[%c2_205, %c0_206, %c0_207] : memref<10x10x128xf32, #tpu.memory_space<vmem>>, vector<1x10x128xf32>
    %456 = vector.shape_cast %455 : vector<1x10x128xf32> to vector<10x128xf32>
    %c0_208 = arith.constant 0 : index
    %c0_209 = arith.constant 0 : index
    %457 = vector.load %arg14[%c0_208, %c0_209] : memref<9x128xf32, #tpu.memory_space<vmem>>, vector<1x128xf32>
    %458 = vector.shape_cast %457 : vector<1x128xf32> to vector<128xf32>
    %459 = vector.extract_strided_slice %456 {offsets = [0, 0], sizes = [1, 128], strides = [1, 1]} : vector<10x128xf32> to vector<1x128xf32>
    %460 = vector.shape_cast %459 : vector<1x128xf32> to vector<128xf32>
    %461 = arith.mulf %460, %458 : vector<128xf32>
    %462 = arith.addf %451, %461 : vector<128xf32>
    %463 = vector.extract_strided_slice %456 {offsets = [2, 0], sizes = [1, 128], strides = [1, 1]} : vector<10x128xf32> to vector<1x128xf32>
    %464 = vector.shape_cast %463 : vector<1x128xf32> to vector<128xf32>
    %465 = arith.mulf %464, %458 : vector<128xf32>
    %466 = arith.addf %452, %465 : vector<128xf32>
    %467 = vector.extract_strided_slice %456 {offsets = [4, 0], sizes = [1, 128], strides = [1, 1]} : vector<10x128xf32> to vector<1x128xf32>
    %468 = vector.shape_cast %467 : vector<1x128xf32> to vector<128xf32>
    %469 = arith.mulf %468, %458 : vector<128xf32>
    %470 = arith.addf %453, %469 : vector<128xf32>
    %471 = vector.extract_strided_slice %456 {offsets = [6, 0], sizes = [1, 128], strides = [1, 1]} : vector<10x128xf32> to vector<1x128xf32>
    %472 = vector.shape_cast %471 : vector<1x128xf32> to vector<128xf32>
    %473 = arith.mulf %472, %458 : vector<128xf32>
    %474 = arith.addf %454, %473 : vector<128xf32>
    %c1_210 = arith.constant 1 : index
    %c0_211 = arith.constant 0 : index
    %475 = vector.load %arg14[%c1_210, %c0_211] : memref<9x128xf32, #tpu.memory_space<vmem>>, vector<1x128xf32>
    %476 = vector.shape_cast %475 : vector<1x128xf32> to vector<128xf32>
    %477 = vector.extract_strided_slice %456 {offsets = [1, 0], sizes = [1, 128], strides = [1, 1]} : vector<10x128xf32> to vector<1x128xf32>
    %478 = vector.shape_cast %477 : vector<1x128xf32> to vector<128xf32>
    %479 = arith.mulf %478, %476 : vector<128xf32>
    %480 = arith.addf %462, %479 : vector<128xf32>
    %481 = vector.extract_strided_slice %456 {offsets = [3, 0], sizes = [1, 128], strides = [1, 1]} : vector<10x128xf32> to vector<1x128xf32>
    %482 = vector.shape_cast %481 : vector<1x128xf32> to vector<128xf32>
    %483 = arith.mulf %482, %476 : vector<128xf32>
    %484 = arith.addf %466, %483 : vector<128xf32>
    %485 = vector.extract_strided_slice %456 {offsets = [5, 0], sizes = [1, 128], strides = [1, 1]} : vector<10x128xf32> to vector<1x128xf32>
    %486 = vector.shape_cast %485 : vector<1x128xf32> to vector<128xf32>
    %487 = arith.mulf %486, %476 : vector<128xf32>
    %488 = arith.addf %470, %487 : vector<128xf32>
    %489 = vector.extract_strided_slice %456 {offsets = [7, 0], sizes = [1, 128], strides = [1, 1]} : vector<10x128xf32> to vector<1x128xf32>
    %490 = vector.shape_cast %489 : vector<1x128xf32> to vector<128xf32>
    %491 = arith.mulf %490, %476 : vector<128xf32>
    %492 = arith.addf %474, %491 : vector<128xf32>
    %c2_212 = arith.constant 2 : index
    %c0_213 = arith.constant 0 : index
    %493 = vector.load %arg14[%c2_212, %c0_213] : memref<9x128xf32, #tpu.memory_space<vmem>>, vector<1x128xf32>
    %494 = vector.shape_cast %493 : vector<1x128xf32> to vector<128xf32>
    %495 = vector.extract_strided_slice %456 {offsets = [2, 0], sizes = [1, 128], strides = [1, 1]} : vector<10x128xf32> to vector<1x128xf32>
    %496 = vector.shape_cast %495 : vector<1x128xf32> to vector<128xf32>
    %497 = arith.mulf %496, %494 : vector<128xf32>
    %498 = arith.addf %480, %497 : vector<128xf32>
    %499 = vector.extract_strided_slice %456 {offsets = [4, 0], sizes = [1, 128], strides = [1, 1]} : vector<10x128xf32> to vector<1x128xf32>
    %500 = vector.shape_cast %499 : vector<1x128xf32> to vector<128xf32>
    %501 = arith.mulf %500, %494 : vector<128xf32>
    %502 = arith.addf %484, %501 : vector<128xf32>
    %503 = vector.extract_strided_slice %456 {offsets = [6, 0], sizes = [1, 128], strides = [1, 1]} : vector<10x128xf32> to vector<1x128xf32>
    %504 = vector.shape_cast %503 : vector<1x128xf32> to vector<128xf32>
    %505 = arith.mulf %504, %494 : vector<128xf32>
    %506 = arith.addf %488, %505 : vector<128xf32>
    %507 = vector.extract_strided_slice %456 {offsets = [8, 0], sizes = [1, 128], strides = [1, 1]} : vector<10x128xf32> to vector<1x128xf32>
    %508 = vector.shape_cast %507 : vector<1x128xf32> to vector<128xf32>
    %509 = arith.mulf %508, %494 : vector<128xf32>
    %510 = arith.addf %492, %509 : vector<128xf32>
    %c3_214 = arith.constant 3 : index
    %c0_215 = arith.constant 0 : index
    %c0_216 = arith.constant 0 : index
    %511 = vector.load %arg38[%c3_214, %c0_215, %c0_216] : memref<10x10x128xf32, #tpu.memory_space<vmem>>, vector<1x10x128xf32>
    %512 = vector.shape_cast %511 : vector<1x10x128xf32> to vector<10x128xf32>
    %c3_217 = arith.constant 3 : index
    %c0_218 = arith.constant 0 : index
    %513 = vector.load %arg14[%c3_217, %c0_218] : memref<9x128xf32, #tpu.memory_space<vmem>>, vector<1x128xf32>
    %514 = vector.shape_cast %513 : vector<1x128xf32> to vector<128xf32>
    %515 = vector.extract_strided_slice %512 {offsets = [0, 0], sizes = [1, 128], strides = [1, 1]} : vector<10x128xf32> to vector<1x128xf32>
    %516 = vector.shape_cast %515 : vector<1x128xf32> to vector<128xf32>
    %517 = arith.mulf %516, %514 : vector<128xf32>
    %518 = arith.addf %498, %517 : vector<128xf32>
    %519 = vector.extract_strided_slice %512 {offsets = [2, 0], sizes = [1, 128], strides = [1, 1]} : vector<10x128xf32> to vector<1x128xf32>
    %520 = vector.shape_cast %519 : vector<1x128xf32> to vector<128xf32>
    %521 = arith.mulf %520, %514 : vector<128xf32>
    %522 = arith.addf %502, %521 : vector<128xf32>
    %523 = vector.extract_strided_slice %512 {offsets = [4, 0], sizes = [1, 128], strides = [1, 1]} : vector<10x128xf32> to vector<1x128xf32>
    %524 = vector.shape_cast %523 : vector<1x128xf32> to vector<128xf32>
    %525 = arith.mulf %524, %514 : vector<128xf32>
    %526 = arith.addf %506, %525 : vector<128xf32>
    %527 = vector.extract_strided_slice %512 {offsets = [6, 0], sizes = [1, 128], strides = [1, 1]} : vector<10x128xf32> to vector<1x128xf32>
    %528 = vector.shape_cast %527 : vector<1x128xf32> to vector<128xf32>
    %529 = arith.mulf %528, %514 : vector<128xf32>
    %530 = arith.addf %510, %529 : vector<128xf32>
    %c4_219 = arith.constant 4 : index
    %c0_220 = arith.constant 0 : index
    %531 = vector.load %arg14[%c4_219, %c0_220] : memref<9x128xf32, #tpu.memory_space<vmem>>, vector<1x128xf32>
    %532 = vector.shape_cast %531 : vector<1x128xf32> to vector<128xf32>
    %533 = vector.extract_strided_slice %512 {offsets = [1, 0], sizes = [1, 128], strides = [1, 1]} : vector<10x128xf32> to vector<1x128xf32>
    %534 = vector.shape_cast %533 : vector<1x128xf32> to vector<128xf32>
    %535 = arith.mulf %534, %532 : vector<128xf32>
    %536 = arith.addf %518, %535 : vector<128xf32>
    %537 = vector.extract_strided_slice %512 {offsets = [3, 0], sizes = [1, 128], strides = [1, 1]} : vector<10x128xf32> to vector<1x128xf32>
    %538 = vector.shape_cast %537 : vector<1x128xf32> to vector<128xf32>
    %539 = arith.mulf %538, %532 : vector<128xf32>
    %540 = arith.addf %522, %539 : vector<128xf32>
    %541 = vector.extract_strided_slice %512 {offsets = [5, 0], sizes = [1, 128], strides = [1, 1]} : vector<10x128xf32> to vector<1x128xf32>
    %542 = vector.shape_cast %541 : vector<1x128xf32> to vector<128xf32>
    %543 = arith.mulf %542, %532 : vector<128xf32>
    %544 = arith.addf %526, %543 : vector<128xf32>
    %545 = vector.extract_strided_slice %512 {offsets = [7, 0], sizes = [1, 128], strides = [1, 1]} : vector<10x128xf32> to vector<1x128xf32>
    %546 = vector.shape_cast %545 : vector<1x128xf32> to vector<128xf32>
    %547 = arith.mulf %546, %532 : vector<128xf32>
    %548 = arith.addf %530, %547 : vector<128xf32>
    %c5_221 = arith.constant 5 : index
    %c0_222 = arith.constant 0 : index
    %549 = vector.load %arg14[%c5_221, %c0_222] : memref<9x128xf32, #tpu.memory_space<vmem>>, vector<1x128xf32>
    %550 = vector.shape_cast %549 : vector<1x128xf32> to vector<128xf32>
    %551 = vector.extract_strided_slice %512 {offsets = [2, 0], sizes = [1, 128], strides = [1, 1]} : vector<10x128xf32> to vector<1x128xf32>
    %552 = vector.shape_cast %551 : vector<1x128xf32> to vector<128xf32>
    %553 = arith.mulf %552, %550 : vector<128xf32>
    %554 = arith.addf %536, %553 : vector<128xf32>
    %555 = vector.extract_strided_slice %512 {offsets = [4, 0], sizes = [1, 128], strides = [1, 1]} : vector<10x128xf32> to vector<1x128xf32>
    %556 = vector.shape_cast %555 : vector<1x128xf32> to vector<128xf32>
    %557 = arith.mulf %556, %550 : vector<128xf32>
    %558 = arith.addf %540, %557 : vector<128xf32>
    %559 = vector.extract_strided_slice %512 {offsets = [6, 0], sizes = [1, 128], strides = [1, 1]} : vector<10x128xf32> to vector<1x128xf32>
    %560 = vector.shape_cast %559 : vector<1x128xf32> to vector<128xf32>
    %561 = arith.mulf %560, %550 : vector<128xf32>
    %562 = arith.addf %544, %561 : vector<128xf32>
    %563 = vector.extract_strided_slice %512 {offsets = [8, 0], sizes = [1, 128], strides = [1, 1]} : vector<10x128xf32> to vector<1x128xf32>
    %564 = vector.shape_cast %563 : vector<1x128xf32> to vector<128xf32>
    %565 = arith.mulf %564, %550 : vector<128xf32>
    %566 = arith.addf %548, %565 : vector<128xf32>
    %c4_223 = arith.constant 4 : index
    %c0_224 = arith.constant 0 : index
    %c0_225 = arith.constant 0 : index
    %567 = vector.load %arg38[%c4_223, %c0_224, %c0_225] : memref<10x10x128xf32, #tpu.memory_space<vmem>>, vector<1x10x128xf32>
    %568 = vector.shape_cast %567 : vector<1x10x128xf32> to vector<10x128xf32>
    %c6_226 = arith.constant 6 : index
    %c0_227 = arith.constant 0 : index
    %569 = vector.load %arg14[%c6_226, %c0_227] : memref<9x128xf32, #tpu.memory_space<vmem>>, vector<1x128xf32>
    %570 = vector.shape_cast %569 : vector<1x128xf32> to vector<128xf32>
    %571 = vector.extract_strided_slice %568 {offsets = [0, 0], sizes = [1, 128], strides = [1, 1]} : vector<10x128xf32> to vector<1x128xf32>
    %572 = vector.shape_cast %571 : vector<1x128xf32> to vector<128xf32>
    %573 = arith.mulf %572, %570 : vector<128xf32>
    %574 = arith.addf %554, %573 : vector<128xf32>
    %575 = vector.extract_strided_slice %568 {offsets = [2, 0], sizes = [1, 128], strides = [1, 1]} : vector<10x128xf32> to vector<1x128xf32>
    %576 = vector.shape_cast %575 : vector<1x128xf32> to vector<128xf32>
    %577 = arith.mulf %576, %570 : vector<128xf32>
    %578 = arith.addf %558, %577 : vector<128xf32>
    %579 = vector.extract_strided_slice %568 {offsets = [4, 0], sizes = [1, 128], strides = [1, 1]} : vector<10x128xf32> to vector<1x128xf32>
    %580 = vector.shape_cast %579 : vector<1x128xf32> to vector<128xf32>
    %581 = arith.mulf %580, %570 : vector<128xf32>
    %582 = arith.addf %562, %581 : vector<128xf32>
    %583 = vector.extract_strided_slice %568 {offsets = [6, 0], sizes = [1, 128], strides = [1, 1]} : vector<10x128xf32> to vector<1x128xf32>
    %584 = vector.shape_cast %583 : vector<1x128xf32> to vector<128xf32>
    %585 = arith.mulf %584, %570 : vector<128xf32>
    %586 = arith.addf %566, %585 : vector<128xf32>
    %c7_228 = arith.constant 7 : index
    %c0_229 = arith.constant 0 : index
    %587 = vector.load %arg14[%c7_228, %c0_229] : memref<9x128xf32, #tpu.memory_space<vmem>>, vector<1x128xf32>
    %588 = vector.shape_cast %587 : vector<1x128xf32> to vector<128xf32>
    %589 = vector.extract_strided_slice %568 {offsets = [1, 0], sizes = [1, 128], strides = [1, 1]} : vector<10x128xf32> to vector<1x128xf32>
    %590 = vector.shape_cast %589 : vector<1x128xf32> to vector<128xf32>
    %591 = arith.mulf %590, %588 : vector<128xf32>
    %592 = arith.addf %574, %591 : vector<128xf32>
    %593 = vector.extract_strided_slice %568 {offsets = [3, 0], sizes = [1, 128], strides = [1, 1]} : vector<10x128xf32> to vector<1x128xf32>
    %594 = vector.shape_cast %593 : vector<1x128xf32> to vector<128xf32>
    %595 = arith.mulf %594, %588 : vector<128xf32>
    %596 = arith.addf %578, %595 : vector<128xf32>
    %597 = vector.extract_strided_slice %568 {offsets = [5, 0], sizes = [1, 128], strides = [1, 1]} : vector<10x128xf32> to vector<1x128xf32>
    %598 = vector.shape_cast %597 : vector<1x128xf32> to vector<128xf32>
    %599 = arith.mulf %598, %588 : vector<128xf32>
    %600 = arith.addf %582, %599 : vector<128xf32>
    %601 = vector.extract_strided_slice %568 {offsets = [7, 0], sizes = [1, 128], strides = [1, 1]} : vector<10x128xf32> to vector<1x128xf32>
    %602 = vector.shape_cast %601 : vector<1x128xf32> to vector<128xf32>
    %603 = arith.mulf %602, %588 : vector<128xf32>
    %604 = arith.addf %586, %603 : vector<128xf32>
    %c8_230 = arith.constant 8 : index
    %c0_231 = arith.constant 0 : index
    %605 = vector.load %arg14[%c8_230, %c0_231] : memref<9x128xf32, #tpu.memory_space<vmem>>, vector<1x128xf32>
    %606 = vector.shape_cast %605 : vector<1x128xf32> to vector<128xf32>
    %607 = vector.extract_strided_slice %568 {offsets = [2, 0], sizes = [1, 128], strides = [1, 1]} : vector<10x128xf32> to vector<1x128xf32>
    %608 = vector.shape_cast %607 : vector<1x128xf32> to vector<128xf32>
    %609 = arith.mulf %608, %606 : vector<128xf32>
    %610 = arith.addf %592, %609 : vector<128xf32>
    %611 = vector.extract_strided_slice %568 {offsets = [4, 0], sizes = [1, 128], strides = [1, 1]} : vector<10x128xf32> to vector<1x128xf32>
    %612 = vector.shape_cast %611 : vector<1x128xf32> to vector<128xf32>
    %613 = arith.mulf %612, %606 : vector<128xf32>
    %614 = arith.addf %596, %613 : vector<128xf32>
    %615 = vector.extract_strided_slice %568 {offsets = [6, 0], sizes = [1, 128], strides = [1, 1]} : vector<10x128xf32> to vector<1x128xf32>
    %616 = vector.shape_cast %615 : vector<1x128xf32> to vector<128xf32>
    %617 = arith.mulf %616, %606 : vector<128xf32>
    %618 = arith.addf %600, %617 : vector<128xf32>
    %619 = vector.extract_strided_slice %568 {offsets = [8, 0], sizes = [1, 128], strides = [1, 1]} : vector<10x128xf32> to vector<1x128xf32>
    %620 = vector.shape_cast %619 : vector<1x128xf32> to vector<128xf32>
    %621 = arith.mulf %620, %606 : vector<128xf32>
    %622 = arith.addf %604, %621 : vector<128xf32>
    %c0_232 = arith.constant 0 : index
    %c0_233 = arith.constant 0 : index
    %623 = vector.load %arg15[%c0_232, %c0_233] : memref<1x128xf32, #tpu.memory_space<vmem>>, vector<1x128xf32>
    %624 = vector.shape_cast %623 : vector<1x128xf32> to vector<128xf32>
    %625 = arith.addf %610, %624 : vector<128xf32>
    %cst_234 = arith.constant 0.000000e+00 : f32
    %626 = vector.broadcast %cst_234 : f32 to vector<128xf32>
    %627 = arith.subf %626, %625 : vector<128xf32>
    %628 = math.exp %627 : vector<128xf32>
    %cst_235 = arith.constant 1.000000e+00 : f32
    %629 = vector.broadcast %cst_235 : f32 to vector<128xf32>
    %630 = arith.addf %629, %628 : vector<128xf32>
    %631 = tpu.reciprocal %630 {approx = true} : vector<128xf32> -> vector<128xf32>
    %632 = arith.mulf %625, %631 : vector<128xf32>
    %c4_236 = arith.constant 4 : index
    %c0_237 = arith.constant 0 : index
    %633 = vector.load %arg41[%c4_236, %c0_237] : memref<16x128xf32, #tpu.memory_space<vmem>>, vector<1x128xf32>
    %634 = vector.shape_cast %633 : vector<1x128xf32> to vector<128xf32>
    %635 = vector.shape_cast %632 : vector<128xf32> to vector<1x128xf32>
    tpu.vector_store %arg41[%c4_236, %c0_237], %635 {strides = array<i32>} : memref<16x128xf32, #tpu.memory_space<vmem>>, vector<1x128xf32>,
    %c0_238 = arith.constant 0 : index
    %c0_239 = arith.constant 0 : index
    %636 = vector.load %arg15[%c0_238, %c0_239] : memref<1x128xf32, #tpu.memory_space<vmem>>, vector<1x128xf32>
    %637 = vector.shape_cast %636 : vector<1x128xf32> to vector<128xf32>
    %638 = arith.addf %614, %637 : vector<128xf32>
    %cst_240 = arith.constant 0.000000e+00 : f32
    %639 = vector.broadcast %cst_240 : f32 to vector<128xf32>
    %640 = arith.subf %639, %638 : vector<128xf32>
    %641 = math.exp %640 : vector<128xf32>
    %cst_241 = arith.constant 1.000000e+00 : f32
    %642 = vector.broadcast %cst_241 : f32 to vector<128xf32>
    %643 = arith.addf %642, %641 : vector<128xf32>
    %644 = tpu.reciprocal %643 {approx = true} : vector<128xf32> -> vector<128xf32>
    %645 = arith.mulf %638, %644 : vector<128xf32>
    %c5_242 = arith.constant 5 : index
    %c0_243 = arith.constant 0 : index
    %646 = vector.load %arg41[%c5_242, %c0_243] : memref<16x128xf32, #tpu.memory_space<vmem>>, vector<1x128xf32>
    %647 = vector.shape_cast %646 : vector<1x128xf32> to vector<128xf32>
    %648 = vector.shape_cast %645 : vector<128xf32> to vector<1x128xf32>
    tpu.vector_store %arg41[%c5_242, %c0_243], %648 {strides = array<i32>} : memref<16x128xf32, #tpu.memory_space<vmem>>, vector<1x128xf32>,
    %c0_244 = arith.constant 0 : index
    %c0_245 = arith.constant 0 : index
    %649 = vector.load %arg15[%c0_244, %c0_245] : memref<1x128xf32, #tpu.memory_space<vmem>>, vector<1x128xf32>
    %650 = vector.shape_cast %649 : vector<1x128xf32> to vector<128xf32>
    %651 = arith.addf %618, %650 : vector<128xf32>
    %cst_246 = arith.constant 0.000000e+00 : f32
    %652 = vector.broadcast %cst_246 : f32 to vector<128xf32>
    %653 = arith.subf %652, %651 : vector<128xf32>
    %654 = math.exp %653 : vector<128xf32>
    %cst_247 = arith.constant 1.000000e+00 : f32
    %655 = vector.broadcast %cst_247 : f32 to vector<128xf32>
    %656 = arith.addf %655, %654 : vector<128xf32>
    %657 = tpu.reciprocal %656 {approx = true} : vector<128xf32> -> vector<128xf32>
    %658 = arith.mulf %651, %657 : vector<128xf32>
    %c6_248 = arith.constant 6 : index
    %c0_249 = arith.constant 0 : index
    %659 = vector.load %arg41[%c6_248, %c0_249] : memref<16x128xf32, #tpu.memory_space<vmem>>, vector<1x128xf32>
    %660 = vector.shape_cast %659 : vector<1x128xf32> to vector<128xf32>
    %661 = vector.shape_cast %658 : vector<128xf32> to vector<1x128xf32>
    tpu.vector_store %arg41[%c6_248, %c0_249], %661 {strides = array<i32>} : memref<16x128xf32, #tpu.memory_space<vmem>>, vector<1x128xf32>,
    %c0_250 = arith.constant 0 : index
    %c0_251 = arith.constant 0 : index
    %662 = vector.load %arg15[%c0_250, %c0_251] : memref<1x128xf32, #tpu.memory_space<vmem>>, vector<1x128xf32>
    %663 = vector.shape_cast %662 : vector<1x128xf32> to vector<128xf32>
    %664 = arith.addf %622, %663 : vector<128xf32>
    %cst_252 = arith.constant 0.000000e+00 : f32
    %665 = vector.broadcast %cst_252 : f32 to vector<128xf32>
    %666 = arith.subf %665, %664 : vector<128xf32>
    %667 = math.exp %666 : vector<128xf32>
    %cst_253 = arith.constant 1.000000e+00 : f32
    %668 = vector.broadcast %cst_253 : f32 to vector<128xf32>
    %669 = arith.addf %668, %667 : vector<128xf32>
    %670 = tpu.reciprocal %669 {approx = true} : vector<128xf32> -> vector<128xf32>
    %671 = arith.mulf %664, %670 : vector<128xf32>
    %c7_254 = arith.constant 7 : index
    %c0_255 = arith.constant 0 : index
    %672 = vector.load %arg41[%c7_254, %c0_255] : memref<16x128xf32, #tpu.memory_space<vmem>>, vector<1x128xf32>
    %673 = vector.shape_cast %672 : vector<1x128xf32> to vector<128xf32>
    %674 = vector.shape_cast %671 : vector<128xf32> to vector<1x128xf32>
    tpu.vector_store %arg41[%c7_254, %c0_255], %674 {strides = array<i32>} : memref<16x128xf32, #tpu.memory_space<vmem>>, vector<1x128xf32>,
    %cst_256 = arith.constant 0.000000e+00 : f32
    %675 = vector.broadcast %cst_256 : f32 to vector<128xf32>
    %cst_257 = arith.constant 0.000000e+00 : f32
    %676 = vector.broadcast %cst_257 : f32 to vector<128xf32>
    %cst_258 = arith.constant 0.000000e+00 : f32
    %677 = vector.broadcast %cst_258 : f32 to vector<128xf32>
    %cst_259 = arith.constant 0.000000e+00 : f32
    %678 = vector.broadcast %cst_259 : f32 to vector<128xf32>
    %c4_260 = arith.constant 4 : index
    %c0_261 = arith.constant 0 : index
    %c0_262 = arith.constant 0 : index
    %679 = vector.load %arg38[%c4_260, %c0_261, %c0_262] : memref<10x10x128xf32, #tpu.memory_space<vmem>>, vector<1x10x128xf32>
    %680 = vector.shape_cast %679 : vector<1x10x128xf32> to vector<10x128xf32>
    %c0_263 = arith.constant 0 : index
    %c0_264 = arith.constant 0 : index
    %681 = vector.load %arg14[%c0_263, %c0_264] : memref<9x128xf32, #tpu.memory_space<vmem>>, vector<1x128xf32>
    %682 = vector.shape_cast %681 : vector<1x128xf32> to vector<128xf32>
    %683 = vector.extract_strided_slice %680 {offsets = [0, 0], sizes = [1, 128], strides = [1, 1]} : vector<10x128xf32> to vector<1x128xf32>
    %684 = vector.shape_cast %683 : vector<1x128xf32> to vector<128xf32>
    %685 = arith.mulf %684, %682 : vector<128xf32>
    %686 = arith.addf %675, %685 : vector<128xf32>
    %687 = vector.extract_strided_slice %680 {offsets = [2, 0], sizes = [1, 128], strides = [1, 1]} : vector<10x128xf32> to vector<1x128xf32>
    %688 = vector.shape_cast %687 : vector<1x128xf32> to vector<128xf32>
    %689 = arith.mulf %688, %682 : vector<128xf32>
    %690 = arith.addf %676, %689 : vector<128xf32>
    %691 = vector.extract_strided_slice %680 {offsets = [4, 0], sizes = [1, 128], strides = [1, 1]} : vector<10x128xf32> to vector<1x128xf32>
    %692 = vector.shape_cast %691 : vector<1x128xf32> to vector<128xf32>
    %693 = arith.mulf %692, %682 : vector<128xf32>
    %694 = arith.addf %677, %693 : vector<128xf32>
    %695 = vector.extract_strided_slice %680 {offsets = [6, 0], sizes = [1, 128], strides = [1, 1]} : vector<10x128xf32> to vector<1x128xf32>
    %696 = vector.shape_cast %695 : vector<1x128xf32> to vector<128xf32>
    %697 = arith.mulf %696, %682 : vector<128xf32>
    %698 = arith.addf %678, %697 : vector<128xf32>
    %c1_265 = arith.constant 1 : index
    %c0_266 = arith.constant 0 : index
    %699 = vector.load %arg14[%c1_265, %c0_266] : memref<9x128xf32, #tpu.memory_space<vmem>>, vector<1x128xf32>
    %700 = vector.shape_cast %699 : vector<1x128xf32> to vector<128xf32>
    %701 = vector.extract_strided_slice %680 {offsets = [1, 0], sizes = [1, 128], strides = [1, 1]} : vector<10x128xf32> to vector<1x128xf32>
    %702 = vector.shape_cast %701 : vector<1x128xf32> to vector<128xf32>
    %703 = arith.mulf %702, %700 : vector<128xf32>
    %704 = arith.addf %686, %703 : vector<128xf32>
    %705 = vector.extract_strided_slice %680 {offsets = [3, 0], sizes = [1, 128], strides = [1, 1]} : vector<10x128xf32> to vector<1x128xf32>
    %706 = vector.shape_cast %705 : vector<1x128xf32> to vector<128xf32>
    %707 = arith.mulf %706, %700 : vector<128xf32>
    %708 = arith.addf %690, %707 : vector<128xf32>
    %709 = vector.extract_strided_slice %680 {offsets = [5, 0], sizes = [1, 128], strides = [1, 1]} : vector<10x128xf32> to vector<1x128xf32>
    %710 = vector.shape_cast %709 : vector<1x128xf32> to vector<128xf32>
    %711 = arith.mulf %710, %700 : vector<128xf32>
    %712 = arith.addf %694, %711 : vector<128xf32>
    %713 = vector.extract_strided_slice %680 {offsets = [7, 0], sizes = [1, 128], strides = [1, 1]} : vector<10x128xf32> to vector<1x128xf32>
    %714 = vector.shape_cast %713 : vector<1x128xf32> to vector<128xf32>
    %715 = arith.mulf %714, %700 : vector<128xf32>
    %716 = arith.addf %698, %715 : vector<128xf32>
    %c2_267 = arith.constant 2 : index
    %c0_268 = arith.constant 0 : index
    %717 = vector.load %arg14[%c2_267, %c0_268] : memref<9x128xf32, #tpu.memory_space<vmem>>, vector<1x128xf32>
    %718 = vector.shape_cast %717 : vector<1x128xf32> to vector<128xf32>
    %719 = vector.extract_strided_slice %680 {offsets = [2, 0], sizes = [1, 128], strides = [1, 1]} : vector<10x128xf32> to vector<1x128xf32>
    %720 = vector.shape_cast %719 : vector<1x128xf32> to vector<128xf32>
    %721 = arith.mulf %720, %718 : vector<128xf32>
    %722 = arith.addf %704, %721 : vector<128xf32>
    %723 = vector.extract_strided_slice %680 {offsets = [4, 0], sizes = [1, 128], strides = [1, 1]} : vector<10x128xf32> to vector<1x128xf32>
    %724 = vector.shape_cast %723 : vector<1x128xf32> to vector<128xf32>
    %725 = arith.mulf %724, %718 : vector<128xf32>
    %726 = arith.addf %708, %725 : vector<128xf32>
    %727 = vector.extract_strided_slice %680 {offsets = [6, 0], sizes = [1, 128], strides = [1, 1]} : vector<10x128xf32> to vector<1x128xf32>
    %728 = vector.shape_cast %727 : vector<1x128xf32> to vector<128xf32>
    %729 = arith.mulf %728, %718 : vector<128xf32>
    %730 = arith.addf %712, %729 : vector<128xf32>
    %731 = vector.extract_strided_slice %680 {offsets = [8, 0], sizes = [1, 128], strides = [1, 1]} : vector<10x128xf32> to vector<1x128xf32>
    %732 = vector.shape_cast %731 : vector<1x128xf32> to vector<128xf32>
    %733 = arith.mulf %732, %718 : vector<128xf32>
    %734 = arith.addf %716, %733 : vector<128xf32>
    %c5_269 = arith.constant 5 : index
    %c0_270 = arith.constant 0 : index
    %c0_271 = arith.constant 0 : index
    %735 = vector.load %arg38[%c5_269, %c0_270, %c0_271] : memref<10x10x128xf32, #tpu.memory_space<vmem>>, vector<1x10x128xf32>
    %736 = vector.shape_cast %735 : vector<1x10x128xf32> to vector<10x128xf32>
    %c3_272 = arith.constant 3 : index
    %c0_273 = arith.constant 0 : index
    %737 = vector.load %arg14[%c3_272, %c0_273] : memref<9x128xf32, #tpu.memory_space<vmem>>, vector<1x128xf32>
    %738 = vector.shape_cast %737 : vector<1x128xf32> to vector<128xf32>
    %739 = vector.extract_strided_slice %736 {offsets = [0, 0], sizes = [1, 128], strides = [1, 1]} : vector<10x128xf32> to vector<1x128xf32>
    %740 = vector.shape_cast %739 : vector<1x128xf32> to vector<128xf32>
    %741 = arith.mulf %740, %738 : vector<128xf32>
    %742 = arith.addf %722, %741 : vector<128xf32>
    %743 = vector.extract_strided_slice %736 {offsets = [2, 0], sizes = [1, 128], strides = [1, 1]} : vector<10x128xf32> to vector<1x128xf32>
    %744 = vector.shape_cast %743 : vector<1x128xf32> to vector<128xf32>
    %745 = arith.mulf %744, %738 : vector<128xf32>
    %746 = arith.addf %726, %745 : vector<128xf32>
    %747 = vector.extract_strided_slice %736 {offsets = [4, 0], sizes = [1, 128], strides = [1, 1]} : vector<10x128xf32> to vector<1x128xf32>
    %748 = vector.shape_cast %747 : vector<1x128xf32> to vector<128xf32>
    %749 = arith.mulf %748, %738 : vector<128xf32>
    %750 = arith.addf %730, %749 : vector<128xf32>
    %751 = vector.extract_strided_slice %736 {offsets = [6, 0], sizes = [1, 128], strides = [1, 1]} : vector<10x128xf32> to vector<1x128xf32>
    %752 = vector.shape_cast %751 : vector<1x128xf32> to vector<128xf32>
    %753 = arith.mulf %752, %738 : vector<128xf32>
    %754 = arith.addf %734, %753 : vector<128xf32>
    %c4_274 = arith.constant 4 : index
    %c0_275 = arith.constant 0 : index
    %755 = vector.load %arg14[%c4_274, %c0_275] : memref<9x128xf32, #tpu.memory_space<vmem>>, vector<1x128xf32>
    %756 = vector.shape_cast %755 : vector<1x128xf32> to vector<128xf32>
    %757 = vector.extract_strided_slice %736 {offsets = [1, 0], sizes = [1, 128], strides = [1, 1]} : vector<10x128xf32> to vector<1x128xf32>
    %758 = vector.shape_cast %757 : vector<1x128xf32> to vector<128xf32>
    %759 = arith.mulf %758, %756 : vector<128xf32>
    %760 = arith.addf %742, %759 : vector<128xf32>
    %761 = vector.extract_strided_slice %736 {offsets = [3, 0], sizes = [1, 128], strides = [1, 1]} : vector<10x128xf32> to vector<1x128xf32>
    %762 = vector.shape_cast %761 : vector<1x128xf32> to vector<128xf32>
    %763 = arith.mulf %762, %756 : vector<128xf32>
    %764 = arith.addf %746, %763 : vector<128xf32>
    %765 = vector.extract_strided_slice %736 {offsets = [5, 0], sizes = [1, 128], strides = [1, 1]} : vector<10x128xf32> to vector<1x128xf32>
    %766 = vector.shape_cast %765 : vector<1x128xf32> to vector<128xf32>
    %767 = arith.mulf %766, %756 : vector<128xf32>
    %768 = arith.addf %750, %767 : vector<128xf32>
    %769 = vector.extract_strided_slice %736 {offsets = [7, 0], sizes = [1, 128], strides = [1, 1]} : vector<10x128xf32> to vector<1x128xf32>
    %770 = vector.shape_cast %769 : vector<1x128xf32> to vector<128xf32>
    %771 = arith.mulf %770, %756 : vector<128xf32>
    %772 = arith.addf %754, %771 : vector<128xf32>
    %c5_276 = arith.constant 5 : index
    %c0_277 = arith.constant 0 : index
    %773 = vector.load %arg14[%c5_276, %c0_277] : memref<9x128xf32, #tpu.memory_space<vmem>>, vector<1x128xf32>
    %774 = vector.shape_cast %773 : vector<1x128xf32> to vector<128xf32>
    %775 = vector.extract_strided_slice %736 {offsets = [2, 0], sizes = [1, 128], strides = [1, 1]} : vector<10x128xf32> to vector<1x128xf32>
    %776 = vector.shape_cast %775 : vector<1x128xf32> to vector<128xf32>
    %777 = arith.mulf %776, %774 : vector<128xf32>
    %778 = arith.addf %760, %777 : vector<128xf32>
    %779 = vector.extract_strided_slice %736 {offsets = [4, 0], sizes = [1, 128], strides = [1, 1]} : vector<10x128xf32> to vector<1x128xf32>
    %780 = vector.shape_cast %779 : vector<1x128xf32> to vector<128xf32>
    %781 = arith.mulf %780, %774 : vector<128xf32>
    %782 = arith.addf %764, %781 : vector<128xf32>
    %783 = vector.extract_strided_slice %736 {offsets = [6, 0], sizes = [1, 128], strides = [1, 1]} : vector<10x128xf32> to vector<1x128xf32>
    %784 = vector.shape_cast %783 : vector<1x128xf32> to vector<128xf32>
    %785 = arith.mulf %784, %774 : vector<128xf32>
    %786 = arith.addf %768, %785 : vector<128xf32>
    %787 = vector.extract_strided_slice %736 {offsets = [8, 0], sizes = [1, 128], strides = [1, 1]} : vector<10x128xf32> to vector<1x128xf32>
    %788 = vector.shape_cast %787 : vector<1x128xf32> to vector<128xf32>
    %789 = arith.mulf %788, %774 : vector<128xf32>
    %790 = arith.addf %772, %789 : vector<128xf32>
    %c6_278 = arith.constant 6 : index
    %c0_279 = arith.constant 0 : index
    %c0_280 = arith.constant 0 : index
    %791 = vector.load %arg38[%c6_278, %c0_279, %c0_280] : memref<10x10x128xf32, #tpu.memory_space<vmem>>, vector<1x10x128xf32>
    %792 = vector.shape_cast %791 : vector<1x10x128xf32> to vector<10x128xf32>
    %c6_281 = arith.constant 6 : index
    %c0_282 = arith.constant 0 : index
    %793 = vector.load %arg14[%c6_281, %c0_282] : memref<9x128xf32, #tpu.memory_space<vmem>>, vector<1x128xf32>
    %794 = vector.shape_cast %793 : vector<1x128xf32> to vector<128xf32>
    %795 = vector.extract_strided_slice %792 {offsets = [0, 0], sizes = [1, 128], strides = [1, 1]} : vector<10x128xf32> to vector<1x128xf32>
    %796 = vector.shape_cast %795 : vector<1x128xf32> to vector<128xf32>
    %797 = arith.mulf %796, %794 : vector<128xf32>
    %798 = arith.addf %778, %797 : vector<128xf32>
    %799 = vector.extract_strided_slice %792 {offsets = [2, 0], sizes = [1, 128], strides = [1, 1]} : vector<10x128xf32> to vector<1x128xf32>
    %800 = vector.shape_cast %799 : vector<1x128xf32> to vector<128xf32>
    %801 = arith.mulf %800, %794 : vector<128xf32>
    %802 = arith.addf %782, %801 : vector<128xf32>
    %803 = vector.extract_strided_slice %792 {offsets = [4, 0], sizes = [1, 128], strides = [1, 1]} : vector<10x128xf32> to vector<1x128xf32>
    %804 = vector.shape_cast %803 : vector<1x128xf32> to vector<128xf32>
    %805 = arith.mulf %804, %794 : vector<128xf32>
    %806 = arith.addf %786, %805 : vector<128xf32>
    %807 = vector.extract_strided_slice %792 {offsets = [6, 0], sizes = [1, 128], strides = [1, 1]} : vector<10x128xf32> to vector<1x128xf32>
    %808 = vector.shape_cast %807 : vector<1x128xf32> to vector<128xf32>
    %809 = arith.mulf %808, %794 : vector<128xf32>
    %810 = arith.addf %790, %809 : vector<128xf32>
    %c7_283 = arith.constant 7 : index
    %c0_284 = arith.constant 0 : index
    %811 = vector.load %arg14[%c7_283, %c0_284] : memref<9x128xf32, #tpu.memory_space<vmem>>, vector<1x128xf32>
    %812 = vector.shape_cast %811 : vector<1x128xf32> to vector<128xf32>
    %813 = vector.extract_strided_slice %792 {offsets = [1, 0], sizes = [1, 128], strides = [1, 1]} : vector<10x128xf32> to vector<1x128xf32>
    %814 = vector.shape_cast %813 : vector<1x128xf32> to vector<128xf32>
    %815 = arith.mulf %814, %812 : vector<128xf32>
    %816 = arith.addf %798, %815 : vector<128xf32>
    %817 = vector.extract_strided_slice %792 {offsets = [3, 0], sizes = [1, 128], strides = [1, 1]} : vector<10x128xf32> to vector<1x128xf32>
    %818 = vector.shape_cast %817 : vector<1x128xf32> to vector<128xf32>
    %819 = arith.mulf %818, %812 : vector<128xf32>
    %820 = arith.addf %802, %819 : vector<128xf32>
    %821 = vector.extract_strided_slice %792 {offsets = [5, 0], sizes = [1, 128], strides = [1, 1]} : vector<10x128xf32> to vector<1x128xf32>
    %822 = vector.shape_cast %821 : vector<1x128xf32> to vector<128xf32>
    %823 = arith.mulf %822, %812 : vector<128xf32>
    %824 = arith.addf %806, %823 : vector<128xf32>
    %825 = vector.extract_strided_slice %792 {offsets = [7, 0], sizes = [1, 128], strides = [1, 1]} : vector<10x128xf32> to vector<1x128xf32>
    %826 = vector.shape_cast %825 : vector<1x128xf32> to vector<128xf32>
    %827 = arith.mulf %826, %812 : vector<128xf32>
    %828 = arith.addf %810, %827 : vector<128xf32>
    %c8_285 = arith.constant 8 : index
    %c0_286 = arith.constant 0 : index
    %829 = vector.load %arg14[%c8_285, %c0_286] : memref<9x128xf32, #tpu.memory_space<vmem>>, vector<1x128xf32>
    %830 = vector.shape_cast %829 : vector<1x128xf32> to vector<128xf32>
    %831 = vector.extract_strided_slice %792 {offsets = [2, 0], sizes = [1, 128], strides = [1, 1]} : vector<10x128xf32> to vector<1x128xf32>
    %832 = vector.shape_cast %831 : vector<1x128xf32> to vector<128xf32>
    %833 = arith.mulf %832, %830 : vector<128xf32>
    %834 = arith.addf %816, %833 : vector<128xf32>
    %835 = vector.extract_strided_slice %792 {offsets = [4, 0], sizes = [1, 128], strides = [1, 1]} : vector<10x128xf32> to vector<1x128xf32>
    %836 = vector.shape_cast %835 : vector<1x128xf32> to vector<128xf32>
    %837 = arith.mulf %836, %830 : vector<128xf32>
    %838 = arith.addf %820, %837 : vector<128xf32>
    %839 = vector.extract_strided_slice %792 {offsets = [6, 0], sizes = [1, 128], strides = [1, 1]} : vector<10x128xf32> to vector<1x128xf32>
    %840 = vector.shape_cast %839 : vector<1x128xf32> to vector<128xf32>
    %841 = arith.mulf %840, %830 : vector<128xf32>
    %842 = arith.addf %824, %841 : vector<128xf32>
    %843 = vector.extract_strided_slice %792 {offsets = [8, 0], sizes = [1, 128], strides = [1, 1]} : vector<10x128xf32> to vector<1x128xf32>
    %844 = vector.shape_cast %843 : vector<1x128xf32> to vector<128xf32>
    %845 = arith.mulf %844, %830 : vector<128xf32>
    %846 = arith.addf %828, %845 : vector<128xf32>
    %c0_287 = arith.constant 0 : index
    %c0_288 = arith.constant 0 : index
    %847 = vector.load %arg15[%c0_287, %c0_288] : memref<1x128xf32, #tpu.memory_space<vmem>>, vector<1x128xf32>
    %848 = vector.shape_cast %847 : vector<1x128xf32> to vector<128xf32>
    %849 = arith.addf %834, %848 : vector<128xf32>
    %cst_289 = arith.constant 0.000000e+00 : f32
    %850 = vector.broadcast %cst_289 : f32 to vector<128xf32>
    %851 = arith.subf %850, %849 : vector<128xf32>
    %852 = math.exp %851 : vector<128xf32>
    %cst_290 = arith.constant 1.000000e+00 : f32
    %853 = vector.broadcast %cst_290 : f32 to vector<128xf32>
    %854 = arith.addf %853, %852 : vector<128xf32>
    %855 = tpu.reciprocal %854 {approx = true} : vector<128xf32> -> vector<128xf32>
    %856 = arith.mulf %849, %855 : vector<128xf32>
    %c8_291 = arith.constant 8 : index
    %c0_292 = arith.constant 0 : index
    %857 = vector.load %arg41[%c8_291, %c0_292] : memref<16x128xf32, #tpu.memory_space<vmem>>, vector<1x128xf32>
    %858 = vector.shape_cast %857 : vector<1x128xf32> to vector<128xf32>
    %859 = vector.shape_cast %856 : vector<128xf32> to vector<1x128xf32>
    tpu.vector_store %arg41[%c8_291, %c0_292], %859 {strides = array<i32>} : memref<16x128xf32, #tpu.memory_space<vmem>>, vector<1x128xf32>,
    %c0_293 = arith.constant 0 : index
    %c0_294 = arith.constant 0 : index
    %860 = vector.load %arg15[%c0_293, %c0_294] : memref<1x128xf32, #tpu.memory_space<vmem>>, vector<1x128xf32>
    %861 = vector.shape_cast %860 : vector<1x128xf32> to vector<128xf32>
    %862 = arith.addf %838, %861 : vector<128xf32>
    %cst_295 = arith.constant 0.000000e+00 : f32
    %863 = vector.broadcast %cst_295 : f32 to vector<128xf32>
    %864 = arith.subf %863, %862 : vector<128xf32>
    %865 = math.exp %864 : vector<128xf32>
    %cst_296 = arith.constant 1.000000e+00 : f32
    %866 = vector.broadcast %cst_296 : f32 to vector<128xf32>
    %867 = arith.addf %866, %865 : vector<128xf32>
    %868 = tpu.reciprocal %867 {approx = true} : vector<128xf32> -> vector<128xf32>
    %869 = arith.mulf %862, %868 : vector<128xf32>
    %c9 = arith.constant 9 : index
    %c0_297 = arith.constant 0 : index
    %870 = vector.load %arg41[%c9, %c0_297] : memref<16x128xf32, #tpu.memory_space<vmem>>, vector<1x128xf32>
    %871 = vector.shape_cast %870 : vector<1x128xf32> to vector<128xf32>
    %872 = vector.shape_cast %869 : vector<128xf32> to vector<1x128xf32>
    tpu.vector_store %arg41[%c9, %c0_297], %872 {strides = array<i32>} : memref<16x128xf32, #tpu.memory_space<vmem>>, vector<1x128xf32>,
    %c0_298 = arith.constant 0 : index
    %c0_299 = arith.constant 0 : index
    %873 = vector.load %arg15[%c0_298, %c0_299] : memref<1x128xf32, #tpu.memory_space<vmem>>, vector<1x128xf32>
    %874 = vector.shape_cast %873 : vector<1x128xf32> to vector<128xf32>
    %875 = arith.addf %842, %874 : vector<128xf32>
    %cst_300 = arith.constant 0.000000e+00 : f32
    %876 = vector.broadcast %cst_300 : f32 to vector<128xf32>
    %877 = arith.subf %876, %875 : vector<128xf32>
    %878 = math.exp %877 : vector<128xf32>
    %cst_301 = arith.constant 1.000000e+00 : f32
    %879 = vector.broadcast %cst_301 : f32 to vector<128xf32>
    %880 = arith.addf %879, %878 : vector<128xf32>
    %881 = tpu.reciprocal %880 {approx = true} : vector<128xf32> -> vector<128xf32>
    %882 = arith.mulf %875, %881 : vector<128xf32>
    %c10 = arith.constant 10 : index
    %c0_302 = arith.constant 0 : index
    %883 = vector.load %arg41[%c10, %c0_302] : memref<16x128xf32, #tpu.memory_space<vmem>>, vector<1x128xf32>
    %884 = vector.shape_cast %883 : vector<1x128xf32> to vector<128xf32>
    %885 = vector.shape_cast %882 : vector<128xf32> to vector<1x128xf32>
    tpu.vector_store %arg41[%c10, %c0_302], %885 {strides = array<i32>} : memref<16x128xf32, #tpu.memory_space<vmem>>, vector<1x128xf32>,
    %c0_303 = arith.constant 0 : index
    %c0_304 = arith.constant 0 : index
    %886 = vector.load %arg15[%c0_303, %c0_304] : memref<1x128xf32, #tpu.memory_space<vmem>>, vector<1x128xf32>
    %887 = vector.shape_cast %886 : vector<1x128xf32> to vector<128xf32>
    %888 = arith.addf %846, %887 : vector<128xf32>
    %cst_305 = arith.constant 0.000000e+00 : f32
    %889 = vector.broadcast %cst_305 : f32 to vector<128xf32>
    %890 = arith.subf %889, %888 : vector<128xf32>
    %891 = math.exp %890 : vector<128xf32>
    %cst_306 = arith.constant 1.000000e+00 : f32
    %892 = vector.broadcast %cst_306 : f32 to vector<128xf32>
    %893 = arith.addf %892, %891 : vector<128xf32>
    %894 = tpu.reciprocal %893 {approx = true} : vector<128xf32> -> vector<128xf32>
    %895 = arith.mulf %888, %894 : vector<128xf32>
    %c11 = arith.constant 11 : index
    %c0_307 = arith.constant 0 : index
    %896 = vector.load %arg41[%c11, %c0_307] : memref<16x128xf32, #tpu.memory_space<vmem>>, vector<1x128xf32>
    %897 = vector.shape_cast %896 : vector<1x128xf32> to vector<128xf32>
    %898 = vector.shape_cast %895 : vector<128xf32> to vector<1x128xf32>
    tpu.vector_store %arg41[%c11, %c0_307], %898 {strides = array<i32>} : memref<16x128xf32, #tpu.memory_space<vmem>>, vector<1x128xf32>,
    %cst_308 = arith.constant 0.000000e+00 : f32
    %899 = vector.broadcast %cst_308 : f32 to vector<128xf32>
    %cst_309 = arith.constant 0.000000e+00 : f32
    %900 = vector.broadcast %cst_309 : f32 to vector<128xf32>
    %cst_310 = arith.constant 0.000000e+00 : f32
    %901 = vector.broadcast %cst_310 : f32 to vector<128xf32>
    %cst_311 = arith.constant 0.000000e+00 : f32
    %902 = vector.broadcast %cst_311 : f32 to vector<128xf32>
    %c6_312 = arith.constant 6 : index
    %c0_313 = arith.constant 0 : index
    %c0_314 = arith.constant 0 : index
    %903 = vector.load %arg38[%c6_312, %c0_313, %c0_314] : memref<10x10x128xf32, #tpu.memory_space<vmem>>, vector<1x10x128xf32>
    %904 = vector.shape_cast %903 : vector<1x10x128xf32> to vector<10x128xf32>
    %c0_315 = arith.constant 0 : index
    %c0_316 = arith.constant 0 : index
    %905 = vector.load %arg14[%c0_315, %c0_316] : memref<9x128xf32, #tpu.memory_space<vmem>>, vector<1x128xf32>
    %906 = vector.shape_cast %905 : vector<1x128xf32> to vector<128xf32>
    %907 = vector.extract_strided_slice %904 {offsets = [0, 0], sizes = [1, 128], strides = [1, 1]} : vector<10x128xf32> to vector<1x128xf32>
    %908 = vector.shape_cast %907 : vector<1x128xf32> to vector<128xf32>
    %909 = arith.mulf %908, %906 : vector<128xf32>
    %910 = arith.addf %899, %909 : vector<128xf32>
    %911 = vector.extract_strided_slice %904 {offsets = [2, 0], sizes = [1, 128], strides = [1, 1]} : vector<10x128xf32> to vector<1x128xf32>
    %912 = vector.shape_cast %911 : vector<1x128xf32> to vector<128xf32>
    %913 = arith.mulf %912, %906 : vector<128xf32>
    %914 = arith.addf %900, %913 : vector<128xf32>
    %915 = vector.extract_strided_slice %904 {offsets = [4, 0], sizes = [1, 128], strides = [1, 1]} : vector<10x128xf32> to vector<1x128xf32>
    %916 = vector.shape_cast %915 : vector<1x128xf32> to vector<128xf32>
    %917 = arith.mulf %916, %906 : vector<128xf32>
    %918 = arith.addf %901, %917 : vector<128xf32>
    %919 = vector.extract_strided_slice %904 {offsets = [6, 0], sizes = [1, 128], strides = [1, 1]} : vector<10x128xf32> to vector<1x128xf32>
    %920 = vector.shape_cast %919 : vector<1x128xf32> to vector<128xf32>
    %921 = arith.mulf %920, %906 : vector<128xf32>
    %922 = arith.addf %902, %921 : vector<128xf32>
    %c1_317 = arith.constant 1 : index
    %c0_318 = arith.constant 0 : index
    %923 = vector.load %arg14[%c1_317, %c0_318] : memref<9x128xf32, #tpu.memory_space<vmem>>, vector<1x128xf32>
    %924 = vector.shape_cast %923 : vector<1x128xf32> to vector<128xf32>
    %925 = vector.extract_strided_slice %904 {offsets = [1, 0], sizes = [1, 128], strides = [1, 1]} : vector<10x128xf32> to vector<1x128xf32>
    %926 = vector.shape_cast %925 : vector<1x128xf32> to vector<128xf32>
    %927 = arith.mulf %926, %924 : vector<128xf32>
    %928 = arith.addf %910, %927 : vector<128xf32>
    %929 = vector.extract_strided_slice %904 {offsets = [3, 0], sizes = [1, 128], strides = [1, 1]} : vector<10x128xf32> to vector<1x128xf32>
    %930 = vector.shape_cast %929 : vector<1x128xf32> to vector<128xf32>
    %931 = arith.mulf %930, %924 : vector<128xf32>
    %932 = arith.addf %914, %931 : vector<128xf32>
    %933 = vector.extract_strided_slice %904 {offsets = [5, 0], sizes = [1, 128], strides = [1, 1]} : vector<10x128xf32> to vector<1x128xf32>
    %934 = vector.shape_cast %933 : vector<1x128xf32> to vector<128xf32>
    %935 = arith.mulf %934, %924 : vector<128xf32>
    %936 = arith.addf %918, %935 : vector<128xf32>
    %937 = vector.extract_strided_slice %904 {offsets = [7, 0], sizes = [1, 128], strides = [1, 1]} : vector<10x128xf32> to vector<1x128xf32>
    %938 = vector.shape_cast %937 : vector<1x128xf32> to vector<128xf32>
    %939 = arith.mulf %938, %924 : vector<128xf32>
    %940 = arith.addf %922, %939 : vector<128xf32>
    %c2_319 = arith.constant 2 : index
    %c0_320 = arith.constant 0 : index
    %941 = vector.load %arg14[%c2_319, %c0_320] : memref<9x128xf32, #tpu.memory_space<vmem>>, vector<1x128xf32>
    %942 = vector.shape_cast %941 : vector<1x128xf32> to vector<128xf32>
    %943 = vector.extract_strided_slice %904 {offsets = [2, 0], sizes = [1, 128], strides = [1, 1]} : vector<10x128xf32> to vector<1x128xf32>
    %944 = vector.shape_cast %943 : vector<1x128xf32> to vector<128xf32>
    %945 = arith.mulf %944, %942 : vector<128xf32>
    %946 = arith.addf %928, %945 : vector<128xf32>
    %947 = vector.extract_strided_slice %904 {offsets = [4, 0], sizes = [1, 128], strides = [1, 1]} : vector<10x128xf32> to vector<1x128xf32>
    %948 = vector.shape_cast %947 : vector<1x128xf32> to vector<128xf32>
    %949 = arith.mulf %948, %942 : vector<128xf32>
    %950 = arith.addf %932, %949 : vector<128xf32>
    %951 = vector.extract_strided_slice %904 {offsets = [6, 0], sizes = [1, 128], strides = [1, 1]} : vector<10x128xf32> to vector<1x128xf32>
    %952 = vector.shape_cast %951 : vector<1x128xf32> to vector<128xf32>
    %953 = arith.mulf %952, %942 : vector<128xf32>
    %954 = arith.addf %936, %953 : vector<128xf32>
    %955 = vector.extract_strided_slice %904 {offsets = [8, 0], sizes = [1, 128], strides = [1, 1]} : vector<10x128xf32> to vector<1x128xf32>
    %956 = vector.shape_cast %955 : vector<1x128xf32> to vector<128xf32>
    %957 = arith.mulf %956, %942 : vector<128xf32>
    %958 = arith.addf %940, %957 : vector<128xf32>
    %c7_321 = arith.constant 7 : index
    %c0_322 = arith.constant 0 : index
    %c0_323 = arith.constant 0 : index
    %959 = vector.load %arg38[%c7_321, %c0_322, %c0_323] : memref<10x10x128xf32, #tpu.memory_space<vmem>>, vector<1x10x128xf32>
    %960 = vector.shape_cast %959 : vector<1x10x128xf32> to vector<10x128xf32>
    %c3_324 = arith.constant 3 : index
    %c0_325 = arith.constant 0 : index
    %961 = vector.load %arg14[%c3_324, %c0_325] : memref<9x128xf32, #tpu.memory_space<vmem>>, vector<1x128xf32>
    %962 = vector.shape_cast %961 : vector<1x128xf32> to vector<128xf32>
    %963 = vector.extract_strided_slice %960 {offsets = [0, 0], sizes = [1, 128], strides = [1, 1]} : vector<10x128xf32> to vector<1x128xf32>
    %964 = vector.shape_cast %963 : vector<1x128xf32> to vector<128xf32>
    %965 = arith.mulf %964, %962 : vector<128xf32>
    %966 = arith.addf %946, %965 : vector<128xf32>
    %967 = vector.extract_strided_slice %960 {offsets = [2, 0], sizes = [1, 128], strides = [1, 1]} : vector<10x128xf32> to vector<1x128xf32>
    %968 = vector.shape_cast %967 : vector<1x128xf32> to vector<128xf32>
    %969 = arith.mulf %968, %962 : vector<128xf32>
    %970 = arith.addf %950, %969 : vector<128xf32>
    %971 = vector.extract_strided_slice %960 {offsets = [4, 0], sizes = [1, 128], strides = [1, 1]} : vector<10x128xf32> to vector<1x128xf32>
    %972 = vector.shape_cast %971 : vector<1x128xf32> to vector<128xf32>
    %973 = arith.mulf %972, %962 : vector<128xf32>
    %974 = arith.addf %954, %973 : vector<128xf32>
    %975 = vector.extract_strided_slice %960 {offsets = [6, 0], sizes = [1, 128], strides = [1, 1]} : vector<10x128xf32> to vector<1x128xf32>
    %976 = vector.shape_cast %975 : vector<1x128xf32> to vector<128xf32>
    %977 = arith.mulf %976, %962 : vector<128xf32>
    %978 = arith.addf %958, %977 : vector<128xf32>
    %c4_326 = arith.constant 4 : index
    %c0_327 = arith.constant 0 : index
    %979 = vector.load %arg14[%c4_326, %c0_327] : memref<9x128xf32, #tpu.memory_space<vmem>>, vector<1x128xf32>
    %980 = vector.shape_cast %979 : vector<1x128xf32> to vector<128xf32>
    %981 = vector.extract_strided_slice %960 {offsets = [1, 0], sizes = [1, 128], strides = [1, 1]} : vector<10x128xf32> to vector<1x128xf32>
    %982 = vector.shape_cast %981 : vector<1x128xf32> to vector<128xf32>
    %983 = arith.mulf %982, %980 : vector<128xf32>
    %984 = arith.addf %966, %983 : vector<128xf32>
    %985 = vector.extract_strided_slice %960 {offsets = [3, 0], sizes = [1, 128], strides = [1, 1]} : vector<10x128xf32> to vector<1x128xf32>
    %986 = vector.shape_cast %985 : vector<1x128xf32> to vector<128xf32>
    %987 = arith.mulf %986, %980 : vector<128xf32>
    %988 = arith.addf %970, %987 : vector<128xf32>
    %989 = vector.extract_strided_slice %960 {offsets = [5, 0], sizes = [1, 128], strides = [1, 1]} : vector<10x128xf32> to vector<1x128xf32>
    %990 = vector.shape_cast %989 : vector<1x128xf32> to vector<128xf32>
    %991 = arith.mulf %990, %980 : vector<128xf32>
    %992 = arith.addf %974, %991 : vector<128xf32>
    %993 = vector.extract_strided_slice %960 {offsets = [7, 0], sizes = [1, 128], strides = [1, 1]} : vector<10x128xf32> to vector<1x128xf32>
    %994 = vector.shape_cast %993 : vector<1x128xf32> to vector<128xf32>
    %995 = arith.mulf %994, %980 : vector<128xf32>
    %996 = arith.addf %978, %995 : vector<128xf32>
    %c5_328 = arith.constant 5 : index
    %c0_329 = arith.constant 0 : index
    %997 = vector.load %arg14[%c5_328, %c0_329] : memref<9x128xf32, #tpu.memory_space<vmem>>, vector<1x128xf32>
    %998 = vector.shape_cast %997 : vector<1x128xf32> to vector<128xf32>
    %999 = vector.extract_strided_slice %960 {offsets = [2, 0], sizes = [1, 128], strides = [1, 1]} : vector<10x128xf32> to vector<1x128xf32>
    %1000 = vector.shape_cast %999 : vector<1x128xf32> to vector<128xf32>
    %1001 = arith.mulf %1000, %998 : vector<128xf32>
    %1002 = arith.addf %984, %1001 : vector<128xf32>
    %1003 = vector.extract_strided_slice %960 {offsets = [4, 0], sizes = [1, 128], strides = [1, 1]} : vector<10x128xf32> to vector<1x128xf32>
    %1004 = vector.shape_cast %1003 : vector<1x128xf32> to vector<128xf32>
    %1005 = arith.mulf %1004, %998 : vector<128xf32>
    %1006 = arith.addf %988, %1005 : vector<128xf32>
    %1007 = vector.extract_strided_slice %960 {offsets = [6, 0], sizes = [1, 128], strides = [1, 1]} : vector<10x128xf32> to vector<1x128xf32>
    %1008 = vector.shape_cast %1007 : vector<1x128xf32> to vector<128xf32>
    %1009 = arith.mulf %1008, %998 : vector<128xf32>
    %1010 = arith.addf %992, %1009 : vector<128xf32>
    %1011 = vector.extract_strided_slice %960 {offsets = [8, 0], sizes = [1, 128], strides = [1, 1]} : vector<10x128xf32> to vector<1x128xf32>
    %1012 = vector.shape_cast %1011 : vector<1x128xf32> to vector<128xf32>
    %1013 = arith.mulf %1012, %998 : vector<128xf32>
    %1014 = arith.addf %996, %1013 : vector<128xf32>
    %c8_330 = arith.constant 8 : index
    %c0_331 = arith.constant 0 : index
    %c0_332 = arith.constant 0 : index
    %1015 = vector.load %arg38[%c8_330, %c0_331, %c0_332] : memref<10x10x128xf32, #tpu.memory_space<vmem>>, vector<1x10x128xf32>
    %1016 = vector.shape_cast %1015 : vector<1x10x128xf32> to vector<10x128xf32>
    %c6_333 = arith.constant 6 : index
    %c0_334 = arith.constant 0 : index
    %1017 = vector.load %arg14[%c6_333, %c0_334] : memref<9x128xf32, #tpu.memory_space<vmem>>, vector<1x128xf32>
    %1018 = vector.shape_cast %1017 : vector<1x128xf32> to vector<128xf32>
    %1019 = vector.extract_strided_slice %1016 {offsets = [0, 0], sizes = [1, 128], strides = [1, 1]} : vector<10x128xf32> to vector<1x128xf32>
    %1020 = vector.shape_cast %1019 : vector<1x128xf32> to vector<128xf32>
    %1021 = arith.mulf %1020, %1018 : vector<128xf32>
    %1022 = arith.addf %1002, %1021 : vector<128xf32>
    %1023 = vector.extract_strided_slice %1016 {offsets = [2, 0], sizes = [1, 128], strides = [1, 1]} : vector<10x128xf32> to vector<1x128xf32>
    %1024 = vector.shape_cast %1023 : vector<1x128xf32> to vector<128xf32>
    %1025 = arith.mulf %1024, %1018 : vector<128xf32>
    %1026 = arith.addf %1006, %1025 : vector<128xf32>
    %1027 = vector.extract_strided_slice %1016 {offsets = [4, 0], sizes = [1, 128], strides = [1, 1]} : vector<10x128xf32> to vector<1x128xf32>
    %1028 = vector.shape_cast %1027 : vector<1x128xf32> to vector<128xf32>
    %1029 = arith.mulf %1028, %1018 : vector<128xf32>
    %1030 = arith.addf %1010, %1029 : vector<128xf32>
    %1031 = vector.extract_strided_slice %1016 {offsets = [6, 0], sizes = [1, 128], strides = [1, 1]} : vector<10x128xf32> to vector<1x128xf32>
    %1032 = vector.shape_cast %1031 : vector<1x128xf32> to vector<128xf32>
    %1033 = arith.mulf %1032, %1018 : vector<128xf32>
    %1034 = arith.addf %1014, %1033 : vector<128xf32>
    %c7_335 = arith.constant 7 : index
    %c0_336 = arith.constant 0 : index
    %1035 = vector.load %arg14[%c7_335, %c0_336] : memref<9x128xf32, #tpu.memory_space<vmem>>, vector<1x128xf32>
    %1036 = vector.shape_cast %1035 : vector<1x128xf32> to vector<128xf32>
    %1037 = vector.extract_strided_slice %1016 {offsets = [1, 0], sizes = [1, 128], strides = [1, 1]} : vector<10x128xf32> to vector<1x128xf32>
    %1038 = vector.shape_cast %1037 : vector<1x128xf32> to vector<128xf32>
    %1039 = arith.mulf %1038, %1036 : vector<128xf32>
    %1040 = arith.addf %1022, %1039 : vector<128xf32>
    %1041 = vector.extract_strided_slice %1016 {offsets = [3, 0], sizes = [1, 128], strides = [1, 1]} : vector<10x128xf32> to vector<1x128xf32>
    %1042 = vector.shape_cast %1041 : vector<1x128xf32> to vector<128xf32>
    %1043 = arith.mulf %1042, %1036 : vector<128xf32>
    %1044 = arith.addf %1026, %1043 : vector<128xf32>
    %1045 = vector.extract_strided_slice %1016 {offsets = [5, 0], sizes = [1, 128], strides = [1, 1]} : vector<10x128xf32> to vector<1x128xf32>
    %1046 = vector.shape_cast %1045 : vector<1x128xf32> to vector<128xf32>
    %1047 = arith.mulf %1046, %1036 : vector<128xf32>
    %1048 = arith.addf %1030, %1047 : vector<128xf32>
    %1049 = vector.extract_strided_slice %1016 {offsets = [7, 0], sizes = [1, 128], strides = [1, 1]} : vector<10x128xf32> to vector<1x128xf32>
    %1050 = vector.shape_cast %1049 : vector<1x128xf32> to vector<128xf32>
    %1051 = arith.mulf %1050, %1036 : vector<128xf32>
    %1052 = arith.addf %1034, %1051 : vector<128xf32>
    %c8_337 = arith.constant 8 : index
    %c0_338 = arith.constant 0 : index
    %1053 = vector.load %arg14[%c8_337, %c0_338] : memref<9x128xf32, #tpu.memory_space<vmem>>, vector<1x128xf32>
    %1054 = vector.shape_cast %1053 : vector<1x128xf32> to vector<128xf32>
    %1055 = vector.extract_strided_slice %1016 {offsets = [2, 0], sizes = [1, 128], strides = [1, 1]} : vector<10x128xf32> to vector<1x128xf32>
    %1056 = vector.shape_cast %1055 : vector<1x128xf32> to vector<128xf32>
    %1057 = arith.mulf %1056, %1054 : vector<128xf32>
    %1058 = arith.addf %1040, %1057 : vector<128xf32>
    %1059 = vector.extract_strided_slice %1016 {offsets = [4, 0], sizes = [1, 128], strides = [1, 1]} : vector<10x128xf32> to vector<1x128xf32>
    %1060 = vector.shape_cast %1059 : vector<1x128xf32> to vector<128xf32>
    %1061 = arith.mulf %1060, %1054 : vector<128xf32>
    %1062 = arith.addf %1044, %1061 : vector<128xf32>
    %1063 = vector.extract_strided_slice %1016 {offsets = [6, 0], sizes = [1, 128], strides = [1, 1]} : vector<10x128xf32> to vector<1x128xf32>
    %1064 = vector.shape_cast %1063 : vector<1x128xf32> to vector<128xf32>
    %1065 = arith.mulf %1064, %1054 : vector<128xf32>
    %1066 = arith.addf %1048, %1065 : vector<128xf32>
    %1067 = vector.extract_strided_slice %1016 {offsets = [8, 0], sizes = [1, 128], strides = [1, 1]} : vector<10x128xf32> to vector<1x128xf32>
    %1068 = vector.shape_cast %1067 : vector<1x128xf32> to vector<128xf32>
    %1069 = arith.mulf %1068, %1054 : vector<128xf32>
    %1070 = arith.addf %1052, %1069 : vector<128xf32>
    %c0_339 = arith.constant 0 : index
    %c0_340 = arith.constant 0 : index
    %1071 = vector.load %arg15[%c0_339, %c0_340] : memref<1x128xf32, #tpu.memory_space<vmem>>, vector<1x128xf32>
    %1072 = vector.shape_cast %1071 : vector<1x128xf32> to vector<128xf32>
    %1073 = arith.addf %1058, %1072 : vector<128xf32>
    %cst_341 = arith.constant 0.000000e+00 : f32
    %1074 = vector.broadcast %cst_341 : f32 to vector<128xf32>
    %1075 = arith.subf %1074, %1073 : vector<128xf32>
    %1076 = math.exp %1075 : vector<128xf32>
    %cst_342 = arith.constant 1.000000e+00 : f32
    %1077 = vector.broadcast %cst_342 : f32 to vector<128xf32>
    %1078 = arith.addf %1077, %1076 : vector<128xf32>
    %1079 = tpu.reciprocal %1078 {approx = true} : vector<128xf32> -> vector<128xf32>
    %1080 = arith.mulf %1073, %1079 : vector<128xf32>
    %c12 = arith.constant 12 : index
    %c0_343 = arith.constant 0 : index
    %1081 = vector.load %arg41[%c12, %c0_343] : memref<16x128xf32, #tpu.memory_space<vmem>>, vector<1x128xf32>
    %1082 = vector.shape_cast %1081 : vector<1x128xf32> to vector<128xf32>
    %1083 = vector.shape_cast %1080 : vector<128xf32> to vector<1x128xf32>
    tpu.vector_store %arg41[%c12, %c0_343], %1083 {strides = array<i32>} : memref<16x128xf32, #tpu.memory_space<vmem>>, vector<1x128xf32>,
    %c0_344 = arith.constant 0 : index
    %c0_345 = arith.constant 0 : index
    %1084 = vector.load %arg15[%c0_344, %c0_345] : memref<1x128xf32, #tpu.memory_space<vmem>>, vector<1x128xf32>
    %1085 = vector.shape_cast %1084 : vector<1x128xf32> to vector<128xf32>
    %1086 = arith.addf %1062, %1085 : vector<128xf32>
    %cst_346 = arith.constant 0.000000e+00 : f32
    %1087 = vector.broadcast %cst_346 : f32 to vector<128xf32>
    %1088 = arith.subf %1087, %1086 : vector<128xf32>
    %1089 = math.exp %1088 : vector<128xf32>
    %cst_347 = arith.constant 1.000000e+00 : f32
    %1090 = vector.broadcast %cst_347 : f32 to vector<128xf32>
    %1091 = arith.addf %1090, %1089 : vector<128xf32>
    %1092 = tpu.reciprocal %1091 {approx = true} : vector<128xf32> -> vector<128xf32>
    %1093 = arith.mulf %1086, %1092 : vector<128xf32>
    %c13 = arith.constant 13 : index
    %c0_348 = arith.constant 0 : index
    %1094 = vector.load %arg41[%c13, %c0_348] : memref<16x128xf32, #tpu.memory_space<vmem>>, vector<1x128xf32>
    %1095 = vector.shape_cast %1094 : vector<1x128xf32> to vector<128xf32>
    %1096 = vector.shape_cast %1093 : vector<128xf32> to vector<1x128xf32>
    tpu.vector_store %arg41[%c13, %c0_348], %1096 {strides = array<i32>} : memref<16x128xf32, #tpu.memory_space<vmem>>, vector<1x128xf32>,
    %c0_349 = arith.constant 0 : index
    %c0_350 = arith.constant 0 : index
    %1097 = vector.load %arg15[%c0_349, %c0_350] : memref<1x128xf32, #tpu.memory_space<vmem>>, vector<1x128xf32>
    %1098 = vector.shape_cast %1097 : vector<1x128xf32> to vector<128xf32>
    %1099 = arith.addf %1066, %1098 : vector<128xf32>
    %cst_351 = arith.constant 0.000000e+00 : f32
    %1100 = vector.broadcast %cst_351 : f32 to vector<128xf32>
    %1101 = arith.subf %1100, %1099 : vector<128xf32>
    %1102 = math.exp %1101 : vector<128xf32>
    %cst_352 = arith.constant 1.000000e+00 : f32
    %1103 = vector.broadcast %cst_352 : f32 to vector<128xf32>
    %1104 = arith.addf %1103, %1102 : vector<128xf32>
    %1105 = tpu.reciprocal %1104 {approx = true} : vector<128xf32> -> vector<128xf32>
    %1106 = arith.mulf %1099, %1105 : vector<128xf32>
    %c14 = arith.constant 14 : index
    %c0_353 = arith.constant 0 : index
    %1107 = vector.load %arg41[%c14, %c0_353] : memref<16x128xf32, #tpu.memory_space<vmem>>, vector<1x128xf32>
    %1108 = vector.shape_cast %1107 : vector<1x128xf32> to vector<128xf32>
    %1109 = vector.shape_cast %1106 : vector<128xf32> to vector<1x128xf32>
    tpu.vector_store %arg41[%c14, %c0_353], %1109 {strides = array<i32>} : memref<16x128xf32, #tpu.memory_space<vmem>>, vector<1x128xf32>,
    %c0_354 = arith.constant 0 : index
    %c0_355 = arith.constant 0 : index
    %1110 = vector.load %arg15[%c0_354, %c0_355] : memref<1x128xf32, #tpu.memory_space<vmem>>, vector<1x128xf32>
    %1111 = vector.shape_cast %1110 : vector<1x128xf32> to vector<128xf32>
    %1112 = arith.addf %1070, %1111 : vector<128xf32>
    %cst_356 = arith.constant 0.000000e+00 : f32
    %1113 = vector.broadcast %cst_356 : f32 to vector<128xf32>
    %1114 = arith.subf %1113, %1112 : vector<128xf32>
    %1115 = math.exp %1114 : vector<128xf32>
    %cst_357 = arith.constant 1.000000e+00 : f32
    %1116 = vector.broadcast %cst_357 : f32 to vector<128xf32>
    %1117 = arith.addf %1116, %1115 : vector<128xf32>
    %1118 = tpu.reciprocal %1117 {approx = true} : vector<128xf32> -> vector<128xf32>
    %1119 = arith.mulf %1112, %1118 : vector<128xf32>
    %c15 = arith.constant 15 : index
    %c0_358 = arith.constant 0 : index
    %1120 = vector.load %arg41[%c15, %c0_358] : memref<16x128xf32, #tpu.memory_space<vmem>>, vector<1x128xf32>
    %1121 = vector.shape_cast %1120 : vector<1x128xf32> to vector<128xf32>
    %1122 = vector.shape_cast %1119 : vector<128xf32> to vector<1x128xf32>
    tpu.vector_store %arg41[%c15, %c0_358], %1122 {strides = array<i32>} : memref<16x128xf32, #tpu.memory_space<vmem>>, vector<1x128xf32>,
    %c0_359 = arith.constant 0 : index
    %c0_360 = arith.constant 0 : index
    %1123 = vector.load %arg41[%c0_359, %c0_360] : memref<16x128xf32, #tpu.memory_space<vmem>>, vector<16x128xf32>
    %cst_361 = arith.constant dense<0.000000e+00> : vector<128xf32>
    %1124 = vector.multi_reduction <add>, %1123, %cst_361 [0] : vector<16x128xf32> to vector<128xf32>
    %1125 = vector.shape_cast %1124 : vector<128xf32> to vector<1x128xf32>
    %cst_362 = arith.constant 1.600000e+01 : f32
    %1126 = vector.broadcast %cst_362 : f32 to vector<1x128xf32>
    %1127 = arith.divf %1125, %1126 : vector<1x128xf32>
    %c0_363 = arith.constant 0 : index
    %c0_364 = arith.constant 0 : index
    %1128 = vector.load %arg16[%c0_363, %c0_364] : memref<128x128xf32, #tpu.memory_space<vmem>>, vector<128x128xf32>
    %cst_365 = arith.constant dense<0.000000e+00> : vector<1x128xf32>
    %1129 = tpu.matmul %1127, %1128, %cst_365 {dimension_numbers = #tpu.dot_dimension_numbers<[1], [0], [0], [1], [0, 0, 1, 1], [], []>} : vector<1x128xf32>, vector<128x128xf32>, vector<1x128xf32> -> vector<1x128xf32>
    %c0_366 = arith.constant 0 : index
    %c0_367 = arith.constant 0 : index
    %1130 = vector.load %arg17[%c0_366, %c0_367] : memref<1x128xf32, #tpu.memory_space<vmem>>, vector<1x128xf32>
    %1131 = arith.addf %1129, %1130 : vector<1x128xf32>
    %cst_368 = arith.constant 0.000000e+00 : f32
    %1132 = vector.broadcast %cst_368 : f32 to vector<1x128xf32>
    %1133 = arith.subf %1132, %1131 : vector<1x128xf32>
    %1134 = math.exp %1133 : vector<1x128xf32>
    %cst_369 = arith.constant 1.000000e+00 : f32
    %1135 = vector.broadcast %cst_369 : f32 to vector<1x128xf32>
    %1136 = arith.addf %1135, %1134 : vector<1x128xf32>
    %1137 = tpu.reciprocal %1136 {approx = true} : vector<1x128xf32> -> vector<1x128xf32>
    %1138 = arith.mulf %1131, %1137 : vector<1x128xf32>
    %c0_370 = arith.constant 0 : index
    %c0_371 = arith.constant 0 : index
    %1139 = vector.load %arg18[%c0_370, %c0_371] : memref<128x128xf32, #tpu.memory_space<vmem>>, vector<128x128xf32>
    %cst_372 = arith.constant dense<0.000000e+00> : vector<1x128xf32>
    %1140 = tpu.matmul %1138, %1139, %cst_372 {dimension_numbers = #tpu.dot_dimension_numbers<[1], [0], [0], [1], [0, 0, 1, 1], [], []>} : vector<1x128xf32>, vector<128x128xf32>, vector<1x128xf32> -> vector<1x128xf32>
    %c0_373 = arith.constant 0 : index
    %c0_374 = arith.constant 0 : index
    %1141 = vector.load %arg19[%c0_373, %c0_374] : memref<1x128xf32, #tpu.memory_space<vmem>>, vector<1x128xf32>
    %1142 = arith.addf %1140, %1141 : vector<1x128xf32>
    %cst_375 = arith.constant 0.000000e+00 : f32
    %1143 = vector.broadcast %cst_375 : f32 to vector<1x128xf32>
    %1144 = arith.subf %1143, %1142 : vector<1x128xf32>
    %1145 = math.exp %1144 : vector<1x128xf32>
    %cst_376 = arith.constant 1.000000e+00 : f32
    %1146 = vector.broadcast %cst_376 : f32 to vector<1x128xf32>
    %1147 = arith.addf %1146, %1145 : vector<1x128xf32>
    %1148 = tpu.reciprocal %1147 {approx = true} : vector<1x128xf32> -> vector<1x128xf32>
    %1149 = vector.broadcast %1148 : vector<1x128xf32> to vector<16x128xf32>
    %1150 = arith.mulf %1123, %1149 : vector<16x128xf32>
    %c0_377 = arith.constant 0 : index
    %c0_378 = arith.constant 0 : index
    %1151 = vector.load %arg20[%c0_377, %c0_378] : memref<128x128xf32, #tpu.memory_space<vmem>>, vector<128x128xf32>
    %cst_379 = arith.constant dense<0.000000e+00> : vector<16x128xf32>
    %1152 = tpu.matmul %1150, %1151, %cst_379 {dimension_numbers = #tpu.dot_dimension_numbers<[1], [0], [0], [1], [0, 0, 1, 1], [], []>} : vector<16x128xf32>, vector<128x128xf32>, vector<16x128xf32> -> vector<16x128xf32>
    %c0_380 = arith.constant 0 : index
    %c0_381 = arith.constant 0 : index
    %1153 = vector.load %arg21[%c0_380, %c0_381] : memref<1x128xf32, #tpu.memory_space<vmem>>, vector<1x128xf32>
    %1154 = vector.broadcast %1153 : vector<1x128xf32> to vector<16x128xf32>
    %1155 = arith.addf %1152, %1154 : vector<16x128xf32>
    %c0_382 = arith.constant 0 : index
    %c0_383 = arith.constant 0 : index
    %1156 = vector.load %arg22[%c0_382, %c0_383] : memref<128x128xf32, #tpu.memory_space<vmem>>, vector<128x128xf32>
    %cst_384 = arith.constant dense<0.000000e+00> : vector<16x128xf32>
    %1157 = tpu.matmul %1155, %1156, %cst_384 {dimension_numbers = #tpu.dot_dimension_numbers<[1], [0], [0], [1], [0, 0, 1, 1], [], []>} : vector<16x128xf32>, vector<128x128xf32>, vector<16x128xf32> -> vector<16x128xf32>
    %c0_385 = arith.constant 0 : index
    %c0_386 = arith.constant 0 : index
    %1158 = vector.load %arg23[%c0_385, %c0_386] : memref<1x128xf32, #tpu.memory_space<vmem>>, vector<1x128xf32>
    %1159 = vector.broadcast %1158 : vector<1x128xf32> to vector<16x128xf32>
    %1160 = arith.addf %1157, %1159 : vector<16x128xf32>
    %cst_387 = arith.constant 0.000000e+00 : f32
    %1161 = vector.broadcast %cst_387 : f32 to vector<16x128xf32>
    %1162 = arith.subf %1161, %1160 : vector<16x128xf32>
    %1163 = math.exp %1162 : vector<16x128xf32>
    %cst_388 = arith.constant 1.000000e+00 : f32
    %1164 = vector.broadcast %cst_388 : f32 to vector<16x128xf32>
    %1165 = arith.addf %1164, %1163 : vector<16x128xf32>
    %1166 = tpu.reciprocal %1165 {approx = true} : vector<16x128xf32> -> vector<16x128xf32>
    %1167 = arith.mulf %1160, %1166 : vector<16x128xf32>
    %cst_389 = arith.constant 0.000000e+00 : f32
    %1168 = vector.broadcast %cst_389 : f32 to vector<6x6x128xf32>
    %c0_390 = arith.constant 0 : index
    %c0_391 = arith.constant 0 : index
    %c0_392 = arith.constant 0 : index
    %1169 = vector.load %arg39[%c0_390, %c0_391, %c0_392] : memref<6x6x128xf32, #tpu.memory_space<vmem>>, vector<6x6x128xf32>
    tpu.vector_store %arg39[%c0_390, %c0_391, %c0_392], %1168 {strides = array<i32>} : memref<6x6x128xf32, #tpu.memory_space<vmem>>, vector<6x6x128xf32>,
    %1170 = vector.extract_strided_slice %1167 {offsets = [0, 0], sizes = [4, 128], strides = [1, 1]} : vector<16x128xf32> to vector<4x128xf32>
    %c1_393 = arith.constant 1 : index
    %c1_394 = arith.constant 1 : index
    %c0_395 = arith.constant 0 : index
    %1171 = vector.load %arg39[%c1_393, %c1_394, %c0_395] : memref<6x6x128xf32, #tpu.memory_space<vmem>>, vector<1x4x128xf32>
    %1172 = vector.shape_cast %1171 : vector<1x4x128xf32> to vector<4x128xf32>
    %1173 = vector.shape_cast %1170 : vector<4x128xf32> to vector<1x4x128xf32>
    tpu.vector_store %arg39[%c1_393, %c1_394, %c0_395], %1173 {strides = array<i32>} : memref<6x6x128xf32, #tpu.memory_space<vmem>>, vector<1x4x128xf32>,
    %1174 = vector.extract_strided_slice %1167 {offsets = [4, 0], sizes = [4, 128], strides = [1, 1]} : vector<16x128xf32> to vector<4x128xf32>
    %c2_396 = arith.constant 2 : index
    %c1_397 = arith.constant 1 : index
    %c0_398 = arith.constant 0 : index
    %1175 = vector.load %arg39[%c2_396, %c1_397, %c0_398] : memref<6x6x128xf32, #tpu.memory_space<vmem>>, vector<1x4x128xf32>
    %1176 = vector.shape_cast %1175 : vector<1x4x128xf32> to vector<4x128xf32>
    %1177 = vector.shape_cast %1174 : vector<4x128xf32> to vector<1x4x128xf32>
    tpu.vector_store %arg39[%c2_396, %c1_397, %c0_398], %1177 {strides = array<i32>} : memref<6x6x128xf32, #tpu.memory_space<vmem>>, vector<1x4x128xf32>,
    %1178 = vector.extract_strided_slice %1167 {offsets = [8, 0], sizes = [4, 128], strides = [1, 1]} : vector<16x128xf32> to vector<4x128xf32>
    %c3_399 = arith.constant 3 : index
    %c1_400 = arith.constant 1 : index
    %c0_401 = arith.constant 0 : index
    %1179 = vector.load %arg39[%c3_399, %c1_400, %c0_401] : memref<6x6x128xf32, #tpu.memory_space<vmem>>, vector<1x4x128xf32>
    %1180 = vector.shape_cast %1179 : vector<1x4x128xf32> to vector<4x128xf32>
    %1181 = vector.shape_cast %1178 : vector<4x128xf32> to vector<1x4x128xf32>
    tpu.vector_store %arg39[%c3_399, %c1_400, %c0_401], %1181 {strides = array<i32>} : memref<6x6x128xf32, #tpu.memory_space<vmem>>, vector<1x4x128xf32>,
    %1182 = vector.extract_strided_slice %1167 {offsets = [12, 0], sizes = [4, 128], strides = [1, 1]} : vector<16x128xf32> to vector<4x128xf32>
    %c4_402 = arith.constant 4 : index
    %c1_403 = arith.constant 1 : index
    %c0_404 = arith.constant 0 : index
    %1183 = vector.load %arg39[%c4_402, %c1_403, %c0_404] : memref<6x6x128xf32, #tpu.memory_space<vmem>>, vector<1x4x128xf32>
    %1184 = vector.shape_cast %1183 : vector<1x4x128xf32> to vector<4x128xf32>
    %1185 = vector.shape_cast %1182 : vector<4x128xf32> to vector<1x4x128xf32>
    tpu.vector_store %arg39[%c4_402, %c1_403, %c0_404], %1185 {strides = array<i32>} : memref<6x6x128xf32, #tpu.memory_space<vmem>>, vector<1x4x128xf32>,
    %cst_405 = arith.constant 0.000000e+00 : f32
    %1186 = vector.broadcast %cst_405 : f32 to vector<4x4x128xf32>
    %c0_406 = arith.constant 0 : index
    %c0_407 = arith.constant 0 : index
    %c0_408 = arith.constant 0 : index
    %1187 = vector.load %arg39[%c0_406, %c0_407, %c0_408] : memref<6x6x128xf32, #tpu.memory_space<vmem>>, vector<4x4x128xf32>
    %c0_409 = arith.constant 0 : index
    %c0_410 = arith.constant 0 : index
    %1188 = vector.load %arg24[%c0_409, %c0_410] : memref<9x128xf32, #tpu.memory_space<vmem>>, vector<1x128xf32>
    %1189 = vector.shape_cast %1188 : vector<1x128xf32> to vector<128xf32>
    %1190 = vector.shape_cast %1189 : vector<128xf32> to vector<1x1x128xf32>
    %1191 = vector.broadcast %1190 : vector<1x1x128xf32> to vector<4x4x128xf32>
    %1192 = arith.mulf %1187, %1191 : vector<4x4x128xf32>
    %1193 = arith.addf %1186, %1192 : vector<4x4x128xf32>
    %c0_411 = arith.constant 0 : index
    %c1_412 = arith.constant 1 : index
    %c0_413 = arith.constant 0 : index
    %1194 = vector.load %arg39[%c0_411, %c1_412, %c0_413] : memref<6x6x128xf32, #tpu.memory_space<vmem>>, vector<4x4x128xf32>
    %c1_414 = arith.constant 1 : index
    %c0_415 = arith.constant 0 : index
    %1195 = vector.load %arg24[%c1_414, %c0_415] : memref<9x128xf32, #tpu.memory_space<vmem>>, vector<1x128xf32>
    %1196 = vector.shape_cast %1195 : vector<1x128xf32> to vector<128xf32>
    %1197 = vector.shape_cast %1196 : vector<128xf32> to vector<1x1x128xf32>
    %1198 = vector.broadcast %1197 : vector<1x1x128xf32> to vector<4x4x128xf32>
    %1199 = arith.mulf %1194, %1198 : vector<4x4x128xf32>
    %1200 = arith.addf %1193, %1199 : vector<4x4x128xf32>
    %c0_416 = arith.constant 0 : index
    %c2_417 = arith.constant 2 : index
    %c0_418 = arith.constant 0 : index
    %1201 = vector.load %arg39[%c0_416, %c2_417, %c0_418] : memref<6x6x128xf32, #tpu.memory_space<vmem>>, vector<4x4x128xf32>
    %c2_419 = arith.constant 2 : index
    %c0_420 = arith.constant 0 : index
    %1202 = vector.load %arg24[%c2_419, %c0_420] : memref<9x128xf32, #tpu.memory_space<vmem>>, vector<1x128xf32>
    %1203 = vector.shape_cast %1202 : vector<1x128xf32> to vector<128xf32>
    %1204 = vector.shape_cast %1203 : vector<128xf32> to vector<1x1x128xf32>
    %1205 = vector.broadcast %1204 : vector<1x1x128xf32> to vector<4x4x128xf32>
    %1206 = arith.mulf %1201, %1205 : vector<4x4x128xf32>
    %1207 = arith.addf %1200, %1206 : vector<4x4x128xf32>
    %c1_421 = arith.constant 1 : index
    %c0_422 = arith.constant 0 : index
    %c0_423 = arith.constant 0 : index
    %1208 = vector.load %arg39[%c1_421, %c0_422, %c0_423] : memref<6x6x128xf32, #tpu.memory_space<vmem>>, vector<4x4x128xf32>
    %c3_424 = arith.constant 3 : index
    %c0_425 = arith.constant 0 : index
    %1209 = vector.load %arg24[%c3_424, %c0_425] : memref<9x128xf32, #tpu.memory_space<vmem>>, vector<1x128xf32>
    %1210 = vector.shape_cast %1209 : vector<1x128xf32> to vector<128xf32>
    %1211 = vector.shape_cast %1210 : vector<128xf32> to vector<1x1x128xf32>
    %1212 = vector.broadcast %1211 : vector<1x1x128xf32> to vector<4x4x128xf32>
    %1213 = arith.mulf %1208, %1212 : vector<4x4x128xf32>
    %1214 = arith.addf %1207, %1213 : vector<4x4x128xf32>
    %c1_426 = arith.constant 1 : index
    %c1_427 = arith.constant 1 : index
    %c0_428 = arith.constant 0 : index
    %1215 = vector.load %arg39[%c1_426, %c1_427, %c0_428] : memref<6x6x128xf32, #tpu.memory_space<vmem>>, vector<4x4x128xf32>
    %c4_429 = arith.constant 4 : index
    %c0_430 = arith.constant 0 : index
    %1216 = vector.load %arg24[%c4_429, %c0_430] : memref<9x128xf32, #tpu.memory_space<vmem>>, vector<1x128xf32>
    %1217 = vector.shape_cast %1216 : vector<1x128xf32> to vector<128xf32>
    %1218 = vector.shape_cast %1217 : vector<128xf32> to vector<1x1x128xf32>
    %1219 = vector.broadcast %1218 : vector<1x1x128xf32> to vector<4x4x128xf32>
    %1220 = arith.mulf %1215, %1219 : vector<4x4x128xf32>
    %1221 = arith.addf %1214, %1220 : vector<4x4x128xf32>
    %c1_431 = arith.constant 1 : index
    %c2_432 = arith.constant 2 : index
    %c0_433 = arith.constant 0 : index
    %1222 = vector.load %arg39[%c1_431, %c2_432, %c0_433] : memref<6x6x128xf32, #tpu.memory_space<vmem>>, vector<4x4x128xf32>
    %c5_434 = arith.constant 5 : index
    %c0_435 = arith.constant 0 : index
    %1223 = vector.load %arg24[%c5_434, %c0_435] : memref<9x128xf32, #tpu.memory_space<vmem>>, vector<1x128xf32>
    %1224 = vector.shape_cast %1223 : vector<1x128xf32> to vector<128xf32>
    %1225 = vector.shape_cast %1224 : vector<128xf32> to vector<1x1x128xf32>
    %1226 = vector.broadcast %1225 : vector<1x1x128xf32> to vector<4x4x128xf32>
    %1227 = arith.mulf %1222, %1226 : vector<4x4x128xf32>
    %1228 = arith.addf %1221, %1227 : vector<4x4x128xf32>
    %c2_436 = arith.constant 2 : index
    %c0_437 = arith.constant 0 : index
    %c0_438 = arith.constant 0 : index
    %1229 = vector.load %arg39[%c2_436, %c0_437, %c0_438] : memref<6x6x128xf32, #tpu.memory_space<vmem>>, vector<4x4x128xf32>
    %c6_439 = arith.constant 6 : index
    %c0_440 = arith.constant 0 : index
    %1230 = vector.load %arg24[%c6_439, %c0_440] : memref<9x128xf32, #tpu.memory_space<vmem>>, vector<1x128xf32>
    %1231 = vector.shape_cast %1230 : vector<1x128xf32> to vector<128xf32>
    %1232 = vector.shape_cast %1231 : vector<128xf32> to vector<1x1x128xf32>
    %1233 = vector.broadcast %1232 : vector<1x1x128xf32> to vector<4x4x128xf32>
    %1234 = arith.mulf %1229, %1233 : vector<4x4x128xf32>
    %1235 = arith.addf %1228, %1234 : vector<4x4x128xf32>
    %c2_441 = arith.constant 2 : index
    %c1_442 = arith.constant 1 : index
    %c0_443 = arith.constant 0 : index
    %1236 = vector.load %arg39[%c2_441, %c1_442, %c0_443] : memref<6x6x128xf32, #tpu.memory_space<vmem>>, vector<4x4x128xf32>
    %c7_444 = arith.constant 7 : index
    %c0_445 = arith.constant 0 : index
    %1237 = vector.load %arg24[%c7_444, %c0_445] : memref<9x128xf32, #tpu.memory_space<vmem>>, vector<1x128xf32>
    %1238 = vector.shape_cast %1237 : vector<1x128xf32> to vector<128xf32>
    %1239 = vector.shape_cast %1238 : vector<128xf32> to vector<1x1x128xf32>
    %1240 = vector.broadcast %1239 : vector<1x1x128xf32> to vector<4x4x128xf32>
    %1241 = arith.mulf %1236, %1240 : vector<4x4x128xf32>
    %1242 = arith.addf %1235, %1241 : vector<4x4x128xf32>
    %c2_446 = arith.constant 2 : index
    %c2_447 = arith.constant 2 : index
    %c0_448 = arith.constant 0 : index
    %1243 = vector.load %arg39[%c2_446, %c2_447, %c0_448] : memref<6x6x128xf32, #tpu.memory_space<vmem>>, vector<4x4x128xf32>
    %c8_449 = arith.constant 8 : index
    %c0_450 = arith.constant 0 : index
    %1244 = vector.load %arg24[%c8_449, %c0_450] : memref<9x128xf32, #tpu.memory_space<vmem>>, vector<1x128xf32>
    %1245 = vector.shape_cast %1244 : vector<1x128xf32> to vector<128xf32>
    %1246 = vector.shape_cast %1245 : vector<128xf32> to vector<1x1x128xf32>
    %1247 = vector.broadcast %1246 : vector<1x1x128xf32> to vector<4x4x128xf32>
    %1248 = arith.mulf %1243, %1247 : vector<4x4x128xf32>
    %1249 = arith.addf %1242, %1248 : vector<4x4x128xf32>
    %c0_451 = arith.constant 0 : index
    %c0_452 = arith.constant 0 : index
    %1250 = vector.load %arg25[%c0_451, %c0_452] : memref<1x128xf32, #tpu.memory_space<vmem>>, vector<1x128xf32>
    %1251 = vector.shape_cast %1250 : vector<1x128xf32> to vector<1x1x128xf32>
    %1252 = vector.broadcast %1251 : vector<1x1x128xf32> to vector<4x4x128xf32>
    %1253 = arith.addf %1249, %1252 : vector<4x4x128xf32>
    %cst_453 = arith.constant 0.000000e+00 : f32
    %1254 = vector.broadcast %cst_453 : f32 to vector<4x4x128xf32>
    %1255 = arith.subf %1254, %1253 : vector<4x4x128xf32>
    %1256 = math.exp %1255 : vector<4x4x128xf32>
    %cst_454 = arith.constant 1.000000e+00 : f32
    %1257 = vector.broadcast %cst_454 : f32 to vector<4x4x128xf32>
    %1258 = arith.addf %1257, %1256 : vector<4x4x128xf32>
    %1259 = tpu.reciprocal %1258 {approx = true} : vector<4x4x128xf32> -> vector<4x4x128xf32>
    %1260 = arith.mulf %1253, %1259 : vector<4x4x128xf32>
    %1261 = vector.extract_strided_slice %1260 {offsets = [0, 0, 0], sizes = [1, 4, 128], strides = [1, 1, 1]} : vector<4x4x128xf32> to vector<1x4x128xf32>
    %1262 = vector.shape_cast %1261 : vector<1x4x128xf32> to vector<4x128xf32>
    %c0_455 = arith.constant 0 : index
    %c0_456 = arith.constant 0 : index
    %1263 = vector.load %arg42[%c0_455, %c0_456] : memref<16x128xf32, #tpu.memory_space<vmem>>, vector<4x128xf32>
    tpu.vector_store %arg42[%c0_455, %c0_456], %1262 {strides = array<i32>} : memref<16x128xf32, #tpu.memory_space<vmem>>, vector<4x128xf32>,
    %1264 = vector.extract_strided_slice %1260 {offsets = [1, 0, 0], sizes = [1, 4, 128], strides = [1, 1, 1]} : vector<4x4x128xf32> to vector<1x4x128xf32>
    %1265 = vector.shape_cast %1264 : vector<1x4x128xf32> to vector<4x128xf32>
    %c4_457 = arith.constant 4 : index
    %c0_458 = arith.constant 0 : index
    %1266 = vector.load %arg42[%c4_457, %c0_458] : memref<16x128xf32, #tpu.memory_space<vmem>>, vector<4x128xf32>
    tpu.vector_store %arg42[%c4_457, %c0_458], %1265 {strides = array<i32>} : memref<16x128xf32, #tpu.memory_space<vmem>>, vector<4x128xf32>,
    %1267 = vector.extract_strided_slice %1260 {offsets = [2, 0, 0], sizes = [1, 4, 128], strides = [1, 1, 1]} : vector<4x4x128xf32> to vector<1x4x128xf32>
    %1268 = vector.shape_cast %1267 : vector<1x4x128xf32> to vector<4x128xf32>
    %c8_459 = arith.constant 8 : index
    %c0_460 = arith.constant 0 : index
    %1269 = vector.load %arg42[%c8_459, %c0_460] : memref<16x128xf32, #tpu.memory_space<vmem>>, vector<4x128xf32>
    tpu.vector_store %arg42[%c8_459, %c0_460], %1268 {strides = array<i32>} : memref<16x128xf32, #tpu.memory_space<vmem>>, vector<4x128xf32>,
    %1270 = vector.extract_strided_slice %1260 {offsets = [3, 0, 0], sizes = [1, 4, 128], strides = [1, 1, 1]} : vector<4x4x128xf32> to vector<1x4x128xf32>
    %1271 = vector.shape_cast %1270 : vector<1x4x128xf32> to vector<4x128xf32>
    %c12_461 = arith.constant 12 : index
    %c0_462 = arith.constant 0 : index
    %1272 = vector.load %arg42[%c12_461, %c0_462] : memref<16x128xf32, #tpu.memory_space<vmem>>, vector<4x128xf32>
    tpu.vector_store %arg42[%c12_461, %c0_462], %1271 {strides = array<i32>} : memref<16x128xf32, #tpu.memory_space<vmem>>, vector<4x128xf32>,
    %c0_463 = arith.constant 0 : index
    %c0_464 = arith.constant 0 : index
    %1273 = vector.load %arg42[%c0_463, %c0_464] : memref<16x128xf32, #tpu.memory_space<vmem>>, vector<16x128xf32>
    %cst_465 = arith.constant dense<0.000000e+00> : vector<128xf32>
    %1274 = vector.multi_reduction <add>, %1273, %cst_465 [0] : vector<16x128xf32> to vector<128xf32>
    %1275 = vector.shape_cast %1274 : vector<128xf32> to vector<1x128xf32>
    %cst_466 = arith.constant 1.600000e+01 : f32
    %1276 = vector.broadcast %cst_466 : f32 to vector<1x128xf32>
    %1277 = arith.divf %1275, %1276 : vector<1x128xf32>
    %c0_467 = arith.constant 0 : index
    %c0_468 = arith.constant 0 : index
    %1278 = vector.load %arg26[%c0_467, %c0_468] : memref<128x128xf32, #tpu.memory_space<vmem>>, vector<128x128xf32>
    %cst_469 = arith.constant dense<0.000000e+00> : vector<1x128xf32>
    %1279 = tpu.matmul %1277, %1278, %cst_469 {dimension_numbers = #tpu.dot_dimension_numbers<[1], [0], [0], [1], [0, 0, 1, 1], [], []>} : vector<1x128xf32>, vector<128x128xf32>, vector<1x128xf32> -> vector<1x128xf32>
    %c0_470 = arith.constant 0 : index
    %c0_471 = arith.constant 0 : index
    %1280 = vector.load %arg27[%c0_470, %c0_471] : memref<1x128xf32, #tpu.memory_space<vmem>>, vector<1x128xf32>
    %1281 = arith.addf %1279, %1280 : vector<1x128xf32>
    %cst_472 = arith.constant 0.000000e+00 : f32
    %1282 = vector.broadcast %cst_472 : f32 to vector<1x128xf32>
    %1283 = arith.subf %1282, %1281 : vector<1x128xf32>
    %1284 = math.exp %1283 : vector<1x128xf32>
    %cst_473 = arith.constant 1.000000e+00 : f32
    %1285 = vector.broadcast %cst_473 : f32 to vector<1x128xf32>
    %1286 = arith.addf %1285, %1284 : vector<1x128xf32>
    %1287 = tpu.reciprocal %1286 {approx = true} : vector<1x128xf32> -> vector<1x128xf32>
    %1288 = arith.mulf %1281, %1287 : vector<1x128xf32>
    %c0_474 = arith.constant 0 : index
    %c0_475 = arith.constant 0 : index
    %1289 = vector.load %arg28[%c0_474, %c0_475] : memref<128x128xf32, #tpu.memory_space<vmem>>, vector<128x128xf32>
    %cst_476 = arith.constant dense<0.000000e+00> : vector<1x128xf32>
    %1290 = tpu.matmul %1288, %1289, %cst_476 {dimension_numbers = #tpu.dot_dimension_numbers<[1], [0], [0], [1], [0, 0, 1, 1], [], []>} : vector<1x128xf32>, vector<128x128xf32>, vector<1x128xf32> -> vector<1x128xf32>
    %c0_477 = arith.constant 0 : index
    %c0_478 = arith.constant 0 : index
    %1291 = vector.load %arg29[%c0_477, %c0_478] : memref<1x128xf32, #tpu.memory_space<vmem>>, vector<1x128xf32>
    %1292 = arith.addf %1290, %1291 : vector<1x128xf32>
    %cst_479 = arith.constant 0.000000e+00 : f32
    %1293 = vector.broadcast %cst_479 : f32 to vector<1x128xf32>
    %1294 = arith.subf %1293, %1292 : vector<1x128xf32>
    %1295 = math.exp %1294 : vector<1x128xf32>
    %cst_480 = arith.constant 1.000000e+00 : f32
    %1296 = vector.broadcast %cst_480 : f32 to vector<1x128xf32>
    %1297 = arith.addf %1296, %1295 : vector<1x128xf32>
    %1298 = tpu.reciprocal %1297 {approx = true} : vector<1x128xf32> -> vector<1x128xf32>
    %1299 = vector.broadcast %1298 : vector<1x128xf32> to vector<16x128xf32>
    %1300 = arith.mulf %1273, %1299 : vector<16x128xf32>
    %c0_481 = arith.constant 0 : index
    %c0_482 = arith.constant 0 : index
    %1301 = vector.load %arg30[%c0_481, %c0_482] : memref<128x128xf32, #tpu.memory_space<vmem>>, vector<128x128xf32>
    %cst_483 = arith.constant dense<0.000000e+00> : vector<16x128xf32>
    %1302 = tpu.matmul %1300, %1301, %cst_483 {dimension_numbers = #tpu.dot_dimension_numbers<[1], [0], [0], [1], [0, 0, 1, 1], [], []>} : vector<16x128xf32>, vector<128x128xf32>, vector<16x128xf32> -> vector<16x128xf32>
    %c0_484 = arith.constant 0 : index
    %c0_485 = arith.constant 0 : index
    %1303 = vector.load %arg31[%c0_484, %c0_485] : memref<1x128xf32, #tpu.memory_space<vmem>>, vector<1x128xf32>
    %1304 = vector.broadcast %1303 : vector<1x128xf32> to vector<16x128xf32>
    %1305 = arith.addf %1302, %1304 : vector<16x128xf32>
    %1306 = arith.addf %1305, %1155 : vector<16x128xf32>
    %c0_486 = arith.constant 0 : index
    %c0_487 = arith.constant 0 : index
    %1307 = vector.load %arg32[%c0_486, %c0_487] : memref<128x128xf32, #tpu.memory_space<vmem>>, vector<128x128xf32>
    %cst_488 = arith.constant dense<0.000000e+00> : vector<16x128xf32>
    %1308 = tpu.matmul %1306, %1307, %cst_488 {dimension_numbers = #tpu.dot_dimension_numbers<[1], [0], [0], [1], [0, 0, 1, 1], [], []>} : vector<16x128xf32>, vector<128x128xf32>, vector<16x128xf32> -> vector<16x128xf32>
    %c0_489 = arith.constant 0 : index
    %c0_490 = arith.constant 0 : index
    %1309 = vector.load %arg33[%c0_489, %c0_490] : memref<1x128xf32, #tpu.memory_space<vmem>>, vector<1x128xf32>
    %1310 = vector.broadcast %1309 : vector<1x128xf32> to vector<16x128xf32>
    %1311 = arith.addf %1308, %1310 : vector<16x128xf32>
    %cst_491 = arith.constant 0.000000e+00 : f32
    %1312 = vector.broadcast %cst_491 : f32 to vector<16x128xf32>
    %1313 = arith.subf %1312, %1311 : vector<16x128xf32>
    %1314 = math.exp %1313 : vector<16x128xf32>
    %cst_492 = arith.constant 1.000000e+00 : f32
    %1315 = vector.broadcast %cst_492 : f32 to vector<16x128xf32>
    %1316 = arith.addf %1315, %1314 : vector<16x128xf32>
    %1317 = tpu.reciprocal %1316 {approx = true} : vector<16x128xf32> -> vector<16x128xf32>
    %1318 = arith.mulf %1311, %1317 : vector<16x128xf32>
    %cst_493 = arith.constant dense<0.000000e+00> : vector<128xf32>
    %1319 = vector.multi_reduction <add>, %1318, %cst_493 [0] : vector<16x128xf32> to vector<128xf32>
    %1320 = vector.shape_cast %1319 : vector<128xf32> to vector<1x128xf32>
    %cst_494 = arith.constant 1.600000e+01 : f32
    %1321 = vector.broadcast %cst_494 : f32 to vector<1x128xf32>
    %1322 = arith.divf %1320, %1321 : vector<1x128xf32>
    %c0_495 = arith.constant 0 : index
    %c0_496 = arith.constant 0 : index
    %1323 = vector.load %arg34[%c0_495, %c0_496] : memref<128x128xf32, #tpu.memory_space<vmem>>, vector<128x128xf32>
    %cst_497 = arith.constant dense<0.000000e+00> : vector<1x128xf32>
    %1324 = tpu.matmul %1322, %1323, %cst_497 {dimension_numbers = #tpu.dot_dimension_numbers<[1], [0], [0], [1], [0, 0, 1, 1], [], []>} : vector<1x128xf32>, vector<128x128xf32>, vector<1x128xf32> -> vector<1x128xf32>
    %c0_498 = arith.constant 0 : index
    %c0_499 = arith.constant 0 : index
    %1325 = vector.load %arg35[%c0_498, %c0_499] : memref<1x128xf32, #tpu.memory_space<vmem>>, vector<1x128xf32>
    %1326 = arith.addf %1324, %1325 : vector<1x128xf32>
    %c0_500 = arith.constant 0 : index
    %c0_501 = arith.constant 0 : index
    %c0_502 = arith.constant 0 : index
    %1327 = vector.load %arg36[%c0_500, %c0_501, %c0_502] : memref<1x1x128xf32, #tpu.memory_space<vmem>>, vector<1x1x128xf32>
    %1328 = vector.shape_cast %1327 : vector<1x1x128xf32> to vector<1x128xf32>
    %1329 = vector.shape_cast %1326 : vector<1x128xf32> to vector<1x1x128xf32>
    tpu.vector_store %arg36[%c0_500, %c0_501, %c0_502], %1329 {strides = array<i32>} : memref<1x1x128xf32, #tpu.memory_space<vmem>>, vector<1x1x128xf32>,
    return
  }
  func.func @transform_0(%arg0: i32) -> (i32, i32, i32) {
    %c0_i32 = arith.constant 0 : i32
    %c0_i32_0 = arith.constant 0 : i32
    %c0_i32_1 = arith.constant 0 : i32
    return %arg0, %c0_i32, %c0_i32_0 : i32, i32, i32
  }
  func.func @transform_1(%arg0: i32) -> (i32, i32) {
    %c0_i32 = arith.constant 0 : i32
    %c0_i32_0 = arith.constant 0 : i32
    %c0_i32_1 = arith.constant 0 : i32
    return %c0_i32, %c0_i32_0 : i32, i32
  }
  func.func @transform_2(%arg0: i32) -> (i32, i32) {
    %c0_i32 = arith.constant 0 : i32
    %c0_i32_0 = arith.constant 0 : i32
    %c0_i32_1 = arith.constant 0 : i32
    return %c0_i32, %c0_i32_0 : i32, i32
  }
  func.func @transform_3(%arg0: i32) -> (i32, i32) {
    %c0_i32 = arith.constant 0 : i32
    %c0_i32_0 = arith.constant 0 : i32
    %c0_i32_1 = arith.constant 0 : i32
    return %c0_i32, %c0_i32_0 : i32, i32
  }
  func.func @transform_4(%arg0: i32) -> (i32, i32) {
    %c0_i32 = arith.constant 0 : i32
    %c0_i32_0 = arith.constant 0 : i32
    %c0_i32_1 = arith.constant 0 : i32
    return %c0_i32, %c0_i32_0 : i32, i32
  }
  func.func @transform_5(%arg0: i32) -> (i32, i32) {
    %c0_i32 = arith.constant 0 : i32
    %c0_i32_0 = arith.constant 0 : i32
    %c0_i32_1 = arith.constant 0 : i32
    return %c0_i32, %c0_i32_0 : i32, i32
  }
  func.func @transform_6(%arg0: i32) -> (i32, i32) {
    %c0_i32 = arith.constant 0 : i32
    %c0_i32_0 = arith.constant 0 : i32
    %c0_i32_1 = arith.constant 0 : i32
    return %c0_i32, %c0_i32_0 : i32, i32
  }
  func.func @transform_7(%arg0: i32) -> (i32, i32) {
    %c0_i32 = arith.constant 0 : i32
    %c0_i32_0 = arith.constant 0 : i32
    %c0_i32_1 = arith.constant 0 : i32
    return %c0_i32, %c0_i32_0 : i32, i32
  }
  func.func @transform_8(%arg0: i32) -> (i32, i32) {
    %c0_i32 = arith.constant 0 : i32
    %c0_i32_0 = arith.constant 0 : i32
    %c0_i32_1 = arith.constant 0 : i32
    return %c0_i32, %c0_i32_0 : i32, i32
  }
  func.func @transform_9(%arg0: i32) -> (i32, i32) {
    %c0_i32 = arith.constant 0 : i32
    %c0_i32_0 = arith.constant 0 : i32
    %c0_i32_1 = arith.constant 0 : i32
    return %c0_i32, %c0_i32_0 : i32, i32
  }
  func.func @transform_10(%arg0: i32) -> (i32, i32) {
    %c0_i32 = arith.constant 0 : i32
    %c0_i32_0 = arith.constant 0 : i32
    %c0_i32_1 = arith.constant 0 : i32
    return %c0_i32, %c0_i32_0 : i32, i32
  }
  func.func @transform_11(%arg0: i32) -> (i32, i32) {
    %c0_i32 = arith.constant 0 : i32
    %c0_i32_0 = arith.constant 0 : i32
    %c0_i32_1 = arith.constant 0 : i32
    return %c0_i32, %c0_i32_0 : i32, i32
  }
  func.func @transform_12(%arg0: i32) -> (i32, i32) {
    %c0_i32 = arith.constant 0 : i32
    %c0_i32_0 = arith.constant 0 : i32
    %c0_i32_1 = arith.constant 0 : i32
    return %c0_i32, %c0_i32_0 : i32, i32
  }
  func.func @transform_13(%arg0: i32) -> (i32, i32) {
    %c0_i32 = arith.constant 0 : i32
    %c0_i32_0 = arith.constant 0 : i32
    %c0_i32_1 = arith.constant 0 : i32
    return %c0_i32, %c0_i32_0 : i32, i32
  }
  func.func @transform_14(%arg0: i32) -> (i32, i32) {
    %c0_i32 = arith.constant 0 : i32
    %c0_i32_0 = arith.constant 0 : i32
    %c0_i32_1 = arith.constant 0 : i32
    return %c0_i32, %c0_i32_0 : i32, i32
  }
  func.func @transform_15(%arg0: i32) -> (i32, i32) {
    %c0_i32 = arith.constant 0 : i32
    %c0_i32_0 = arith.constant 0 : i32
    %c0_i32_1 = arith.constant 0 : i32
    return %c0_i32, %c0_i32_0 : i32, i32
  }
  func.func @transform_16(%arg0: i32) -> (i32, i32) {
    %c0_i32 = arith.constant 0 : i32
    %c0_i32_0 = arith.constant 0 : i32
    %c0_i32_1 = arith.constant 0 : i32
    return %c0_i32, %c0_i32_0 : i32, i32
  }
  func.func @transform_17(%arg0: i32) -> (i32, i32) {
    %c0_i32 = arith.constant 0 : i32
    %c0_i32_0 = arith.constant 0 : i32
    %c0_i32_1 = arith.constant 0 : i32
    return %c0_i32, %c0_i32_0 : i32, i32
  }
  func.func @transform_18(%arg0: i32) -> (i32, i32) {
    %c0_i32 = arith.constant 0 : i32
    %c0_i32_0 = arith.constant 0 : i32
    %c0_i32_1 = arith.constant 0 : i32
    return %c0_i32, %c0_i32_0 : i32, i32
  }
  func.func @transform_19(%arg0: i32) -> (i32, i32) {
    %c0_i32 = arith.constant 0 : i32
    %c0_i32_0 = arith.constant 0 : i32
    %c0_i32_1 = arith.constant 0 : i32
    return %c0_i32, %c0_i32_0 : i32, i32
  }
  func.func @transform_20(%arg0: i32) -> (i32, i32) {
    %c0_i32 = arith.constant 0 : i32
    %c0_i32_0 = arith.constant 0 : i32
    %c0_i32_1 = arith.constant 0 : i32
    return %c0_i32, %c0_i32_0 : i32, i32
  }
  func.func @transform_21(%arg0: i32) -> (i32, i32) {
    %c0_i32 = arith.constant 0 : i32
    %c0_i32_0 = arith.constant 0 : i32
    %c0_i32_1 = arith.constant 0 : i32
    return %c0_i32, %c0_i32_0 : i32, i32
  }
  func.func @transform_22(%arg0: i32) -> (i32, i32) {
    %c0_i32 = arith.constant 0 : i32
    %c0_i32_0 = arith.constant 0 : i32
    %c0_i32_1 = arith.constant 0 : i32
    return %c0_i32, %c0_i32_0 : i32, i32
  }
  func.func @transform_23(%arg0: i32) -> (i32, i32) {
    %c0_i32 = arith.constant 0 : i32
    %c0_i32_0 = arith.constant 0 : i32
    %c0_i32_1 = arith.constant 0 : i32
    return %c0_i32, %c0_i32_0 : i32, i32
  }
  func.func @transform_24(%arg0: i32) -> (i32, i32) {
    %c0_i32 = arith.constant 0 : i32
    %c0_i32_0 = arith.constant 0 : i32
    %c0_i32_1 = arith.constant 0 : i32
    return %c0_i32, %c0_i32_0 : i32, i32
  }
  func.func @transform_25(%arg0: i32) -> (i32, i32) {
    %c0_i32 = arith.constant 0 : i32
    %c0_i32_0 = arith.constant 0 : i32
    %c0_i32_1 = arith.constant 0 : i32
    return %c0_i32, %c0_i32_0 : i32, i32
  }
  func.func @transform_26(%arg0: i32) -> (i32, i32) {
    %c0_i32 = arith.constant 0 : i32
    %c0_i32_0 = arith.constant 0 : i32
    %c0_i32_1 = arith.constant 0 : i32
    return %c0_i32, %c0_i32_0 : i32, i32
  }
  func.func @transform_27(%arg0: i32) -> (i32, i32) {
    %c0_i32 = arith.constant 0 : i32
    %c0_i32_0 = arith.constant 0 : i32
    %c0_i32_1 = arith.constant 0 : i32
    return %c0_i32, %c0_i32_0 : i32, i32
  }
  func.func @transform_28(%arg0: i32) -> (i32, i32) {
    %c0_i32 = arith.constant 0 : i32
    %c0_i32_0 = arith.constant 0 : i32
    %c0_i32_1 = arith.constant 0 : i32
    return %c0_i32, %c0_i32_0 : i32, i32
  }
  func.func @transform_29(%arg0: i32) -> (i32, i32) {
    %c0_i32 = arith.constant 0 : i32
    %c0_i32_0 = arith.constant 0 : i32
    %c0_i32_1 = arith.constant 0 : i32
    return %c0_i32, %c0_i32_0 : i32, i32
  }
  func.func @transform_30(%arg0: i32) -> (i32, i32) {
    %c0_i32 = arith.constant 0 : i32
    %c0_i32_0 = arith.constant 0 : i32
    %c0_i32_1 = arith.constant 0 : i32
    return %c0_i32, %c0_i32_0 : i32, i32
  }
  func.func @transform_31(%arg0: i32) -> (i32, i32) {
    %c0_i32 = arith.constant 0 : i32
    %c0_i32_0 = arith.constant 0 : i32
    %c0_i32_1 = arith.constant 0 : i32
    return %c0_i32, %c0_i32_0 : i32, i32
  }
  func.func @transform_32(%arg0: i32) -> (i32, i32) {
    %c0_i32 = arith.constant 0 : i32
    %c0_i32_0 = arith.constant 0 : i32
    %c0_i32_1 = arith.constant 0 : i32
    return %c0_i32, %c0_i32_0 : i32, i32
  }
  func.func @transform_33(%arg0: i32) -> (i32, i32) {
    %c0_i32 = arith.constant 0 : i32
    %c0_i32_0 = arith.constant 0 : i32
    %c0_i32_1 = arith.constant 0 : i32
    return %c0_i32, %c0_i32_0 : i32, i32
  }
  func.func @transform_34(%arg0: i32) -> (i32, i32) {
    %c0_i32 = arith.constant 0 : i32
    %c0_i32_0 = arith.constant 0 : i32
    %c0_i32_1 = arith.constant 0 : i32
    return %c0_i32, %c0_i32_0 : i32, i32
  }
  func.func @transform_35(%arg0: i32) -> (i32, i32, i32) {
    %c0_i32 = arith.constant 0 : i32
    %c0_i32_0 = arith.constant 0 : i32
    %c0_i32_1 = arith.constant 0 : i32
    return %arg0, %c0_i32, %c0_i32_0 : i32, i32, i32
  }
}

</mosaic_0001>

<bundles_post_ra>
// kernel: _lambda_.1
= control target key start
LH: loop header
LB: loop body
LE: loop exit
PB: predicated region body
PF: predicated region fallthrough
CT: control target
= control target key end

     0   :  { %s5974_s6 = smov 1   ;;  %s5975_s10 = smov 2   ;;  %s7812_s0 = inlined_call_operand.smem [shape: u32[36], index: -1, kind: input, shape index: {}] }
   0x1   :  { %s6020_s5 = sld [smem:[%s7812_s0]]   ;;  %s5976_s14 = smov 3  }
   0x2   :  { %s6025_s9 = sld [smem:[%s7812_s0 + %s5974_s6]]   ;;  %s5977_s18 = smov 4  }
   0x3   :  { %s6030_s13 = sld [smem:[%s7812_s0 + %s5975_s10]]   ;;  %s5978_s22 = smov 5  }
   0x4   :  { %s6035_s17 = sld [smem:[%s7812_s0 + %s5976_s14]]   ;;  %s5979_s26 = smov 6  }
   0x5   :  { %s6040_s21 = sld [smem:[%s7812_s0 + %s5977_s18]]   ;;  %s5980_s30 = smov 7  }
   0x6   :  { %s6045_s25 = sld [smem:[%s7812_s0 + %s5978_s22]]   ;;  %s5981_s4 = smov 8  }
   0x7   :  { %s6050_s29 = sld [smem:[%s7812_s0 + %s5979_s26]]   ;;  %s5982_s10 = smov 9  }
   0x8   :  { %s6055_s3 = sld [smem:[%s7812_s0 + %s5980_s30]]   ;;  %s5983_s15 = smov 10  }
   0x9   :  { %s6060_s8 = sld [smem:[%s7812_s0 + %s5981_s4]]   ;;  %s5984_s20 = smov 11  }
   0xa   :  { %s6065_s14 = sld [smem:[%s7812_s0 + %s5982_s10]]   ;;  %s5985_s26 = smov 12  }
   0xb   :  { %s6070_s19 = sld [smem:[%s7812_s0 + %s5983_s15]]   ;;  %s5986_s1 = smov 13  }
   0xc   :  { %s6075_s24 = sld [smem:[%s7812_s0 + %s5984_s20]]   ;;  %s5987_s7 = smov 14  }
   0xd   :  { %s6080_s30 = sld [smem:[%s7812_s0 + %s5985_s26]]   ;;  %s5988_s15 = smov 15  }
   0xe   :  { %s6085_s6 = sld [smem:[%s7812_s0 + %s5986_s1]]   ;;  %s5989_s22 = smov 16  }
   0xf   :  { %s6090_s12 = sld [smem:[%s7812_s0 + %s5987_s7]]   ;;  %s5990_s28 = smov 17  }
  0x10   :  { %s6095_s20 = sld [smem:[%s7812_s0 + %s5988_s15]]   ;;  %s5991_s7 = smov 18  }
  0x11   :  { %s6100_s27 = sld [smem:[%s7812_s0 + %s5989_s22]]   ;;  %s5992_s15 = smov 19  }
  0x12   :  { %s6105_s4 = sld [smem:[%s7812_s0 + %s5990_s28]]   ;;  %s5993_s22 = smov 20  }
  0x13   :  { %s5994_s28 = smov 21  }
  0x15   :  { %7853 = sst [smem:[#allocation8_spill]] %s6090_s12 }
  0x16   :  { %7854 = sst [smem:[#allocation9_spill]] %s6095_s20 }
  0x17   :  { %7855 = sst [smem:[#allocation10_spill]] %s6100_s27 }
  0x18   :  { %7856 = sst [smem:[#allocation11_spill]] %s6105_s4 }
  0x19   :  { %s6110_s12 = sld [smem:[%s7812_s0 + %s5991_s7]]   ;;  %s5995_s7 = smov 22  }
  0x1a   :  { %s6115_s20 = sld [smem:[%s7812_s0 + %s5992_s15]]   ;;  %s5996_s15 = smov 23  }
  0x1b   :  { %s6120_s27 = sld [smem:[%s7812_s0 + %s5993_s22]]   ;;  %s5997_s22 = smov 24  }
  0x1c   :  { %s6125_s4 = sld [smem:[%s7812_s0 + %s5994_s28]]   ;;  %s5998_s28 = smov 25  }
  0x1f   :  { %7857 = sst [smem:[#allocation12_spill]] %s6110_s12 }
  0x20   :  { %7858 = sst [smem:[#allocation13_spill]] %s6115_s20 }
  0x21   :  { %7859 = sst [smem:[#allocation14_spill]] %s6120_s27 }
  0x22   :  { %7860 = sst [smem:[#allocation15_spill]] %s6125_s4 }
  0x23   :  { %s6130_s12 = sld [smem:[%s7812_s0 + %s5995_s7]]   ;;  %s5999_s7 = smov 26  }
  0x24   :  { %s6135_s20 = sld [smem:[%s7812_s0 + %s5996_s15]]   ;;  %s6000_s15 = smov 27  }
  0x25   :  { %s6140_s27 = sld [smem:[%s7812_s0 + %s5997_s22]]   ;;  %s6001_s22 = smov 28  }
  0x26   :  { %s6145_s4 = sld [smem:[%s7812_s0 + %s5998_s28]]   ;;  %s6002_s28 = smov 29  }
  0x29   :  { %7861 = sst [smem:[#allocation16_spill]] %s6130_s12 }
  0x2a   :  { %7862 = sst [smem:[#allocation17_spill]] %s6135_s20 }
  0x2b   :  { %7863 = sst [smem:[#allocation18_spill]] %s6140_s27 }
  0x2c   :  { %7864 = sst [smem:[#allocation19_spill]] %s6145_s4 }
  0x2d   :  { %s6150_s12 = sld [smem:[%s7812_s0 + %s5999_s7]]   ;;  %s6003_s7 = smov 30  }
  0x2e   :  { %s6155_s20 = sld [smem:[%s7812_s0 + %s6000_s15]]   ;;  %s6004_s15 = smov 31  }
  0x2f   :  { %s6160_s27 = sld [smem:[%s7812_s0 + %s6001_s22]]   ;;  %s6005_s22 = smov 32  }
  0x30   :  { %s6165_s4 = sld [smem:[%s7812_s0 + %s6002_s28]]   ;;  %s6006_s28 = smov 33  }
  0x33   :  { %7865 = sst [smem:[#allocation20_spill]] %s6150_s12 }
  0x34   :  { %7866 = sst [smem:[#allocation21_spill]] %s6155_s20 }
  0x35   :  { %7867 = sst [smem:[#allocation22_spill]] %s6160_s27 }
  0x36   :  { %7868 = sst [smem:[#allocation23_spill]] %s6165_s4 }
  0x37   :  { %s6170_s12 = sld [smem:[%s7812_s0 + %s6003_s7]]   ;;  %s6007_s7 = smov 34  }
  0x38   :  { %s6175_s20 = sld [smem:[%s7812_s0 + %s6004_s15]]   ;;  %s6008_s15 = smov 35  }
  0x39   :  { %s6180_s27 = sld [smem:[%s7812_s0 + %s6005_s22]]   ;;  %s6197_s22 = smov 0  }
  0x3a   :  { %s6185_s4 = sld [smem:[%s7812_s0 + %s6006_s28]]  }
  0x3d   :  { %7869 = sst [smem:[#allocation24_spill]] %s6170_s12 }
  0x3e   :  { %7870 = sst [smem:[#allocation25_spill]] %s6175_s20 }
  0x3f   :  { %s6190_s12 = sld [smem:[%s7812_s0 + %s6007_s7]]  }
  0x40   :  { %s6195_s20 = sld [smem:[%s7812_s0 + %s6008_s15]]  }
  0x41 LB: > { %s4533_s23 = sadd.s32 4294967295, %s5972_s22   ;;  %p4537_p0 = scmp.ge.s32.totalorder %s5972_s22, 1  ;;  %s5972_s22 = sphi %s6197_s22, %s81_s22  }
  0x42   : > { %p973_p1 = scmp.lt.s32.totalorder %s5972_s22, 3 }
  0x44   : > { %p974_p2 = pnand %p4537_p0, %p973_p1 }
  0x46   : > { %977 = sbr.rel (%p974_p2) target bundleno = 3803 (0xedb), region = 160 }
  0x4d   : > { %v1075_v0 = vld [vmem:[%s6025_s9] sm:$0xff]  ;;  %v1076_v1 = vld [vmem:[%s6025_s9 + $0x8] sm:$0xff]  ;;  %v1077_v2 = vld [vmem:[%s6025_s9 + $0x10] sm:$0xff]  ;;  %p1059_p3 = scmp.lt.s32.totalorder %s4533_s23, 1  ;;  %vm1086_vm0 = vcmask 261120   ;;  %v6009_v14 = vmov 0.0  }
  0x4e   : > { %v5334_v3 = vpack.c.bf16 %v1076_v1, %v1075_v0  ;;  %v1078_v4 = vld [vmem:[%s6025_s9 + $0x18] sm:$0xff]  ;;  %1268 = vst [vmem:[#allocation2 + $0x20] sm:$0xff] %v6009_v14  ;;  %1269 = vst [vmem:[#allocation2 + $0x28] sm:$0x3] %v6009_v14  ;;  %v1655_v15 = vld [vmem:[%s6045_s25] sm:$0xff]  ;;  %v7823_v18 = vmov 0.0|0.0  }
  0x4f   : > { %v5338_v5 = vpack.c.bf16 %v1078_v4, %v1077_v2  ;;  %s8047_s23 = smov (!%p1059_p3, %s4533_s23), 1  ;;  %1264 = vst [vmem:[#allocation2] sm:$0xff] %v6009_v14  ;;  %1265 = vst [vmem:[#allocation2 + $0x8] sm:$0x3] %v6009_v14  ;;  %v1656_v16 = vld [vmem:[%s6045_s25 + $0x8] sm:$0xff]  ;;  %v1657_v17 = vld [vmem:[%s6045_s25 + $0x10] sm:$0xff]  ;;  %5342 = vmatprep.subr.bf16.mxu1 %v7823_v18 }
  0x50   : > { %5335 = vmatprep.subr.bf16.mxu0 %v5334_v3  ;;  %s4589_s0 = sshll.u32 %s8047_s23, 6  ;;  %1266 = vst [vmem:[#allocation2 + $0x10] sm:$0xff] %v6009_v14  ;;  %1267 = vst [vmem:[#allocation2 + $0x18] sm:$0x3] %v6009_v14  ;;  %v5343_v19 = vpack.c.bf16 %v1656_v16, %v1655_v15  ;;  %v1658_v20 = vld [vmem:[%s6045_s25 + $0x18] sm:$0xff]  ;;  %vm6011_vm1 = vmmov 0  }
  0x51   : > { %5337 = vmatpush3.bf16.msra.mxu0 %v5334_v3  ;;  %s1063_s26 = scalar_lea.vmem %s6020_s5, %s4589_s0  ;;  %1270 = vst [vmem:[#allocation2 + $0x30] sm:$0xff] %v6009_v14  ;;  %1271 = vst [vmem:[#allocation2 + $0x38] sm:$0x3] %v6009_v14  ;;  %4893 = vmatprep.mubr.msk.f32.mxu1 %vm6011_vm1, %v6009_v14  ;;  %v5346_v21 = vpack.c.bf16 %v1658_v20, %v1657_v17  ;;  %v1659_v22 = vld [vmem:[%s6045_s25 + $0x20] sm:$0xff]  ;;  %v1660_v23 = vld [vmem:[%s6045_s25 + $0x28] sm:$0xff]  ;;  %s7887_s28 = sld [smem:[#allocation9_spill]] }
  0x52   : > { %5339 = vmatprep.subr.bf16.mxu0 %v5338_v5  ;;  %v1067_v6 = vld [vmem:[%s1063_s26] sm:$0xff]  ;;  %v1068_v7 = vld [vmem:[%s1063_s26 + $0x8] sm:$0xff]  ;;  %v1069_v8 = vld [vmem:[%s1063_s26 + $0x10] sm:$0xff]  ;;  %1272 = vst [vmem:[#allocation2 + $0x40] sm:$0xff] %v6009_v14  ;;  %5344 = vmatpush3.bf16.msra.mxu1 %v5343_v19  ;;  %v5349_v24 = vpack.c.bf16 %v1660_v23, %v1659_v22  ;;  %s7930_s1 = sld [smem:[#allocation8_spill]]  ;;  %s8029_s2 = sld [smem:[#allocation11_spill]] }
  0x53   : > { %4849 = vmatprep.mubr.msk.f32.mxu0 %vm1086_vm0, %v1067_v6  ;;  %v1070_v9 = vld [vmem:[%s1063_s26 + $0x18] sm:$0xff]  ;;  %v1071_v10 = vld [vmem:[%s1063_s26 + $0x20] sm:$0xff]  ;;  %v1072_v11 = vld [vmem:[%s1063_s26 + $0x28] sm:$0xff]  ;;  %1273 = vst [vmem:[#allocation2 + $0x48] sm:$0x3] %v6009_v14  ;;  %5345 = vmatprep.subr.bf16.mxu1 %v7823_v18  ;;  %s8030_s7 = sld [smem:[#allocation10_spill]] }
  0x54   : > { %v1073_v12 = vld [vmem:[%s1063_s26 + $0x30] sm:$0xff]  ;;  %v1074_v13 = vld [vmem:[%s1063_s26 + $0x38] sm:$0xff]  ;;  %1274 = vst [vmem:[#allocation2 + $0x50] sm:$0xff] %v6009_v14  ;;  %1275 = vst [vmem:[#allocation2 + $0x58] sm:$0x3] %v6009_v14  ;;  %s8031_s10 = sld [smem:[#allocation13_spill]] }
  0x55   : > { %5341 = vmatpush3.bf16.msra.mxu0 %v5338_v5  ;;  %1276 = vst [vmem:[#allocation2 + $0x60] sm:$0xff] %v6009_v14  ;;  %1277 = vst [vmem:[#allocation2 + $0x68] sm:$0x3] %v6009_v14  ;;  %v1661_v25 = vld [vmem:[%s6045_s25 + $0x30] sm:$0xff]  ;;  %v1662_v26 = vld [vmem:[%s6045_s25 + $0x38] sm:$0xff]  ;;  %s8032_s11 = sld [smem:[#allocation15_spill]] }
  0x56   : > { %1278 = vst [vmem:[#allocation2 + $0x70] sm:$0xff] %v6009_v14  ;;  %1279 = vst [vmem:[#allocation2 + $0x78] sm:$0x3] %v6009_v14  ;;  %5366 = vmatprep.subr.bf16.mxu0 %v7823_v18  ;;  %5347 = vmatpush3.bf16.msra.mxu1 %v5346_v21  ;;  %v5352_v27 = vpack.c.bf16 %v1662_v26, %v1661_v25  ;;  %v1663_v28 = vld [vmem:[%s6045_s25 + $0x40] sm:$0xff]  ;;  %v1664_v29 = vld [vmem:[%s6045_s25 + $0x48] sm:$0xff]  ;;  %s8033_s15 = sld [smem:[#allocation12_spill]] }
  0x57   : > { %1280 = vst [vmem:[#allocation2 + $0x80] sm:$0xff] %v6009_v14  ;;  %1281 = vst [vmem:[#allocation2 + $0x88] sm:$0x3] %v6009_v14  ;;  %5348 = vmatprep.subr.bf16.mxu1 %v7823_v18  ;;  %v5355_v30 = vpack.c.bf16 %v1664_v29, %v1663_v28  ;;  %v1665_v31 = vld [vmem:[%s6045_s25 + $0x50] sm:$0xff]  ;;  %v1666_v32 = vld [vmem:[%s6045_s25 + $0x58] sm:$0xff]  ;;  %s8034_s16 = sld [smem:[#allocation14_spill]] }
  0x58   : > { %4850 = vmatmul.mubr.msk.f32.vlgmr.msra.gmra.mrb[0].mxu0 %vm1086_vm0, %v1068_v7  ;;  %1282 = vst [vmem:[#allocation2 + $0x90] sm:$0xff] %v6009_v14  ;;  %1283 = vst [vmem:[#allocation2 + $0x98] sm:$0x3] %v6009_v14  ;;  %v5358_v33 = vpack.c.bf16 %v1666_v32, %v1665_v31  ;;  %v1667_v34 = vld [vmem:[%s6045_s25 + $0x60] sm:$0xff]  ;;  %v1668_v35 = vld [vmem:[%s6045_s25 + $0x68] sm:$0xff]  ;;  %s8036_s18 = sld [smem:[#allocation19_spill]] }
  0x59   : > { %4852 = vmatprep.mubr.msk.f32.mxu0 %vm1086_vm0, %v1069_v8  ;;  %2165 = vst [vmem:[#allocation3 + $0x8] sm:$0x3] %v6009_v14  ;;  %2166 = vst [vmem:[#allocation3 + $0x10] sm:$0xff] %v6009_v14  ;;  %v5361_v36 = vpack.c.bf16 %v1668_v35, %v1667_v34  ;;  %v1669_v37 = vld [vmem:[%s6045_s25 + $0x70] sm:$0xff]  ;;  %v1670_v38 = vld [vmem:[%s6045_s25 + $0x78] sm:$0xff]  ;;  %s8037_s0 = sld [smem:[#allocation16_spill]] }
  0x5a   : > { %2167 = vst [vmem:[#allocation3 + $0x18] sm:$0x3] %v6009_v14  ;;  %2168 = vst [vmem:[#allocation3 + $0x20] sm:$0xff] %v6009_v14  ;;  %5350 = vmatpush3.bf16.msra.mxu1 %v5349_v24  ;;  %v5364_v39 = vpack.c.bf16 %v1670_v38, %v1669_v37  ;;  %v4540_v40 = vld [vmem:[%s6030_s13] ss:$0 sm:$0xff]  ;;  %v1329_v20 = vld [vmem:[#allocation2 + $0x1] sm:$0xff] }
  0x5b   : > { %2169 = vst [vmem:[#allocation3 + $0x28] sm:$0x3] %v6009_v14  ;;  %2170 = vst [vmem:[#allocation3 + $0x30] sm:$0xff] %v6009_v14  ;;  %5351 = vmatprep.subr.bf16.mxu1 %v7823_v18  ;;  %v6274_v19 = vld [vmem:[%s6035_s17] ss:$0 sm:$0xff]  ;;  %v1358_v29 = vld [vmem:[#allocation2 + $0x2] sm:$0xff] }
  0x5c   : > { %4853 = vmatmul.mubr.msk.f32.gmra.mrb[2].mxu0 %vm1086_vm0, %v1070_v9  ;;  %2171 = vst [vmem:[#allocation3 + $0x38] sm:$0x3] %v6009_v14  ;;  %2172 = vst [vmem:[#allocation3 + $0x40] sm:$0xff] %v6009_v14  ;;  %v6277_v23 = vld [vmem:[%s6035_s17 + $0x1] ss:$0 sm:$0xff]  ;;  %v1313_v25 = vmul.f32 0.0, %v6274_v19 }
  0x5d   : > { %4855 = vmatprep.mubr.msk.f32.mxu0 %vm1086_vm0, %v1071_v10  ;;  %2173 = vst [vmem:[#allocation3 + $0x48] sm:$0x3] %v6009_v14  ;;  %2174 = vst [vmem:[#allocation3 + $0x50] sm:$0xff] %v6009_v14  ;;  %v1342_v26 = vmul.f32 %v6277_v23, %v1329_v20  ;;  %v6282_v28 = vld [vmem:[%s6035_s17 + $0x2] ss:$0 sm:$0xff]  ;;  %s8038_s26 = sld [smem:[#allocation17_spill]] }
  0x5e   : > { %2175 = vst [vmem:[#allocation3 + $0x58] sm:$0x3] %v6009_v14  ;;  %2176 = vst [vmem:[#allocation3 + $0x60] sm:$0xff] %v6009_v14  ;;  %5353 = vmatpush3.bf16.msra.mxu1 %v5352_v27  ;;  %v1371_v37 = vmul.f32 %v6282_v28, %v1358_v29 }
  0x5f   : > { %2177 = vst [vmem:[#allocation3 + $0x68] sm:$0x3] %v6009_v14  ;;  %2178 = vst [vmem:[#allocation3 + $0x70] sm:$0xff] %v6009_v14  ;;  %5354 = vmatprep.subr.bf16.mxu1 %v7823_v18 }
  0x60   : > { %4856 = vmatmul.mubr.msk.f32.gmra.mrb[4].mxu0 %vm1086_vm0, %v1072_v11  ;;  %2179 = vst [vmem:[#allocation3 + $0x78] sm:$0x3] %v6009_v14  ;;  %2180 = vst [vmem:[#allocation3 + $0x80] sm:$0xff] %v6009_v14 }
  0x61   : > { %4858 = vmatprep.mubr.msk.f32.mxu0 %vm1086_vm0, %v1073_v12  ;;  %2181 = vst [vmem:[#allocation3 + $0x88] sm:$0x3] %v6009_v14  ;;  %3738 = vst [vmem:[#allocation4] sm:$0x3f] %v6009_v14 }
  0x62   : > { %3739 = vst [vmem:[#allocation4 + $0x8] sm:$0x3f] %v6009_v14  ;;  %3740 = vst [vmem:[#allocation4 + $0x10] sm:$0x3f] %v6009_v14  ;;  %5356 = vmatpush3.bf16.msra.mxu1 %v5355_v30 }
  0x63   : > { %3741 = vst [vmem:[#allocation4 + $0x18] sm:$0x3f] %v6009_v14  ;;  %3742 = vst [vmem:[#allocation4 + $0x20] sm:$0x3f] %v6009_v14  ;;  %5357 = vmatprep.subr.bf16.mxu1 %v7823_v18 }
  0x64   : > { %4859 = vmatmul.mubr.msk.f32.gmra.mrb[6].mxu0 %vm1086_vm0, %v1074_v13  ;;  %3743 = vst [vmem:[#allocation4 + $0x28] sm:$0x3f] %v6009_v14 }
  0x65   : > { %4928 = vmatprep.mubr.msk.f32.mxu0 %vm6011_vm1, %v6009_v14 }
  0x66   : > { %5359 = vmatpush3.bf16.msra.mxu1 %v5358_v33 }
  0x67   : > { %5360 = vmatprep.subr.bf16.mxu1 %v7823_v18 }
  0x6a   : > { %5362 = vmatpush3.bf16.msra.mxu1 %v5361_v36  ;;  %v1350_v36 = vadd.f32 %v1342_v26, %v1313_v25 }
  0x6b   : > { %5363 = vmatprep.subr.bf16.mxu1 %v7823_v18 }
  0x6e   : > { %5365 = vmatpush3.bf16.msra.mxu1 %v5364_v39 }
 0x12b   : > { %v4851_v41 = vpop.f32.mrb[0].mxu0 }
 0x12c   : > { %v6249_v42 = vadd.f32 %v4851_v41, %v4540_v40  ;;  %v1177_v43 = vpop.f32.mrb[1].mxu0  ;;  %v1539_v41 = vld [vmem:[#allocation2 + $0x92] sm:$0xff] }
 0x12d   : > { %v6251_v44 = vadd.f32 %v4540_v40, %v1177_v43 }
 0x12e   : > { %v1217_v45 = vsub.f32 0.0, %v6249_v42 }
 0x12f   : > { %v1216_v46 = vsub.f32 0.0, %v6251_v44  ;;  %v4854_v47 = vpop.f32.mrb[2].mxu0 }
 0x130   : > { %v1226_v48 = vmul.f32 1.442695, %v1217_v45  ;;  %v6255_v49 = vadd.f32 %v4854_v47, %v4540_v40  ;;  %v1187_v50 = vpop.f32.mrb[3].mxu0  ;;  %v6300_v45 = vld [vmem:[%s6035_s17 + $0x7] ss:$0 sm:$0xff]  ;;  %v1379_v47 = vadd.f32 %v1371_v37, %v1350_v36 }
 0x131   : > { %v1224_v51 = vmul.f32 1.442695, %v1216_v46  ;;  %v6257_v52 = vadd.f32 %v4540_v40, %v1187_v50  ;;  %v6309_v50 = vld [vmem:[%s6035_s17 + $0x8] ss:$0 sm:$0xff] }
 0x132   : > { %5748 = vpow2.f32 %v1226_v48  ;;  %v1219_v53 = vsub.f32 0.0, %v6255_v49  ;;  %v6306_v48 = vld [vmem:[%s6035_s17 + $0x6] ss:$0 sm:$0xff] }
 0x133   : > { %5750 = vpow2.f32 %v1224_v51  ;;  %v1218_v54 = vsub.f32 0.0, %v6257_v52  ;;  %v4857_v55 = vpop.f32.mrb[4].mxu0 }
 0x134   : > { %v1230_v56 = vmul.f32 1.442695, %v1219_v53  ;;  %v6261_v57 = vadd.f32 %v4857_v55, %v4540_v40  ;;  %v1197_v58 = vpop.f32.mrb[5].mxu0  ;;  %v6324_v55 = vld [vmem:[%s6035_s17 + $0x3] ss:$0 sm:$0xff] }
 0x135   : > { %v1228_v59 = vmul.f32 1.442695, %v1218_v54  ;;  %v6263_v60 = vadd.f32 %v4540_v40, %v1197_v58  ;;  %v6321_v54 = vmul.f32 %v6309_v50, %v1539_v41 }
 0x136   : > { %5752 = vpow2.f32 %v1230_v56  ;;  %v1221_v61 = vsub.f32 0.0, %v6261_v57 }
 0x137   : > { %5754 = vpow2.f32 %v1228_v59  ;;  %v1220_v62 = vsub.f32 0.0, %v6263_v60  ;;  %v4860_v63 = vpop.f32.mrb[6].mxu0  ;;  %7875 = vst [vmem:[#allocation30_spill] sm:$0xff] %v6321_v54 }
 0x138   : > { %v1234_v0 = vmul.f32 1.442695, %v1221_v61  ;;  %v6267_v1 = vadd.f32 %v4860_v63, %v4540_v40  ;;  %v1207_v2 = vpop.f32.mrb[7].mxu0 }
 0x139   : > { %v1232_v3 = vmul.f32 1.442695, %v1220_v62  ;;  %v6269_v4 = vadd.f32 %v4540_v40, %v1207_v2  ;;  %v1510_v40 = vld [vmem:[#allocation2 + $0x91] sm:$0xff] }
 0x13a   : > { %5756 = vpow2.f32 %v1234_v0  ;;  %v1223_v5 = vsub.f32 0.0, %v6267_v1  ;;  %v6318_v53 = vmul.f32 %v6300_v45, %v1510_v40 }
 0x13b   : > { %5758 = vpow2.f32 %v1232_v3  ;;  %v1222_v6 = vsub.f32 0.0, %v6269_v4 }
 0x13c   : > { %v5749_v7 = vpop.eup %5748  ;;  %v1238_v8 = vmul.f32 1.442695, %v1223_v5 }
 0x13d   : > { %v5751_v9 = vpop.eup %5750  ;;  %v1241_v10 = vadd.f32 1.0, %v5749_v7  ;;  %v1236_v11 = vmul.f32 1.442695, %v1222_v6 }
 0x13e   : > { %v1240_v12 = vadd.f32 1.0, %v5751_v9  ;;  %5760 = vpow2.f32 %v1238_v8 }
 0x13f   : > { %5762 = vrcp.f32 %v1241_v10 }
 0x140   : > { %v5753_v13 = vpop.eup %5752  ;;  %5764 = vrcp.f32 %v1240_v12 }
 0x141   : > { %v5755_v14 = vpop.eup %5754  ;;  %v1243_v15 = vadd.f32 1.0, %v5753_v13  ;;  %5766 = vpow2.f32 %v1236_v11 }
 0x142   : > { %v1242_v16 = vadd.f32 1.0, %v5755_v14 }
 0x143   : > { %5768 = vrcp.f32 %v1243_v15  ;;  %v6379_v15 = vld [vmem:[%s6035_s17 + $0x5] ss:$0 sm:$0xff] }
 0x144   : > { %v5757_v17 = vpop.eup %5756  ;;  %5770 = vrcp.f32 %v1242_v16 }
 0x145   : > { %v5759_v21 = vpop.eup %5758  ;;  %v1245_v22 = vadd.f32 1.0, %v5757_v17 }
 0x146   : > { %v1244_v24 = vadd.f32 1.0, %v5759_v21 }
 0x147   : > { %5772 = vrcp.f32 %v1245_v22 }
 0x148   : > { %v5761_v27 = vpop.eup %5760  ;;  %5774 = vrcp.f32 %v1244_v24 }
 0x149   : > { %v5763_v30 = vpop.eup %5762  ;;  %v1247_v31 = vadd.f32 1.0, %v5761_v27 }
 0x14a   : > { %v5765_v32 = vpop.eup %5764  ;;  %v6285_v33 = vmul.f32 %v5763_v30, %v6249_v42 }
 0x14b   : > { %v5767_v34 = vpop.eup %5766  ;;  %v6288_v35 = vmul.f32 %v5765_v32, %v6251_v44  ;;  %5776 = vrcp.f32 %v1247_v31  ;;  %v6297_v44 = vld [vmem:[%s6035_s17 + $0x4] ss:$0 sm:$0xff] }
 0x14c   : > { %7871 = vst [vmem:[#allocation26_spill] sm:$0xff] %v6285_v33  ;;  %1287 = vst [vmem:[#allocation2 + $0x21] sm:$0xff] %v6285_v33  ;;  %v1246_v38 = vadd.f32 1.0, %v5767_v34  ;;  %v1344_v51 = vmul.f32 %v6277_v23, %v6285_v33  ;;  %v6333_v59 = vmul.f32 %v6297_v44, %v6285_v33  ;;  %v6337_v61 = vmul.f32 %v6300_v45, %v6285_v33 }
 0x14d   : > { %7872 = vst [vmem:[#allocation27_spill] sm:$0xff] %v6288_v35  ;;  %v5769_v39 = vpop.eup %5768  ;;  %1285 = vst [vmem:[#allocation2 + $0x11] sm:$0xff] %v6288_v35  ;;  %v1343_v56 = vmul.f32 %v6277_v23, %v6288_v35  ;;  %v1429_v58 = vmul.f32 %v6297_v44, %v6288_v35 }
 0x14e   : > { %v5771_v42 = vpop.eup %5770  ;;  %v6294_v43 = vmul.f32 %v5769_v39, %v6255_v49  ;;  %5778 = vrcp.f32 %v1246_v38  ;;  %v6315_v49 = vmul.f32 0.0, %v6306_v48 }
 0x14f   : > { %v6303_v46 = vmul.f32 %v5771_v42, %v6257_v52 }
 0x150   : > { %7873 = vst [vmem:[#allocation28_spill] sm:$0xff] %v6294_v43  ;;  %1291 = vst [vmem:[#allocation2 + $0x41] sm:$0xff] %v6294_v43  ;;  %v1346_v0 = vmul.f32 %v6277_v23, %v6294_v43  ;;  %v6346_v2 = vmul.f32 %v6297_v44, %v6294_v43  ;;  %v6350_v3 = vmul.f32 %v6300_v45, %v6294_v43 }
 0x151   : > { %7874 = vst [vmem:[#allocation29_spill] sm:$0xff] %v6303_v46  ;;  %v5773_v52 = vpop.eup %5772  ;;  %1289 = vst [vmem:[#allocation2 + $0x31] sm:$0xff] %v6303_v46  ;;  %v6363_v8 = vmul.f32 %v6297_v44, %v6303_v46  ;;  %v6367_v9 = vmul.f32 %v6300_v45, %v6303_v46 }
 0x152   : > { %v5775_v62 = vpop.eup %5774  ;;  %v6340_v63 = vmul.f32 %v5773_v52, %v6261_v57  ;;  %v1345_v57 = vmul.f32 %v6277_v23, %v6303_v46 }
 0x153   : > { %v6352_v5 = vld [vmem:[#allocation2 + $0x20] sm:$0xff]  ;;  %v6359_v7 = vmul.f32 %v5775_v62, %v6263_v60 }
 0x154   : > { %v6354_v6 = vld [vmem:[#allocation2 + $0x22] sm:$0xff]  ;;  %v1315_v10 = vmul.f32 %v6274_v19, %v6352_v5  ;;  %v1401_v12 = vmul.f32 %v6324_v55, %v6352_v5  ;;  %v1301_v13 = vld [vmem:[#allocation2 + $0x10] sm:$0xff]  ;;  %1295 = vst [vmem:[#allocation2 + $0x61] sm:$0xff] %v6340_v63  ;;  %v1348_v14 = vmul.f32 %v6277_v23, %v6340_v63  ;;  %v6394_v27 = vmul.f32 %v6297_v44, %v6340_v63 }
 0x155   : > { %v1373_v11 = vmul.f32 %v6282_v28, %v6354_v6  ;;  %v1359_v60 = vld [vmem:[#allocation2 + $0x12] sm:$0xff]  ;;  %v5777_v16 = vpop.eup %5776  ;;  %v1314_v17 = vmul.f32 %v6274_v19, %v1301_v13  ;;  %v1400_v21 = vmul.f32 %v6324_v55, %v1301_v13  ;;  %1293 = vst [vmem:[#allocation2 + $0x51] sm:$0xff] %v6359_v7  ;;  %v1347_v22 = vmul.f32 %v6277_v23, %v6359_v7 }
 0x156   : > { %v1372_v20 = vmul.f32 %v6282_v28, %v1359_v60  ;;  %v6388_v24 = vmul.f32 %v5777_v16, %v6267_v1  ;;  %v1352_v25 = vadd.f32 %v1344_v51, %v1315_v10  ;;  %v1433_v26 = vmul.f32 %v6297_v44, %v6359_v7 }
 0x157   : > { %v1351_v29 = vadd.f32 %v1343_v56, %v1314_v17  ;;  %v6396_v30 = vld [vmem:[#allocation2 + $0x40] sm:$0xff]  ;;  %v1408_v32 = vadd.f32 %v1400_v21, %v1379_v47  ;;  %v1458_v34 = vmul.f32 %v6379_v15, %v1359_v60  ;;  %v1459_v1 = vmul.f32 %v6379_v15, %v6354_v6 }
 0x158   : > { %v6398_v31 = vld [vmem:[#allocation2 + $0x42] sm:$0xff]  ;;  %v5779_v36 = vpop.eup %5778  ;;  %v6403_v37 = vld [vmem:[#allocation2 + $0x30] sm:$0xff]  ;;  %1299 = vst [vmem:[#allocation2 + $0x81] sm:$0xff] %v6388_v24  ;;  %v1317_v39 = vmul.f32 %v6274_v19, %v6396_v30  ;;  %v1381_v41 = vadd.f32 %v1373_v11, %v1352_v25  ;;  %v1403_v42 = vmul.f32 %v6324_v55, %v6396_v30  ;;  %v6425_v11 = vmul.f32 %v6297_v44, %v6388_v24 }
 0x159   : > { %v6405_v38 = vld [vmem:[#allocation2 + $0x32] sm:$0xff]  ;;  %v1375_v40 = vmul.f32 %v6282_v28, %v6398_v31  ;;  %v1316_v47 = vmul.f32 %v6274_v19, %v6403_v37  ;;  %v6417_v51 = vmul.f32 %v5779_v36, %v6269_v4  ;;  %v1380_v56 = vadd.f32 %v1372_v20, %v1351_v29 }
 0x15a   : > { %v1374_v52 = vmul.f32 %v6282_v28, %v6405_v38  ;;  %v1354_v62 = vadd.f32 %v1346_v0, %v1317_v39  ;;  %v1402_v10 = vmul.f32 %v6324_v55, %v6403_v37  ;;  %v1437_v13 = vadd.f32 %v1429_v58, %v1408_v32 }
 0x15b   : > { %1297 = vst [vmem:[#allocation2 + $0x71] sm:$0xff] %v6417_v51  ;;  %v1306_v60 = vld [vmem:[#allocation2 + $0x60] sm:$0xff]  ;;  %v1349_v4 = vmul.f32 %v6277_v23, %v6417_v51  ;;  %v1353_v16 = vadd.f32 %v1345_v57, %v1316_v47  ;;  %v1409_v21 = vadd.f32 %v1401_v12, %v1380_v56  ;;  %v1435_v0 = vmul.f32 %v6297_v44, %v6417_v51 }
 0x15c   : > { %v6430_v17 = vld [vmem:[#allocation2 + $0x62] sm:$0xff]  ;;  %v1305_v20 = vld [vmem:[#allocation2 + $0x50] sm:$0xff]  ;;  %v1319_v25 = vmul.f32 %v6274_v19, %v1306_v60  ;;  %v1383_v32 = vadd.f32 %v1375_v40, %v1354_v62  ;;  %v1405_v36 = vmul.f32 %v6324_v55, %v1306_v60  ;;  %v1410_v47 = vadd.f32 %v1402_v10, %v1381_v41 }
 0x15d   : > { %v6435_v29 = vld [vmem:[#allocation2 + $0x52] sm:$0xff]  ;;  %v1377_v58 = vmul.f32 %v6282_v28, %v6430_v17  ;;  %v1318_v23 = vmul.f32 %v6274_v19, %v1305_v20  ;;  %v1382_v12 = vadd.f32 %v1374_v52, %v1353_v16  ;;  %v1404_v39 = vmul.f32 %v6324_v55, %v1305_v20 }
 0x15e   : > { %v1376_v57 = vmul.f32 %v6282_v28, %v6435_v29  ;;  %v1356_v44 = vadd.f32 %v1348_v14, %v1319_v25  ;;  %v1438_v56 = vadd.f32 %v6333_v59, %v1409_v21  ;;  %v1460_v18 = vmul.f32 %v6379_v15, %v6405_v38 }
 0x15f   : > { %v1355_v43 = vadd.f32 %v1347_v22, %v1318_v23  ;;  %v1394_v46 = vld [vmem:[#allocation2 + $0x80] sm:$0xff]  ;;  %v1411_v40 = vadd.f32 %v1403_v42, %v1382_v12  ;;  %v1412_v62 = vadd.f32 %v1404_v39, %v1383_v32  ;;  %v1461_v35 = vmul.f32 %v6379_v15, %v6398_v31 }
 0x160   : > { %v6447_v33 = vld [vmem:[#allocation2 + $0x82] sm:$0xff]  ;;  %v1385_v54 = vadd.f32 %v1377_v58, %v1356_v44  ;;  %v1407_v52 = vmul.f32 %v6324_v55, %v1394_v46  ;;  %v1439_v14 = vadd.f32 %v6363_v8, %v1410_v47  ;;  %v1462_v59 = vmul.f32 %v6379_v15, %v6435_v29 }
 0x161   : > { %v1384_v41 = vadd.f32 %v1376_v57, %v1355_v43  ;;  %v1440_v10 = vadd.f32 %v6346_v2, %v1411_v40  ;;  %v1441_v22 = vadd.f32 %v1433_v26, %v1412_v62  ;;  %v1463_v42 = vmul.f32 %v6379_v15, %v6430_v17 }
 0x162   : > { %v1307_v16 = vld [vmem:[#allocation2 + $0x70] sm:$0xff]  ;;  %v1465_v25 = vmul.f32 %v6379_v15, %v6447_v33  ;;  %v1466_v58 = vadd.f32 %v1458_v34, %v1437_v13  ;;  %v1467_v32 = vadd.f32 %v1459_v1, %v1438_v56  ;;  %v1468_v23 = vadd.f32 %v1460_v18, %v1439_v14 }
 0x163   : > { %v1365_v21 = vld [vmem:[#allocation2 + $0x72] sm:$0xff]  ;;  %v1320_v8 = vmul.f32 %v6274_v19, %v1307_v16  ;;  %v1406_v43 = vmul.f32 %v6324_v55, %v1307_v16  ;;  %v1413_v57 = vadd.f32 %v1405_v36, %v1384_v41  ;;  %v1469_v26 = vadd.f32 %v1461_v35, %v1440_v10 }
 0x164   : > { %v1378_v12 = vmul.f32 %v6282_v28, %v1365_v21  ;;  %v1464_v2 = vmul.f32 %v6379_v15, %v1365_v21  ;;  %v1470_v39 = vadd.f32 %v1462_v59, %v1441_v22  ;;  %v1487_v44 = vmul.f32 %v6306_v48, %v6352_v5 }
 0x165   : > { %v1357_v47 = vadd.f32 %v1349_v4, %v1320_v8  ;;  %v1414_v40 = vadd.f32 %v1406_v43, %v1385_v54  ;;  %v1442_v34 = vadd.f32 %v6394_v27, %v1413_v57  ;;  %v1488_v18 = vmul.f32 %v6306_v48, %v6403_v37 }
 0x166   : > { %v1489_v19 = vmul.f32 %v6306_v48, %v6396_v30  ;;  %v1490_v28 = vmul.f32 %v6306_v48, %v1305_v20  ;;  %v1491_v55 = vmul.f32 %v6306_v48, %v1306_v60  ;;  %v1492_v35 = vmul.f32 %v6306_v48, %v1307_v16 }
 0x167   : > { %v1386_v15 = vadd.f32 %v1378_v12, %v1357_v47  ;;  %v1443_v1 = vadd.f32 %v1435_v0, %v1414_v40  ;;  %v1471_v13 = vadd.f32 %v1463_v42, %v1442_v34  ;;  %v1493_v5 = vmul.f32 %v6306_v48, %v1394_v46 }
 0x168   : > { %v1495_v54 = vadd.f32 %v1487_v44, %v1466_v58  ;;  %v1496_v4 = vadd.f32 %v1488_v18, %v1467_v32  ;;  %v1497_v27 = vadd.f32 %v1489_v19, %v1468_v23  ;;  %v1498_v36 = vadd.f32 %v1490_v28, %v1469_v26  ;;  %v4558_v23 = vld [vmem:[%s6040_s21] ss:$0 sm:$0xff] }
 0x169   : > { %v1415_v56 = vadd.f32 %v1407_v52, %v1386_v15  ;;  %v1472_v37 = vadd.f32 %v1464_v2, %v1443_v1  ;;  %v1499_v62 = vadd.f32 %v1491_v55, %v1470_v39  ;;  %v1500_v14 = vadd.f32 %v1492_v35, %v1471_v13 }
 0x16a   : > { %v1519_v30 = vmul.f32 %v6300_v45, %v6359_v7  ;;  %v1520_v60 = vmul.f32 %v6300_v45, %v6340_v63  ;;  %v1521_v0 = vmul.f32 %v6300_v45, %v6417_v51  ;;  %v1522_v46 = vmul.f32 %v6300_v45, %v6388_v24 }
 0x16b   : > { %v1444_v48 = vadd.f32 %v6425_v11, %v1415_v56  ;;  %v1501_v20 = vadd.f32 %v1493_v5, %v1472_v37  ;;  %v1524_v52 = vadd.f32 %v6337_v61, %v1495_v54  ;;  %v1525_v59 = vadd.f32 %v6367_v9, %v1496_v4 }
 0x16c   : > { %v1526_v41 = vadd.f32 %v6350_v3, %v1497_v27  ;;  %v1527_v10 = vadd.f32 %v1519_v30, %v1498_v36  ;;  %v1528_v22 = vadd.f32 %v1520_v60, %v1499_v62  ;;  %v1529_v42 = vadd.f32 %v1521_v0, %v1500_v14 }
 0x16d   : > { %v1473_v16 = vadd.f32 %v1465_v25, %v1444_v48  ;;  %v1530_v58 = vadd.f32 %v1522_v46, %v1501_v20  ;;  %v1545_v32 = vmul.f32 %v6309_v50, %v6354_v6  ;;  %v1546_v45 = vmul.f32 %v6309_v50, %v6405_v38 }
 0x16e   : > { %v1547_v11 = vmul.f32 %v6309_v50, %v6398_v31  ;;  %v1548_v61 = vmul.f32 %v6309_v50, %v6435_v29  ;;  %v1549_v3 = vmul.f32 %v6309_v50, %v6430_v17  ;;  %v1550_v9 = vmul.f32 %v6309_v50, %v1365_v21 }
 0x16f   : > { %v1502_v25 = vadd.f32 %v6315_v49, %v1473_v16  ;;  %v1551_v6 = vmul.f32 %v6309_v50, %v6447_v33  ;;  %v1553_v8 = vadd.f32 %v1545_v32, %v1524_v52  ;;  %v1554_v12 = vadd.f32 %v1546_v45, %v1525_v59  ;;  %v7876_v49 = vld [vmem:[#allocation30_spill] sm:$0xff] }
 0x170   : > { %v1555_v38 = vadd.f32 %v1547_v11, %v1526_v41  ;;  %v1556_v43 = vadd.f32 %v1548_v61, %v1527_v10  ;;  %v1557_v57 = vadd.f32 %v1549_v3, %v1528_v22  ;;  %v1558_v31 = vadd.f32 %v1550_v9, %v1529_v42 }
 0x171   : > { %v1531_v2 = vadd.f32 %v6318_v53, %v1502_v25  ;;  %v1559_v29 = vadd.f32 %v1551_v6, %v1530_v58  ;;  %v1568_v26 = vadd.f32 %v4558_v23, %v1553_v8  ;;  %v1569_v39 = vadd.f32 %v4558_v23, %v1554_v12 }
 0x172   : > { %v1570_v17 = vadd.f32 %v4558_v23, %v1555_v38  ;;  %v1571_v44 = vadd.f32 %v4558_v23, %v1556_v43  ;;  %v6503_v21 = vadd.f32 %v4558_v23, %v1557_v57  ;;  %v6505_v47 = vadd.f32 %v4558_v23, %v1558_v31 }
 0x173   : > { %v1560_v40 = vadd.f32 %v7876_v49, %v1531_v2  ;;  %v6508_v33 = vadd.f32 %v4558_v23, %v1559_v29  ;;  %v1576_v50 = vsub.f32 0.0, %v1568_v26  ;;  %v1577_v34 = vsub.f32 0.0, %v1569_v39 }
 0x174   : > { %v1578_v18 = vsub.f32 0.0, %v1570_v17  ;;  %v1579_v19 = vsub.f32 0.0, %v1571_v44  ;;  %v1580_v28 = vsub.f32 0.0, %v6503_v21  ;;  %v1581_v53 = vsub.f32 0.0, %v6505_v47 }
 0x175   : > { %v1575_v55 = vadd.f32 %v4558_v23, %v1560_v40  ;;  %v1582_v35 = vsub.f32 0.0, %v6508_v33  ;;  %v1584_v15 = vmul.f32 1.442695, %v1576_v50  ;;  %v1586_v1 = vmul.f32 1.442695, %v1577_v34 }
 0x176   : > { %v1588_v13 = vmul.f32 1.442695, %v1578_v18  ;;  %v1590_v5 = vmul.f32 1.442695, %v1579_v19  ;;  %v1592_v4 = vmul.f32 1.442695, %v1580_v28 }
 0x177   : > { %v1583_v54 = vsub.f32 0.0, %v1575_v55  ;;  %5780 = vpow2.f32 %v1584_v15  ;;  %v1594_v27 = vmul.f32 1.442695, %v1581_v53  ;;  %v1596_v36 = vmul.f32 1.442695, %v1582_v35  ;;  %v1748_v19 = vld [vmem:[%s6055_s3] sm:$0xff] }
 0x178   : > { %5782 = vpow2.f32 %v1586_v1  ;;  %v1749_v28 = vld [vmem:[%s6055_s3 + $0x8] sm:$0xff]  ;;  %v1750_v35 = vld [vmem:[%s6055_s3 + $0x10] sm:$0xff]  ;;  %v1751_v15 = vld [vmem:[%s6055_s3 + $0x18] sm:$0xff] }
 0x179   : > { %5784 = vpow2.f32 %v1588_v13  ;;  %v1598_v56 = vmul.f32 1.442695, %v1583_v54  ;;  %v5367_v53 = vpack.c.bf16 %v1749_v28, %v1748_v19  ;;  %v5370_v1 = vpack.c.bf16 %v1751_v15, %v1750_v35  ;;  %v1752_v13 = vld [vmem:[%s6055_s3 + $0x20] sm:$0xff]  ;;  %v1866_v15 = vld [vmem:[%s6065_s14 + $0x70] sm:$0xff] }
 0x17a   : > { %5786 = vpow2.f32 %v1590_v5  ;;  %v1753_v5 = vld [vmem:[%s6055_s3 + $0x28] sm:$0xff]  ;;  %v1864_v28 = vld [vmem:[%s6065_s14 + $0x60] sm:$0xff] }
 0x17b   : > { %5788 = vpow2.f32 %v1592_v4  ;;  %5368 = vmatpush3.bf16.msra.mxu0 %v5367_v53  ;;  %v5373_v54 = vpack.c.bf16 %v1753_v5, %v1752_v13  ;;  %v1754_v4 = vld [vmem:[%s6055_s3 + $0x30] sm:$0xff]  ;;  %v1865_v53 = vld [vmem:[%s6065_s14 + $0x68] sm:$0xff]  ;;  %v1988_v5 = vld [vmem:[%s6075_s24] sm:$0xff] }
 0x17c   : > { %5790 = vpow2.f32 %v1594_v27  ;;  %v1755_v27 = vld [vmem:[%s6055_s3 + $0x38] sm:$0xff]  ;;  %v5414_v35 = vpack.c.bf16 %v1865_v53, %v1864_v28  ;;  %v7880_v53 = vld [vmem:[#allocation26_spill] sm:$0xff] }
 0x17d   : > { %5792 = vpow2.f32 %v1596_v36  ;;  %v5376_v36 = vpack.c.bf16 %v1755_v27, %v1754_v4  ;;  %v1990_v4 = vld [vmem:[%s6075_s24 + $0x10] sm:$0xff] }
 0x17e   : > { %5794 = vpow2.f32 %v1598_v56  ;;  %v1756_v56 = vld [vmem:[%s6055_s3 + $0x40] sm:$0xff] }
 0x181   : > { %v5781_v37 = vpop.eup %5780 }
 0x182   : > { %v5783_v62 = vpop.eup %5782  ;;  %v1600_v14 = vadd.f32 1.0, %v5781_v37  ;;  %v1757_v37 = vld [vmem:[%s6055_s3 + $0x48] sm:$0xff] }
 0x183   : > { %v5785_v30 = vpop.eup %5784  ;;  %v1601_v60 = vadd.f32 1.0, %v5783_v62  ;;  %v5379_v62 = vpack.c.bf16 %v1757_v37, %v1756_v56  ;;  %v1992_v37 = vld [vmem:[%s6075_s24 + $0x20] sm:$0xff] }
 0x184   : > { %v5787_v0 = vpop.eup %5786  ;;  %v1602_v46 = vadd.f32 1.0, %v5785_v30  ;;  %5796 = vrcp.f32 %v1600_v14  ;;  %v1758_v14 = vld [vmem:[%s6055_s3 + $0x50] sm:$0xff]  ;;  %v1759_v30 = vld [vmem:[%s6055_s3 + $0x58] sm:$0xff] }
 0x185   : > { %v5789_v48 = vpop.eup %5788  ;;  %v1603_v20 = vadd.f32 1.0, %v5787_v0  ;;  %5798 = vrcp.f32 %v1601_v60  ;;  %v5382_v60 = vpack.c.bf16 %v1759_v30, %v1758_v14  ;;  %v1760_v0 = vld [vmem:[%s6055_s3 + $0x60] sm:$0xff]  ;;  %v1994_v30 = vld [vmem:[%s6075_s24 + $0x30] sm:$0xff] }
 0x186   : > { %v5791_v52 = vpop.eup %5790  ;;  %v1604_v59 = vadd.f32 1.0, %v5789_v48  ;;  %5800 = vrcp.f32 %v1602_v46  ;;  %v1761_v46 = vld [vmem:[%s6055_s3 + $0x68] sm:$0xff] }
 0x187   : > { %v5793_v41 = vpop.eup %5792  ;;  %v1605_v10 = vadd.f32 1.0, %v5791_v52  ;;  %5802 = vrcp.f32 %v1603_v20  ;;  %v5385_v48 = vpack.c.bf16 %v1761_v46, %v1760_v0  ;;  %v1762_v20 = vld [vmem:[%s6055_s3 + $0x70] sm:$0xff]  ;;  %v1763_v52 = vld [vmem:[%s6055_s3 + $0x78] sm:$0xff]  ;;  %v1996_v46 = vld [vmem:[%s6075_s24 + $0x40] sm:$0xff] }
 0x188   : > { %v5795_v22 = vpop.eup %5794  ;;  %v1606_v42 = vadd.f32 1.0, %v5793_v41  ;;  %5804 = vrcp.f32 %v1604_v59  ;;  %v5388_v59 = vpack.c.bf16 %v1763_v52, %v1762_v20  ;;  %v1671_v41 = vld [vmem:[%s6050_s29] sm:$0x1]  ;;  %v1998_v52 = vld [vmem:[%s6075_s24 + $0x50] sm:$0xff] }
 0x189   : > { %v1607_v16 = vadd.f32 1.0, %v5795_v22  ;;  %5806 = vrcp.f32 %v1605_v10 }
 0x18a   : > { %5808 = vrcp.f32 %v1606_v42 }
 0x18b   : > { %5810 = vrcp.f32 %v1607_v16 }
 0x18e   : > { %v5797_v58 = vpop.eup %5796 }
 0x18f   : > { %v5799_v32 = vpop.eup %5798  ;;  %v6513_v11 = vmul.f32 %v5797_v58, %v1568_v26 }
 0x190   : > { %v5801_v45 = vpop.eup %5800  ;;  %v6515_v61 = vmul.f32 %v5799_v32, %v1569_v39 }
 0x191   : > { %v5803_v3 = vpop.eup %5802  ;;  %v6517_v23 = vmul.f32 %v5801_v45, %v1570_v17 }
 0x192   : > { %v5805_v9 = vpop.eup %5804  ;;  %v6519_v25 = vmul.f32 %v5803_v3, %v1571_v44  ;;  %v1640_v6 = vadd.f32 %v6515_v61, %v6513_v11 }
 0x193   : > { %v5807_v8 = vpop.eup %5806  ;;  %v6525_v43 = vmul.f32 %v5805_v9, %v6503_v21 }
 0x194   : > { %v1641_v12 = vadd.f32 %v1640_v6, %v6517_v23  ;;  %v5809_v38 = vpop.eup %5808  ;;  %v6528_v57 = vmul.f32 %v5807_v8, %v6505_v47  ;;  %v1852_v6 = vld [vmem:[%s6065_s14] sm:$0xff]  ;;  %v1853_v8 = vld [vmem:[%s6065_s14 + $0x8] sm:$0xff] }
 0x195   : > { %v5811_v2 = vpop.eup %5810  ;;  %v6533_v26 = vmul.f32 %v5809_v38, %v6508_v33  ;;  %v1854_v38 = vld [vmem:[%s6065_s14 + $0x10] sm:$0xff] }
 0x196   : > { %v1642_v31 = vadd.f32 %v1641_v12, %v6519_v25  ;;  %v6535_v39 = vmul.f32 %v5811_v2, %v1575_v55  ;;  %v7877_v55 = vmov 0.0|0.0   ;;  %v5390_v12 = vpack.c.bf16 %v1853_v8, %v1852_v6 }
 0x197   : > { %5369 = vmatprep.subr.bf16.mxu0 %v7877_v55 }
 0x198   : > { %v1643_v29 = vadd.f32 %v1642_v31, %v6525_v43  ;;  %5371 = vmatpush3.bf16.msra.mxu0 %v5370_v1  ;;  %5391 = vmatprep.subr.bf16.mxu1 %v5390_v12  ;;  %v1855_v31 = vld [vmem:[%s6065_s14 + $0x18] sm:$0xff] }
 0x199   : > { %5372 = vmatprep.subr.bf16.mxu0 %v7877_v55  ;;  %v5394_v2 = vpack.c.bf16 %v1855_v31, %v1854_v38  ;;  %v1867_v1 = vld [vmem:[%s6065_s14 + $0x78] sm:$0xff] }
 0x19a   : > { %v1644_v17 = vadd.f32 %v1643_v29, %v6528_v57  ;;  %v1856_v29 = vld [vmem:[%s6065_s14 + $0x20] sm:$0xff]  ;;  %v5418_v13 = vpack.c.bf16 %v1867_v1, %v1866_v15 }
 0x19c   : > { %v1645_v44 = vadd.f32 %v1644_v17, %v6533_v26  ;;  %5374 = vmatpush3.bf16.msra.mxu0 %v5373_v54  ;;  %v1857_v17 = vld [vmem:[%s6065_s14 + $0x28] sm:$0xff] }
 0x19d   : > { %5375 = vmatprep.subr.bf16.mxu0 %v7877_v55  ;;  %v1989_v54 = vld [vmem:[%s6075_s24 + $0x8] sm:$0xff] }
 0x19e   : > { %v1646_v21 = vadd.f32 %v1645_v44, %v6535_v39  ;;  %v5398_v44 = vpack.c.bf16 %v1857_v17, %v1856_v29  ;;  %v5422_v27 = vpack.c.bf16 %v1989_v54, %v1988_v5  ;;  %v7881_v5 = vld [vmem:[#allocation29_spill] sm:$0xff] }
 0x1a0   : > { %v1647_v47 = vrot.slane %v1646_v21, 4  ;;  %5377 = vmatpush3.bf16.msra.mxu0 %v5376_v36  ;;  %v1991_v36 = vld [vmem:[%s6075_s24 + $0x18] sm:$0xff] }
 0x1a1   : > { %5378 = vmatprep.subr.bf16.mxu0 %v7877_v55  ;;  %v5426_v56 = vpack.c.bf16 %v1991_v36, %v1990_v4 }
 0x1a2   : > { %v1648_v49 = vadd.f32 %v1647_v47, %v1646_v21  ;;  %v1858_v21 = vld [vmem:[%s6065_s14 + $0x30] sm:$0xff]  ;;  %v1859_v47 = vld [vmem:[%s6065_s14 + $0x38] sm:$0xff] }
 0x1a4   : > { %v1649_v40 = vrot.slane %v1648_v49, 2  ;;  %5380 = vmatpush3.bf16.msra.mxu0 %v5379_v62  ;;  %v1993_v62 = vld [vmem:[%s6075_s24 + $0x28] sm:$0xff] }
 0x1a5   : > { %5381 = vmatprep.subr.bf16.mxu0 %v7877_v55  ;;  %v5430_v14 = vpack.c.bf16 %v1993_v62, %v1992_v37 }
 0x1a6   : > { %v1650_v50 = vadd.f32 %v1649_v40, %v1648_v49  ;;  %v5402_v49 = vpack.c.bf16 %v1859_v47, %v1858_v21  ;;  %v1860_v40 = vld [vmem:[%s6065_s14 + $0x40] sm:$0xff] }
 0x1a8   : > { %v1651_v34 = vrot.slane %v1650_v50, 1  ;;  %5383 = vmatpush3.bf16.msra.mxu0 %v5382_v60  ;;  %v1995_v60 = vld [vmem:[%s6075_s24 + $0x38] sm:$0xff] }
 0x1a9   : > { %5384 = vmatprep.subr.bf16.mxu0 %v7877_v55  ;;  %v5434_v0 = vpack.c.bf16 %v1995_v60, %v1994_v30 }
 0x1aa   : > { %v1652_v18 = vadd.f32 %v1651_v34, %v1650_v50  ;;  %v1861_v50 = vld [vmem:[%s6065_s14 + $0x48] sm:$0xff]  ;;  %v1862_v34 = vld [vmem:[%s6065_s14 + $0x50] sm:$0xff] }
 0x1ac   : > { %v1654_v33 = vmul.f32 0.015625, %v1652_v18  ;;  %5386 = vmatpush3.bf16.msra.mxu0 %v5385_v48  ;;  %v5406_v18 = vpack.c.bf16 %v1861_v50, %v1860_v40  ;;  %v1997_v48 = vld [vmem:[%s6075_s24 + $0x48] sm:$0xff]  ;;  %v2003_v50 = vld [vmem:[%s6075_s24 + $0x78] sm:$0xff] }
 0x1ad   : > { %5387 = vmatprep.subr.bf16.mxu0 %v7877_v55  ;;  %v5438_v20 = vpack.c.bf16 %v1997_v48, %v1996_v46 }
 0x1ae   : > { %4894 = vmatmul.mubr.f32.vlgmr.msra.gmra.mrb[0].mxu1 %v1654_v33  ;;  %v1863_v33 = vld [vmem:[%s6065_s14 + $0x58] sm:$0xff] }
 0x1af   : > { %5393 = vmatpush3.bf16.msra.mxu1 %v5390_v12  ;;  %v5410_v19 = vpack.c.bf16 %v1863_v33, %v1862_v34  ;;  %v1840_v12 = vlaneseq }
 0x1b0   : > { %5389 = vmatpush3.bf16.msra.mxu0 %v5388_v59  ;;  %5395 = vmatprep.subr.bf16.mxu1 %v5394_v2  ;;  %v1999_v59 = vld [vmem:[%s6075_s24 + $0x58] sm:$0xff] }
 0x1b1   : > { %5423 = vmatprep.subr.bf16.mxu0 %v5422_v27  ;;  %v1841_v38 = vshrl.u32 %v1840_v12, 7  ;;  %v6863_v12 = vld [vmem:[%s6085_s6 + $0x7] sm:$0x1] }
 0x1b3   : > { %5397 = vmatpush3.bf16.msra.mxu1 %v5394_v2  ;;  %v6596_v31 = vsub.s32 0, %v1841_v38 }
 0x1b4   : > { %5399 = vmatprep.subr.bf16.mxu1 %v5398_v44 }
 0x1b5   : > { %7878 = vst [vmem:[#allocation30_spill] sm:$0xff] %v6596_v31 }
 0x1b7   : > { %5401 = vmatpush3.bf16.msra.mxu1 %v5398_v44 }
 0x1b8   : > { %5403 = vmatprep.subr.bf16.mxu1 %v5402_v49 }
 0x1bb   : > { %5405 = vmatpush3.bf16.msra.mxu1 %v5402_v49 }
 0x1bc   : > { %5407 = vmatprep.subr.bf16.mxu1 %v5406_v18 }
 0x1bf   : > { %5409 = vmatpush3.bf16.msra.mxu1 %v5406_v18 }
 0x1c0   : > { %5411 = vmatprep.subr.bf16.mxu1 %v5410_v19 }
 0x1c3   : > { %5413 = vmatpush3.bf16.msra.mxu1 %v5410_v19  ;;  %v7879_v19 = vld [vmem:[#allocation27_spill] sm:$0xff] }
 0x1c4   : > { %5415 = vmatprep.subr.bf16.mxu1 %v5414_v35 }
 0x1c7   : > { %5417 = vmatpush3.bf16.msra.mxu1 %v5414_v35 }
 0x1c8   : > { %5419 = vmatprep.subr.bf16.mxu1 %v5418_v13 }
 0x1cb   : > { %5421 = vmatpush3.bf16.msra.mxu1 %v5418_v13 }
 0x1cc   : > { %5454 = vmatprep.subr.bf16.mxu1 %v7877_v55 }
 0x281   : > { %v1738_v10 = vpop.f32.mrb[0].mxu1 }
 0x282   : > { %v1739_v22 = vadd.f32 %v1738_v10, %v1671_v41  ;;  %v4895_v42 = vpop.f32.mrb[1].mxu1  ;;  %v5442_v41 = vpack.c.bf16 %v1999_v59, %v1998_v52  ;;  %v2000_v10 = vld [vmem:[%s6075_s24 + $0x60] sm:$0xff]  ;;  %v6627_v59 = vld [vmem:[%s6085_s6 + $0x8] sm:$0x1] }
 0x284   : > { %v1742_v16 = vsub.f32 0.0, %v1739_v22 }
 0x286   : > { %v1743_v58 = vmul.f32 1.442695, %v1742_v16  ;;  %v1764_v16 = vld [vmem:[%s6060_s8] sm:$0x1] }
 0x288   : > { %5812 = vpow2.f32 %v1743_v58 }
 0x292   : > { %v5813_v32 = vpop.eup %5812 }
 0x293   : > { %v1745_v45 = vadd.f32 1.0, %v5813_v32 }
 0x295   : > { %5814 = vrcp.f32 %v1745_v45 }
 0x29f   : > { %v5815_v3 = vpop.eup %5814 }
 0x2a0   : > { %v1747_v9 = vmul.f32 %v5815_v3, %v1739_v22  ;;  %v2001_v22 = vld [vmem:[%s6075_s24 + $0x68] sm:$0xff] }
 0x2a1   : > { %v5446_v42 = vpack.c.bf16 %v2001_v22, %v2000_v10  ;;  %v2248_v10 = vld [vmem:[%s6085_s6 + $0x2] sm:$0x1]  ;;  %v6907_v22 = vld [vmem:[%s6085_s6 + $0x5] sm:$0x1] }
 0x2a2   : > { %4929 = vmatmul.mubr.f32.vlgmr.msra.gmra.mrb[8].mxu0 %v1747_v9  ;;  %7891 = vst [vmem:[#allocation34_spill] sm:$0xff] %v6907_v22 }
 0x2a3   : > { %5425 = vmatpush3.bf16.msra.mxu0 %v5422_v27  ;;  %v7882_v27 = vld [vmem:[#allocation28_spill] sm:$0xff] }
 0x2a4   : > { %5427 = vmatprep.subr.bf16.mxu0 %v5426_v56  ;;  %7886 = vst [vmem:[#allocation28_spill] sm:$0xff] %v6863_v12 }
 0x2a7   : > { %5429 = vmatpush3.bf16.msra.mxu0 %v5426_v56 }
 0x2a8   : > { %5431 = vmatprep.subr.bf16.mxu0 %v5430_v14 }
 0x2ab   : > { %5433 = vmatpush3.bf16.msra.mxu0 %v5430_v14 }
 0x2ac   : > { %5435 = vmatprep.subr.bf16.mxu0 %v5434_v0 }
 0x2af   : > { %5437 = vmatpush3.bf16.msra.mxu0 %v5434_v0 }
 0x2b0   : > { %5439 = vmatprep.subr.bf16.mxu0 %v5438_v20 }
 0x2b3   : > { %5441 = vmatpush3.bf16.msra.mxu0 %v5438_v20 }
 0x2b4   : > { %5443 = vmatprep.subr.bf16.mxu0 %v5442_v41 }
 0x2b7   : > { %5445 = vmatpush3.bf16.msra.mxu0 %v5442_v41  ;;  %v6630_v41 = vld [vmem:[%s6085_s6] sm:$0x1] }
 0x2b8   : > { %5447 = vmatprep.subr.bf16.mxu0 %v5446_v42 }
 0x2bb   : > { %5449 = vmatpush3.bf16.msra.mxu0 %v5446_v42  ;;  %v6635_v42 = vld [vmem:[%s6085_s6 + $0x1] sm:$0x1] }
 0x375   : > { %v1831_v58 = vpop.f32.mrb[8].mxu0 }
 0x376   : > { %v1832_v32 = vadd.f32 %v1831_v58, %v1764_v16  ;;  %v4930_v45 = vpop.f32.mrb[9].mxu0  ;;  %v2202_v16 = vld [vmem:[%s6085_s6] sm:$0x1] }
 0x378   : > { %v1835_v3 = vsub.f32 0.0, %v1832_v32 }
 0x37a   : > { %v1836_v9 = vmul.f32 1.442695, %v1835_v3 }
 0x37c   : > { %5816 = vpow2.f32 %v1836_v9 }
 0x386   : > { %v5817_v6 = vpop.eup %5816 }
 0x387   : > { %v1838_v8 = vadd.f32 1.0, %v5817_v6  ;;  %v2250_v6 = vrot.slane %v2248_v10, 6 }
 0x389   : > { %5818 = vrcp.f32 %v1838_v8 }
 0x393   : > { %v5819_v2 = vpop.eup %5818 }
 0x394   : > { %v1843_v29 = vrot.slane %v5819_v2, %v6596_v31  ;;  %v2201_v2 = vld [vmem:[#allocation3 + $0x8] sm:$0x3] }
 0x396   : > { %v1844_v17 = vmul.f32 %v1843_v29, %v6513_v11  ;;  %v1845_v44 = vmul.f32 %v1843_v29, %v6515_v61  ;;  %v1846_v21 = vmul.f32 %v1843_v29, %v6517_v23  ;;  %v1847_v47 = vmul.f32 %v1843_v29, %v6519_v25  ;;  %v6607_v23 = vld [vmem:[#allocation2] sm:$0xff]  ;;  %v2002_v25 = vld [vmem:[%s6075_s24 + $0x70] sm:$0xff] }
 0x397   : > { %v1848_v49 = vmul.f32 %v1843_v29, %v6525_v43  ;;  %v1849_v40 = vmul.f32 %v1843_v29, %v6528_v57  ;;  %v1850_v11 = vmul.f32 %v1843_v29, %v6533_v26  ;;  %v1851_v61 = vmul.f32 %v1843_v29, %v6535_v39  ;;  %v4559_v57 = vld [vmem:[%s6070_s19] ss:$0 sm:$0xff] }
 0x398   : > { %4963 = vmatprep.mubr.f32.mxu1 %v1844_v17  ;;  %v5450_v43 = vpack.c.bf16 %v2003_v50, %v2002_v25  ;;  %v2257_v29 = vrot.slane %v2248_v10, 4 }
 0x399   : > { %4964 = vmatmul.mubr.f32.vlgmr.msra.gmra.mrb[2].mxu1 %v1845_v44  ;;  %v6647_v44 = vld [vmem:[%s6085_s6 + $0x2] sm:$0x1] }
 0x39a   : > { %4966 = vmatprep.mubr.f32.mxu1 %v1846_v21  ;;  %5451 = vmatprep.subr.bf16.mxu0 %v5450_v43  ;;  %v2203_v21 = vmul.f32 %v6607_v23, %v2202_v16 }
 0x39b   : > { %5453 = vmatpush3.bf16.msra.mxu0 %v5450_v43 }
 0x39c   : > { %5478 = vmatprep.subr.bf16.mxu0 %v7877_v55 }
 0x39d   : > { %4967 = vmatmul.mubr.f32.gmra.mrb[4].mxu1 %v1847_v47  ;;  %v2206_v47 = vrot.slane %v2202_v16, 6 }
 0x39e   : > { %4969 = vmatprep.mubr.f32.mxu1 %v1848_v49  ;;  %v2264_v49 = vrot.slane %v2248_v10, 2 }
 0x3a1   : > { %4970 = vmatmul.mubr.f32.gmra.mrb[6].mxu1 %v1849_v40  ;;  %v2210_v40 = vrot.slane %v2202_v16, 4 }
 0x3a2   : > { %4972 = vmatprep.mubr.f32.mxu1 %v1850_v11  ;;  %v2214_v11 = vrot.slane %v2202_v16, 2 }
 0x3a5   : > { %4973 = vmatmul.mubr.f32.gmra.mrb[8].mxu1 %v1851_v61 }
 0x3a6   : > { %5051 = vmatprep.mubr.msk.f32.mxu1 %vm6011_vm1, %v6607_v23 }
 0x46c   : > { %v4965_v34 = vpop.f32.mrb[2].mxu1 }
 0x46d   : > { %v1947_v26 = vadd.f32 %v4965_v34, %v4559_v57  ;;  %v1941_v18 = vpop.f32.mrb[3].mxu1  ;;  %v6660_v34 = vmul.f32 %v2248_v10, %v2201_v2 }
 0x46e   : > { %v1942_v33 = vadd.f32 %v4559_v57, %v1941_v18 }
 0x46f   : > { %v1981_v35 = vadd.f32 %v1947_v26, %v7880_v53  ;;  %v6821_v26 = vld [vmem:[%s6085_s6] sm:$0x1] }
 0x470   : > { %v1980_v39 = vadd.f32 %v1942_v33, %v7879_v19  ;;  %v4968_v28 = vpop.f32.mrb[4].mxu1  ;;  %v6666_v19 = vmul.f32 %v6607_v23, %v2257_v29 }
 0x471   : > { %v1957_v15 = vadd.f32 %v4968_v28, %v4559_v57  ;;  %v1951_v1 = vpop.f32.mrb[5].mxu1 }
 0x472   : > { %v1952_v13 = vadd.f32 %v4559_v57, %v1951_v1  ;;  %5007 = vmatprep.mubr.f32.mxu0 %v1980_v39  ;;  %v6669_v39 = vld [vmem:[%s6080_s30] ss:$0 sm:$0xff]  ;;  %v6678_v1 = vld [vmem:[%s6085_s6 + $0x3] sm:$0x1] }
 0x473   : > { %5008 = vmatmul.mubr.f32.vlgmr.msra.gmra.mrb[10].mxu0 %v1981_v35  ;;  %v1983_v36 = vadd.f32 %v1957_v15, %v7882_v27  ;;  %v2208_v35 = vmul.f32 %v6607_v23, %v2206_v47  ;;  %v6675_v15 = vmul.f32 %v6607_v23, %v2264_v49  ;;  %v6686_v27 = vld [vmem:[%s6085_s6 + $0x4] sm:$0x1]  ;;  %v6851_v47 = vld [vmem:[%s6085_s6 + $0x5] sm:$0x1] }
 0x474   : > { %v1982_v54 = vadd.f32 %v1952_v13, %v7881_v5  ;;  %v4971_v4 = vpop.f32.mrb[6].mxu1  ;;  %v2212_v13 = vmul.f32 %v6607_v23, %v2210_v40  ;;  %v6682_v5 = vmul.f32 %v6607_v23, %v2214_v11  ;;  %v6743_v11 = vld [vmem:[%s6085_s6 + $0x1] sm:$0x1] }
 0x475   : > { %v1967_v56 = vadd.f32 %v4971_v4, %v4559_v57  ;;  %v1961_v37 = vpop.f32.mrb[7].mxu1 }
 0x476   : > { %v1962_v62 = vadd.f32 %v4559_v57, %v1961_v37  ;;  %5010 = vmatprep.mubr.f32.mxu0 %v1982_v54 }
 0x477   : > { %5011 = vmatmul.mubr.f32.gmra.mrb[12].mxu0 %v1983_v36  ;;  %v1985_v60 = vadd.f32 %v1967_v56, %v6340_v63  ;;  %v6689_v36 = vld [vmem:[%s6085_s6 + $0x6] sm:$0x1] }
 0x478   : > { %v1984_v14 = vadd.f32 %v1962_v62, %v6359_v7  ;;  %v4974_v30 = vpop.f32.mrb[8].mxu1  ;;  %v2218_v7 = vld [vmem:[%s6085_s6 + $0x1] sm:$0x1] }
 0x479   : > { %v1977_v0 = vadd.f32 %v4974_v30, %v4559_v57  ;;  %v1971_v46 = vpop.f32.mrb[9].mxu1  ;;  %v2220_v63 = vrot.slane %v2218_v7, 7  ;;  %v2227_v58 = vrot.slane %v2218_v7, 5  ;;  %v2234_v32 = vrot.slane %v2218_v7, 3  ;;  %v6697_v30 = vld [vmem:[%s6085_s6 + $0x5] sm:$0x1] }
 0x47a   : > { %v1972_v48 = vadd.f32 %v4559_v57, %v1971_v46  ;;  %5013 = vmatprep.mubr.f32.mxu0 %v1984_v14  ;;  %v2241_v9 = vrot.slane %v2218_v7, 1  ;;  %v6658_v57 = vmul.f32 %v6607_v23, %v2250_v6  ;;  %v2273_v14 = vrot.slane %v6660_v34, 2  ;;  %v6717_v6 = vld [vmem:[%s6085_s6 + $0x8] sm:$0x1]  ;;  %v6771_v7 = vld [vmem:[%s6085_s6 + $0x4] sm:$0x1] }
 0x47b   : > { %5014 = vmatmul.mubr.f32.gmra.mrb[14].mxu0 %v1985_v60  ;;  %v1987_v52 = vadd.f32 %v1977_v0, %v6388_v24  ;;  %v2222_v3 = vmul.f32 %v6607_v23, %v2220_v63  ;;  %v2229_v61 = vmul.f32 %v6607_v23, %v2227_v58  ;;  %v6652_v25 = vmul.f32 %v6607_v23, %v2234_v32 }
 0x47c   : > { %v1986_v20 = vadd.f32 %v1972_v48, %v6417_v51  ;;  %v6655_v43 = vmul.f32 %v6607_v23, %v2241_v9  ;;  %v2254_v62 = vrot.slane %v6658_v57, 2  ;;  %v6704_v48 = vld [vmem:[%s6085_s6 + $0x7] sm:$0x1]  ;;  %v7901_v24 = vrot.slane %v6630_v41, 6 }
 0x47d   : > { %v2224_v50 = vrot.slane %v2222_v3, 1  ;;  %v2231_v54 = vrot.slane %v2229_v61, 1  ;;  %v2238_v4 = vrot.slane %v6652_v25, 1  ;;  %v6730_v25 = vld [vmem:[%s6085_s6] sm:$0x1] }
 0x47e   : > { %5016 = vmatprep.mubr.f32.mxu0 %v1986_v20  ;;  %v2245_v37 = vrot.slane %v6655_v43, 1 }
 0x47f   : > { %5017 = vmatmul.mubr.f32.gmra.mrb[16].mxu0 %v1987_v52  ;;  %v6691_v56 = vadd.f32 %v2224_v50, %v2203_v21  ;;  %v6736_v9 = vadd.f32 %v2231_v54, %v2208_v35  ;;  %v6763_v54 = vld [vmem:[%s6085_s6 + $0x3] sm:$0x1] }
 0x480   : > { %5086 = vmatprep.mubr.msk.f32.mxu0 %vm6011_vm1, %v6607_v23  ;;  %v2261_v23 = vrot.slane %v6666_v19, 2 }
 0x546   : > { %v5009_v20 = vpop.f32.mrb[10].mxu0 }
 0x547   : > { %v6711_v16 = vadd.f32 %v5009_v20, %v6669_v39  ;;  %v2077_v58 = vpop.f32.mrb[11].mxu0 }
 0x548   : > { %v6720_v2 = vadd.f32 %v6669_v39, %v2077_v58 }
 0x549   : > { %v2117_v49 = vsub.f32 0.0, %v6711_v16 }
 0x54a   : > { %v2116_v50 = vsub.f32 0.0, %v6720_v2  ;;  %v5012_v21 = vpop.f32.mrb[12].mxu0 }
 0x54b   : > { %v2126_v29 = vmul.f32 1.442695, %v2117_v49  ;;  %v6739_v40 = vadd.f32 %v5012_v21, %v6669_v39  ;;  %v2087_v3 = vpop.f32.mrb[13].mxu0  ;;  %v6754_v49 = vld [vmem:[%s6085_s6 + $0x2] sm:$0x1] }
 0x54c   : > { %v2124_v32 = vmul.f32 1.442695, %v2116_v50  ;;  %v6748_v10 = vadd.f32 %v6669_v39, %v2087_v3  ;;  %v6759_v3 = vadd.f32 %v2238_v4, %v2212_v13  ;;  %v6834_v4 = vld [vmem:[%s6085_s6 + $0x2] sm:$0x1] }
 0x54d   : > { %5820 = vpow2.f32 %v2126_v29  ;;  %v2119_v35 = vsub.f32 0.0, %v6739_v40 }
 0x54e   : > { %5822 = vpow2.f32 %v2124_v32  ;;  %v2118_v58 = vsub.f32 0.0, %v6748_v10  ;;  %v5015_v61 = vpop.f32.mrb[14].mxu0  ;;  %v6793_v32 = vld [vmem:[%s6085_s6 + $0x6] sm:$0x1] }
 0x54f   : > { %v2130_v29 = vmul.f32 1.442695, %v2119_v35  ;;  %v6766_v21 = vadd.f32 %v5015_v61, %v6669_v39  ;;  %v2097_v63 = vpop.f32.mrb[15].mxu0 }
 0x550   : > { %v2128_v20 = vmul.f32 1.442695, %v2118_v58  ;;  %v6774_v13 = vadd.f32 %v6669_v39, %v2097_v63  ;;  %v6782_v58 = vld [vmem:[%s6085_s6 + $0x5] sm:$0x1] }
 0x551   : > { %5824 = vpow2.f32 %v2130_v29  ;;  %v2121_v61 = vsub.f32 0.0, %v6766_v21  ;;  %v6815_v29 = vld [vmem:[%s6085_s6 + $0x8] sm:$0x1] }
 0x552   : > { %5826 = vpow2.f32 %v2128_v20  ;;  %v2120_v50 = vsub.f32 0.0, %v6774_v13  ;;  %v5018_v63 = vpop.f32.mrb[16].mxu0 }
 0x553   : > { %v2134_v46 = vmul.f32 1.442695, %v2121_v61  ;;  %v6788_v35 = vadd.f32 %v5018_v63, %v6669_v39  ;;  %v2107_v0 = vpop.f32.mrb[17].mxu0  ;;  %v6801_v61 = vld [vmem:[%s6085_s6 + $0x7] sm:$0x1] }
 0x554   : > { %v2132_v60 = vmul.f32 1.442695, %v2120_v50  ;;  %v6796_v53 = vadd.f32 %v6669_v39, %v2107_v0  ;;  %v6810_v0 = vadd.f32 %v2245_v37, %v6682_v5  ;;  %v6825_v37 = vld [vmem:[%s6085_s6 + $0x1] sm:$0x1]  ;;  %v6845_v5 = vld [vmem:[%s6085_s6 + $0x4] sm:$0x1] }
 0x555   : > { %7883 = vst [vmem:[#allocation27_spill] sm:$0xff] %v6788_v35  ;;  %5828 = vpow2.f32 %v2134_v46  ;;  %v2123_v63 = vsub.f32 0.0, %v6788_v35 }
 0x556   : > { %7884 = vst [vmem:[#allocation26_spill] sm:$0xff] %v6796_v53  ;;  %5830 = vpow2.f32 %v2132_v60  ;;  %v2122_v50 = vsub.f32 0.0, %v6796_v53 }
 0x557   : > { %v5821_v39 = vpop.eup %5820  ;;  %v2138_v28 = vmul.f32 1.442695, %v2123_v63  ;;  %v6840_v63 = vld [vmem:[%s6085_s6 + $0x3] sm:$0x1] }
 0x558   : > { %v5823_v20 = vpop.eup %5822  ;;  %v2141_v33 = vadd.f32 1.0, %v5821_v39  ;;  %v2136_v46 = vmul.f32 1.442695, %v2122_v50  ;;  %v6872_v50 = vld [vmem:[%s6085_s6 + $0x8] sm:$0x1] }
 0x559   : > { %v2140_v43 = vadd.f32 1.0, %v5823_v20  ;;  %5832 = vpow2.f32 %v2138_v28  ;;  %7888 = vst [vmem:[#allocation31_spill] sm:$0xff] %v6872_v50  ;;  %v6890_v20 = vadd.f32 %v2273_v14, %v6810_v0  ;;  %v3342_v0 = vld [vmem:[%s7887_s28 + $0x18] sm:$0xff] }
 0x55a   : > { %5834 = vrcp.f32 %v2141_v33 }
 0x55b   : > { %v5825_v18 = vpop.eup %5824  ;;  %5836 = vrcp.f32 %v2140_v43 }
 0x55c   : > { %v5827_v28 = vpop.eup %5826  ;;  %v2143_v33 = vadd.f32 1.0, %v5825_v18  ;;  %5838 = vpow2.f32 %v2136_v46  ;;  %v6857_v46 = vld [vmem:[%s6085_s6 + $0x6] sm:$0x1]  ;;  %v6885_v18 = vld [vmem:[%s6085_s6 + $0x4] sm:$0x1] }
 0x55d   : > { %v2142_v43 = vadd.f32 1.0, %v5827_v28  ;;  %7885 = vst [vmem:[#allocation29_spill] sm:$0xff] %v6857_v46  ;;  %v6882_v28 = vld [vmem:[%s6085_s6 + $0x3] sm:$0x1]  ;;  %7890 = vst [vmem:[#allocation33_spill] sm:$0xff] %v6885_v18  ;;  %v7910_v18 = vrot.slane %v6647_v44, 2 }
 0x55e   : > { %5840 = vrcp.f32 %v2143_v33  ;;  %7889 = vst [vmem:[#allocation32_spill] sm:$0xff] %v6882_v28 }
 0x55f   : > { %v5829_v17 = vpop.eup %5828  ;;  %5842 = vrcp.f32 %v2142_v43 }
 0x560   : > { %v5831_v33 = vpop.eup %5830  ;;  %v2145_v38 = vadd.f32 1.0, %v5829_v17  ;;  %v3340_v17 = vld [vmem:[%s7887_s28 + $0x8] sm:$0xff] }
 0x561   : > { %v2144_v43 = vadd.f32 1.0, %v5831_v33  ;;  %v6877_v33 = vadd.f32 %v2254_v62, %v6691_v56 }
 0x562   : > { %5844 = vrcp.f32 %v2145_v38  ;;  %v3341_v38 = vld [vmem:[%s7887_s28 + $0x10] sm:$0xff] }
 0x563   : > { %v5833_v8 = vpop.eup %5832  ;;  %5846 = vrcp.f32 %v2144_v43  ;;  %v3339_v43 = vld [vmem:[%s7887_s28] sm:$0xff] }
 0x564   : > { %v5835_v39 = vpop.eup %5834  ;;  %v5455_v14 = vpack.c.bf16 %v3340_v17, %v3339_v43  ;;  %v6920_v17 = vld [vmem:[%s6085_s6 + $0x7] sm:$0x1]  ;;  %v5458_v43 = vpack.c.bf16 %v3342_v0, %v3341_v38  ;;  %v3344_v38 = vld [vmem:[%s7887_s28 + $0x28] sm:$0xff]  ;;  %v6933_v0 = vld [vmem:[%s7887_s28 + $0x30] sm:$0xff] }
 0x565   : > { %v5837_v60 = vpop.eup %5836  ;;  %v2157_v45 = vmul.f32 %v5835_v39, %v6711_v16  ;;  %v6912_v16 = vadd.f32 %v2261_v23, %v6736_v9  ;;  %v6917_v39 = vld [vmem:[%s6085_s6 + $0x6] sm:$0x1]  ;;  %7893 = vst [vmem:[#allocation36_spill] sm:$0xff] %v6920_v17  ;;  %v2147_v23 = vadd.f32 1.0, %v5833_v8  ;;  %v3346_v9 = vld [vmem:[%s7887_s28 + $0x38] sm:$0xff] }
 0x566   : > { %v2156_v57 = vmul.f32 %v5837_v60, %v6720_v2  ;;  %v5839_v52 = vpop.eup %5838  ;;  %7892 = vst [vmem:[#allocation35_spill] sm:$0xff] %v6917_v39  ;;  %5456 = vmatpush3.bf16.msra.mxu1 %v5455_v14  ;;  %v3343_v14 = vld [vmem:[%s7887_s28 + $0x20] sm:$0xff]  ;;  %v6944_v2 = vld [vmem:[%s7887_s28 + $0x48] sm:$0xff]  ;;  %v6953_v8 = vld [vmem:[%s7887_s28 + $0x58] sm:$0xff]  ;;  %v7909_v39 = vrot.slane %v6647_v44, 4 }
 0x567   : > { %2187 = vst [vmem:[#allocation3 + $0x21] sm:$0xff] %v2157_v45  ;;  %v7894_v45 = vrot.slane %v6675_v15, 2  ;;  %5457 = vmatprep.subr.bf16.mxu1 %v7877_v55  ;;  %v6941_v60 = vld [vmem:[%s7887_s28 + $0x40] sm:$0xff]  ;;  %v2146_v56 = vadd.f32 1.0, %v5839_v52  ;;  %v6962_v52 = vld [vmem:[%s7887_s28 + $0x68] sm:$0xff]  ;;  %5848 = vrcp.f32 %v2147_v23 }
 0x568   : > { %v5841_v51 = vpop.eup %5840  ;;  %2185 = vst [vmem:[#allocation3 + $0x11] sm:$0xff] %v2156_v57 }
 0x569   : > { %v6925_v19 = vadd.f32 %v7894_v45, %v6759_v3  ;;  %v5843_v57 = vpop.eup %5842  ;;  %v2159_v15 = vmul.f32 %v5841_v51, %v6739_v40  ;;  %v6950_v40 = vld [vmem:[%s7887_s28 + $0x50] sm:$0xff]  ;;  %v6956_v45 = vld [vmem:[%s7887_s28 + $0x60] sm:$0xff]  ;;  %v6968_v51 = vld [vmem:[%s7887_s28 + $0x78] sm:$0xff]  ;;  %5850 = vrcp.f32 %v2146_v56 }
 0x56a   : > { %v2158_v62 = vmul.f32 %v5843_v57, %v6748_v10  ;;  %5459 = vmatpush3.bf16.msra.mxu1 %v5458_v43  ;;  %v5461_v10 = vpack.c.bf16 %v3344_v38, %v3343_v14  ;;  %v6965_v57 = vld [vmem:[%s7887_s28 + $0x70] sm:$0xff]  ;;  %v5464_v14 = vpack.c.bf16 %v3346_v9, %v6933_v0  ;;  %v5467_v38 = vpack.c.bf16 %v6944_v2, %v6941_v60 }
 0x56b   : > { %2191 = vst [vmem:[#allocation3 + $0x41] sm:$0xff] %v2159_v15  ;;  %5460 = vmatprep.subr.bf16.mxu1 %v7877_v55  ;;  %v7897_v2 = vrot.slane %v6627_v59, 4 }
 0x56c   : > { %v5845_v34 = vpop.eup %5844  ;;  %2189 = vst [vmem:[#allocation3 + $0x31] sm:$0xff] %v2158_v62 }
 0x56d   : > { %v5847_v31 = vpop.eup %5846  ;;  %v2161_v43 = vmul.f32 %v5845_v34, %v6766_v21  ;;  %v7895_v34 = vrot.slane %v6627_v59, 6 }
 0x56e   : > { %v6980_v23 = vld [vmem:[#allocation3 + $0x20] sm:$0xff]  ;;  %v2353_v22 = vld [vmem:[#allocation3 + $0x28] sm:$0x3]  ;;  %v2160_v15 = vmul.f32 %v5847_v31, %v6774_v13  ;;  %v7899_v31 = vrot.slane %v6627_v59, 2  ;;  %5462 = vmatpush3.bf16.msra.mxu1 %v5461_v10  ;;  %v7908_v10 = vrot.slane %v6647_v44, 6 }
 0x56f   : > { %v6990_v9 = vmul.f32 %v7895_v34, %v6980_v23  ;;  %v6995_v60 = vmul.f32 %v7897_v2, %v6980_v23  ;;  %v7003_v56 = vmul.f32 %v6627_v59, %v2353_v22  ;;  %2195 = vst [vmem:[#allocation3 + $0x61] sm:$0xff] %v2161_v43  ;;  %v2483_v0 = vld [vmem:[#allocation3 + $0x28] sm:$0x3]  ;;  %v2485_v34 = vmul.f32 %v6630_v41, %v6980_v23 }
 0x570   : > { %v7000_v13 = vmul.f32 %v7899_v31, %v6980_v23  ;;  %v2490_v21 = vmul.f32 %v7901_v24, %v6980_v23  ;;  %v7902_v2 = vrot.slane %v6630_v41, 4  ;;  %v7903_v31 = vrot.slane %v6630_v41, 2  ;;  %2193 = vst [vmem:[#allocation3 + $0x51] sm:$0xff] %v2160_v15  ;;  %5463 = vmatprep.subr.bf16.mxu1 %v7877_v55 }
 0x571   : > { %7896 = vst [vmem:[#allocation37_spill] sm:$0xff] %v6990_v9  ;;  %7898 = vst [vmem:[#allocation38_spill] sm:$0xff] %v6995_v60  ;;  %v7904_v24 = vrot.slane %v6635_v42, 7  ;;  %v7906_v15 = vrot.slane %v6635_v42, 3  ;;  %v7907_v59 = vrot.slane %v6635_v42, 1  ;;  %v2534_v43 = vmul.f32 %v7908_v10, %v6980_v23  ;;  %v7044_v35 = vpop.eup %5848 }
 0x572   : > { %7900 = vst [vmem:[#allocation39_spill] sm:$0xff] %v7000_v13  ;;  %v2494_v3 = vmul.f32 %v7902_v2, %v6980_v23  ;;  %v2498_v62 = vmul.f32 %v7903_v31, %v6980_v23  ;;  %v7905_v2 = vrot.slane %v6635_v42, 5  ;;  %v2553_v28 = vmul.f32 %v6647_v44, %v2483_v0  ;;  %5465 = vmatpush3.bf16.msra.mxu1 %v5464_v14 }
 0x573   : > { %v2504_v17 = vmul.f32 %v7904_v24, %v6980_v23  ;;  %v2518_v31 = vmul.f32 %v7906_v15, %v6980_v23  ;;  %v2525_v22 = vmul.f32 %v7907_v59, %v6980_v23  ;;  %v2541_v24 = vmul.f32 %v7909_v39, %v6980_v23  ;;  %v2276_v59 = vld [vmem:[#allocation3 + $0x10] sm:$0xff]  ;;  %5466 = vmatprep.subr.bf16.mxu1 %v7877_v55 }
 0x574   : > { %v2511_v41 = vmul.f32 %v7905_v2, %v6980_v23  ;;  %v2548_v2 = vmul.f32 %v7910_v18, %v6980_v23  ;;  %v2536_v60 = vrot.slane %v2534_v43, 2  ;;  %v2555_v53 = vrot.slane %v2553_v28, 2 }
 0x575   : > { %v2506_v15 = vrot.slane %v2504_v17, 1  ;;  %v2520_v13 = vrot.slane %v2518_v31, 1  ;;  %v2527_v42 = vrot.slane %v2525_v22, 1  ;;  %v2543_v10 = vrot.slane %v2541_v24, 2  ;;  %v7053_v31 = vpop.eup %5850 }
 0x576   : > { %v2513_v50 = vrot.slane %v2511_v41, 1  ;;  %v2550_v9 = vrot.slane %v2548_v2, 2  ;;  %v2279_v44 = vmul.f32 %v6678_v1, %v2276_v59  ;;  %v7911_v17 = vrot.slane %v6678_v1, 6  ;;  %5468 = vmatpush3.bf16.msra.mxu1 %v5467_v38 }
 0x577   : > { %v2508_v39 = vadd.f32 %v2506_v15, %v2485_v34  ;;  %v2522_v46 = vadd.f32 %v2520_v13, %v2494_v3  ;;  %v2529_v18 = vadd.f32 %v2527_v42, %v2498_v62  ;;  %v7912_v0 = vrot.slane %v6678_v1, 4  ;;  %v2277_v62 = vld [vmem:[#allocation3 + $0x18] sm:$0x3]  ;;  %5469 = vmatprep.subr.bf16.mxu1 %v7877_v55 }
 0x578   : > { %v2515_v12 = vadd.f32 %v2513_v50, %v2490_v21  ;;  %v2284_v14 = vmul.f32 %v7911_v17, %v2276_v59  ;;  %v7913_v41 = vrot.slane %v6678_v1, 2  ;;  %v2280_v21 = vadd.f32 %v2279_v44, %v6877_v33 }
 0x579   : > { %v2288_v22 = vmul.f32 %v7912_v0, %v2276_v59  ;;  %v7055_v28 = vadd.f32 %v2536_v60, %v2508_v39  ;;  %v7059_v50 = vadd.f32 %v2550_v9, %v2522_v46  ;;  %v7061_v3 = vadd.f32 %v2555_v53, %v2529_v18 }
 0x57a   : > { %v2292_v43 = vmul.f32 %v7913_v41, %v2276_v59  ;;  %v7057_v34 = vadd.f32 %v2543_v10, %v2515_v12  ;;  %v2285_v13 = vadd.f32 %v2284_v14, %v6912_v16  ;;  %v7914_v60 = vrot.slane %v6686_v27, 7 }
 0x57b   : > { %v2289_v1 = vadd.f32 %v2288_v22, %v6925_v19  ;;  %v7915_v12 = vrot.slane %v6686_v27, 5  ;;  %v7916_v53 = vrot.slane %v6686_v27, 3  ;;  %v7917_v2 = vrot.slane %v6686_v27, 1 }
 0x57c   : > { %v2293_v38 = vadd.f32 %v2292_v43, %v6890_v20  ;;  %v2298_v24 = vmul.f32 %v7914_v60, %v2276_v59  ;;  %v7918_v33 = vrot.slane %v6697_v30, 6  ;;  %v7919_v16 = vrot.slane %v6697_v30, 4 }
 0x57d   : > { %v2305_v46 = vmul.f32 %v7915_v12, %v2276_v59  ;;  %v2312_v9 = vmul.f32 %v7916_v53, %v2276_v59  ;;  %v2319_v15 = vmul.f32 %v7917_v2, %v2276_v59  ;;  %v7920_v20 = vrot.slane %v6697_v30, 2 }
 0x57e   : > { %v2328_v42 = vmul.f32 %v7918_v33, %v2276_v59  ;;  %v2335_v19 = vmul.f32 %v7919_v16, %v2276_v59  ;;  %v2347_v39 = vmul.f32 %v6697_v30, %v2277_v62  ;;  %v7921_v18 = vpack.c.bf16 %v6953_v8, %v6950_v40 }
 0x57f   : > { %v2342_v10 = vmul.f32 %v7920_v20, %v2276_v59  ;;  %v2300_v44 = vrot.slane %v2298_v24, 1  ;;  %v2307_v17 = vrot.slane %v2305_v46, 1  ;;  %v2314_v14 = vrot.slane %v2312_v9, 1  ;;  %v7114_v20 = vld [vmem:[#allocation3 + $0x40] sm:$0xff] }
 0x580   : > { %5471 = vmatpush3.bf16.msra.mxu1 %v7921_v18  ;;  %v2321_v27 = vrot.slane %v2319_v15, 1  ;;  %v2330_v0 = vrot.slane %v2328_v42, 2  ;;  %v2337_v22 = vrot.slane %v2335_v19, 2  ;;  %v2349_v43 = vrot.slane %v2347_v39, 2 }
 0x581   : > { %5472 = vmatprep.subr.bf16.mxu1 %v7877_v55  ;;  %v2344_v41 = vrot.slane %v2342_v10, 2  ;;  %v2302_v60 = vadd.f32 %v2300_v44, %v2280_v21  ;;  %v2309_v12 = vadd.f32 %v2307_v17, %v2285_v13  ;;  %v2316_v53 = vadd.f32 %v2314_v14, %v2289_v1  ;;  %v2635_v10 = vld [vmem:[#allocation3 + $0x48] sm:$0x3] }
 0x582   : > { %v2323_v59 = vadd.f32 %v2321_v27, %v2293_v38  ;;  %v2355_v30 = vmul.f32 %v6689_v36, %v6980_v23  ;;  %v7922_v8 = vrot.slane %v6689_v36, 6  ;;  %v7923_v62 = vrot.slane %v6689_v36, 4 }
 0x583   : > { %v7924_v46 = vrot.slane %v6689_v36, 2  ;;  %v7925_v21 = vpack.c.bf16 %v6962_v52, %v6956_v45  ;;  %v2332_v13 = vadd.f32 %v2330_v0, %v2302_v60  ;;  %v2339_v1 = vadd.f32 %v2337_v22, %v2309_v12 }
 0x584   : > { %v2360_v40 = vmul.f32 %v7922_v8, %v6980_v23  ;;  %v2364_v24 = vmul.f32 %v7923_v62, %v6980_v23  ;;  %v2346_v38 = vadd.f32 %v2344_v41, %v2316_v53  ;;  %v2351_v2 = vadd.f32 %v2349_v43, %v2323_v59 }
 0x585   : > { %v2368_v9 = vmul.f32 %v7924_v46, %v6980_v23  ;;  %5474 = vmatpush3.bf16.msra.mxu1 %v7925_v21  ;;  %v7926_v15 = vrot.slane %v6704_v48, 7  ;;  %v7927_v42 = vrot.slane %v6704_v48, 5  ;;  %v7928_v36 = vrot.slane %v6704_v48, 3 }
 0x586   : > { %5475 = vmatprep.subr.bf16.mxu1 %v7877_v55  ;;  %v7929_v45 = vrot.slane %v6704_v48, 1  ;;  %v2356_v39 = vadd.f32 %v2355_v30, %v2332_v13  ;;  %v2361_v18 = vadd.f32 %v2360_v40, %v2339_v1  ;;  %v2365_v44 = vadd.f32 %v2364_v24, %v2346_v38  ;;  %v7144_v40 = vld [vmem:[%s7930_s1] ss:$0 sm:$0xff] }
 0x587   : > { %v2374_v33 = vmul.f32 %v7926_v15, %v6980_v23  ;;  %v2381_v16 = vmul.f32 %v7927_v42, %v6980_v23  ;;  %v2388_v19 = vmul.f32 %v7928_v36, %v6980_v23  ;;  %v2369_v17 = vadd.f32 %v2368_v9, %v2351_v2 }
 0x588   : > { %v2395_v52 = vmul.f32 %v7929_v45, %v6980_v23  ;;  %v7931_v41 = vpack.c.bf16 %v6968_v51, %v6965_v57  ;;  %v7932_v48 = vrot.slane %v6717_v6, 6  ;;  %v7933_v43 = vrot.slane %v6717_v6, 4 }
 0x589   : > { %v2376_v14 = vrot.slane %v2374_v33, 1  ;;  %v2383_v27 = vrot.slane %v2381_v16, 1  ;;  %v2390_v0 = vrot.slane %v2388_v19, 1  ;;  %v7934_v12 = vrot.slane %v6717_v6, 2 }
 0x58a   : > { %v2397_v22 = vrot.slane %v2395_v52, 1  ;;  %5477 = vmatpush3.bf16.msra.mxu1 %v7931_v41  ;;  %v7122_v23 = vmul.f32 %v7932_v48, %v7114_v20  ;;  %v7127_v60 = vmul.f32 %v7933_v43, %v7114_v20  ;;  %v7135_v59 = vmul.f32 %v6717_v6, %v2635_v10 }
 0x58b   : > { %v7132_v53 = vmul.f32 %v7934_v12, %v7114_v20  ;;  %v7137_v51 = vadd.f32 %v2376_v14, %v2356_v39  ;;  %v7139_v57 = vadd.f32 %v2383_v27, %v2361_v18  ;;  %v7141_v30 = vadd.f32 %v2390_v0, %v2365_v44  ;;  %v2765_v27 = vld [vmem:[#allocation3 + $0x48] sm:$0x3]  ;;  %v2558_v12 = vld [vmem:[#allocation3 + $0x30] sm:$0xff] }
 0x58c   : > { %v2399_v8 = vadd.f32 %v2397_v22, %v2369_v17  ;;  %v2688_v62 = vrot.slane %v7122_v23, 2  ;;  %v2695_v24 = vrot.slane %v7127_v60, 2  ;;  %v2707_v9 = vrot.slane %v7135_v59, 2 }
 0x58d   : > { %v2702_v46 = vrot.slane %v7132_v53, 2  ;;  %v7935_v6 = vrot.slane %v7003_v56, 2  ;;  %v2767_v13 = vmul.f32 %v6730_v25, %v7114_v20  ;;  %v7936_v1 = vrot.slane %v6730_v25, 6 }
 0x58e   : > { %v7937_v2 = vrot.slane %v6730_v25, 4  ;;  %v7938_v33 = vrot.slane %v6730_v25, 2  ;;  %v7939_v16 = vrot.slane %v6743_v11, 7  ;;  %v7940_v36 = vrot.slane %v6743_v11, 5 }
 0x58f   : > { %v2427_v21 = vadd.f32 %v7935_v6, %v2399_v8  ;;  %v2772_v38 = vmul.f32 %v7936_v1, %v7114_v20  ;;  %v7941_v45 = vrot.slane %v6743_v11, 3  ;;  %v7942_v39 = vrot.slane %v6743_v11, 1 }
 0x590   : > { %v2776_v15 = vmul.f32 %v7937_v2, %v7114_v20  ;;  %v2780_v42 = vmul.f32 %v7938_v33, %v7114_v20  ;;  %v2786_v56 = vmul.f32 %v7939_v16, %v7114_v20  ;;  %v2793_v19 = vmul.f32 %v7940_v36, %v7114_v20 }
 0x591   : > { %v2800_v52 = vmul.f32 %v7941_v45, %v7114_v20  ;;  %v7173_v10 = vadd.f32 %v7144_v40, %v2427_v21  ;;  %v2807_v25 = vmul.f32 %v7942_v39, %v7114_v20  ;;  %v7943_v18 = vrot.slane %v6754_v49, 6 }
 0x592   : > { %v7944_v17 = vrot.slane %v6754_v49, 4  ;;  %v2788_v0 = vrot.slane %v2786_v56, 1  ;;  %v2795_v22 = vrot.slane %v2793_v19, 1  ;;  %v7945_v48 = vrot.slane %v6754_v49, 2 }
 0x593   : > { %v2816_v44 = vmul.f32 %v7943_v18, %v7114_v20  ;;  %v2802_v41 = vrot.slane %v2800_v52, 1  ;;  %v2475_v11 = vsub.f32 0.0, %v7173_v10  ;;  %v2809_v8 = vrot.slane %v2807_v25, 1 }
 0x594   : > { %v2823_v14 = vmul.f32 %v7944_v17, %v7114_v20  ;;  %v2830_v43 = vmul.f32 %v7945_v48, %v7114_v20  ;;  %v2790_v1 = vadd.f32 %v2788_v0, %v2767_v13  ;;  %v2797_v2 = vadd.f32 %v2795_v22, %v2772_v38 }
 0x595   : > { %v2818_v6 = vrot.slane %v2816_v44, 2  ;;  %v2804_v33 = vadd.f32 %v2802_v41, %v2776_v15  ;;  %v2476_v36 = vmul.f32 1.442695, %v2475_v11  ;;  %v2811_v45 = vadd.f32 %v2809_v8, %v2780_v42 }
 0x596   : > { %v2825_v21 = vrot.slane %v2823_v14, 2  ;;  %v2832_v16 = vrot.slane %v2830_v43, 2  ;;  %v2835_v56 = vmul.f32 %v6754_v49, %v2765_v27  ;;  %v2561_v19 = vmul.f32 %v6763_v54, %v2558_v12  ;;  %v2559_v43 = vld [vmem:[#allocation3 + $0x38] sm:$0x3] }
 0x597   : > { %v7190_v52 = vadd.f32 %v2818_v6, %v2790_v1  ;;  %v7946_v25 = vrot.slane %v6763_v54, 6  ;;  %5852 = vpow2.f32 %v2476_v36  ;;  %v7947_v15 = vrot.slane %v6763_v54, 4 }
 0x598   : > { %v7192_v39 = vadd.f32 %v2825_v21, %v2797_v2  ;;  %v7194_v18 = vadd.f32 %v2832_v16, %v2804_v33  ;;  %v2837_v13 = vrot.slane %v2835_v56, 2  ;;  %v2562_v38 = vadd.f32 %v2561_v19, %v7055_v28 }
 0x599   : > { %v2566_v44 = vmul.f32 %v7946_v25, %v2558_v12  ;;  %v2570_v42 = vmul.f32 %v7947_v15, %v2558_v12  ;;  %v7948_v17 = vrot.slane %v6763_v54, 2  ;;  %v7949_v27 = vrot.slane %v6771_v7, 7 }
 0x59a   : > { %v7950_v22 = vrot.slane %v6771_v7, 5  ;;  %v7208_v48 = vadd.f32 %v2837_v13, %v2811_v45  ;;  %v7951_v28 = vrot.slane %v6771_v7, 3  ;;  %v7952_v6 = vrot.slane %v6771_v7, 1 }
 0x59b   : > { %v2567_v49 = vadd.f32 %v2566_v44, %v7057_v34  ;;  %v2574_v14 = vmul.f32 %v7948_v17, %v2558_v12  ;;  %v2580_v0 = vmul.f32 %v7949_v27, %v2558_v12  ;;  %v2571_v11 = vadd.f32 %v2570_v42, %v7059_v50 }
 0x59c   : > { %v2587_v41 = vmul.f32 %v7950_v22, %v2558_v12  ;;  %v2594_v8 = vmul.f32 %v7951_v28, %v2558_v12  ;;  %v2601_v34 = vmul.f32 %v7952_v6, %v2558_v12  ;;  %v7953_v2 = vrot.slane %v6782_v58, 6 }
 0x59d   : > { %v2575_v54 = vadd.f32 %v2574_v14, %v7061_v3  ;;  %v2582_v21 = vrot.slane %v2580_v0, 1  ;;  %v7954_v45 = vrot.slane %v6782_v58, 4  ;;  %v7955_v50 = vrot.slane %v6782_v58, 2 }
 0x59e   : > { %v2589_v1 = vrot.slane %v2587_v41, 1  ;;  %v2610_v33 = vmul.f32 %v7953_v2, %v2558_v12  ;;  %v2596_v16 = vrot.slane %v2594_v8, 1  ;;  %v2603_v36 = vrot.slane %v2601_v34, 1 }
 0x59f   : > { %v2617_v56 = vmul.f32 %v7954_v45, %v2558_v12  ;;  %v2624_v19 = vmul.f32 %v7955_v50, %v2558_v12  ;;  %v2584_v25 = vadd.f32 %v2582_v21, %v2562_v38  ;;  %v2629_v7 = vmul.f32 %v6782_v58, %v2559_v43 }
 0x5a0   : > { %v2591_v44 = vadd.f32 %v2589_v1, %v2567_v49  ;;  %v2612_v13 = vrot.slane %v2610_v33, 2  ;;  %v2598_v15 = vadd.f32 %v2596_v16, %v2571_v11  ;;  %v2605_v3 = vadd.f32 %v2603_v36, %v2575_v54  ;;  %v7240_v1 = vld [vmem:[#allocation3 + $0x60] sm:$0xff] }
 0x5a1   : > { %v2619_v42 = vrot.slane %v2617_v56, 2  ;;  %v2626_v17 = vrot.slane %v2624_v19, 2  ;;  %v2631_v27 = vrot.slane %v2629_v7, 2  ;;  %v2637_v0 = vmul.f32 %v6793_v32, %v7114_v20  ;;  %v5853_v2 = vpop.eup %5852 }
 0x5a2   : > { %v2614_v14 = vadd.f32 %v2612_v13, %v2584_v25  ;;  %v7956_v22 = vrot.slane %v6793_v32, 6  ;;  %v7957_v38 = vrot.slane %v6793_v32, 4  ;;  %v7958_v58 = vrot.slane %v6793_v32, 2 }
 0x5a3   : > { %v2621_v28 = vadd.f32 %v2619_v42, %v2591_v44  ;;  %v2628_v12 = vadd.f32 %v2626_v17, %v2598_v15  ;;  %v2633_v11 = vadd.f32 %v2631_v27, %v2605_v3  ;;  %v7959_v6 = vrot.slane %v6801_v61, 7  ;;  %v2917_v15 = vld [vmem:[#allocation3 + $0x68] sm:$0x3] }
 0x5a4   : > { %v2642_v41 = vmul.f32 %v7956_v22, %v7114_v20  ;;  %v2646_v49 = vmul.f32 %v7957_v38, %v7114_v20  ;;  %v2650_v43 = vmul.f32 %v7958_v58, %v7114_v20  ;;  %v2638_v8 = vadd.f32 %v2637_v0, %v2614_v14 }
 0x5a5   : > { %v2656_v34 = vmul.f32 %v7959_v6, %v7114_v20  ;;  %v7960_v54 = vrot.slane %v6801_v61, 5  ;;  %v7961_v36 = vrot.slane %v6801_v61, 3  ;;  %v7962_v45 = vrot.slane %v6801_v61, 1 }
 0x5a6   : > { %v2643_v33 = vadd.f32 %v2642_v41, %v2621_v28  ;;  %v2647_v16 = vadd.f32 %v2646_v49, %v2628_v12  ;;  %v2478_v50 = vadd.f32 1.0, %v5853_v2  ;;  %v2651_v19 = vadd.f32 %v2650_v43, %v2633_v11 }
 0x5a7   : > { %v2663_v21 = vmul.f32 %v7960_v54, %v7114_v20  ;;  %v2670_v32 = vmul.f32 %v7961_v36, %v7114_v20  ;;  %v2677_v56 = vmul.f32 %v7962_v45, %v7114_v20  ;;  %v2658_v25 = vrot.slane %v2656_v34, 1 }
 0x5a8   : > { %v7963_v3 = vrot.slane %v6815_v29, 6  ;;  %v7964_v17 = vrot.slane %v6815_v29, 4  ;;  %5854 = vrcp.f32 %v2478_v50  ;;  %v7965_v27 = vrot.slane %v6815_v29, 2 }
 0x5a9   : > { %v2665_v44 = vrot.slane %v2663_v21, 1  ;;  %v2672_v13 = vrot.slane %v2670_v32, 1  ;;  %v2679_v7 = vrot.slane %v2677_v56, 1  ;;  %v7258_v61 = vadd.f32 %v2658_v25, %v2638_v8 }
 0x5aa   : > { %v7251_v42 = vmul.f32 %v7963_v3, %v7240_v1  ;;  %v7256_v14 = vmul.f32 %v7964_v17, %v7240_v1  ;;  %v7265_v0 = vmul.f32 %v7965_v27, %v7240_v1  ;;  %v7273_v49 = vmul.f32 %v6815_v29, %v2917_v15  ;;  %v2840_v27 = vld [vmem:[#allocation3 + $0x50] sm:$0xff] }
 0x5ab   : > { %v7260_v20 = vadd.f32 %v2665_v44, %v2643_v33  ;;  %v7267_v22 = vadd.f32 %v2672_v13, %v2647_v16  ;;  %v2681_v41 = vadd.f32 %v2679_v7, %v2651_v19  ;;  %v3049_v58 = vmul.f32 %v6821_v26, %v7240_v1  ;;  %v3047_v13 = vld [vmem:[#allocation3 + $0x68] sm:$0x3] }
 0x5ac   : > { %v2970_v28 = vrot.slane %v7251_v42, 2  ;;  %v2977_v12 = vrot.slane %v7256_v14, 2  ;;  %v2984_v38 = vrot.slane %v7265_v0, 2  ;;  %v7966_v43 = vrot.slane %v6821_v26, 6 }
 0x5ad   : > { %v2709_v8 = vadd.f32 %v2707_v9, %v2681_v41  ;;  %v7967_v6 = vrot.slane %v6821_v26, 4  ;;  %v7968_v54 = vrot.slane %v6821_v26, 2  ;;  %v7969_v29 = vrot.slane %v6825_v37, 7 }
 0x5ae   : > { %v3054_v11 = vmul.f32 %v7966_v43, %v7240_v1  ;;  %v2989_v33 = vrot.slane %v7273_v49, 2  ;;  %v7970_v16 = vrot.slane %v6825_v37, 5  ;;  %v7971_v59 = vrot.slane %v6825_v37, 3 }
 0x5af   : > { %v3058_v34 = vmul.f32 %v7967_v6, %v7240_v1  ;;  %v3062_v21 = vmul.f32 %v7968_v54, %v7240_v1  ;;  %v3068_v2 = vmul.f32 %v7969_v29, %v7240_v1  ;;  %v7972_v32 = vrot.slane %v6825_v37, 1 }
 0x5b0   : > { %v3075_v36 = vmul.f32 %v7970_v16, %v7240_v1  ;;  %v3082_v9 = vmul.f32 %v7971_v59, %v7240_v1  ;;  %v7302_v26 = vadd.f32 %v7144_v40, %v2709_v8  ;;  %v7973_v50 = vrot.slane %v6834_v4, 6 }
 0x5b1   : > { %v3089_v45 = vmul.f32 %v7972_v32, %v7240_v1  ;;  %v3070_v56 = vrot.slane %v3068_v2, 1  ;;  %v7974_v25 = vrot.slane %v6834_v4, 4  ;;  %v7975_v37 = vrot.slane %v6834_v4, 2 }
 0x5b2   : > { %v3098_v19 = vmul.f32 %v7973_v50, %v7240_v1  ;;  %v3077_v7 = vrot.slane %v3075_v36, 1  ;;  %v3084_v15 = vrot.slane %v3082_v9, 1  ;;  %v2757_v41 = vsub.f32 0.0, %v7302_v26 }
 0x5b3   : > { %v3105_v44 = vmul.f32 %v7974_v25, %v7240_v1  ;;  %v3091_v3 = vrot.slane %v3089_v45, 1  ;;  %v3112_v17 = vmul.f32 %v7975_v37, %v7240_v1  ;;  %v3072_v43 = vadd.f32 %v3070_v56, %v3049_v58  ;;  %v7318_v45 = vpop.eup %5854 }
 0x5b4   : > { %v3100_v8 = vrot.slane %v3098_v19, 2  ;;  %v3079_v54 = vadd.f32 %v3077_v7, %v3054_v11  ;;  %v3086_v29 = vadd.f32 %v3084_v15, %v3058_v34  ;;  %v2758_v59 = vmul.f32 1.442695, %v2757_v41 }
 0x5b5   : > { %v3107_v6 = vrot.slane %v3105_v44, 2  ;;  %v3093_v2 = vadd.f32 %v3091_v3, %v3062_v21  ;;  %v3114_v16 = vrot.slane %v3112_v17, 2  ;;  %v3117_v36 = vmul.f32 %v6834_v4, %v3047_v13  ;;  %v2841_v13 = vld [vmem:[#allocation3 + $0x58] sm:$0x3] }
 0x5b6   : > { %v7314_v32 = vadd.f32 %v3100_v8, %v3072_v43  ;;  %v2843_v9 = vmul.f32 %v6840_v63, %v2840_v27  ;;  %v7976_v58 = vrot.slane %v6840_v63, 6  ;;  %v7977_v11 = vrot.slane %v6840_v63, 4 }
 0x5b7   : > { %v7320_v50 = vadd.f32 %v3107_v6, %v3079_v54  ;;  %v7322_v25 = vadd.f32 %v3114_v16, %v3086_v29  ;;  %5856 = vpow2.f32 %v2758_v59  ;;  %v3119_v21 = vrot.slane %v3117_v36, 2 }
 0x5b8   : > { %v2848_v56 = vmul.f32 %v7976_v58, %v2840_v27  ;;  %v2852_v34 = vmul.f32 %v7977_v11, %v2840_v27  ;;  %v2844_v19 = vadd.f32 %v2843_v9, %v7190_v52  ;;  %v7978_v4 = vrot.slane %v6840_v63, 2 }
 0x5b9   : > { %v7979_v3 = vrot.slane %v6845_v5, 7  ;;  %v7980_v17 = vrot.slane %v6845_v5, 5  ;;  %v7337_v43 = vadd.f32 %v3119_v21, %v3093_v2  ;;  %v7981_v52 = vrot.slane %v6845_v5, 3 }
 0x5ba   : > { %v2856_v44 = vmul.f32 %v7978_v4, %v2840_v27  ;;  %v2849_v7 = vadd.f32 %v2848_v56, %v7192_v39  ;;  %v2853_v15 = vadd.f32 %v2852_v34, %v7194_v18  ;;  %v7982_v63 = vrot.slane %v6845_v5, 1 }
 0x5bb   : > { %v2862_v37 = vmul.f32 %v7979_v3, %v2840_v27  ;;  %v2869_v41 = vmul.f32 %v7980_v17, %v2840_v27  ;;  %v2876_v6 = vmul.f32 %v7981_v52, %v2840_v27  ;;  %v7983_v18 = vrot.slane %v6851_v47, 6  ;;  %v7986_v52 = vld [vmem:[#allocation29_spill] sm:$0xff] }
 0x5bc   : > { %v2857_v8 = vadd.f32 %v2856_v44, %v7208_v48  ;;  %v2883_v54 = vmul.f32 %v7982_v63, %v2840_v27  ;;  %v7984_v59 = vrot.slane %v6851_v47, 4  ;;  %v7985_v2 = vrot.slane %v6851_v47, 2 }
 0x5bd   : > { %v2864_v29 = vrot.slane %v2862_v37, 1  ;;  %v2871_v39 = vrot.slane %v2869_v41, 1  ;;  %v2892_v16 = vmul.f32 %v7983_v18, %v2840_v27  ;;  %v2878_v9 = vrot.slane %v2876_v6, 1 }
 0x5be   : > { %v2899_v36 = vmul.f32 %v7984_v59, %v2840_v27  ;;  %v2885_v58 = vrot.slane %v2883_v54, 1  ;;  %v2906_v56 = vmul.f32 %v7985_v2, %v2840_v27  ;;  %v2911_v48 = vmul.f32 %v6851_v47, %v2841_v13 }
 0x5bf   : > { %v2866_v11 = vadd.f32 %v2864_v29, %v2844_v19  ;;  %v2873_v34 = vadd.f32 %v2871_v39, %v2849_v7  ;;  %v2894_v21 = vrot.slane %v2892_v16, 2  ;;  %v2880_v4 = vadd.f32 %v2878_v9, %v2853_v15  ;;  %v7990_v29 = vld [vmem:[#allocation28_spill] sm:$0xff] }
 0x5c0   : > { %v2901_v5 = vrot.slane %v2899_v36, 2  ;;  %v2887_v44 = vadd.f32 %v2885_v58, %v2857_v8  ;;  %v2908_v3 = vrot.slane %v2906_v56, 2  ;;  %v2913_v37 = vrot.slane %v2911_v48, 2 }
 0x5c1   : > { %v2896_v17 = vadd.f32 %v2894_v21, %v2866_v11  ;;  %v2919_v63 = vmul.f32 %v7986_v52, %v7240_v1  ;;  %v7987_v6 = vrot.slane %v7986_v52, 6  ;;  %v7988_v47 = vrot.slane %v7986_v52, 4  ;;  %v5857_v9 = vpop.eup %5856 }
 0x5c2   : > { %v2903_v41 = vadd.f32 %v2901_v5, %v2873_v34  ;;  %v2910_v27 = vadd.f32 %v2908_v3, %v2880_v4  ;;  %v2915_v18 = vadd.f32 %v2913_v37, %v2887_v44  ;;  %v7989_v13 = vrot.slane %v7986_v52, 2  ;;  %v7995_v44 = vld [vmem:[#allocation27_spill] sm:$0xff]  ;;  %v2428_v37 = vld [vmem:[%s7930_s1] sm:$0x1]  ;;  %v7996_v52 = vld [vmem:[#allocation26_spill] sm:$0xff] }
 0x5c3   : > { %v2924_v54 = vmul.f32 %v7987_v6, %v7240_v1  ;;  %v2928_v19 = vmul.f32 %v7988_v47, %v7240_v1  ;;  %v2920_v15 = vadd.f32 %v2919_v63, %v2896_v17  ;;  %v7991_v39 = vrot.slane %v7990_v29, 7  ;;  %v7997_v6 = vld [vmem:[#allocation37_spill] sm:$0xff]  ;;  %v7999_v47 = vld [vmem:[#allocation38_spill] sm:$0xff] }
 0x5c4   : > { %v2932_v7 = vmul.f32 %v7989_v13, %v7240_v1  ;;  %v7992_v59 = vrot.slane %v7990_v29, 5  ;;  %v7993_v56 = vrot.slane %v7990_v29, 3  ;;  %v7994_v11 = vrot.slane %v7990_v29, 1  ;;  %v8001_v29 = vld [vmem:[#allocation39_spill] sm:$0xff] }
 0x5c5   : > { %v2925_v8 = vadd.f32 %v2924_v54, %v2903_v41  ;;  %v2938_v16 = vmul.f32 %v7991_v39, %v7240_v1  ;;  %v2929_v58 = vadd.f32 %v2928_v19, %v2910_v27  ;;  %v2760_v21 = vadd.f32 1.0, %v5857_v9 }
 0x5c6   : > { %v2945_v36 = vmul.f32 %v7992_v59, %v7240_v1  ;;  %v2933_v2 = vadd.f32 %v2932_v7, %v2915_v18  ;;  %v2952_v48 = vmul.f32 %v7993_v56, %v7240_v1  ;;  %v2959_v34 = vmul.f32 %v7994_v11, %v7240_v1  ;;  %v2710_v59 = vld [vmem:[%s7930_s1] sm:$0x1]  ;;  %v8003_v11 = vld [vmem:[#allocation31_spill] sm:$0xff] }
 0x5c7   : > { %v2940_v5 = vrot.slane %v2938_v16, 1  ;;  %v2163_v3 = vmul.f32 %v7044_v35, %v7995_v44  ;;  %v2162_v63 = vmul.f32 %v7053_v31, %v7996_v52  ;;  %v7998_v54 = vrot.slane %v7997_v6, 2 }
 0x5c8   : > { %v2947_v4 = vrot.slane %v2945_v36, 1  ;;  %v2954_v17 = vrot.slane %v2952_v48, 1  ;;  %v2961_v41 = vrot.slane %v2959_v34, 1  ;;  %5858 = vrcp.f32 %v2760_v21  ;;  %v7392_v36 = vld [vmem:[%s7930_s1] ss:$0 sm:$0xff] }
 0x5c9   : > { %v2408_v27 = vadd.f32 %v7998_v54, %v7137_v51  ;;  %v2942_v1 = vadd.f32 %v2940_v5, %v2920_v15  ;;  %2199 = vst [vmem:[#allocation3 + $0x81] sm:$0xff] %v2163_v3  ;;  %v8000_v19 = vrot.slane %v7999_v47, 2  ;;  %2197 = vst [vmem:[#allocation3 + $0x71] sm:$0xff] %v2162_v63  ;;  %v8002_v39 = vrot.slane %v8001_v29, 2  ;;  %v8007_v3 = vld [vmem:[#allocation32_spill] sm:$0xff]  ;;  %v8011_v29 = vld [vmem:[#allocation33_spill] sm:$0xff] }
 0x5ca   : > { %v2949_v18 = vadd.f32 %v2947_v4, %v2925_v8  ;;  %v2956_v13 = vadd.f32 %v2954_v17, %v2929_v58  ;;  %v2963_v7 = vadd.f32 %v2961_v41, %v2933_v2  ;;  %v2480_v15 = vmul.f32 %v7318_v45, %v7173_v10 }
 0x5cb   : > { %v2415_v35 = vadd.f32 %v8000_v19, %v7139_v57  ;;  %v2422_v16 = vadd.f32 %v8002_v39, %v7141_v30  ;;  %v7388_v31 = vadd.f32 %v2428_v37, %v2408_v27  ;;  %v2690_v57 = vadd.f32 %v2688_v62, %v7258_v61 }
 0x5cc   : > { %v2697_v8 = vadd.f32 %v2695_v24, %v7260_v20  ;;  %v2991_v30 = vadd.f32 %v2989_v33, %v2963_v7  ;;  %v2704_v10 = vadd.f32 %v2702_v46, %v7267_v22  ;;  %2481 = vst [vmem:[#allocation6 - $0x3] sm:$0x40] %v2480_v15  ;;  %v7422_v62 = vadd.f32 %v2970_v28, %v2942_v1 }
 0x5cd   : > { %v7395_v51 = vadd.f32 %v7144_v40, %v2415_v35  ;;  %v2430_v9 = vsub.f32 0.0, %v7388_v31  ;;  %v7409_v58 = vadd.f32 %v7144_v40, %v2422_v16  ;;  %v7415_v23 = vadd.f32 %v2710_v59, %v2690_v57 }
 0x5ce   : > { %v7418_v60 = vadd.f32 %v7392_v36, %v2697_v8  ;;  %v7425_v24 = vadd.f32 %v7144_v40, %v2991_v30  ;;  %v7429_v53 = vadd.f32 %v7392_v36, %v2704_v10  ;;  %v7437_v42 = vadd.f32 %v2977_v12, %v2949_v18  ;;  %v8016_v10 = vld [vmem:[#allocation34_spill] sm:$0xff] }
 0x5cf   : > { %v2445_v45 = vsub.f32 0.0, %v7395_v51  ;;  %v2431_v61 = vmul.f32 1.442695, %v2430_v9  ;;  %v2460_v20 = vsub.f32 0.0, %v7409_v58  ;;  %v2712_v22 = vsub.f32 0.0, %v7415_v23 }
 0x5d0   : > { %v2727_v49 = vsub.f32 0.0, %v7418_v60  ;;  %v3039_v28 = vsub.f32 0.0, %v7425_v24  ;;  %v7440_v33 = vld [vmem:[#allocation3 + $0x80] sm:$0xff]  ;;  %v3199_v2 = vld [vmem:[#allocation3 + $0x88] sm:$0x3]  ;;  %v7446_v48 = vadd.f32 %v2984_v38, %v2956_v13  ;;  %v8004_v34 = vrot.slane %v8003_v11, 6 }
 0x5d1   : > { %v7431_v46 = vmul.f32 1.442695, %v2445_v45  ;;  %5860 = vpow2.f32 %v2431_v61  ;;  %v7442_v56 = vmul.f32 1.442695, %v2460_v20  ;;  %v8005_v14 = vrot.slane %v8003_v11, 4  ;;  %v3122_v0 = vld [vmem:[#allocation3 + $0x70] sm:$0xff] }
 0x5d2   : > { %v7451_v21 = vmul.f32 %v8004_v34, %v7440_v33  ;;  %v8006_v5 = vrot.slane %v8003_v11, 2  ;;  %v7464_v44 = vmul.f32 %v8003_v11, %v3199_v2  ;;  %v3040_v38 = vmul.f32 1.442695, %v3039_v28  ;;  %v7471_v6 = vpop.eup %5858  ;;  %v3123_v30 = vld [vmem:[#allocation3 + $0x78] sm:$0x3] }
 0x5d3   : > { %v7456_v12 = vmul.f32 %v8005_v14, %v7440_v33  ;;  %v3125_v37 = vmul.f32 %v8007_v3, %v3122_v0  ;;  %v8008_v17 = vrot.slane %v8007_v3, 6  ;;  %v8009_v52 = vrot.slane %v8007_v3, 4 }
 0x5d4   : > { %v7461_v4 = vmul.f32 %v8006_v5, %v7440_v33  ;;  %v3252_v54 = vrot.slane %v7451_v21, 2  ;;  %v3271_v18 = vrot.slane %v7464_v44, 2  ;;  %5862 = vpow2.f32 %v3040_v38 }
 0x5d5   : > { %v3130_v41 = vmul.f32 %v8008_v17, %v3122_v0  ;;  %v3134_v63 = vmul.f32 %v8009_v52, %v3122_v0  ;;  %v3259_v27 = vrot.slane %v7456_v12, 2  ;;  %v3126_v47 = vadd.f32 %v3125_v37, %v7314_v32 }
 0x5d6   : > { %v3266_v1 = vrot.slane %v7461_v4, 2  ;;  %v8010_v13 = vrot.slane %v8007_v3, 2  ;;  %v8012_v39 = vrot.slane %v8011_v29, 7  ;;  %v8013_v59 = vrot.slane %v8011_v29, 5 }
 0x5d7   : > { %v3131_v19 = vadd.f32 %v3130_v41, %v7320_v50  ;;  %v3135_v35 = vadd.f32 %v3134_v63, %v7322_v25  ;;  %v8014_v57 = vrot.slane %v8011_v29, 3  ;;  %v8015_v9 = vrot.slane %v8011_v29, 1 }
 0x5d8   : > { %v3138_v7 = vmul.f32 %v8010_v13, %v3122_v0  ;;  %v3144_v16 = vmul.f32 %v8012_v39, %v3122_v0  ;;  %v3151_v15 = vmul.f32 %v8013_v59, %v3122_v0  ;;  %v8017_v50 = vrot.slane %v8016_v10, 6  ;;  %v8020_v39 = vld [vmem:[#allocation35_spill] sm:$0xff] }
 0x5d9   : > { %v3158_v8 = vmul.f32 %v8014_v57, %v3122_v0  ;;  %v3165_v32 = vmul.f32 %v8015_v9, %v3122_v0  ;;  %v8018_v25 = vrot.slane %v8016_v10, 4  ;;  %v8019_v20 = vrot.slane %v8016_v10, 2 }
 0x5da   : > { %v3174_v45 = vmul.f32 %v8017_v50, %v3122_v0  ;;  %v3139_v2 = vadd.f32 %v3138_v7, %v7337_v43  ;;  %v3146_v11 = vrot.slane %v3144_v16, 1  ;;  %v3153_v34 = vrot.slane %v3151_v15, 1 }
 0x5db   : > { %v3181_v61 = vmul.f32 %v8018_v25, %v3122_v0  ;;  %v3188_v28 = vmul.f32 %v8019_v20, %v3122_v0  ;;  %v3160_v14 = vrot.slane %v3158_v8, 1  ;;  %v3167_v5 = vrot.slane %v3165_v32, 1  ;;  %v5861_v13 = vpop.eup %5860 }
 0x5dc   : > { %v3176_v38 = vrot.slane %v3174_v45, 2  ;;  %v3148_v17 = vadd.f32 %v3146_v11, %v3126_v47  ;;  %v3155_v41 = vadd.f32 %v3153_v34, %v3131_v19  ;;  %v3193_v63 = vmul.f32 %v8016_v10, %v3123_v30  ;;  %v8024_v30 = vld [vmem:[#allocation36_spill] sm:$0xff] }
 0x5dd   : > { %v3183_v3 = vrot.slane %v3181_v61, 2  ;;  %v3190_v37 = vrot.slane %v3188_v28, 2  ;;  %v3162_v52 = vadd.f32 %v3160_v14, %v3135_v35  ;;  %v3169_v29 = vadd.f32 %v3167_v5, %v3139_v2 }
 0x5de   : > { %v3201_v59 = vmul.f32 %v8020_v39, %v7440_v33  ;;  %v8021_v43 = vrot.slane %v8020_v39, 6  ;;  %v8022_v7 = vrot.slane %v8020_v39, 4  ;;  %v3178_v15 = vadd.f32 %v3176_v38, %v3148_v17  ;;  %v5863_v11 = vpop.eup %5862 }
 0x5df   : > { %v3185_v57 = vadd.f32 %v3183_v3, %v3155_v41  ;;  %v3192_v47 = vadd.f32 %v3190_v37, %v3162_v52  ;;  %v3195_v19 = vrot.slane %v3193_v63, 2  ;;  %v8023_v35 = vrot.slane %v8020_v39, 2  ;;  %v2992_v52 = vld [vmem:[%s7930_s1] sm:$0x1] }
 0x5e0   : > { %v3206_v0 = vmul.f32 %v8021_v43, %v7440_v33  ;;  %v3210_v16 = vmul.f32 %v8022_v7, %v7440_v33  ;;  %v8025_v9 = vrot.slane %v8024_v30, 7  ;;  %v8026_v10 = vrot.slane %v8024_v30, 5 }
 0x5e1   : > { %v3214_v8 = vmul.f32 %v8023_v35, %v7440_v33  ;;  %v8027_v45 = vrot.slane %v8024_v30, 3  ;;  %v3197_v61 = vadd.f32 %v3195_v19, %v3169_v29  ;;  %v3202_v20 = vadd.f32 %v3201_v59, %v3178_v15 }
 0x5e2   : > { %v3220_v32 = vmul.f32 %v8025_v9, %v7440_v33  ;;  %v3227_v50 = vmul.f32 %v8026_v10, %v7440_v33  ;;  %v3207_v28 = vadd.f32 %v3206_v0, %v3185_v57  ;;  %v3211_v2 = vadd.f32 %v3210_v16, %v3192_v47 }
 0x5e3   : > { %v3234_v25 = vmul.f32 %v8027_v45, %v7440_v33  ;;  %v8028_v38 = vrot.slane %v8024_v30, 1  ;;  %v3042_v37 = vadd.f32 1.0, %v5863_v11  ;;  %v3215_v17 = vadd.f32 %v3214_v8, %v3197_v61 }
 0x5e4   : > { %v3222_v34 = vrot.slane %v3220_v32, 1  ;;  %v3229_v14 = vrot.slane %v3227_v50, 1  ;;  %v2433_v41 = vadd.f32 1.0, %v5861_v13  ;;  %5864 = vpow2.f32 %v7431_v46 }
 0x5e5   : > { %v3236_v5 = vrot.slane %v3234_v25, 1  ;;  %v3241_v3 = vmul.f32 %v8028_v38, %v7440_v33  ;;  %5866 = vrcp.f32 %v3042_v37  ;;  %v2713_v43 = vmul.f32 1.442695, %v2712_v22 }
 0x5e6   : > { %v3224_v63 = vadd.f32 %v3222_v34, %v3202_v20  ;;  %v3231_v39 = vadd.f32 %v3229_v14, %v3207_v28  ;;  %v2728_v0 = vmul.f32 1.442695, %v2727_v49  ;;  %v2742_v33 = vsub.f32 0.0, %v7429_v53 }
 0x5e7   : > { %v3238_v29 = vadd.f32 %v3236_v5, %v3211_v2  ;;  %v3243_v59 = vrot.slane %v3241_v3, 1  ;;  %5868 = vrcp.f32 %v2433_v41  ;;  %v2762_v46 = vmul.f32 %v7471_v6, %v7302_v26 }
 0x5e8   : > { %v7531_v13 = vadd.f32 %v2992_v52, %v7422_v62  ;;  %5870 = vpow2.f32 %v7442_v56  ;;  %v2743_v16 = vmul.f32 1.442695, %v2742_v33  ;;  %v7536_v22 = vadd.f32 %v7392_v36, %v7437_v42  ;;  %v3274_v56 = vld [vmem:[%s7930_s1] sm:$0x1] }
 0x5e9   : > { %v3245_v7 = vadd.f32 %v3243_v59, %v3215_v17  ;;  %v7540_v49 = vadd.f32 %v7392_v36, %v7446_v48  ;;  %5872 = vpow2.f32 %v2713_v43  ;;  %2763 = vst [vmem:[#allocation6 + $0x1] sm:$0x40] %v2762_v46  ;;  %v3254_v62 = vadd.f32 %v3252_v54, %v3224_v63 }
 0x5ea   : > { %v2994_v26 = vsub.f32 0.0, %v7531_v13  ;;  %5874 = vpow2.f32 %v2728_v0  ;;  %v3009_v6 = vsub.f32 0.0, %v7536_v22  ;;  %v3261_v48 = vadd.f32 %v3259_v27, %v3231_v39 }
 0x5eb   : > { %v3273_v15 = vadd.f32 %v3271_v18, %v3245_v7  ;;  %v3024_v42 = vsub.f32 0.0, %v7540_v49  ;;  %5876 = vpow2.f32 %v2743_v16  ;;  %v3268_v18 = vadd.f32 %v3266_v1, %v3238_v29 }
 0x5ec   : > { %v2995_v44 = vmul.f32 1.442695, %v2994_v26  ;;  %v3010_v47 = vmul.f32 1.442695, %v3009_v6  ;;  %v7557_v54 = vadd.f32 %v3274_v56, %v3254_v62  ;;  %v7560_v19 = vadd.f32 %v7392_v36, %v3261_v48 }
 0x5ed   : > { %v7553_v57 = vadd.f32 %v7144_v40, %v3273_v15  ;;  %v3025_v21 = vmul.f32 1.442695, %v3024_v42  ;;  %v7564_v12 = vadd.f32 %v7392_v36, %v3268_v18 }
 0x5ee   : > { %5878 = vpow2.f32 %v2995_v44  ;;  %v5865_v40 = vpop.eup %5864  ;;  %v3276_v27 = vsub.f32 0.0, %v7557_v54  ;;  %v3291_v4 = vsub.f32 0.0, %v7560_v19 }
 0x5ef   : > { %v3321_v35 = vsub.f32 0.0, %v7553_v57  ;;  %5880 = vpow2.f32 %v3010_v47  ;;  %v2448_v8 = vadd.f32 1.0, %v5865_v40  ;;  %v5867_v30 = vpop.eup %5866  ;;  %v3306_v45 = vsub.f32 0.0, %v7564_v12 }
 0x5f0   : > { %5882 = vpow2.f32 %v3025_v21  ;;  %v3277_v9 = vmul.f32 1.442695, %v3276_v27  ;;  %v3292_v32 = vmul.f32 1.442695, %v3291_v4  ;;  %v3044_v50 = vmul.f32 %v5867_v30, %v7425_v24 }
 0x5f1   : > { %v3322_v1 = vmul.f32 1.442695, %v3321_v35  ;;  %v5869_v10 = vpop.eup %5868  ;;  %v3307_v14 = vmul.f32 1.442695, %v3306_v45  ;;  %v3435_v45 = vld [vmem:[%s8029_s2 + $0x18] sm:$0xff] }
 0x5f2   : > { %v5871_v36 = vpop.eup %5870  ;;  %v2435_v25 = vmul.f32 %v5869_v10, %v7388_v31  ;;  %3045 = vst [vmem:[#allocation6 + $0x5] sm:$0x40] %v3044_v50  ;;  %v3434_v50 = vld [vmem:[%s8029_s2 + $0x10] sm:$0xff] }
 0x5f3   : > { %5884 = vpow2.f32 %v3322_v1  ;;  %v5873_v61 = vpop.eup %5872  ;;  %v2463_v20 = vadd.f32 1.0, %v5871_v36  ;;  %v5482_v36 = vpack.c.bf16 %v3435_v45, %v3434_v50  ;;  %v3632_v50 = vld [vmem:[%s8032_s11 + $0x20] sm:$0xff]  ;;  %v3633_v45 = vld [vmem:[%s8032_s11 + $0x28] sm:$0xff] }
 0x5f4   : > { %5886 = vrcp.f32 %v2448_v8  ;;  %v5875_v28 = vpop.eup %5874  ;;  %2436 = vst [vmem:[#allocation6] sm:$0x1] %v2435_v25  ;;  %v2715_v2 = vadd.f32 1.0, %v5873_v61  ;;  %v3436_v25 = vld [vmem:[%s8029_s2 + $0x20] sm:$0xff]  ;;  %v3437_v61 = vld [vmem:[%s8029_s2 + $0x28] sm:$0xff] }
 0x5f5   : > { %5888 = vpow2.f32 %v3277_v9  ;;  %v5877_v11 = vpop.eup %5876  ;;  %v2730_v34 = vadd.f32 1.0, %v5875_v28  ;;  %v3438_v28 = vld [vmem:[%s8029_s2 + $0x30] sm:$0xff] }
 0x5f6   : > { %5890 = vpow2.f32 %v3292_v32  ;;  %v2745_v24 = vadd.f32 1.0, %v5877_v11  ;;  %v3433_v32 = vld [vmem:[%s8029_s2 + $0x8] sm:$0xff] }
 0x5f7   : > { %5892 = vrcp.f32 %v2463_v20  ;;  %v5485_v20 = vpack.c.bf16 %v3437_v61, %v3436_v25  ;;  %v3634_v25 = vld [vmem:[%s8032_s11 + $0x30] sm:$0xff]  ;;  %v3635_v61 = vld [vmem:[%s8032_s11 + $0x38] sm:$0xff] }
 0x5f8   : > { %5894 = vrcp.f32 %v2715_v2  ;;  %v5879_v5 = vpop.eup %5878  ;;  %v3439_v2 = vld [vmem:[%s8029_s2 + $0x38] sm:$0xff] }
 0x5f9   : > { %5896 = vrcp.f32 %v2730_v34  ;;  %v5881_v38 = vpop.eup %5880  ;;  %v2997_v31 = vadd.f32 1.0, %v5879_v5  ;;  %v5488_v11 = vpack.c.bf16 %v3439_v2, %v3438_v28  ;;  %v3440_v34 = vld [vmem:[%s8029_s2 + $0x40] sm:$0xff]  ;;  %v3442_v5 = vld [vmem:[%s8029_s2 + $0x50] sm:$0xff]  ;;  %v3637_v2 = vld [vmem:[%s8032_s11 + $0x48] sm:$0xff] }
 0x5fa   : > { %5898 = vrcp.f32 %v2745_v24  ;;  %v5883_v3 = vpop.eup %5882  ;;  %v3012_v37 = vadd.f32 1.0, %v5881_v38  ;;  %v3443_v38 = vld [vmem:[%s8029_s2 + $0x58] sm:$0xff]  ;;  %v3636_v28 = vld [vmem:[%s8032_s11 + $0x40] sm:$0xff] }
 0x5fb   : > { %5900 = vpow2.f32 %v3307_v14  ;;  %v3027_v17 = vadd.f32 1.0, %v5883_v3  ;;  %v3441_v14 = vld [vmem:[%s8029_s2 + $0x48] sm:$0xff]  ;;  %v3444_v3 = vld [vmem:[%s8029_s2 + $0x60] sm:$0xff] }
 0x5fc   : > { %5902 = vrcp.f32 %v2997_v31  ;;  %v5491_v24 = vpack.c.bf16 %v3441_v14, %v3440_v34  ;;  %v5494_v31 = vpack.c.bf16 %v3443_v38, %v3442_v5  ;;  %v3638_v34 = vld [vmem:[%s8032_s11 + $0x50] sm:$0xff]  ;;  %v3639_v14 = vld [vmem:[%s8032_s11 + $0x58] sm:$0xff]  ;;  %v3640_v5 = vld [vmem:[%s8032_s11 + $0x60] sm:$0xff] }
 0x5fd   : > { %v5885_v41 = vpop.eup %5884  ;;  %5904 = vrcp.f32 %v3012_v37  ;;  %v3445_v37 = vld [vmem:[%s8029_s2 + $0x68] sm:$0xff] }
 0x5fe   : > { %v5887_v52 = vpop.eup %5886  ;;  %v3324_v63 = vadd.f32 1.0, %v5885_v41  ;;  %5906 = vrcp.f32 %v3027_v17  ;;  %v5497_v17 = vpack.c.bf16 %v3445_v37, %v3444_v3  ;;  %v3446_v41 = vld [vmem:[%s8029_s2 + $0x70] sm:$0xff]  ;;  %v3641_v38 = vld [vmem:[%s8032_s11 + $0x68] sm:$0xff]  ;;  %v3448_v3 = vld [vmem:[%s8033_s15] sm:$0x1]  ;;  %s8040_s15 = sld [smem:[#allocation21_spill]] }
 0x5ff   : > { %v5889_v39 = vpop.eup %5888  ;;  %v2450_v29 = vmul.f32 %v5887_v52, %v7395_v51  ;;  %v3447_v52 = vld [vmem:[%s8029_s2 + $0x78] sm:$0xff] }
 0x600   : > { %v5891_v59 = vpop.eup %5890  ;;  %5908 = vrcp.f32 %v3324_v63  ;;  %v3279_v43 = vadd.f32 1.0, %v5889_v39  ;;  %v5500_v63 = vpack.c.bf16 %v3447_v52, %v3446_v41  ;;  %v3355_v39 = vld [vmem:[%s8030_s7] sm:$0x1]  ;;  %s8039_s7 = sld [smem:[#allocation18_spill]] }
 0x601   : > { %v5893_v0 = vpop.eup %5892  ;;  %2451 = vst [vmem:[#allocation6 - $0x1] sm:$0x4] %v2450_v29  ;;  %v3294_v33 = vadd.f32 1.0, %v5891_v59 }
 0x602   : > { %v5895_v7 = vpop.eup %5894  ;;  %v2465_v46 = vmul.f32 %v5893_v0, %v7409_v58  ;;  %5910 = vrcp.f32 %v3279_v43 }
 0x603   : > { %v5897_v16 = vpop.eup %5896  ;;  %v2717_v15 = vmul.f32 %v5895_v7, %v7415_v23  ;;  %5912 = vrcp.f32 %v3294_v33 }
 0x604   : > { %v5899_v26 = vpop.eup %5898  ;;  %2466 = vst [vmem:[#allocation6 - $0x2] sm:$0x10] %v2465_v46  ;;  %v2732_v62 = vmul.f32 %v5897_v16, %v7418_v60 }
 0x605   : > { %v5901_v56 = vpop.eup %5900  ;;  %2718 = vst [vmem:[#allocation6 + $0x4] sm:$0x1] %v2717_v15  ;;  %v2747_v51 = vmul.f32 %v5899_v26, %v7429_v53  ;;  %v3530_v26 = vld [vmem:[%s8031_s10] sm:$0xff] }
 0x606   : > { %v5903_v6 = vpop.eup %5902  ;;  %2733 = vst [vmem:[#allocation6 + $0x3] sm:$0x4] %v2732_v62  ;;  %v3309_v42 = vadd.f32 1.0, %v5901_v56  ;;  %v3531_v62 = vld [vmem:[%s8031_s10 + $0x8] sm:$0xff] }
 0x607   : > { %v5905_v48 = vpop.eup %5904  ;;  %2748 = vst [vmem:[#allocation6 + $0x2] sm:$0x10] %v2747_v51  ;;  %v2999_v58 = vmul.f32 %v5903_v6, %v7531_v13  ;;  %v5502_v56 = vpack.c.bf16 %v3531_v62, %v3530_v26  ;;  %v3532_v51 = vld [vmem:[%s8031_s10 + $0x10] sm:$0xff]  ;;  %v3533_v6 = vld [vmem:[%s8031_s10 + $0x18] sm:$0xff] }
 0x608   : > { %v5907_v44 = vpop.eup %5906  ;;  %v3014_v18 = vmul.f32 %v5905_v48, %v7536_v22  ;;  %5914 = vrcp.f32 %v3309_v42  ;;  %v5506_v42 = vpack.c.bf16 %v3533_v6, %v3532_v51  ;;  %v3534_v48 = vld [vmem:[%s8031_s10 + $0x20] sm:$0xff] }
 0x609   : > { %3000 = vst [vmem:[#allocation6 + $0x8] sm:$0x1] %v2999_v58  ;;  %v3029_v23 = vmul.f32 %v5907_v44, %v7540_v49  ;;  %5503 = vmatprep.subr.bf16.mxu1 %v5502_v56  ;;  %v3535_v58 = vld [vmem:[%s8031_s10 + $0x28] sm:$0xff]  ;;  %v3954_v6 = vld [vmem:[%s8036_s18] sm:$0xff] }
 0x60a   : > { %v5909_v47 = vpop.eup %5908  ;;  %3015 = vst [vmem:[#allocation6 + $0x7] sm:$0x4] %v3014_v18  ;;  %v5510_v44 = vpack.c.bf16 %v3535_v58, %v3534_v48  ;;  %v3536_v18 = vld [vmem:[%s8031_s10 + $0x30] sm:$0xff] }
 0x60b   : > { %3030 = vst [vmem:[#allocation6 + $0x6] sm:$0x10] %v3029_v23  ;;  %v3326_v60 = vmul.f32 %v5909_v47, %v7553_v57  ;;  %v3537_v23 = vld [vmem:[%s8031_s10 + $0x38] sm:$0xff]  ;;  %v3956_v58 = vld [vmem:[%s8036_s18 + $0x10] sm:$0xff] }
 0x60c   : > { %v5911_v53 = vpop.eup %5910  ;;  %v5514_v47 = vpack.c.bf16 %v3537_v23, %v3536_v18  ;;  %v3958_v23 = vld [vmem:[%s8036_s18 + $0x20] sm:$0xff] }
 0x60d   : > { %v5913_v21 = vpop.eup %5912  ;;  %v3281_v35 = vmul.f32 %v5911_v53, %v7557_v54  ;;  %3327 = vst [vmem:[#allocation6 + $0x9] sm:$0x40] %v3326_v60  ;;  %v3538_v60 = vld [vmem:[%s8031_s10 + $0x40] sm:$0xff]  ;;  %v3539_v53 = vld [vmem:[%s8031_s10 + $0x48] sm:$0xff] }
 0x60e   : > { %v3296_v40 = vmul.f32 %v5913_v21, %v7560_v19  ;;  %v7583_v49 = vld [vmem:[#allocation6] sm:$0xff]  ;;  %v5518_v21 = vpack.c.bf16 %v3539_v53, %v3538_v60 }
 0x60f   : > { %3282 = vst [vmem:[#allocation6 + $0xc] sm:$0x1] %v3281_v35  ;;  %v3540_v35 = vld [vmem:[%s8031_s10 + $0x50] sm:$0xff] }
 0x610   : > { %3297 = vst [vmem:[#allocation6 + $0xb] sm:$0x4] %v3296_v40  ;;  %v3541_v40 = vld [vmem:[%s8031_s10 + $0x58] sm:$0xff]  ;;  %v3960_v53 = vld [vmem:[%s8036_s18 + $0x30] sm:$0xff] }
 0x612   : > { %v5915_v13 = vpop.eup %5914 }
 0x613   : > { %v3311_v22 = vmul.f32 %v5915_v13, %v7564_v12  ;;  %v3432_v12 = vld [vmem:[%s8029_s2] sm:$0xff] }
 0x614   : > { %v5479_v10 = vpack.c.bf16 %v3433_v32, %v3432_v12  ;;  %v3542_v13 = vld [vmem:[%s8031_s10 + $0x60] sm:$0xff]  ;;  %v3631_v32 = vld [vmem:[%s8032_s11 + $0x18] sm:$0xff] }
 0x615   : > { %3312 = vst [vmem:[#allocation6 + $0xa] sm:$0x10] %v3311_v22  ;;  %v5522_v22 = vpack.c.bf16 %v3541_v40, %v3540_v35  ;;  %v3962_v40 = vld [vmem:[%s8036_s18 + $0x40] sm:$0xff] }
 0x616   : > { %5480 = vmatpush3.bf16.msra.mxu0 %v5479_v10 }
 0x617   : > { %5481 = vmatprep.subr.bf16.mxu0 %v7877_v55 }
 0x61a   : > { %5483 = vmatpush3.bf16.msra.mxu0 %v5482_v36  ;;  %v5542_v36 = vpack.c.bf16 %v3633_v45, %v3632_v50 }
 0x61b   : > { %5484 = vmatprep.subr.bf16.mxu0 %v7877_v55 }
 0x61c   : > { %v7585_v27 = vld [vmem:[#allocation6 + $0x8] sm:$0xff] }
 0x61d   : > { %v3330_v57 = vadd.f32 %v7585_v27, %v7583_v49 }
 0x61e   : > { %5486 = vmatpush3.bf16.msra.mxu0 %v5485_v20  ;;  %v5546_v20 = vpack.c.bf16 %v3635_v61, %v3634_v25 }
 0x61f   : > { %v3331_v54 = vrot.slane %v3330_v57, 4  ;;  %5487 = vmatprep.subr.bf16.mxu0 %v7877_v55 }
 0x621   : > { %v3332_v4 = vadd.f32 %v3331_v54, %v3330_v57  ;;  %v3543_v57 = vld [vmem:[%s8031_s10 + $0x68] sm:$0xff] }
 0x622   : > { %5489 = vmatpush3.bf16.msra.mxu0 %v5488_v11  ;;  %v5526_v54 = vpack.c.bf16 %v3543_v57, %v3542_v13  ;;  %v5550_v11 = vpack.c.bf16 %v3637_v2, %v3636_v28  ;;  %v3963_v13 = vld [vmem:[%s8036_s18 + $0x48] sm:$0xff]  ;;  %v3964_v57 = vld [vmem:[%s8036_s18 + $0x50] sm:$0xff] }
 0x623   : > { %v3333_v19 = vrot.slane %v3332_v4, 2  ;;  %5490 = vmatprep.subr.bf16.mxu0 %v7877_v55 }
 0x625   : > { %v3334_v1 = vadd.f32 %v3333_v19, %v3332_v4  ;;  %v3544_v4 = vld [vmem:[%s8031_s10 + $0x70] sm:$0xff]  ;;  %v3545_v19 = vld [vmem:[%s8031_s10 + $0x78] sm:$0xff] }
 0x626   : > { %5492 = vmatpush3.bf16.msra.mxu0 %v5491_v24  ;;  %v5554_v24 = vpack.c.bf16 %v3639_v14, %v3638_v34 }
 0x627   : > { %v3335_v8 = vrot.slane %v3334_v1, 1  ;;  %5493 = vmatprep.subr.bf16.mxu0 %v7877_v55 }
 0x629   : > { %v3336_v30 = vadd.f32 %v3335_v8, %v3334_v1  ;;  %v5530_v1 = vpack.c.bf16 %v3545_v19, %v3544_v4  ;;  %v3628_v8 = vld [vmem:[%s8032_s11] sm:$0xff] }
 0x62a   : > { %5495 = vmatpush3.bf16.msra.mxu0 %v5494_v31  ;;  %v5558_v31 = vpack.c.bf16 %v3641_v38, %v3640_v5  ;;  %v3966_v19 = vld [vmem:[%s8036_s18 + $0x60] sm:$0xff] }
 0x62b   : > { %v3338_v9 = vmul.f32 0.0625, %v3336_v30  ;;  %5496 = vmatprep.subr.bf16.mxu0 %v7877_v55  ;;  %v3629_v30 = vld [vmem:[%s8032_s11 + $0x8] sm:$0xff] }
 0x62c   : > { %v5534_v12 = vpack.c.bf16 %v3629_v30, %v3628_v8  ;;  %v3968_v30 = vld [vmem:[%s8036_s18 + $0x70] sm:$0xff] }
 0x62d   : > { %5052 = vmatmul.mubr.f32.vlgmr.msra.gmra.mrb[10].mxu1 %v3338_v9  ;;  %v3630_v9 = vld [vmem:[%s8032_s11 + $0x10] sm:$0xff] }
 0x62e   : > { %5498 = vmatpush3.bf16.msra.mxu0 %v5497_v17  ;;  %5505 = vmatpush3.bf16.msra.mxu1 %v5502_v56  ;;  %v5538_v10 = vpack.c.bf16 %v3631_v32, %v3630_v9  ;;  %v3969_v9 = vld [vmem:[%s8036_s18 + $0x78] sm:$0xff]  ;;  %v4574_v32 = vld [vmem:[%s8037_s0] ss:$0 sm:$0xff]  ;;  %s8042_s0 = sld [smem:[#allocation23_spill]] }
 0x62f   : > { %5499 = vmatprep.subr.bf16.mxu0 %v7877_v55  ;;  %5507 = vmatprep.subr.bf16.mxu1 %v5506_v42 }
 0x632   : > { %5501 = vmatpush3.bf16.msra.mxu0 %v5500_v63  ;;  %5509 = vmatpush3.bf16.msra.mxu1 %v5506_v42  ;;  %v3955_v42 = vld [vmem:[%s8036_s18 + $0x8] sm:$0xff] }
 0x633   : > { %5511 = vmatprep.subr.bf16.mxu1 %v5510_v44  ;;  %5535 = vmatprep.subr.bf16.mxu0 %v5534_v12  ;;  %v5567_v48 = vpack.c.bf16 %v3955_v42, %v3954_v6  ;;  %v4579_v42 = vld [vmem:[%s8038_s26 + $0x4] ss:$0 sm:$0xff] }
 0x636   : > { %5513 = vmatpush3.bf16.msra.mxu1 %v5510_v44  ;;  %v3957_v44 = vld [vmem:[%s8036_s18 + $0x18] sm:$0xff] }
 0x637   : > { %5515 = vmatprep.subr.bf16.mxu1 %v5514_v47  ;;  %v5570_v18 = vpack.c.bf16 %v3957_v44, %v3956_v58  ;;  %v7694_v44 = vld [vmem:[%s8038_s26 + $0x5] ss:$0 sm:$0xff] }
 0x63a   : > { %5517 = vmatpush3.bf16.msra.mxu1 %v5514_v47  ;;  %v3959_v47 = vld [vmem:[%s8036_s18 + $0x28] sm:$0xff] }
 0x63b   : > { %5519 = vmatprep.subr.bf16.mxu1 %v5518_v21  ;;  %v5573_v60 = vpack.c.bf16 %v3959_v47, %v3958_v23 }
 0x63e   : > { %5521 = vmatpush3.bf16.msra.mxu1 %v5518_v21  ;;  %v3961_v21 = vld [vmem:[%s8036_s18 + $0x38] sm:$0xff] }
 0x63f   : > { %5523 = vmatprep.subr.bf16.mxu1 %v5522_v22  ;;  %v5576_v35 = vpack.c.bf16 %v3961_v21, %v3960_v53 }
 0x642   : > { %5525 = vmatpush3.bf16.msra.mxu1 %v5522_v22  ;;  %v5579_v22 = vpack.c.bf16 %v3963_v13, %v3962_v40 }
 0x643   : > { %5527 = vmatprep.subr.bf16.mxu1 %v5526_v54 }
 0x646   : > { %5529 = vmatpush3.bf16.msra.mxu1 %v5526_v54  ;;  %v3965_v54 = vld [vmem:[%s8036_s18 + $0x58] sm:$0xff] }
 0x647   : > { %5531 = vmatprep.subr.bf16.mxu1 %v5530_v1  ;;  %v5582_v4 = vpack.c.bf16 %v3965_v54, %v3964_v57 }
 0x64a   : > { %5533 = vmatpush3.bf16.msra.mxu1 %v5530_v1  ;;  %v3967_v1 = vld [vmem:[%s8036_s18 + $0x68] sm:$0xff] }
 0x64b   : > { %5566 = vmatprep.subr.bf16.mxu1 %v7877_v55  ;;  %v5585_v8 = vpack.c.bf16 %v3967_v1, %v3966_v19 }
 0x700   : > { %v3422_v29 = vpop.f32.mrb[10].mxu1 }
 0x701   : > { %v3423_v59 = vadd.f32 %v3422_v29, %v3355_v39  ;;  %v5053_v43 = vpop.f32.mrb[11].mxu1 }
 0x702   : > { %v8035_v43 = vld [vmem:[#allocation30_spill] sm:$0xff] }
 0x703   : > { %v3426_v0 = vsub.f32 0.0, %v3423_v59 }
 0x705   : > { %v3427_v33 = vmul.f32 1.442695, %v3426_v0 }
 0x707   : > { %5916 = vpow2.f32 %v3427_v33 }
 0x711   : > { %v5917_v7 = vpop.eup %5916 }
 0x712   : > { %v3429_v46 = vadd.f32 1.0, %v5917_v7 }
 0x714   : > { %5918 = vrcp.f32 %v3429_v46  ;;  %v7648_v46 = vld [vmem:[#allocation2] sm:$0xff] }
 0x71e   : > { %v5919_v16 = vpop.eup %5918 }
 0x71f   : > { %v3431_v15 = vmul.f32 %v5919_v16, %v3423_v59  ;;  %v3642_v16 = vld [vmem:[%s8032_s11 + $0x70] sm:$0xff] }
 0x721   : > { %5087 = vmatmul.mubr.f32.vlgmr.msra.gmra.mrb[18].mxu0 %v3431_v15  ;;  %v3643_v15 = vld [vmem:[%s8032_s11 + $0x78] sm:$0xff] }
 0x722   : > { %5537 = vmatpush3.bf16.msra.mxu0 %v5534_v12  ;;  %v5562_v26 = vpack.c.bf16 %v3643_v15, %v3642_v16  ;;  %v5588_v12 = vpack.c.bf16 %v3969_v9, %v3968_v30 }
 0x723   : > { %5539 = vmatprep.subr.bf16.mxu0 %v5538_v10 }
 0x726   : > { %5541 = vmatpush3.bf16.msra.mxu0 %v5538_v10 }
 0x727   : > { %5543 = vmatprep.subr.bf16.mxu0 %v5542_v36 }
 0x72a   : > { %5545 = vmatpush3.bf16.msra.mxu0 %v5542_v36 }
 0x72b   : > { %5547 = vmatprep.subr.bf16.mxu0 %v5546_v20 }
 0x72e   : > { %5549 = vmatpush3.bf16.msra.mxu0 %v5546_v20 }
 0x72f   : > { %5551 = vmatprep.subr.bf16.mxu0 %v5550_v11 }
 0x732   : > { %5553 = vmatpush3.bf16.msra.mxu0 %v5550_v11 }
 0x733   : > { %5555 = vmatprep.subr.bf16.mxu0 %v5554_v24 }
 0x736   : > { %5557 = vmatpush3.bf16.msra.mxu0 %v5554_v24 }
 0x737   : > { %5559 = vmatprep.subr.bf16.mxu0 %v5558_v31 }
 0x73a   : > { %5561 = vmatpush3.bf16.msra.mxu0 %v5558_v31 }
 0x73b   : > { %5563 = vmatprep.subr.bf16.mxu0 %v5562_v26 }
 0x73e   : > { %5565 = vmatpush3.bf16.msra.mxu0 %v5562_v26  ;;  %v4578_v26 = vld [vmem:[%s8038_s26 + $0x3] ss:$0 sm:$0xff] }
 0x73f   : > { %5590 = vmatprep.subr.bf16.mxu0 %v7877_v55 }
 0x7f4   : > { %v3515_v37 = vpop.f32.mrb[18].mxu0 }
 0x7f5   : > { %v3516_v17 = vadd.f32 %v3515_v37, %v3448_v3  ;;  %v5088_v41 = vpop.f32.mrb[19].mxu0  ;;  %v4575_v3 = vld [vmem:[%s8038_s26] ss:$0 sm:$0xff]  ;;  %v4576_v37 = vld [vmem:[%s8038_s26 + $0x1] ss:$0 sm:$0xff] }
 0x7f6   : > { %v3769_v41 = vld [vmem:[#allocation4 + $0x1] sm:$0xf] }
 0x7f7   : > { %v3519_v52 = vsub.f32 0.0, %v3516_v17  ;;  %v3752_v17 = vld [vmem:[#allocation4] sm:$0xf] }
 0x7f9   : > { %v3520_v63 = vmul.f32 1.442695, %v3519_v52  ;;  %v3761_v52 = vmul.f32 %v4575_v3, %v3752_v17 }
 0x7fb   : > { %5920 = vpow2.f32 %v3520_v63  ;;  %v3778_v63 = vmul.f32 %v4576_v37, %v3769_v41 }
 0x805   : > { %v5921_v39 = vpop.eup %5920 }
 0x806   : > { %v3522_v29 = vadd.f32 1.0, %v5921_v39  ;;  %v4577_v39 = vld [vmem:[%s8038_s26 + $0x2] ss:$0 sm:$0xff] }
 0x808   : > { %5922 = vrcp.f32 %v3522_v29  ;;  %v3786_v29 = vld [vmem:[#allocation4 + $0x2] sm:$0xf] }
 0x812   : > { %v5923_v59 = vpop.eup %5922 }
 0x813   : > { %v3527_v0 = vrot.slane %v5923_v59, %v8035_v43 }
 0x815   : > { %v3528_v33 = vmul.f32 %v3527_v0, %v7583_v49  ;;  %v3529_v7 = vmul.f32 %v3527_v0, %v7585_v27  ;;  %v4573_v49 = vld [vmem:[%s8034_s16] ss:$0 sm:$0xff]  ;;  %s8041_s16 = sld [smem:[#allocation20_spill]] }
 0x817   : > { %5121 = vmatprep.mubr.f32.mxu1 %v3528_v33 }
 0x818   : > { %5122 = vmatmul.mubr.f32.vlgmr.msra.gmra.mrb[12].mxu1 %v3529_v7 }
 0x819   : > { %5191 = vmatprep.mubr.msk.f32.mxu1 %vm6011_vm1, %v7648_v46  ;;  %5568 = vmatpush3.bf16.msra.mxu1 %v5567_v48 }
 0x81a   : > { %5569 = vmatprep.subr.bf16.mxu1 %v7877_v55 }
 0x81d   : > { %5571 = vmatpush3.bf16.msra.mxu1 %v5570_v18  ;;  %v3857_v18 = vld [vmem:[#allocation4 + $0x28] sm:$0xf] }
 0x81e   : > { %5572 = vmatprep.subr.bf16.mxu1 %v7877_v55 }
 0x821   : > { %5574 = vmatpush3.bf16.msra.mxu1 %v5573_v60  ;;  %v7697_v60 = vld [vmem:[%s8038_s26 + $0x6] ss:$0 sm:$0xff] }
 0x822   : > { %5575 = vmatprep.subr.bf16.mxu1 %v7877_v55 }
 0x825   : > { %5577 = vmatpush3.bf16.msra.mxu1 %v5576_v35 }
 0x826   : > { %5578 = vmatprep.subr.bf16.mxu1 %v7877_v55 }
 0x829   : > { %5580 = vmatpush3.bf16.msra.mxu1 %v5579_v22 }
 0x82a   : > { %5581 = vmatprep.subr.bf16.mxu1 %v7877_v55 }
 0x82d   : > { %5583 = vmatpush3.bf16.msra.mxu1 %v5582_v4 }
 0x82e   : > { %5584 = vmatprep.subr.bf16.mxu1 %v7877_v55 }
 0x831   : > { %5586 = vmatpush3.bf16.msra.mxu1 %v5585_v8 }
 0x832   : > { %5587 = vmatprep.subr.bf16.mxu1 %v7877_v55 }
 0x835   : > { %5589 = vmatpush3.bf16.msra.mxu1 %v5588_v12 }
 0x8eb   : > { %v5123_v27 = vpop.f32.mrb[12].mxu1 }
 0x8ec   : > { %v3619_v62 = vpop.f32.mrb[13].mxu1  ;;  %v7658_v51 = vadd.f32 %v5123_v27, %v4573_v49  ;;  %v3795_v27 = vmul.f32 %v4577_v39, %v3786_v29 }
 0x8ed   : > { %v7656_v56 = vadd.f32 %v4573_v49, %v3619_v62  ;;  %v3782_v49 = vadd.f32 %v3778_v63, %v3761_v52 }
 0x8ef   : > { %5156 = vmatprep.mubr.f32.mxu0 %v7656_v56  ;;  %v3799_v19 = vadd.f32 %v3795_v27, %v3782_v49 }
 0x8f0   : > { %5157 = vmatmul.mubr.f32.vlgmr.msra.gmra.mrb[20].mxu0 %v7658_v51 }
 0x8f1   : > { %5226 = vmatprep.mubr.msk.f32.mxu0 %vm6011_vm1, %v7648_v46 }
 0x9c3   : > { %v5158_v10 = vpop.f32.mrb[20].mxu0 }
 0x9c4   : > { %v3723_v50 = vadd.f32 %v5158_v10, %v4574_v32  ;;  %v3717_v45 = vpop.f32.mrb[21].mxu0 }
 0x9c5   : > { %v3718_v36 = vadd.f32 %v4574_v32, %v3717_v45  ;;  %v3874_v45 = vld [vmem:[#allocation4 + $0x29] sm:$0xf] }
 0x9c6   : > { %v3727_v25 = vsub.f32 0.0, %v3723_v50 }
 0x9c7   : > { %v3726_v61 = vsub.f32 0.0, %v3718_v36 }
 0x9c8   : > { %v3730_v20 = vmul.f32 1.442695, %v3727_v25 }
 0x9c9   : > { %v3728_v28 = vmul.f32 1.442695, %v3726_v61 }
 0x9ca   : > { %5924 = vpow2.f32 %v3730_v20 }
 0x9cb   : > { %5926 = vpow2.f32 %v3728_v28 }
 0x9d4   : > { %v5925_v2 = vpop.eup %5924 }
 0x9d5   : > { %v5927_v11 = vpop.eup %5926  ;;  %v3733_v34 = vadd.f32 1.0, %v5925_v2 }
 0x9d6   : > { %v3732_v14 = vadd.f32 1.0, %v5927_v11 }
 0x9d7   : > { %5928 = vrcp.f32 %v3733_v34 }
 0x9d8   : > { %5930 = vrcp.f32 %v3732_v14 }
 0x9e1   : > { %v5929_v24 = vpop.eup %5928 }
 0x9e2   : > { %v5931_v5 = vpop.eup %5930  ;;  %v3737_v38 = vmul.f32 %v5929_v24, %v3723_v50  ;;  %v3866_v50 = vmul.f32 %v7697_v60, %v3857_v18 }
 0x9e3   : > { %v3736_v31 = vmul.f32 %v5931_v5, %v3718_v36  ;;  %v4582_v5 = vld [vmem:[%s8038_s26 + $0x7] ss:$0 sm:$0xff] }
 0x9e4   : > { %3749 = vst [vmem:[#allocation4 + $0x19] ss:$8 sps:$4 sm:$0xff] %v3737_v38   ;;  %v3891_v38 = vld [vmem:[#allocation4 + $0x2a] sm:$0xf]  ;;  %v3883_v63 = vmul.f32 %v4582_v5, %v3874_v45 }
 0x9e5   : > { %3745 = vst [vmem:[#allocation4 + $0x9] ss:$8 sps:$4 sm:$0xff] %v3736_v31  }
 0x9eb   : > { %v3755_v59 = vld [vmem:[#allocation4 + $0x18] sm:$0xf]  ;;  %v3806_v15 = vld [vmem:[#allocation4 + $0x20] sm:$0xf] }
 0x9ec   : > { %v3772_v0 = vld [vmem:[#allocation4 + $0x19] sm:$0xf]  ;;  %v3764_v7 = vmul.f32 %v4575_v3, %v3755_v59  ;;  %v3823_v48 = vld [vmem:[#allocation4 + $0x21] sm:$0xf]  ;;  %v3815_v47 = vmul.f32 %v4578_v26, %v3806_v15  ;;  %v3753_v53 = vld [vmem:[#allocation4 + $0x8] sm:$0xf] }
 0x9ed   : > { %v3789_v33 = vld [vmem:[#allocation4 + $0x1a] sm:$0xf]  ;;  %v3781_v16 = vmul.f32 %v4576_v37, %v3772_v0  ;;  %v3840_v58 = vld [vmem:[#allocation4 + $0x22] sm:$0xf]  ;;  %v3754_v21 = vld [vmem:[#allocation4 + $0x10] sm:$0xf]  ;;  %v3762_v40 = vmul.f32 %v4575_v3, %v3753_v53  ;;  %v3832_v8 = vmul.f32 %v4579_v42, %v3823_v48 }
 0x9ee   : > { %v3798_v6 = vmul.f32 %v4577_v39, %v3789_v33  ;;  %v3770_v35 = vld [vmem:[#allocation4 + $0x9] sm:$0xf]  ;;  %v3763_v13 = vmul.f32 %v4575_v3, %v3754_v21  ;;  %v3771_v22 = vld [vmem:[#allocation4 + $0x11] sm:$0xf]  ;;  %v3805_v10 = vld [vmem:[#allocation4 + $0x18] sm:$0xf]  ;;  %v3849_v28 = vmul.f32 %v7694_v44, %v3840_v58 }
 0x9ef   : > { %v3785_v62 = vadd.f32 %v3781_v16, %v3764_v7  ;;  %v3779_v57 = vmul.f32 %v4576_v37, %v3770_v35  ;;  %v3787_v54 = vld [vmem:[#allocation4 + $0xa] sm:$0xf]  ;;  %v3788_v4 = vld [vmem:[#allocation4 + $0x12] sm:$0xf]  ;;  %v3780_v30 = vmul.f32 %v4576_v37, %v3771_v22  ;;  %v3822_v24 = vld [vmem:[#allocation4 + $0x19] sm:$0xf]  ;;  %v3814_v41 = vmul.f32 %v4578_v26, %v3805_v10 }
 0x9f0   : > { %v3803_v9 = vld [vmem:[#allocation4 + $0x8] sm:$0xf]  ;;  %v3804_v12 = vld [vmem:[#allocation4 + $0x10] sm:$0xf]  ;;  %v3796_v25 = vmul.f32 %v4577_v39, %v3787_v54  ;;  %v3797_v11 = vmul.f32 %v4577_v39, %v3788_v4  ;;  %v3839_v33 = vld [vmem:[#allocation4 + $0x1a] sm:$0xf]  ;;  %v3831_v27 = vmul.f32 %v4579_v42, %v3822_v24 }
 0x9f1   : > { %v3802_v23 = vadd.f32 %v3798_v6, %v3785_v62  ;;  %v3820_v32 = vld [vmem:[#allocation4 + $0x9] sm:$0xf]  ;;  %v3783_v36 = vadd.f32 %v3779_v57, %v3762_v40  ;;  %v3812_v61 = vmul.f32 %v4578_v26, %v3803_v9  ;;  %v3784_v2 = vadd.f32 %v3780_v30, %v3763_v13  ;;  %v3821_v34 = vld [vmem:[#allocation4 + $0x11] sm:$0xf]  ;;  %v4583_v7 = vld [vmem:[%s8038_s26 + $0x8] ss:$0 sm:$0xff] }
 0x9f2   : > { %v3837_v14 = vld [vmem:[#allocation4 + $0xa] sm:$0xf]  ;;  %v3813_v3 = vmul.f32 %v4578_v26, %v3804_v12  ;;  %v3829_v17 = vmul.f32 %v4579_v42, %v3820_v32  ;;  %v3838_v59 = vld [vmem:[#allocation4 + $0x12] sm:$0xf]  ;;  %v3830_v39 = vmul.f32 %v4579_v42, %v3821_v34  ;;  %v3855_v62 = vld [vmem:[#allocation4 + $0x18] sm:$0xf]  ;;  %v3900_v48 = vmul.f32 %v4583_v7, %v3891_v38 }
 0x9f3   : > { %v3819_v1 = vadd.f32 %v3815_v47, %v3802_v23  ;;  %v3800_v31 = vadd.f32 %v3796_v25, %v3783_v36  ;;  %v3816_v37 = vadd.f32 %v3812_v61, %v3799_v19  ;;  %v3801_v29 = vadd.f32 %v3797_v11, %v3784_v2  ;;  %v3854_v0 = vld [vmem:[#allocation4 + $0x10] sm:$0xf]  ;;  %v3856_v23 = vld [vmem:[#allocation4 + $0x20] sm:$0xf]  ;;  %v3872_v40 = vld [vmem:[#allocation4 + $0x19] sm:$0xf] }
 0x9f4   : > { %v3846_v49 = vmul.f32 %v7694_v44, %v3837_v14  ;;  %v3871_v18 = vld [vmem:[#allocation4 + $0x11] sm:$0xf]  ;;  %v3847_v47 = vmul.f32 %v7694_v44, %v3838_v59  ;;  %v3863_v21 = vmul.f32 %v7697_v60, %v3854_v0  ;;  %v3848_v35 = vmul.f32 %v7694_v44, %v3839_v33  ;;  %v3873_v54 = vld [vmem:[#allocation4 + $0x21] sm:$0xf]  ;;  %v3889_v30 = vld [vmem:[#allocation4 + $0x1a] sm:$0xf] }
 0x9f5   : > { %v3836_v20 = vadd.f32 %v3832_v8, %v3819_v1  ;;  %v3817_v16 = vadd.f32 %v3813_v3, %v3800_v31  ;;  %v3833_v15 = vadd.f32 %v3829_v17, %v3816_v37  ;;  %v3818_v58 = vadd.f32 %v3814_v41, %v3801_v29  ;;  %v3888_v57 = vld [vmem:[#allocation4 + $0x12] sm:$0xf]  ;;  %v3890_v10 = vld [vmem:[#allocation4 + $0x22] sm:$0xf]  ;;  %v4584_v36 = vld [vmem:[%s8039_s7] ss:$0 sm:$0xff] }
 0x9f6   : > { %v3864_v42 = vmul.f32 %v7697_v60, %v3855_v62  ;;  %v3880_v1 = vmul.f32 %v4582_v5, %v3871_v18  ;;  %v3865_v8 = vmul.f32 %v7697_v60, %v3856_v23  ;;  %v3881_v32 = vmul.f32 %v4582_v5, %v3872_v40  ;;  %s8043_s7 = sld [smem:[#allocation25_spill]] }
 0x9f7   : > { %v3853_v52 = vadd.f32 %v3849_v28, %v3836_v20  ;;  %v3834_v26 = vadd.f32 %v3830_v39, %v3817_v16  ;;  %v3850_v53 = vadd.f32 %v3846_v49, %v3833_v15  ;;  %v3835_v22 = vadd.f32 %v3831_v27, %v3818_v58 }
 0x9f8   : > { %v3897_v45 = vmul.f32 %v4583_v7, %v3888_v57  ;;  %v3882_v25 = vmul.f32 %v4582_v5, %v3873_v54  ;;  %v3898_v28 = vmul.f32 %v4583_v7, %v3889_v30  ;;  %v3899_v34 = vmul.f32 %v4583_v7, %v3890_v10  ;;  %v4049_v30 = vld [vmem:[%s8040_s15 + $0x10] sm:$0xff]  ;;  %v4052_v10 = vld [vmem:[%s8040_s15 + $0x28] sm:$0xff] }
 0x9f9   : > { %v3870_v6 = vadd.f32 %v3866_v50, %v3853_v52  ;;  %v3851_v4 = vadd.f32 %v3847_v47, %v3834_v26  ;;  %v3867_v19 = vadd.f32 %v3863_v21, %v3850_v53  ;;  %v3852_v12 = vadd.f32 %v3848_v35, %v3835_v22 }
 0x9fb   : > { %v3887_v13 = vadd.f32 %v3883_v63, %v3870_v6  ;;  %v3868_v50 = vadd.f32 %v3864_v42, %v3851_v4  ;;  %v3884_v44 = vadd.f32 %v3880_v1, %v3867_v19  ;;  %v3869_v61 = vadd.f32 %v3865_v8, %v3852_v12  ;;  %v4047_v19 = vld [vmem:[%s8040_s15] sm:$0xff]  ;;  %v4048_v1 = vld [vmem:[%s8040_s15 + $0x8] sm:$0xff] }
 0x9fc   : > { %v5591_v8 = vpack.c.bf16 %v4048_v1, %v4047_v19  ;;  %v4245_v1 = vld [vmem:[%s8043_s7] sm:$0xff] }
 0x9fd   : > { %v3904_v9 = vadd.f32 %v3900_v48, %v3887_v13  ;;  %v3885_v2 = vadd.f32 %v3881_v32, %v3868_v50  ;;  %v3901_v11 = vadd.f32 %v3897_v45, %v3884_v44  ;;  %v3886_v14 = vadd.f32 %v3882_v25, %v3869_v61  ;;  %v4051_v32 = vld [vmem:[%s8040_s15 + $0x20] sm:$0xff]  ;;  %v4053_v44 = vld [vmem:[%s8040_s15 + $0x30] sm:$0xff]  ;;  %v4054_v45 = vld [vmem:[%s8040_s15 + $0x38] sm:$0xff] }
 0x9fe   : > { %5592 = vmatpush3.bf16.msra.mxu0 %v5591_v8  ;;  %v5597_v50 = vpack.c.bf16 %v4052_v10, %v4051_v32  ;;  %v4055_v25 = vld [vmem:[%s8040_s15 + $0x40] sm:$0xff]  ;;  %v4056_v61 = vld [vmem:[%s8040_s15 + $0x48] sm:$0xff] }
 0x9ff   : > { %v3915_v20 = vadd.f32 %v4584_v36, %v3904_v9  ;;  %v3902_v38 = vadd.f32 %v3898_v28, %v3885_v2  ;;  %v3912_v60 = vadd.f32 %v4584_v36, %v3901_v11  ;;  %v3903_v31 = vadd.f32 %v3899_v34, %v3886_v14  ;;  %5593 = vmatprep.subr.bf16.mxu0 %v7877_v55  ;;  %v4050_v9 = vld [vmem:[%s8040_s15 + $0x18] sm:$0xff]  ;;  %v4057_v28 = vld [vmem:[%s8040_s15 + $0x50] sm:$0xff]  ;;  %v4059_v34 = vld [vmem:[%s8040_s15 + $0x60] sm:$0xff] }
 0xa00   : > { %v5594_v12 = vpack.c.bf16 %v4050_v9, %v4049_v30  ;;  %v4058_v2 = vld [vmem:[%s8040_s15 + $0x58] sm:$0xff]  ;;  %v4060_v14 = vld [vmem:[%s8040_s15 + $0x68] sm:$0xff]  ;;  %v4247_v30 = vld [vmem:[%s8043_s7 + $0x10] sm:$0xff] }
 0xa01   : > { %v3919_v24 = vsub.f32 0.0, %v3915_v20  ;;  %v3913_v37 = vadd.f32 %v4584_v36, %v3902_v38  ;;  %v3916_v17 = vsub.f32 0.0, %v3912_v60  ;;  %v3914_v41 = vadd.f32 %v4584_v36, %v3903_v31  ;;  %v4061_v38 = vld [vmem:[%s8040_s15 + $0x70] sm:$0xff]  ;;  %v4246_v8 = vld [vmem:[%s8043_s7 + $0x8] sm:$0xff]  ;;  %v4249_v10 = vld [vmem:[%s8043_s7 + $0x20] sm:$0xff] }
 0xa02   : > { %5595 = vmatpush3.bf16.msra.mxu0 %v5594_v12  ;;  %v5600_v36 = vpack.c.bf16 %v4054_v45, %v4053_v44  ;;  %v5606_v11 = vpack.c.bf16 %v4058_v2, %v4057_v28  ;;  %v5646_v9 = vpack.c.bf16 %v4246_v8, %v4245_v1  ;;  %v4248_v12 = vld [vmem:[%s8043_s7 + $0x18] sm:$0xff]  ;;  %v4251_v45 = vld [vmem:[%s8043_s7 + $0x30] sm:$0xff] }
 0xa03   : > { %v3926_v3 = vmul.f32 1.442695, %v3919_v24  ;;  %v3917_v52 = vsub.f32 0.0, %v3913_v37  ;;  %v3920_v63 = vmul.f32 1.442695, %v3916_v17  ;;  %v3918_v29 = vsub.f32 0.0, %v3914_v41  ;;  %5596 = vmatprep.subr.bf16.mxu0 %v7877_v55 }
 0xa04   : > { %v5609_v24 = vpack.c.bf16 %v4060_v14, %v4059_v34  ;;  %v5650_v32 = vpack.c.bf16 %v4248_v12, %v4247_v30  ;;  %v4255_v2 = vld [vmem:[%s8043_s7 + $0x50] sm:$0xff]  ;;  %v4257_v14 = vld [vmem:[%s8043_s7 + $0x60] sm:$0xff]  ;;  %v4378_v30 = vld [vmem:[%s6185_s4 + $0x78] sm:$0xff] }
 0xa05   : > { %5932 = vpow2.f32 %v3926_v3  ;;  %v3922_v5 = vmul.f32 1.442695, %v3917_v52  ;;  %v3924_v59 = vmul.f32 1.442695, %v3918_v29  ;;  %v3970_v3 = vld [vmem:[%s8041_s16] sm:$0x1] }
 0xa06   : > { %5934 = vpow2.f32 %v3920_v63  ;;  %5598 = vmatpush3.bf16.msra.mxu0 %v5597_v50  ;;  %v4250_v50 = vld [vmem:[%s8043_s7 + $0x28] sm:$0xff]  ;;  %s8044_s16 = sld [smem:[#allocation22_spill]]  ;;  %v4377_v8 = vld [vmem:[%s6185_s4 + $0x70] sm:$0xff]  ;;  %v4586_v12 = vld [vmem:[%s6180_s27] ss:$0 sm:$0xff] }
 0xa07   : > { %5936 = vpow2.f32 %v3922_v5  ;;  %5599 = vmatprep.subr.bf16.mxu0 %v7877_v55  ;;  %v5654_v44 = vpack.c.bf16 %v4250_v50, %v4249_v10 }
 0xa08   : > { %5938 = vpow2.f32 %v3924_v59 }
 0xa0a   : > { %5601 = vmatpush3.bf16.msra.mxu0 %v5600_v36  ;;  %v4252_v36 = vld [vmem:[%s8043_s7 + $0x38] sm:$0xff] }
 0xa0b   : > { %5602 = vmatprep.subr.bf16.mxu0 %v7877_v55 }
 0xa0f   : > { %v5933_v0 = vpop.eup %5932 }
 0xa10   : > { %v3931_v33 = vadd.f32 1.0, %v5933_v0  ;;  %v5935_v7 = vpop.eup %5934 }
 0xa11   : > { %v3928_v16 = vadd.f32 1.0, %v5935_v7  ;;  %v5937_v39 = vpop.eup %5936  ;;  %v4146_v7 = vld [vmem:[%s8042_s0 + $0x8] sm:$0xff] }
 0xa12   : > { %5940 = vrcp.f32 %v3931_v33  ;;  %v5939_v15 = vpop.eup %5938  ;;  %v3929_v49 = vadd.f32 1.0, %v5937_v39  ;;  %v4145_v33 = vld [vmem:[%s8042_s0] sm:$0xff]  ;;  %v4147_v39 = vld [vmem:[%s8042_s0 + $0x10] sm:$0xff] }
 0xa13   : > { %5942 = vrcp.f32 %v3928_v16  ;;  %v3930_v27 = vadd.f32 1.0, %v5939_v15  ;;  %v5614_v16 = vpack.c.bf16 %v4146_v7, %v4145_v33  ;;  %v4148_v15 = vld [vmem:[%s8042_s0 + $0x18] sm:$0xff]  ;;  %v4259_v33 = vld [vmem:[%s8043_s7 + $0x70] sm:$0xff] }
 0xa14   : > { %5944 = vrcp.f32 %v3929_v49  ;;  %v5618_v49 = vpack.c.bf16 %v4148_v15, %v4147_v39  ;;  %v4260_v7 = vld [vmem:[%s8043_s7 + $0x78] sm:$0xff] }
 0xa15   : > { %5946 = vrcp.f32 %v3930_v27  ;;  %5615 = vmatprep.subr.bf16.mxu1 %v5614_v16  ;;  %v4149_v27 = vld [vmem:[%s8042_s0 + $0x20] sm:$0xff] }
 0xa1c   : > { %v5941_v62 = vpop.eup %5940 }
 0xa1d   : > { %v3939_v6 = vmul.f32 %v5941_v62, %v3915_v20  ;;  %v5943_v48 = vpop.eup %5942  ;;  %v5603_v20 = vpack.c.bf16 %v4056_v61, %v4055_v25  ;;  %v4150_v62 = vld [vmem:[%s8042_s0 + $0x28] sm:$0xff]  ;;  %v5658_v25 = vpack.c.bf16 %v4252_v36, %v4251_v45  ;;  %v4253_v61 = vld [vmem:[%s8043_s7 + $0x40] sm:$0xff] }
 0xa1e   : > { %v3936_v58 = vmul.f32 %v5943_v48, %v3912_v60  ;;  %v5945_v18 = vpop.eup %5944  ;;  %v4062_v60 = vld [vmem:[%s8040_s15 + $0x78] sm:$0xff]  ;;  %v4151_v48 = vld [vmem:[%s8042_s0 + $0x30] sm:$0xff] }
 0xa1f   : > { %3943 = vst [vmem:[#allocation7 + $0xc] sm:$0xf] %v3939_v6  ;;  %v5947_v23 = vpop.eup %5946  ;;  %v3937_v26 = vmul.f32 %v5945_v18, %v3913_v37  ;;  %5604 = vmatpush3.bf16.msra.mxu0 %v5603_v20  ;;  %v5612_v31 = vpack.c.bf16 %v4062_v60, %v4061_v38  ;;  %v5622_v6 = vpack.c.bf16 %v4150_v62, %v4149_v27  ;;  %v4254_v20 = vld [vmem:[%s8043_s7 + $0x48] sm:$0xff]  ;;  %v4063_v60 = vld [vmem:[%s8044_s16] sm:$0x1] }
 0xa20   : > { %3940 = vst [vmem:[#allocation7] sm:$0xf] %v3936_v58  ;;  %v3938_v47 = vmul.f32 %v5947_v23, %v3914_v41  ;;  %5605 = vmatprep.subr.bf16.mxu0 %v7877_v55  ;;  %v4152_v58 = vld [vmem:[%s8042_s0 + $0x38] sm:$0xff]  ;;  %v4153_v23 = vld [vmem:[%s8042_s0 + $0x40] sm:$0xff]  ;;  %v5662_v28 = vpack.c.bf16 %v4254_v20, %v4253_v61  ;;  %v4364_v62 = vld [vmem:[%s6185_s4 + $0x8] sm:$0xff] }
 0xa21   : > { %3941 = vst [vmem:[#allocation7 + $0x4] sm:$0xf] %v3937_v26  ;;  %v5626_v18 = vpack.c.bf16 %v4152_v58, %v4151_v48  ;;  %v4154_v26 = vld [vmem:[%s8042_s0 + $0x48] sm:$0xff]  ;;  %v4365_v48 = vld [vmem:[%s6185_s4 + $0x10] sm:$0xff]  ;;  %v4366_v58 = vld [vmem:[%s6185_s4 + $0x18] sm:$0xff] }
 0xa22   : > { %3942 = vst [vmem:[#allocation7 + $0x8] sm:$0xf] %v3938_v47  ;;  %v4155_v47 = vld [vmem:[%s8042_s0 + $0x50] sm:$0xff] }
 0xa23   : > { %5607 = vmatpush3.bf16.msra.mxu0 %v5606_v11  ;;  %v4256_v11 = vld [vmem:[%s8043_s7 + $0x58] sm:$0xff] }
 0xa24   : > { %5608 = vmatprep.subr.bf16.mxu0 %v7877_v55  ;;  %v5666_v34 = vpack.c.bf16 %v4256_v11, %v4255_v2 }
 0xa27   : > { %5610 = vmatpush3.bf16.msra.mxu0 %v5609_v24  ;;  %v4258_v24 = vld [vmem:[%s8043_s7 + $0x68] sm:$0xff] }
 0xa28   : > { %v7710_v53 = vld [vmem:[#allocation7] sm:$0xff]  ;;  %5611 = vmatprep.subr.bf16.mxu0 %v7877_v55  ;;  %v5670_v38 = vpack.c.bf16 %v4258_v24, %v4257_v14 }
 0xa29   : > { %v7712_v21 = vld [vmem:[#allocation7 + $0x8] sm:$0xff] }
 0xa2a   : > { %v3946_v35 = vadd.f32 %v7712_v21, %v7710_v53 }
 0xa2b   : > { %5613 = vmatpush3.bf16.msra.mxu0 %v5612_v31 }
 0xa2c   : > { %v3947_v40 = vrot.slane %v3946_v35, 4  ;;  %5647 = vmatprep.subr.bf16.mxu0 %v5646_v9 }
 0xa2e   : > { %v3948_v13 = vadd.f32 %v3947_v40, %v3946_v35  ;;  %v5630_v35 = vpack.c.bf16 %v4154_v26, %v4153_v23  ;;  %v4156_v40 = vld [vmem:[%s8042_s0 + $0x58] sm:$0xff]  ;;  %v4369_v26 = vld [vmem:[%s6185_s4 + $0x30] sm:$0xff] }
 0xa30   : > { %v3949_v22 = vrot.slane %v3948_v13, 2 }
 0xa32   : > { %v3950_v57 = vadd.f32 %v3949_v22, %v3948_v13  ;;  %v5634_v13 = vpack.c.bf16 %v4156_v40, %v4155_v47  ;;  %v4157_v22 = vld [vmem:[%s8042_s0 + $0x60] sm:$0xff]  ;;  %v4370_v47 = vld [vmem:[%s6185_s4 + $0x38] sm:$0xff] }
 0xa33   : > { %v4371_v40 = vld [vmem:[%s6185_s4 + $0x40] sm:$0xff] }
 0xa34   : > { %v3951_v42 = vrot.slane %v3950_v57, 1 }
 0xa36   : > { %v3952_v54 = vadd.f32 %v3951_v42, %v3950_v57  ;;  %v4158_v57 = vld [vmem:[%s8042_s0 + $0x68] sm:$0xff] }
 0xa37   : > { %v5638_v42 = vpack.c.bf16 %v4158_v57, %v4157_v22  ;;  %v4373_v57 = vld [vmem:[%s6185_s4 + $0x50] sm:$0xff] }
 0xa38   : > { %v3953_v4 = vmul.f32 0.0625, %v3952_v54  ;;  %v4159_v54 = vld [vmem:[%s8042_s0 + $0x70] sm:$0xff] }
 0xa3a   : > { %5192 = vmatmul.mubr.f32.vlgmr.msra.gmra.mrb[14].mxu1 %v3953_v4  ;;  %v4160_v4 = vld [vmem:[%s8042_s0 + $0x78] sm:$0xff]  ;;  %s8045_s0 = sld [smem:[#allocation24_spill]] }
 0xa3b   : > { %5617 = vmatpush3.bf16.msra.mxu1 %v5614_v16  ;;  %v5642_v19 = vpack.c.bf16 %v4160_v4, %v4159_v54  ;;  %v5674_v16 = vpack.c.bf16 %v4260_v7, %v4259_v33  ;;  %v4375_v4 = vld [vmem:[%s6185_s4 + $0x60] sm:$0xff] }
 0xa3c   : > { %5619 = vmatprep.subr.bf16.mxu1 %v5618_v49 }
 0xa3f   : > { %5621 = vmatpush3.bf16.msra.mxu1 %v5618_v49 }
 0xa40   : > { %5623 = vmatprep.subr.bf16.mxu1 %v5622_v6  ;;  %v4585_v39 = vld [vmem:[%s8045_s0] ss:$0 sm:$0xff]  ;;  %s1066_s0 = scalar_lea.vmem %s6195_s20, %s8047_s23 }
 0xa43   : > { %5625 = vmatpush3.bf16.msra.mxu1 %v5622_v6 }
 0xa44   : > { %5627 = vmatprep.subr.bf16.mxu1 %v5626_v18 }
 0xa47   : > { %5629 = vmatpush3.bf16.msra.mxu1 %v5626_v18  ;;  %v5682_v18 = vpack.c.bf16 %v4366_v58, %v4365_v48 }
 0xa48   : > { %5631 = vmatprep.subr.bf16.mxu1 %v5630_v35 }
 0xa4b   : > { %5633 = vmatpush3.bf16.msra.mxu1 %v5630_v35  ;;  %v5688_v35 = vpack.c.bf16 %v4370_v47, %v4369_v26 }
 0xa4c   : > { %5635 = vmatprep.subr.bf16.mxu1 %v5634_v13 }
 0xa4f   : > { %5637 = vmatpush3.bf16.msra.mxu1 %v5634_v13  ;;  %v4372_v13 = vld [vmem:[%s6185_s4 + $0x48] sm:$0xff] }
 0xa50   : > { %5639 = vmatprep.subr.bf16.mxu1 %v5638_v42  ;;  %v5691_v22 = vpack.c.bf16 %v4372_v13, %v4371_v40 }
 0xa53   : > { %5641 = vmatpush3.bf16.msra.mxu1 %v5638_v42  ;;  %v4374_v42 = vld [vmem:[%s6185_s4 + $0x58] sm:$0xff] }
 0xa54   : > { %5643 = vmatprep.subr.bf16.mxu1 %v5642_v19  ;;  %v5694_v54 = vpack.c.bf16 %v4374_v42, %v4373_v57 }
 0xa57   : > { %5645 = vmatpush3.bf16.msra.mxu1 %v5642_v19  ;;  %v4376_v19 = vld [vmem:[%s6185_s4 + $0x68] sm:$0xff] }
 0xa58   : > { %5678 = vmatprep.subr.bf16.mxu1 %v7877_v55  ;;  %v5697_v1 = vpack.c.bf16 %v4376_v19, %v4375_v4 }
 0xb0d   : > { %v4037_v37 = vpop.f32.mrb[14].mxu1 }
 0xb0e   : > { %v4038_v17 = vadd.f32 %v4037_v37, %v3970_v3  ;;  %v5193_v41 = vpop.f32.mrb[15].mxu1 }
 0xb10   : > { %v4041_v52 = vsub.f32 0.0, %v4038_v17 }
 0xb12   : > { %v4042_v63 = vmul.f32 1.442695, %v4041_v52 }
 0xb14   : > { %5948 = vpow2.f32 %v4042_v63 }
 0xb1e   : > { %v5949_v29 = vpop.eup %5948 }
 0xb1f   : > { %v4044_v5 = vadd.f32 1.0, %v5949_v29 }
 0xb21   : > { %5950 = vrcp.f32 %v4044_v5 }
 0xb2b   : > { %v5951_v59 = vpop.eup %5950 }
 0xb2c   : > { %v4046_v0 = vmul.f32 %v5951_v59, %v4038_v17 }
 0xb2e   : > { %5227 = vmatmul.mubr.f32.vlgmr.msra.gmra.mrb[22].mxu0 %v4046_v0 }
 0xb2f   : > { %5649 = vmatpush3.bf16.msra.mxu0 %v5646_v9  ;;  %v5700_v9 = vpack.c.bf16 %v4378_v30, %v4377_v8 }
 0xb30   : > { %5651 = vmatprep.subr.bf16.mxu0 %v5650_v32 }
 0xb33   : > { %5653 = vmatpush3.bf16.msra.mxu0 %v5650_v32 }
 0xb34   : > { %5655 = vmatprep.subr.bf16.mxu0 %v5654_v44 }
 0xb37   : > { %5657 = vmatpush3.bf16.msra.mxu0 %v5654_v44 }
 0xb38   : > { %5659 = vmatprep.subr.bf16.mxu0 %v5658_v25 }
 0xb3b   : > { %5661 = vmatpush3.bf16.msra.mxu0 %v5658_v25 }
 0xb3c   : > { %5663 = vmatprep.subr.bf16.mxu0 %v5662_v28 }
 0xb3f   : > { %5665 = vmatpush3.bf16.msra.mxu0 %v5662_v28 }
 0xb40   : > { %5667 = vmatprep.subr.bf16.mxu0 %v5666_v34 }
 0xb43   : > { %5669 = vmatpush3.bf16.msra.mxu0 %v5666_v34 }
 0xb44   : > { %5671 = vmatprep.subr.bf16.mxu0 %v5670_v38 }
 0xb47   : > { %5673 = vmatpush3.bf16.msra.mxu0 %v5670_v38 }
 0xb48   : > { %5675 = vmatprep.subr.bf16.mxu0 %v5674_v16 }
 0xb4b   : > { %5677 = vmatpush3.bf16.msra.mxu0 %v5674_v16 }
 0xc01   : > { %v4130_v31 = vpop.f32.mrb[22].mxu0 }
 0xc02   : > { %v4131_v3 = vadd.f32 %v4130_v31, %v4063_v60  ;;  %v5228_v37 = vpop.f32.mrb[23].mxu0 }
 0xc04   : > { %v4134_v17 = vsub.f32 0.0, %v4131_v3 }
 0xc06   : > { %v4135_v41 = vmul.f32 1.442695, %v4134_v17 }
 0xc08   : > { %5952 = vpow2.f32 %v4135_v41 }
 0xc12   : > { %v5953_v52 = vpop.eup %5952 }
 0xc13   : > { %v4137_v63 = vadd.f32 1.0, %v5953_v52 }
 0xc15   : > { %5954 = vrcp.f32 %v4137_v63  ;;  %v4379_v63 = vld [vmem:[%s6190_s12] sm:$0x1] }
 0xc1f   : > { %v5955_v29 = vpop.eup %5954 }
 0xc20   : > { %v4142_v5 = vrot.slane %v5955_v29, %v8035_v43 }
 0xc22   : > { %v4143_v59 = vmul.f32 %v4142_v5, %v7710_v53  ;;  %v4144_v0 = vmul.f32 %v4142_v5, %v7712_v21 }
 0xc24   : > { %5261 = vmatprep.mubr.f32.mxu1 %v4143_v59 }
 0xc25   : > { %5262 = vmatmul.mubr.f32.vlgmr.msra.gmra.mrb[16].mxu1 %v4144_v0 }
 0xc26   : > { %5331 = vmatprep.mubr.msk.f32.mxu1 %vm6011_vm1, %v7648_v46  ;;  %v4363_v46 = vld [vmem:[%s6185_s4] sm:$0xff] }
 0xc27   : > { %v5679_v6 = vpack.c.bf16 %v4364_v62, %v4363_v46 }
 0xc29   : > { %5680 = vmatpush3.bf16.msra.mxu1 %v5679_v6 }
 0xc2a   : > { %5681 = vmatprep.subr.bf16.mxu1 %v7877_v55 }
 0xc2d   : > { %5683 = vmatpush3.bf16.msra.mxu1 %v5682_v18 }
 0xc2e   : > { %5684 = vmatprep.subr.bf16.mxu1 %v7877_v55 }
 0xcf8   : > { %v5263_v43 = vpop.f32.mrb[16].mxu1 }
 0xcf9   : > { %v4240_v15 = vadd.f32 %v5263_v43, %v4585_v39  ;;  %v4234_v53 = vpop.f32.mrb[17].mxu1 }
 0xcfa   : > { %v4235_v21 = vadd.f32 %v4585_v39, %v4234_v53 }
 0xcfb   : > { %v4244_v27 = vadd.f32 %v4240_v15, %v7658_v51  ;;  %v4368_v51 = vld [vmem:[%s6185_s4 + $0x28] sm:$0xff] }
 0xcfc   : > { %v4243_v49 = vadd.f32 %v4235_v21, %v7656_v56  ;;  %v4367_v56 = vld [vmem:[%s6185_s4 + $0x20] sm:$0xff] }
 0xcfd   : > { %v5685_v23 = vpack.c.bf16 %v4368_v51, %v4367_v56 }
 0xcfe   : > { %5296 = vmatprep.mubr.f32.mxu0 %v4243_v49 }
 0xcff   : > { %5297 = vmatmul.mubr.f32.vlgmr.msra.gmra.mrb[24].mxu0 %v4244_v27  ;;  %5686 = vmatpush3.bf16.msra.mxu1 %v5685_v23 }
 0xd00   : > { %5687 = vmatprep.subr.bf16.mxu1 %v7877_v55 }
 0xd03   : > { %5689 = vmatpush3.bf16.msra.mxu1 %v5688_v35 }
 0xd04   : > { %5690 = vmatprep.subr.bf16.mxu1 %v7877_v55 }
 0xd07   : > { %5692 = vmatpush3.bf16.msra.mxu1 %v5691_v22 }
 0xd08   : > { %5693 = vmatprep.subr.bf16.mxu1 %v7877_v55 }
 0xd0b   : > { %5695 = vmatpush3.bf16.msra.mxu1 %v5694_v54 }
 0xd0c   : > { %5696 = vmatprep.subr.bf16.mxu1 %v7877_v55 }
 0xd0f   : > { %5698 = vmatpush3.bf16.msra.mxu1 %v5697_v1 }
 0xd10   : > { %5699 = vmatprep.subr.bf16.mxu1 %v7877_v55 }
 0xd13   : > { %5701 = vmatpush3.bf16.msra.mxu1 %v5700_v9 }
 0xdd2   : > { %v5298_v32 = vpop.f32.mrb[24].mxu0 }
 0xdd3   : > { %v4340_v10 = vadd.f32 %v5298_v32, %v4586_v12  ;;  %v4334_v50 = vpop.f32.mrb[25].mxu0 }
 0xdd4   : > { %v4335_v44 = vadd.f32 %v4586_v12, %v4334_v50 }
 0xdd5   : > { %v4344_v45 = vsub.f32 0.0, %v4340_v10 }
 0xdd6   : > { %v4343_v36 = vsub.f32 0.0, %v4335_v44 }
 0xdd7   : > { %v4347_v25 = vmul.f32 1.442695, %v4344_v45 }
 0xdd8   : > { %v4345_v61 = vmul.f32 1.442695, %v4343_v36 }
 0xdd9   : > { %5956 = vpow2.f32 %v4347_v25 }
 0xdda   : > { %5958 = vpow2.f32 %v4345_v61 }
 0xde3   : > { %v5957_v20 = vpop.eup %5956 }
 0xde4   : > { %v5959_v28 = vpop.eup %5958  ;;  %v4350_v2 = vadd.f32 1.0, %v5957_v20 }
 0xde5   : > { %v4349_v11 = vadd.f32 1.0, %v5959_v28 }
 0xde6   : > { %5960 = vrcp.f32 %v4350_v2 }
 0xde7   : > { %5962 = vrcp.f32 %v4349_v11 }
 0xdf0   : > { %v5961_v55 = vpop.eup %5960 }
 0xdf1   : > { %v5963_v34 = vpop.eup %5962  ;;  %v4354_v14 = vmul.f32 %v5961_v55, %v4340_v10 }
 0xdf2   : > { %v4353_v24 = vmul.f32 %v5963_v34, %v4335_v44 }
 0xdf4   : > { %v4355_v38 = vadd.f32 %v4354_v14, %v4353_v24 }
 0xdf6   : > { %v4356_v60 = vrot.slane %v4355_v38, 4 }
 0xdf8   : > { %v4357_v31 = vadd.f32 %v4356_v60, %v4355_v38 }
 0xdfa   : > { %v4358_v3 = vrot.slane %v4357_v31, 2 }
 0xdfc   : > { %v4359_v37 = vadd.f32 %v4358_v3, %v4357_v31 }
 0xdfe   : > { %v4360_v17 = vrot.slane %v4359_v37, 1 }
 0xe00   : > { %v4361_v41 = vadd.f32 %v4360_v17, %v4359_v37 }
 0xe02   : > { %v4362_v52 = vmul.f32 0.0625, %v4361_v41 }
 0xe04   : > { %5332 = vmatmul.mubr.f32.vlgmr.msra.gmra.mrb[18].mxu1 %v4362_v52 }
 0xed7   : > { %v4446_v29 = vpop.f32.mrb[18].mxu1 }
 0xed8   : > { %v4447_v5 = vadd.f32 %v4446_v29, %v4379_v63  ;;  %v5333_v59 = vpop.f32.mrb[19].mxu1 }
 0xeda   : > { %4450 = vst [vmem:[%s1066_s0] sm:$0x1] %v4447_v5 }
 0xedb PF: > { %s81_s22 = sadd.s32 1, %s5972_s22  }
 0xedc   : > { %p78_p4 = scmp.ge.s32.totalorder %s81_s22, 4  }
 0xede   :  { %80 = sbr.rel (!%p78_p4) target bundleno = 65 (0x41), region = 245 }

</bundles_post_ra>
